<compile_context>
chip_gen: v6e
topology: v6e:2x2x1
jax: 0.10.0
libtpu: 0.0.40
codegen_flags: <defaults>
</compile_context>

<pallas_src>
import functools

import numpy as np
import jax
import jax.numpy as jnp
from jax.experimental import pallas as pl
from jax.experimental.pallas import tpu as pltpu

# Architecture is fixed by the module: 2 upsamples + 4 stride-2 deconvs => 64x64 output.
_OUT_HW = 64
_SPATIAL = _OUT_HW * _OUT_HW                       # 4096 pixels / sample
# Per-sample lane index = u1*4^5 + k1*4^4 + u2*4^3 + k2*4^2 + k3*4 + k4
# (u* = upsample copy digits, k* = deconv (kh,kw) digits).  Bit shift of each
# deconv layer's base-4 digit inside that 12-bit lane index:
_DECONV_SHIFTS = (8, 4, 2, 0)


def _round_up(x, m):
    return (x + m - 1) // m * m


# ---------------------------------------------------------------------------
# Fused whole-decoder kernel
# ---------------------------------------------------------------------------
def _decoder_kernel(x_ref, w1_ref, s1_ref, w2_ref, s2_ref, w3_ref, s3_ref,
                    w4_ref, s4_ref, o_ref, *, coutps, n_sigmoid):
    n_final = o_ref.shape[1]
    lane = jax.lax.broadcasted_iota(jnp.int32, (1, n_final), 1)

    def deconv(x, w_ref, s_ref, coutp, shift, leaky):
        # ConvTranspose2d(k=2, s=2) == one matmul; Wt rows = (kh*2+kw)*coutp + co.
        y = jnp.dot(w_ref[...], x.astype(jnp.bfloat16),
                    preferred_element_type=jnp.float32)          # (4*coutp, N) f32
        # Depth-to-space: this layer's base-4 lane digit picks the (kh,kw) row block.
        g = (lane >> shift) & 3
        y = jnp.where(g == 0, y[0 * coutp:1 * coutp, :],
            jnp.where(g == 1, y[1 * coutp:2 * coutp, :],
            jnp.where(g == 2, y[2 * coutp:3 * coutp, :],
                              y[3 * coutp:4 * coutp, :])))
        y = y + s_ref[...]                      # bias / folded-BN shift (f32)
        if leaky:
            y = jnp.where(y >= 0.0, y, 0.01 * y)   # LeakyReLU(0.01)
        return y

    x = x_ref[...]        # (nz_pad, N) bf16, replicated across undecided sub-pixel bits
    # nn.UpsamplingNearest2d(2) is the identity on this replicated representation.
    x = deconv(x, w1_ref, s1_ref, coutps[0], _DECONV_SHIFTS[0], True)
    # (second UpsamplingNearest2d(2): identity again)
    x = deconv(x, w2_ref, s2_ref, coutps[1], _DECONV_SHIFTS[1], True)
    x = deconv(x, w3_ref, s3_ref, coutps[2], _DECONV_SHIFTS[2], True)
    x = deconv(x, w4_ref, s4_ref, coutps[3], _DECONV_SHIFTS[3], False)

    # Fused sigmoid over the "means" channels (rows 0..2); EUP slot, essentially free.
    row = jax.lax.broadcasted_iota(jnp.int32, (x.shape[0], 1), 0)
    x = jnp.where(row < n_sigmoid, jax.nn.sigmoid(x), x)
    o_ref[...] = x.astype(o_ref.dtype)


# ---------------------------------------------------------------------------
# Parameters: deterministic synthetic init in PyTorch layouts, then packed
# ---------------------------------------------------------------------------
def init_raw_params(key, nz, nc, ngf):
    chans = [(nz, ngf // 2), (ngf // 2, ngf // 4),
             (ngf // 4, ngf // 8), (ngf // 8, nc)]
    raw = []
    for i, (cin, cout) in enumerate(chans):
        key, k1, k2, k3, k4, k5, k6 = jax.random.split(key, 7)
        layer = {
            # nn.ConvTranspose2d weight layout: (Cin, Cout, kH, kW)
            "W": 0.1 * jax.random.normal(k1, (cin, cout, 2, 2), jnp.float32),
            "bn": None,
            "bias": None,
        }
        if i < 3:   # BatchNorm2d (eval / running stats) + LeakyReLU layers
            layer["bn"] = (
                1.0 + 0.1 * jax.random.normal(k2, (cout,), jnp.float32),       # gamma
                0.1 * jax.random.normal(k3, (cout,), jnp.float32),             # beta
                0.1 * jax.random.normal(k4, (cout,), jnp.float32),             # mean
                jnp.abs(jax.random.normal(k5, (cout,), jnp.float32)) + 1.0,    # var
            )
        else:       # last ConvTranspose2d: bias=True, no BN, no activation
            layer["bias"] = 0.1 * jax.random.normal(k6, (cout,), jnp.float32)
        raw.append(layer)
    return raw


def pack_params(raw, nz, nc, eps=1e-5):
    """Fold BN scale into the weights, pad channels to sublane multiples, cast bf16."""
    layers, coutps = [], []
    cinp = _round_up(nz, 8)
    nzp = cinp
    for lp in raw:
        W = lp["W"]
        cin, cout = W.shape[0], W.shape[1]
        coutp = _round_up(cout, 8)
        if lp["bn"] is not None:
            gamma, beta, mean, var = lp["bn"]
            sc = gamma / jnp.sqrt(var + eps)       # eval-mode BatchNorm
            sh = beta - mean * sc
        else:
            sc = jnp.ones((cout,), jnp.float32)
            sh = lp["bias"]
        # (Cin, Cout, kh, kw) -> (kh, kw, Cout, Cin), fold BN scale per out-channel,
        # zero-pad channels, flatten rows as (kh*2 + kw)*coutp + co.
        wt = jnp.zeros((2, 2, coutp, cinp), jnp.float32)
        wt = wt.at[:, :, :cout, :cin].set(
            jnp.transpose(W, (2, 3, 1, 0)) * sc[None, None, :, None])
        wt = wt.reshape(4 * coutp, cinp).astype(jnp.bfloat16)
        shift = jnp.zeros((coutp, 1), jnp.float32).at[:cout, 0].set(sh)
        layers.append((wt, shift))
        coutps.append(coutp)
        cinp = coutp                               # next layer's padded Cin
    return {"layers": layers, "nzp": nzp, "coutps": tuple(coutps), "nc": nc}


# ---------------------------------------------------------------------------
# Forward pass (matches ConvDecoder.forward)
# ---------------------------------------------------------------------------
def _raster_to_lane_index():
    """Map output pixel (y, x) -> per-sample lane index in the kernel's layout."""
    yy, xx = np.meshgrid(np.arange(_OUT_HW), np.arange(_OUT_HW), indexing="ij")
    s = np.zeros((_OUT_HW, _OUT_HW), np.int64)
    for d in range(6):                  # d=0: most-significant base-4 digit (u1)
        ybit = (yy >> (5 - d)) & 1      # kh / uy bit
        xbit = (xx >> (5 - d)) & 1      # kw / ux bit
        s = s * 4 + (ybit * 2 + xbit)
    return jnp.asarray(s.reshape(-1), jnp.int32)


def conv_decoder_forward(z, params):
    """z: (B, nz) -> (means, scales), each (B, 3, 64, 64) NCHW like PyTorch."""
    layers = params["layers"]
    nzp, coutps, nc = params["nzp"], params["coutps"], params["nc"]
    coutp_last = coutps[-1]

    B = z.shape[0]
    z = z.reshape(B, -1)                # same as torch reshape(B, -1, 1, 1)
    nz = z.shape[1]
    n_final = B * _SPATIAL

    # Channel-major, channel-padded, bf16, replicated over the 4096 yet-undecided
    # sub-pixel lanes of each sample: x0[c, b*4096 + s] = z[b, c].
    zt = jnp.zeros((nzp, B), jnp.float32).at[:nz, :].set(z.T)
    x0 = jnp.repeat(zt.astype(jnp.bfloat16), _SPATIAL, axis=1)   # (nzp, n_final)

    operands = [x0]
    for wt, sh in layers:
        operands += [wt, sh]

    kern = functools.partial(_decoder_kernel, coutps=coutps, n_sigmoid=3)
    out_cm = pl.pallas_call(
        kern,
        out_shape=jax.ShapeDtypeStruct((coutp_last, n_final), jnp.float32),
        grid=(1,),                                   # whole decoder, one fused step
        in_specs=[pl.BlockSpec(op.shape, lambda i: (0, 0)) for op in operands],
        out_specs=pl.BlockSpec((coutp_last, n_final), lambda i: (0, 0)),
        compiler_params=pltpu.CompilerParams(dimension_semantics=("arbitrary",)),
    )(*operands)

    # Unscramble the base-4 digit layout to NCHW raster order (tiny XLA gather +
    # transpose; everything upstream stayed in VMEM).
    idx = _raster_to_lane_index()
    x = out_cm.reshape(coutp_last, B, _SPATIAL)[:, :, idx]
    x = x.reshape(coutp_last, B, _OUT_HW, _OUT_HW).transpose(1, 0, 2, 3)[:, :nc]
    means = x[:, 0:3]                   # sigmoid already applied inside the kernel
    scales = x[:, 3:6]
    return means, scales


# ---------------------------------------------------------------------------
# Pure-JAX reference (mirrors the PyTorch module; bf16 matmul inputs to match
# the kernel's precision choice)
# ---------------------------------------------------------------------------
def ref_forward(z, raw, eps=1e-5):
    B = z.shape[0]
    x = z.reshape(B, 1, 1, -1)                         # NHWC

    def upsample(x):
        b, h, w, c = x.shape
        x = jnp.broadcast_to(x[:, :, None, :, None, :], (b, h, 2, w, 2, c))
        return x.reshape(b, 2 * h, 2 * w, c)

    def deconv(x, W, bias):
        b, h, w, _ = x.shape
        cout = W.shape[1]
        y = jnp.einsum("bhwi,iokl->bhwklo",
                       x.astype(jnp.bfloat16), W.astype(jnp.bfloat16),
                       preferred_element_type=jnp.float32)
        y = y.transpose(0, 1, 3, 2, 4, 5).reshape(b, 2 * h, 2 * w, cout)
        return y if bias is None else y + bias

    for i, lp in enumerate(raw):
        if i in (0, 1):                                # upsample before layers 0 and 1
            x = upsample(x)
        x = deconv(x, lp["W"], lp["bias"])
        if lp["bn"] is not None:
            gamma, beta, mean, var = lp["bn"]
            x = (x - mean) / jnp.sqrt(var + eps) * gamma + beta
            x = jnp.where(x >= 0, x, 0.01 * x)
    out = x.transpose(0, 3, 1, 2)                      # NCHW
    return jax.nn.sigmoid(out[:, 0:3]), out[:, 3:6]


if __name__ == "__main__":
    # small but structurally faithful config
    B, nz, nc, ngf = 2, 32, 6, 32
    key = jax.random.PRNGKey(0)
    kz, kp = jax.random.split(key)

    z = jax.random.normal(kz, (B, nz), jnp.float32)
    raw = init_raw_params(kp, nz, nc, ngf)
    params = pack_params(raw, nz, nc)

    fwd = jax.jit(lambda zz: conv_decoder_forward(zz, params))
    means, scales = fwd(z)
    jax.block_until_ready((means, scales))

    # shapes match the PyTorch module output
    assert means.shape == (B, 3, _OUT_HW, _OUT_HW)
    assert scales.shape == (B, 3, _OUT_HW, _OUT_HW)

    # correctness vs. pure-JAX reference of the same forward
    ref_means, ref_scales = jax.jit(lambda zz: ref_forward(zz, raw))(z)
    assert jnp.allclose(means, ref_means, rtol=3e-2, atol=2e-2), \
        float(jnp.max(jnp.abs(means - ref_means)))
    assert jnp.allclose(scales, ref_scales, rtol=3e-2, atol=2e-2), \
        float(jnp.max(jnp.abs(scales - ref_scales)))

    print("KERNEL_OK")
</pallas_src>

<mosaic_0001>
module attributes {stable_mosaic.version = 11 : i64} {
  func.func @_decoder_kernel(%arg0: i32, %arg1: memref<32x8192xbf16, #tpu.memory_space<vmem>>, %arg2: memref<64x32xbf16, #tpu.memory_space<vmem>>, %arg3: memref<16x1xf32, #tpu.memory_space<vmem>>, %arg4: memref<32x16xbf16, #tpu.memory_space<vmem>>, %arg5: memref<8x1xf32, #tpu.memory_space<vmem>>, %arg6: memref<32x8xbf16, #tpu.memory_space<vmem>>, %arg7: memref<8x1xf32, #tpu.memory_space<vmem>>, %arg8: memref<32x8xbf16, #tpu.memory_space<vmem>>, %arg9: memref<8x1xf32, #tpu.memory_space<vmem>>, %arg10: memref<8x8192xf32, #tpu.memory_space<vmem>>) attributes {dimension_semantics = [#tpu.dimension_semantics<arbitrary>], iteration_bounds = array<i64: 1>, scalar_prefetch = 0 : i64, scratch_operands = 0 : i64, tpu.core_type = #tpu.core_type<tc>, window_params = [{pipeline_mode = #tpu.pipeline_mode<synchronous>, transform_indices = @transform_0, window_bounds = array<i64: 32, 8192>}, {pipeline_mode = #tpu.pipeline_mode<synchronous>, transform_indices = @transform_1, window_bounds = array<i64: 64, 32>}, {pipeline_mode = #tpu.pipeline_mode<synchronous>, transform_indices = @transform_2, window_bounds = array<i64: 16, 1>}, {pipeline_mode = #tpu.pipeline_mode<synchronous>, transform_indices = @transform_3, window_bounds = array<i64: 32, 16>}, {pipeline_mode = #tpu.pipeline_mode<synchronous>, transform_indices = @transform_4, window_bounds = array<i64: 8, 1>}, {pipeline_mode = #tpu.pipeline_mode<synchronous>, transform_indices = @transform_5, window_bounds = array<i64: 32, 8>}, {pipeline_mode = #tpu.pipeline_mode<synchronous>, transform_indices = @transform_6, window_bounds = array<i64: 8, 1>}, {pipeline_mode = #tpu.pipeline_mode<synchronous>, transform_indices = @transform_7, window_bounds = array<i64: 32, 8>}, {pipeline_mode = #tpu.pipeline_mode<synchronous>, transform_indices = @transform_8, window_bounds = array<i64: 8, 1>}, {pipeline_mode = #tpu.pipeline_mode<synchronous>, transform_indices = @transform_9, window_bounds = array<i64: 8, 8192>}]} {
    %0 = tpu.iota {dimensions = array<i32: 1>} : vector<1x8192xi32>
    %c0 = arith.constant 0 : index
    %c0_0 = arith.constant 0 : index
    %1 = vector.load %arg1[%c0, %c0_0] : memref<32x8192xbf16, #tpu.memory_space<vmem>>, vector<32x8192xbf16>
    %c0_1 = arith.constant 0 : index
    %c0_2 = arith.constant 0 : index
    %2 = vector.load %arg2[%c0_1, %c0_2] : memref<64x32xbf16, #tpu.memory_space<vmem>>, vector<64x32xbf16>
    %cst = arith.constant dense<0.000000e+00> : vector<64x8192xf32>
    %3 = tpu.matmul %2, %1, %cst {dimension_numbers = #tpu.dot_dimension_numbers<[1], [0], [0], [1], [0, 0, 1, 1], [], []>} : vector<64x32xbf16>, vector<32x8192xbf16>, vector<64x8192xf32> -> vector<64x8192xf32>
    %c8_i32 = arith.constant 8 : i32
    %4 = vector.broadcast %c8_i32 : i32 to vector<1x8192xi32>
    %5 = arith.shrsi %0, %4 : vector<1x8192xi32>
    %c3_i32 = arith.constant 3 : i32
    %6 = vector.broadcast %c3_i32 : i32 to vector<1x8192xi32>
    %7 = arith.andi %5, %6 : vector<1x8192xi32>
    %c0_i32 = arith.constant 0 : i32
    %8 = vector.broadcast %c0_i32 : i32 to vector<1x8192xi32>
    %9 = arith.cmpi eq, %7, %8 : vector<1x8192xi32>
    %10 = vector.extract_strided_slice %3 {offsets = [0, 0], sizes = [16, 8192], strides = [1, 1]} : vector<64x8192xf32> to vector<16x8192xf32>
    %c1_i32 = arith.constant 1 : i32
    %11 = vector.broadcast %c1_i32 : i32 to vector<1x8192xi32>
    %12 = arith.cmpi eq, %7, %11 : vector<1x8192xi32>
    %13 = vector.extract_strided_slice %3 {offsets = [16, 0], sizes = [16, 8192], strides = [1, 1]} : vector<64x8192xf32> to vector<16x8192xf32>
    %c2_i32 = arith.constant 2 : i32
    %14 = vector.broadcast %c2_i32 : i32 to vector<1x8192xi32>
    %15 = arith.cmpi eq, %7, %14 : vector<1x8192xi32>
    %16 = vector.extract_strided_slice %3 {offsets = [32, 0], sizes = [16, 8192], strides = [1, 1]} : vector<64x8192xf32> to vector<16x8192xf32>
    %17 = vector.extract_strided_slice %3 {offsets = [48, 0], sizes = [16, 8192], strides = [1, 1]} : vector<64x8192xf32> to vector<16x8192xf32>
    %18 = vector.shape_cast %15 : vector<1x8192xi1> to vector<1x8192xi1>
    %19 = vector.broadcast %18 : vector<1x8192xi1> to vector<16x8192xi1>
    %20 = arith.select %19, %16, %17 : vector<16x8192xi1>, vector<16x8192xf32>
    %21 = vector.shape_cast %12 : vector<1x8192xi1> to vector<1x8192xi1>
    %22 = vector.broadcast %21 : vector<1x8192xi1> to vector<16x8192xi1>
    %23 = arith.select %22, %13, %20 : vector<16x8192xi1>, vector<16x8192xf32>
    %24 = vector.shape_cast %9 : vector<1x8192xi1> to vector<1x8192xi1>
    %25 = vector.broadcast %24 : vector<1x8192xi1> to vector<16x8192xi1>
    %26 = arith.select %25, %10, %23 : vector<16x8192xi1>, vector<16x8192xf32>
    %c0_3 = arith.constant 0 : index
    %c0_4 = arith.constant 0 : index
    %27 = vector.load %arg3[%c0_3, %c0_4] : memref<16x1xf32, #tpu.memory_space<vmem>>, vector<16x1xf32>
    %28 = vector.broadcast %27 : vector<16x1xf32> to vector<16x8192xf32>
    %29 = arith.addf %26, %28 : vector<16x8192xf32>
    %cst_5 = arith.constant 0.000000e+00 : f32
    %30 = vector.broadcast %cst_5 : f32 to vector<16x8192xf32>
    %31 = arith.cmpf oge, %29, %30 : vector<16x8192xf32>
    %cst_6 = arith.constant 0.00999999977 : f32
    %32 = vector.broadcast %cst_6 : f32 to vector<16x8192xf32>
    %33 = arith.mulf %32, %29 : vector<16x8192xf32>
    %34 = arith.select %31, %29, %33 : vector<16x8192xi1>, vector<16x8192xf32>
    %c0_7 = arith.constant 0 : index
    %c0_8 = arith.constant 0 : index
    %35 = vector.load %arg4[%c0_7, %c0_8] : memref<32x16xbf16, #tpu.memory_space<vmem>>, vector<32x16xbf16>
    %36 = arith.truncf %34 : vector<16x8192xf32> to vector<16x8192xbf16>
    %cst_9 = arith.constant dense<0.000000e+00> : vector<32x8192xf32>
    %37 = tpu.matmul %35, %36, %cst_9 {dimension_numbers = #tpu.dot_dimension_numbers<[1], [0], [0], [1], [0, 0, 1, 1], [], []>} : vector<32x16xbf16>, vector<16x8192xbf16>, vector<32x8192xf32> -> vector<32x8192xf32>
    %c4_i32 = arith.constant 4 : i32
    %38 = vector.broadcast %c4_i32 : i32 to vector<1x8192xi32>
    %39 = arith.shrsi %0, %38 : vector<1x8192xi32>
    %c3_i32_10 = arith.constant 3 : i32
    %40 = vector.broadcast %c3_i32_10 : i32 to vector<1x8192xi32>
    %41 = arith.andi %39, %40 : vector<1x8192xi32>
    %c0_i32_11 = arith.constant 0 : i32
    %42 = vector.broadcast %c0_i32_11 : i32 to vector<1x8192xi32>
    %43 = arith.cmpi eq, %41, %42 : vector<1x8192xi32>
    %44 = vector.extract_strided_slice %37 {offsets = [0, 0], sizes = [8, 8192], strides = [1, 1]} : vector<32x8192xf32> to vector<8x8192xf32>
    %c1_i32_12 = arith.constant 1 : i32
    %45 = vector.broadcast %c1_i32_12 : i32 to vector<1x8192xi32>
    %46 = arith.cmpi eq, %41, %45 : vector<1x8192xi32>
    %47 = vector.extract_strided_slice %37 {offsets = [8, 0], sizes = [8, 8192], strides = [1, 1]} : vector<32x8192xf32> to vector<8x8192xf32>
    %c2_i32_13 = arith.constant 2 : i32
    %48 = vector.broadcast %c2_i32_13 : i32 to vector<1x8192xi32>
    %49 = arith.cmpi eq, %41, %48 : vector<1x8192xi32>
    %50 = vector.extract_strided_slice %37 {offsets = [16, 0], sizes = [8, 8192], strides = [1, 1]} : vector<32x8192xf32> to vector<8x8192xf32>
    %51 = vector.extract_strided_slice %37 {offsets = [24, 0], sizes = [8, 8192], strides = [1, 1]} : vector<32x8192xf32> to vector<8x8192xf32>
    %52 = vector.shape_cast %49 : vector<1x8192xi1> to vector<1x8192xi1>
    %53 = vector.broadcast %52 : vector<1x8192xi1> to vector<8x8192xi1>
    %54 = arith.select %53, %50, %51 : vector<8x8192xi1>, vector<8x8192xf32>
    %55 = vector.shape_cast %46 : vector<1x8192xi1> to vector<1x8192xi1>
    %56 = vector.broadcast %55 : vector<1x8192xi1> to vector<8x8192xi1>
    %57 = arith.select %56, %47, %54 : vector<8x8192xi1>, vector<8x8192xf32>
    %58 = vector.shape_cast %43 : vector<1x8192xi1> to vector<1x8192xi1>
    %59 = vector.broadcast %58 : vector<1x8192xi1> to vector<8x8192xi1>
    %60 = arith.select %59, %44, %57 : vector<8x8192xi1>, vector<8x8192xf32>
    %c0_14 = arith.constant 0 : index
    %c0_15 = arith.constant 0 : index
    %61 = vector.load %arg5[%c0_14, %c0_15] : memref<8x1xf32, #tpu.memory_space<vmem>>, vector<8x1xf32>
    %62 = vector.broadcast %61 : vector<8x1xf32> to vector<8x8192xf32>
    %63 = arith.addf %60, %62 : vector<8x8192xf32>
    %cst_16 = arith.constant 0.000000e+00 : f32
    %64 = vector.broadcast %cst_16 : f32 to vector<8x8192xf32>
    %65 = arith.cmpf oge, %63, %64 : vector<8x8192xf32>
    %cst_17 = arith.constant 0.00999999977 : f32
    %66 = vector.broadcast %cst_17 : f32 to vector<8x8192xf32>
    %67 = arith.mulf %66, %63 : vector<8x8192xf32>
    %68 = arith.select %65, %63, %67 : vector<8x8192xi1>, vector<8x8192xf32>
    %c0_18 = arith.constant 0 : index
    %c0_19 = arith.constant 0 : index
    %69 = vector.load %arg6[%c0_18, %c0_19] : memref<32x8xbf16, #tpu.memory_space<vmem>>, vector<32x8xbf16>
    %70 = arith.truncf %68 : vector<8x8192xf32> to vector<8x8192xbf16>
    %cst_20 = arith.constant dense<0.000000e+00> : vector<32x8192xf32>
    %71 = tpu.matmul %69, %70, %cst_20 {dimension_numbers = #tpu.dot_dimension_numbers<[1], [0], [0], [1], [0, 0, 1, 1], [], []>} : vector<32x8xbf16>, vector<8x8192xbf16>, vector<32x8192xf32> -> vector<32x8192xf32>
    %c2_i32_21 = arith.constant 2 : i32
    %72 = vector.broadcast %c2_i32_21 : i32 to vector<1x8192xi32>
    %73 = arith.shrsi %0, %72 : vector<1x8192xi32>
    %c3_i32_22 = arith.constant 3 : i32
    %74 = vector.broadcast %c3_i32_22 : i32 to vector<1x8192xi32>
    %75 = arith.andi %73, %74 : vector<1x8192xi32>
    %c0_i32_23 = arith.constant 0 : i32
    %76 = vector.broadcast %c0_i32_23 : i32 to vector<1x8192xi32>
    %77 = arith.cmpi eq, %75, %76 : vector<1x8192xi32>
    %78 = vector.extract_strided_slice %71 {offsets = [0, 0], sizes = [8, 8192], strides = [1, 1]} : vector<32x8192xf32> to vector<8x8192xf32>
    %c1_i32_24 = arith.constant 1 : i32
    %79 = vector.broadcast %c1_i32_24 : i32 to vector<1x8192xi32>
    %80 = arith.cmpi eq, %75, %79 : vector<1x8192xi32>
    %81 = vector.extract_strided_slice %71 {offsets = [8, 0], sizes = [8, 8192], strides = [1, 1]} : vector<32x8192xf32> to vector<8x8192xf32>
    %c2_i32_25 = arith.constant 2 : i32
    %82 = vector.broadcast %c2_i32_25 : i32 to vector<1x8192xi32>
    %83 = arith.cmpi eq, %75, %82 : vector<1x8192xi32>
    %84 = vector.extract_strided_slice %71 {offsets = [16, 0], sizes = [8, 8192], strides = [1, 1]} : vector<32x8192xf32> to vector<8x8192xf32>
    %85 = vector.extract_strided_slice %71 {offsets = [24, 0], sizes = [8, 8192], strides = [1, 1]} : vector<32x8192xf32> to vector<8x8192xf32>
    %86 = vector.shape_cast %83 : vector<1x8192xi1> to vector<1x8192xi1>
    %87 = vector.broadcast %86 : vector<1x8192xi1> to vector<8x8192xi1>
    %88 = arith.select %87, %84, %85 : vector<8x8192xi1>, vector<8x8192xf32>
    %89 = vector.shape_cast %80 : vector<1x8192xi1> to vector<1x8192xi1>
    %90 = vector.broadcast %89 : vector<1x8192xi1> to vector<8x8192xi1>
    %91 = arith.select %90, %81, %88 : vector<8x8192xi1>, vector<8x8192xf32>
    %92 = vector.shape_cast %77 : vector<1x8192xi1> to vector<1x8192xi1>
    %93 = vector.broadcast %92 : vector<1x8192xi1> to vector<8x8192xi1>
    %94 = arith.select %93, %78, %91 : vector<8x8192xi1>, vector<8x8192xf32>
    %c0_26 = arith.constant 0 : index
    %c0_27 = arith.constant 0 : index
    %95 = vector.load %arg7[%c0_26, %c0_27] : memref<8x1xf32, #tpu.memory_space<vmem>>, vector<8x1xf32>
    %96 = vector.broadcast %95 : vector<8x1xf32> to vector<8x8192xf32>
    %97 = arith.addf %94, %96 : vector<8x8192xf32>
    %cst_28 = arith.constant 0.000000e+00 : f32
    %98 = vector.broadcast %cst_28 : f32 to vector<8x8192xf32>
    %99 = arith.cmpf oge, %97, %98 : vector<8x8192xf32>
    %cst_29 = arith.constant 0.00999999977 : f32
    %100 = vector.broadcast %cst_29 : f32 to vector<8x8192xf32>
    %101 = arith.mulf %100, %97 : vector<8x8192xf32>
    %102 = arith.select %99, %97, %101 : vector<8x8192xi1>, vector<8x8192xf32>
    %c0_30 = arith.constant 0 : index
    %c0_31 = arith.constant 0 : index
    %103 = vector.load %arg8[%c0_30, %c0_31] : memref<32x8xbf16, #tpu.memory_space<vmem>>, vector<32x8xbf16>
    %104 = arith.truncf %102 : vector<8x8192xf32> to vector<8x8192xbf16>
    %cst_32 = arith.constant dense<0.000000e+00> : vector<32x8192xf32>
    %105 = tpu.matmul %103, %104, %cst_32 {dimension_numbers = #tpu.dot_dimension_numbers<[1], [0], [0], [1], [0, 0, 1, 1], [], []>} : vector<32x8xbf16>, vector<8x8192xbf16>, vector<32x8192xf32> -> vector<32x8192xf32>
    %c0_i32_33 = arith.constant 0 : i32
    %106 = vector.broadcast %c0_i32_33 : i32 to vector<1x8192xi32>
    %107 = arith.shrsi %0, %106 : vector<1x8192xi32>
    %c3_i32_34 = arith.constant 3 : i32
    %108 = vector.broadcast %c3_i32_34 : i32 to vector<1x8192xi32>
    %109 = arith.andi %107, %108 : vector<1x8192xi32>
    %c0_i32_35 = arith.constant 0 : i32
    %110 = vector.broadcast %c0_i32_35 : i32 to vector<1x8192xi32>
    %111 = arith.cmpi eq, %109, %110 : vector<1x8192xi32>
    %112 = vector.extract_strided_slice %105 {offsets = [0, 0], sizes = [8, 8192], strides = [1, 1]} : vector<32x8192xf32> to vector<8x8192xf32>
    %c1_i32_36 = arith.constant 1 : i32
    %113 = vector.broadcast %c1_i32_36 : i32 to vector<1x8192xi32>
    %114 = arith.cmpi eq, %109, %113 : vector<1x8192xi32>
    %115 = vector.extract_strided_slice %105 {offsets = [8, 0], sizes = [8, 8192], strides = [1, 1]} : vector<32x8192xf32> to vector<8x8192xf32>
    %c2_i32_37 = arith.constant 2 : i32
    %116 = vector.broadcast %c2_i32_37 : i32 to vector<1x8192xi32>
    %117 = arith.cmpi eq, %109, %116 : vector<1x8192xi32>
    %118 = vector.extract_strided_slice %105 {offsets = [16, 0], sizes = [8, 8192], strides = [1, 1]} : vector<32x8192xf32> to vector<8x8192xf32>
    %119 = vector.extract_strided_slice %105 {offsets = [24, 0], sizes = [8, 8192], strides = [1, 1]} : vector<32x8192xf32> to vector<8x8192xf32>
    %120 = vector.shape_cast %117 : vector<1x8192xi1> to vector<1x8192xi1>
    %121 = vector.broadcast %120 : vector<1x8192xi1> to vector<8x8192xi1>
    %122 = arith.select %121, %118, %119 : vector<8x8192xi1>, vector<8x8192xf32>
    %123 = vector.shape_cast %114 : vector<1x8192xi1> to vector<1x8192xi1>
    %124 = vector.broadcast %123 : vector<1x8192xi1> to vector<8x8192xi1>
    %125 = arith.select %124, %115, %122 : vector<8x8192xi1>, vector<8x8192xf32>
    %126 = vector.shape_cast %111 : vector<1x8192xi1> to vector<1x8192xi1>
    %127 = vector.broadcast %126 : vector<1x8192xi1> to vector<8x8192xi1>
    %128 = arith.select %127, %112, %125 : vector<8x8192xi1>, vector<8x8192xf32>
    %c0_38 = arith.constant 0 : index
    %c0_39 = arith.constant 0 : index
    %129 = vector.load %arg9[%c0_38, %c0_39] : memref<8x1xf32, #tpu.memory_space<vmem>>, vector<8x1xf32>
    %130 = vector.broadcast %129 : vector<8x1xf32> to vector<8x8192xf32>
    %131 = arith.addf %128, %130 : vector<8x8192xf32>
    %132 = tpu.iota {dimensions = array<i32: 0>} : vector<8x1xi32>
    %c3_i32_40 = arith.constant 3 : i32
    %133 = vector.broadcast %c3_i32_40 : i32 to vector<8x1xi32>
    %134 = arith.cmpi slt, %132, %133 : vector<8x1xi32>
    %135 = arith.negf %131 : vector<8x8192xf32>
    %136 = math.exp %135 : vector<8x8192xf32>
    %cst_41 = arith.constant 1.000000e+00 : f32
    %137 = vector.broadcast %cst_41 : f32 to vector<8x8192xf32>
    %138 = arith.addf %137, %136 : vector<8x8192xf32>
    %139 = arith.divf %137, %138 : vector<8x8192xf32>
    %140 = vector.shape_cast %134 : vector<8x1xi1> to vector<8x1xi1>
    %141 = vector.broadcast %140 : vector<8x1xi1> to vector<8x8192xi1>
    %142 = arith.select %141, %139, %131 : vector<8x8192xi1>, vector<8x8192xf32>
    %c0_42 = arith.constant 0 : index
    %c0_43 = arith.constant 0 : index
    %143 = vector.load %arg10[%c0_42, %c0_43] : memref<8x8192xf32, #tpu.memory_space<vmem>>, vector<8x8192xf32>
    tpu.vector_store %arg10[%c0_42, %c0_43], %142 {strides = array<i32>} : memref<8x8192xf32, #tpu.memory_space<vmem>>, vector<8x8192xf32>,
    return
  }
  func.func @transform_0(%arg0: i32) -> (i32, i32) {
    %c0_i32 = arith.constant 0 : i32
    %c0_i32_0 = arith.constant 0 : i32
    %c0_i32_1 = arith.constant 0 : i32
    return %c0_i32, %c0_i32_0 : i32, i32
  }
  func.func @transform_1(%arg0: i32) -> (i32, i32) {
    %c0_i32 = arith.constant 0 : i32
    %c0_i32_0 = arith.constant 0 : i32
    %c0_i32_1 = arith.constant 0 : i32
    return %c0_i32, %c0_i32_0 : i32, i32
  }
  func.func @transform_2(%arg0: i32) -> (i32, i32) {
    %c0_i32 = arith.constant 0 : i32
    %c0_i32_0 = arith.constant 0 : i32
    %c0_i32_1 = arith.constant 0 : i32
    return %c0_i32, %c0_i32_0 : i32, i32
  }
  func.func @transform_3(%arg0: i32) -> (i32, i32) {
    %c0_i32 = arith.constant 0 : i32
    %c0_i32_0 = arith.constant 0 : i32
    %c0_i32_1 = arith.constant 0 : i32
    return %c0_i32, %c0_i32_0 : i32, i32
  }
  func.func @transform_4(%arg0: i32) -> (i32, i32) {
    %c0_i32 = arith.constant 0 : i32
    %c0_i32_0 = arith.constant 0 : i32
    %c0_i32_1 = arith.constant 0 : i32
    return %c0_i32, %c0_i32_0 : i32, i32
  }
  func.func @transform_5(%arg0: i32) -> (i32, i32) {
    %c0_i32 = arith.constant 0 : i32
    %c0_i32_0 = arith.constant 0 : i32
    %c0_i32_1 = arith.constant 0 : i32
    return %c0_i32, %c0_i32_0 : i32, i32
  }
  func.func @transform_6(%arg0: i32) -> (i32, i32) {
    %c0_i32 = arith.constant 0 : i32
    %c0_i32_0 = arith.constant 0 : i32
    %c0_i32_1 = arith.constant 0 : i32
    return %c0_i32, %c0_i32_0 : i32, i32
  }
  func.func @transform_7(%arg0: i32) -> (i32, i32) {
    %c0_i32 = arith.constant 0 : i32
    %c0_i32_0 = arith.constant 0 : i32
    %c0_i32_1 = arith.constant 0 : i32
    return %c0_i32, %c0_i32_0 : i32, i32
  }
  func.func @transform_8(%arg0: i32) -> (i32, i32) {
    %c0_i32 = arith.constant 0 : i32
    %c0_i32_0 = arith.constant 0 : i32
    %c0_i32_1 = arith.constant 0 : i32
    return %c0_i32, %c0_i32_0 : i32, i32
  }
  func.func @transform_9(%arg0: i32) -> (i32, i32) {
    %c0_i32 = arith.constant 0 : i32
    %c0_i32_0 = arith.constant 0 : i32
    %c0_i32_1 = arith.constant 0 : i32
    return %c0_i32, %c0_i32_0 : i32, i32
  }
}

</mosaic_0001>

<bundles_post_ra>
// kernel: _lambda_.1
= control target key start
LH: loop header
LB: loop body
LE: loop exit
PB: predicated region body
PF: predicated region fallthrough
CT: control target
= control target key end

     0   :  { %14 = vsyncpa [#allocation3], 0  ;;  %s22546_s0 = inlined_call_operand.vmem [shape: bf16[32,8192], index: 0, kind: input, shape index: {}]   ;;  %s22547_s1 = inlined_call_operand.hbm [shape: bf16[64,32], index: 1, kind: input, shape index: {}]   ;;  %s22548_s2 = inlined_call_operand.hbm [shape: f32[16,1], index: 2, kind: input, shape index: {}]   ;;  %s22549_s3 = inlined_call_operand.hbm [shape: bf16[32,16], index: 3, kind: input, shape index: {}]   ;;  %s22550_s4 = inlined_call_operand.hbm [shape: f32[8,1], index: 4, kind: input, shape index: {}]   ;;  %s22551_s5 = inlined_call_operand.hbm [shape: bf16[32,8], index: 5, kind: input, shape index: {}]   ;;  %s22552_s6 = inlined_call_operand.hbm [shape: f32[8,1], index: 6, kind: input, shape index: {}]   ;;  %s22553_s7 = inlined_call_operand.hbm [shape: bf16[32,8], index: 7, kind: input, shape index: {}]   ;;  %s22554_s8 = inlined_call_operand.hbm [shape: f32[8,1], index: 8, kind: input, shape index: {}]   ;;  %s22555_s9 = inlined_call_operand.vmem [shape: f32[8,8192], index: 9, kind: output, shape index: {}]  }
   0x1   :  { %15 = vsyncpa [#allocation5], 0 }
   0x2   :  { %16 = vsyncpa [#allocation8], 0 }
   0x3   :  { %17 = vsyncpa [#allocation11], 0 }
   0x4   :  { %18 = vsyncpa [#allocation14], 0  ;;  %s15485_s30 = smov [#allocation4]  }
   0x5   :  { %s38_s10 = sshll.u32 %s15485_s30, 4  ;;  %s39_s10 = int_to_ptr.vmem [resolvable:$true] %s38_s10 }
   0x6   :  { %s15323_s11 = scalar_lea.vmem %s39_s10, 256  ;;  %p15328_p1 = scmp.lt.s32.totalorder %s39_s10, %s39_s10 }
   0x7   :  { %p15324_p0 = scmp.ne.s32.totalorder %s39_s10, %s15323_s11  ;;  %p15329_p2 = scmp.lt.s32.totalorder %s15323_s11, %s15323_s11 }
   0x9   :  { %p15330_p3 = por %p15329_p2, %p15328_p1 }
   0xb   :  { %p15331_p4 = pnand %p15330_p3, %p15324_p0 }
   0xd   :  { %15334 = shalt.err (!%p15331_p4)
}
   0xe   :  { %s15486_s12 = smov 128   ;;  %s15487_s13 = smov 8  }
   0xf   :  { %44 = dma.hbm_to_vmem [thread:$0]  %s22548_s2, 256, %s39_s10, [#allocation5], %s15486_s12, %s15486_s12, %s15487_s13  }
  0x10   :  { %s15488_s16 = smov [#allocation7]   ;;  %s15489_s18 = smov [#allocation10]  }
  0x11   :  { %s63_s17 = sshll.u32 %s15488_s16, 4  ;;  %s85_s19 = sshll.u32 %s15489_s18, 4  ;;  %s64_s17 = int_to_ptr.vmem [resolvable:$true] %s63_s17  ;;  %s86_s19 = int_to_ptr.vmem [resolvable:$true] %s85_s19 }
  0x12   :  { %s15343_s20 = scalar_lea.vmem %s64_s17, 128  ;;  %p15348_p6 = scmp.lt.s32.totalorder %s64_s17, %s64_s17 }
  0x13   :  { %p15344_p5 = scmp.ne.s32.totalorder %s64_s17, %s15343_s20  ;;  %p15349_p7 = scmp.lt.s32.totalorder %s15343_s20, %s15343_s20 }
  0x15   :  { %p15350_p8 = por %p15349_p7, %p15348_p6 }
  0x17   :  { %p15351_p9 = pnand %p15350_p8, %p15344_p5 }
  0x19   :  { %15354 = shalt.err (!%p15351_p9)
}
  0x1a   :  { %66 = dma.hbm_to_vmem [thread:$0]  %s22550_s4, 128, %s64_s17, [#allocation8]  }
  0x1b   :  { %s15363_s23 = scalar_lea.vmem %s86_s19, 128  ;;  %p15368_p11 = scmp.lt.s32.totalorder %s86_s19, %s86_s19 }
  0x1c   :  { %p15364_p10 = scmp.ne.s32.totalorder %s86_s19, %s15363_s23  ;;  %p15369_p12 = scmp.lt.s32.totalorder %s15363_s23, %s15363_s23 }
  0x1e   :  { %p15370_p13 = por %p15369_p12, %p15368_p11 }
  0x20   :  { %p15371_p0 = pnand %p15370_p13, %p15364_p10 }
  0x22   :  { %15374 = shalt.err (!%p15371_p0)
}
  0x23   :  { %88 = dma.hbm_to_vmem [thread:$0]  %s22552_s6, 128, %s86_s19, [#allocation11]  }
  0x24   :  { %s15490_s25 = smov [#allocation2]  }
  0x25   :  { %s26_s26 = sshll.u32 %s15490_s25, 4  ;;  %s27_s26 = int_to_ptr.vmem [resolvable:$true] %s26_s26 }
  0x26   :  { %s15383_s27 = scalar_lea.vmem %s27_s26, 512  ;;  %p15388_p2 = scmp.lt.s32.totalorder %s27_s26, %s27_s26 }
  0x27   :  { %p15384_p1 = scmp.ne.s32.totalorder %s27_s26, %s15383_s27  ;;  %p15389_p3 = scmp.lt.s32.totalorder %s15383_s27, %s15383_s27 }
  0x29   :  { %p15390_p4 = por %p15389_p3, %p15388_p2 }
  0x2b   :  { %p15391_p5 = pnand %p15390_p4, %p15384_p1 }
  0x2d   :  { %15394 = shalt.err (!%p15391_p5)
}
  0x2e   :  { %s15491_s4 = smov 64   ;;  %s15492_s28 = smov 4  }
  0x2f   :  { %32 = dma.hbm_to_vmem [thread:$0]  %s22547_s1, 512, %s27_s26, [#allocation3], %s15491_s4, %s15491_s4, %s15492_s28  }
  0x30   :  { %s15493_s6 = smov [#allocation6]   ;;  %s15494_s11 = smov [#allocation9]  }
  0x31   :  { %s50_s10 = sshll.u32 %s15493_s6, 4  ;;  %s72_s12 = sshll.u32 %s15494_s11, 4  ;;  %s51_s10 = int_to_ptr.vmem [resolvable:$true] %s50_s10  ;;  %s73_s12 = int_to_ptr.vmem [resolvable:$true] %s72_s12 }
  0x32   :  { %s15403_s13 = scalar_lea.vmem %s51_s10, 256  ;;  %p15408_p7 = scmp.lt.s32.totalorder %s51_s10, %s51_s10 }
  0x33   :  { %p15404_p6 = scmp.ne.s32.totalorder %s51_s10, %s15403_s13  ;;  %p15409_p8 = scmp.lt.s32.totalorder %s15403_s13, %s15403_s13 }
  0x35   :  { %p15410_p9 = por %p15409_p8, %p15408_p7 }
  0x37   :  { %p15411_p10 = pnand %p15410_p9, %p15404_p6 }
  0x39   :  { %15414 = shalt.err (!%p15411_p10)
}
  0x3a   :  { %56 = dma.hbm_to_vmem [thread:$0]  %s22549_s3, 256, %s51_s10, [#allocation5], %s15491_s4, %s15491_s4, %s15492_s28  }
  0x3b   :  { %s15423_s1 = scalar_lea.vmem %s73_s12, 256  ;;  %p15428_p12 = scmp.lt.s32.totalorder %s73_s12, %s73_s12 }
  0x3c   :  { %p15424_p11 = scmp.ne.s32.totalorder %s73_s12, %s15423_s1  ;;  %p15429_p13 = scmp.lt.s32.totalorder %s15423_s1, %s15423_s1 }
  0x3e   :  { %p15430_p0 = por %p15429_p13, %p15428_p12 }
  0x40   :  { %p15431_p1 = pnand %p15430_p0, %p15424_p11 }
  0x42   :  { %15434 = shalt.err (!%p15431_p1)
}
  0x43   :  { %78 = dma.hbm_to_vmem [thread:$0]  %s22551_s5, 256, %s73_s12, [#allocation8], %s15491_s4, %s15491_s4, %s15492_s28  }
  0x44   :  { %s15495_s18 = smov [#allocation12]   ;;  %s15496_s20 = smov [#allocation13]  }
  0x45   :  { %s94_s19 = sshll.u32 %s15495_s18, 4  ;;  %s107_s21 = sshll.u32 %s15496_s20, 4  ;;  %s95_s19 = int_to_ptr.vmem [resolvable:$true] %s94_s19  ;;  %s108_s21 = int_to_ptr.vmem [resolvable:$true] %s107_s21 }
  0x46   :  { %s15443_s3 = scalar_lea.vmem %s95_s19, 256  ;;  %p15448_p3 = scmp.lt.s32.totalorder %s95_s19, %s95_s19 }
  0x47   :  { %p15444_p2 = scmp.ne.s32.totalorder %s95_s19, %s15443_s3  ;;  %p15449_p4 = scmp.lt.s32.totalorder %s15443_s3, %s15443_s3 }
  0x49   :  { %p15450_p5 = por %p15449_p4, %p15448_p3 }
  0x4b   :  { %p15451_p6 = pnand %p15450_p5, %p15444_p2 }
  0x4d   :  { %15454 = shalt.err (!%p15451_p6)
}
  0x4e   :  { %100 = dma.hbm_to_vmem [thread:$0]  %s22553_s7, 256, %s95_s19, [#allocation11], %s15491_s4, %s15491_s4, %s15492_s28  }
  0x4f   :  { %s15463_s5 = scalar_lea.vmem %s108_s21, 128  ;;  %p15468_p8 = scmp.lt.s32.totalorder %s108_s21, %s108_s21 }
  0x50   :  { %p15464_p7 = scmp.ne.s32.totalorder %s108_s21, %s15463_s5  ;;  %p15469_p9 = scmp.lt.s32.totalorder %s15463_s5, %s15463_s5 }
  0x52   :  { %p15470_p10 = por %p15469_p9, %p15468_p8 }
  0x54   :  { %p15471_p11 = pnand %p15470_p10, %p15464_p7 }
  0x56   :  { %15474 = shalt.err (!%p15471_p11)
}
  0x57   :  { %110 = dma.hbm_to_vmem [thread:$0]  %s22554_s8, 128, %s108_s21, [#allocation14]  }
  0x58   :  { %15475 = dma.done.wait [#allocation3], 512  }
  0x59   :  { %15476 = vsyncadd [#allocation3], 4294966784 }
  0x5a   :  { %15477 = dma.done.wait [#allocation5], 512  }
  0x5b   :  { %15478 = vsyncadd [#allocation5], 4294966784 }
  0x5c   :  { %15479 = dma.done.wait [#allocation8], 384  }
  0x5d   :  { %15480 = vsyncadd [#allocation8], 4294966912 }
  0x5e   :  { %15481 = dma.done.wait [#allocation11], 384  }
  0x5f   :  { %15482 = vsyncadd [#allocation11], 4294966912 }
  0x60   :  { %15483 = dma.done.wait [#allocation14], 128  }
  0x61   :  { %15484 = vsyncadd [#allocation14], 4294967168  ;;  %v22569_v0 = vmov 0   ;;  %v265_v1 = vld [vmem:[%s22546_s0 + $0x200] sm:$0xff]  ;;  %v266_v3 = vld [vmem:[%s22546_s0 + $0x208] sm:$0xff]  ;;  %vm997_vm0 = vcmask 261120  }
  0x62   :  { %1042 = vmatprep.mubr.bf16.mxu0 %v22569_v0  ;;  %1115 = vmatprep.mubr.bf16.mxu1 %v22569_v0  ;;  %v297_v2 = vld [vmem:[%s22546_s0 + $0x300] sm:$0xff]  ;;  %v298_v5 = vld [vmem:[%s22546_s0 + $0x308] sm:$0xff]  ;;  %v267_v15 = vld [vmem:[%s22546_s0 + $0x210] sm:$0xff] }
  0x63   :  { %15028 = vset.pattern.permute.xlu0 %v22569_v0  ;;  %15029 = vset.pattern.permute.xlu1 %v22569_v0  ;;  %v14498_v4 = vcombine.high %v265_v1, %v297_v2  ;;  %v14497_v6 = vcombine.low %v265_v1, %v297_v2  ;;  %v201_v7 = vld [vmem:[%s22546_s0] sm:$0xff]  ;;  %v14500_v9 = vcombine.high %v266_v3, %v298_v5  ;;  %v202_v12 = vld [vmem:[%s22546_s0 + $0x8] sm:$0xff]  ;;  %v299_v17 = vld [vmem:[%s22546_s0 + $0x310] sm:$0xff] }
  0x64   :  { %v233_v8 = vld [vmem:[%s22546_s0 + $0x100] sm:$0xff]  ;;  %v14499_v10 = vcombine.low %v266_v3, %v298_v5  ;;  %v234_v13 = vld [vmem:[%s22546_s0 + $0x108] sm:$0xff]  ;;  %v268_v18 = vld [vmem:[%s22546_s0 + $0x218] sm:$0xff]  ;;  %v14502_v21 = vcombine.high %v267_v15, %v299_v17  ;;  %v14501_v27 = vcombine.low %v267_v15, %v299_v17 }
  0x65   :  { %v14434_v11 = vcombine.high %v201_v7, %v233_v8  ;;  %1022 = vmatprep.subr.bf16.mxu0 %v14498_v4  ;;  %v14436_v14 = vcombine.high %v202_v12, %v234_v13  ;;  %1095 = vmatprep.subr.bf16.mxu1 %v14500_v9  ;;  %v14433_v16 = vcombine.low %v201_v7, %v233_v8  ;;  %v300_v19 = vld [vmem:[%s22546_s0 + $0x318] sm:$0xff]  ;;  %v15624_v22 = vld [vmem:[#allocation2] sm:$0xff]   ;;  %v203_v24 = vld [vmem:[%s22546_s0 + $0x10] sm:$0xff] }
  0x66   :  { %1023 = vmatpush1.bf16.msra.mxu0 %v14497_v6  ;;  %1096 = vmatpush1.bf16.msra.mxu1 %v14499_v10  ;;  %v14435_v20 = vcombine.low %v202_v12, %v234_v13  ;;  %v14504_v23 = vcombine.high %v268_v18, %v300_v19  ;;  %v235_v25 = vld [vmem:[%s22546_s0 + $0x110] sm:$0xff]  ;;  %v204_v26 = vld [vmem:[%s22546_s0 + $0x18] sm:$0xff]  ;;  %v14503_v29 = vcombine.low %v268_v18, %v300_v19  ;;  %v269_v31 = vld [vmem:[%s22546_s0 + $0x220] sm:$0xff] }
  0x67   :  { %1024 = vmatprep.subr.bf16.mxu0 %v14434_v11  ;;  %1097 = vmatprep.subr.bf16.mxu1 %v14436_v14  ;;  %v236_v28 = vld [vmem:[%s22546_s0 + $0x118] sm:$0xff]  ;;  %v14438_v30 = vcombine.high %v203_v24, %v235_v25  ;;  %v301_v32 = vld [vmem:[%s22546_s0 + $0x320] sm:$0xff]  ;;  %v270_v34 = vld [vmem:[%s22546_s0 + $0x228] sm:$0xff]  ;;  %v14437_v36 = vcombine.low %v203_v24, %v235_v25 }
  0x68   :  { %v14440_v33 = vcombine.high %v204_v26, %v236_v28  ;;  %v302_v35 = vld [vmem:[%s22546_s0 + $0x328] sm:$0xff]  ;;  %v14439_v37 = vcombine.low %v204_v26, %v236_v28  ;;  %v14506_v38 = vcombine.high %v269_v31, %v301_v32  ;;  %v4434_v40 = vld [vmem:[#allocation4] sm:$0xff]  ;;  %v15664_v43 = vld [vmem:[#allocation2 + $0x10] sm:$0xff]   ;;  %v14505_v47 = vcombine.low %v269_v31, %v301_v32 }
  0x69   :  { %v14508_v39 = vcombine.high %v270_v34, %v302_v35  ;;  %v15656_v41 = vld [vmem:[#allocation2 + $0x8] sm:$0xff]   ;;  %4438 = vperm.xlu0 %15028, %v4434_v40   ;;  %v15672_v44 = vld [vmem:[#allocation2 + $0x18] sm:$0xff]   ;;  %v205_v45 = vld [vmem:[%s22546_s0 + $0x20] sm:$0xff]  ;;  %v14507_v50 = vcombine.low %v270_v34, %v302_v35 }
  0x6a   :  { %1025 = vmatpush1.bf16.msra.mxu0 %v14433_v16  ;;  %1098 = vmatpush1.bf16.msra.mxu1 %v14435_v20  ;;  %v4435_v42 = vld [vmem:[#allocation4 + $0x8] sm:$0xff]  ;;  %v237_v46 = vld [vmem:[%s22546_s0 + $0x120] sm:$0xff]  ;;  %v271_v52 = vld [vmem:[%s22546_s0 + $0x230] sm:$0xff] }
  0x6b   :  { %1168 = vmatprep.subr.bf16.mxu0 %v14502_v21  ;;  %1241 = vmatprep.subr.bf16.mxu1 %v14504_v23  ;;  %v206_v48 = vld [vmem:[%s22546_s0 + $0x28] sm:$0xff]  ;;  %v14442_v51 = vcombine.high %v205_v45, %v237_v46  ;;  %v303_v53 = vld [vmem:[%s22546_s0 + $0x330] sm:$0xff]  ;;  %v272_v55 = vld [vmem:[%s22546_s0 + $0x238] sm:$0xff]  ;;  %v14441_v57 = vcombine.low %v205_v45, %v237_v46 }
  0x6c   :  { %v238_v49 = vld [vmem:[%s22546_s0 + $0x128] sm:$0xff]  ;;  %v304_v56 = vld [vmem:[%s22546_s0 + $0x338] sm:$0xff]  ;;  %v14510_v59 = vcombine.high %v271_v52, %v303_v53  ;;  %v207_v61 = vld [vmem:[%s22546_s0 + $0x30] sm:$0xff]  ;;  %v14509_v63 = vcombine.low %v271_v52, %v303_v53 }
  0x6d   :  { %14561 = vmatmul.mubr.msk.bf16.vlgmr.msra.gmra.mxu0 %vm997_vm0, %v15624_v22  ;;  %14565 = vmatmul.mubr.msk.bf16.vlgmr.msra.gmra.mxu1 %vm997_vm0, %v15624_v22  ;;  %v14444_v54 = vcombine.high %v206_v48, %v238_v49  ;;  %v14443_v58 = vcombine.low %v206_v48, %v238_v49  ;;  %v14512_v60 = vcombine.high %v272_v55, %v304_v56  ;;  %v239_v62 = vld [vmem:[%s22546_s0 + $0x130] sm:$0xff]  ;;  %v208_v1 = vld [vmem:[%s22546_s0 + $0x38] sm:$0xff]  ;;  %v273_v5 = vld [vmem:[%s22546_s0 + $0x240] sm:$0xff] }
  0x6e   :  { %1169 = vmatpush1.bf16.msra.mxu0 %v14501_v27  ;;  %1242 = vmatpush1.bf16.msra.mxu1 %v14503_v29  ;;  %v240_v2 = vld [vmem:[%s22546_s0 + $0x138] sm:$0xff]  ;;  %v14511_v3 = vcombine.low %v272_v55, %v304_v56  ;;  %v14446_v4 = vcombine.high %v207_v61, %v239_v62  ;;  %v305_v6 = vld [vmem:[%s22546_s0 + $0x340] sm:$0xff]  ;;  %v274_v8 = vld [vmem:[%s22546_s0 + $0x248] sm:$0xff]  ;;  %v14445_v10 = vcombine.low %v207_v61, %v239_v62 }
  0x6f   :  { %1052 = vmatprep.mubr.bf16.mxu0 %v22569_v0  ;;  %1125 = vmatprep.mubr.bf16.mxu1 %v22569_v0  ;;  %v14448_v7 = vcombine.high %v208_v1, %v240_v2  ;;  %v306_v9 = vld [vmem:[%s22546_s0 + $0x348] sm:$0xff]  ;;  %v14447_v11 = vcombine.low %v208_v1, %v240_v2  ;;  %v14514_v12 = vcombine.high %v273_v5, %v305_v6  ;;  %v209_v14 = vld [vmem:[%s22546_s0 + $0x40] sm:$0xff]  ;;  %v275_v21 = vld [vmem:[%s22546_s0 + $0x250] sm:$0xff] }
  0x70   :  { %1170 = vmatprep.subr.bf16.mxu0 %v14438_v30  ;;  %1243 = vmatprep.subr.bf16.mxu1 %v14440_v33  ;;  %v14516_v13 = vcombine.high %v274_v8, %v306_v9  ;;  %v241_v15 = vld [vmem:[%s22546_s0 + $0x140] sm:$0xff]  ;;  %v14513_v16 = vcombine.low %v273_v5, %v305_v6  ;;  %v210_v17 = vld [vmem:[%s22546_s0 + $0x48] sm:$0xff]  ;;  %v14515_v19 = vcombine.low %v274_v8, %v306_v9  ;;  %v307_v23 = vld [vmem:[%s22546_s0 + $0x350] sm:$0xff] }
  0x71   :  { %4443 = vperm.xlu0 %15028, %v4435_v42   ;;  %v242_v18 = vld [vmem:[%s22546_s0 + $0x148] sm:$0xff]  ;;  %v14450_v20 = vcombine.high %v209_v14, %v241_v15  ;;  %v276_v25 = vld [vmem:[%s22546_s0 + $0x258] sm:$0xff]  ;;  %v14449_v27 = vcombine.low %v209_v14, %v241_v15  ;;  %v14518_v29 = vcombine.high %v275_v21, %v307_v23  ;;  %v211_v31 = vld [vmem:[%s22546_s0 + $0x50] sm:$0xff]  ;;  %v14517_v33 = vcombine.low %v275_v21, %v307_v23 }
  0x72   :  { %1171 = vmatpush1.bf16.msra.mxu0 %v14437_v36  ;;  %1244 = vmatpush1.bf16.msra.mxu1 %v14439_v37  ;;  %v14452_v24 = vcombine.high %v210_v17, %v242_v18  ;;  %v308_v26 = vld [vmem:[%s22546_s0 + $0x358] sm:$0xff]  ;;  %v14451_v28 = vcombine.low %v210_v17, %v242_v18  ;;  %v243_v32 = vld [vmem:[%s22546_s0 + $0x150] sm:$0xff]  ;;  %v278_v42 = vld [vmem:[%s22546_s0 + $0x268] sm:$0xff]  ;;  %v22556_v23 = vlaneseq }
  0x73   :  { %1314 = vmatprep.subr.bf16.mxu0 %v14506_v38  ;;  %1387 = vmatprep.subr.bf16.mxu1 %v14508_v39  ;;  %v14520_v30 = vcombine.high %v276_v25, %v308_v26  ;;  %v212_v34 = vld [vmem:[%s22546_s0 + $0x58] sm:$0xff]  ;;  %v14519_v36 = vcombine.low %v276_v25, %v308_v26  ;;  %v14454_v37 = vcombine.high %v211_v31, %v243_v32  ;;  %v277_v38 = vld [vmem:[%s22546_s0 + $0x260] sm:$0xff]  ;;  %v310_v45 = vld [vmem:[%s22546_s0 + $0x368] sm:$0xff] }
  0x74   :  { %v244_v35 = vld [vmem:[%s22546_s0 + $0x158] sm:$0xff]  ;;  %v309_v39 = vld [vmem:[%s22546_s0 + $0x360] sm:$0xff]  ;;  %v14453_v46 = vcombine.low %v211_v31, %v243_v32  ;;  %v14524_v49 = vcombine.high %v278_v42, %v310_v45  ;;  %v214_v53 = vld [vmem:[%s22546_s0 + $0x68] sm:$0xff]  ;;  %v14523_v55 = vcombine.low %v278_v42, %v310_v45 }
  0x75   :  { %14562 = vmatmul.mubr.msk.bf16.gmra.mxu0 %vm997_vm0, %v15656_v41  ;;  %14566 = vmatmul.mubr.msk.bf16.gmra.mxu1 %vm997_vm0, %v15656_v41  ;;  %v14456_v40 = vcombine.high %v212_v34, %v244_v35  ;;  %v14522_v48 = vcombine.high %v277_v38, %v309_v39  ;;  %v14521_v52 = vcombine.low %v277_v38, %v309_v39  ;;  %v312_v61 = vld [vmem:[%s22546_s0 + $0x378] sm:$0xff]  ;;  %v15949_v14 = vld [vmem:[%s22546_s0 + $0x288] sm:$0xff] }
  0x76   :  { %1062 = vmatprep.mubr.bf16.mxu0 %v22569_v0  ;;  %1135 = vmatprep.mubr.bf16.mxu1 %v22569_v0  ;;  %v216_v6 = vld [vmem:[%s22546_s0 + $0x78] sm:$0xff]  ;;  %v15954_v15 = vld [vmem:[%s22546_s0 + $0x388] sm:$0xff] }
  0x7d   :  { %14563 = vmatmul.mubr.msk.bf16.gmra.mxu0 %vm997_vm0, %v15664_v43  ;;  %14567 = vmatmul.mubr.msk.bf16.gmra.mxu1 %vm997_vm0, %v15664_v43 }
  0x7e   :  { %1072 = vmatprep.mubr.bf16.mxu0 %v22569_v0  ;;  %1145 = vmatprep.mubr.bf16.mxu1 %v22569_v0 }
  0x85   :  { %14564 = vmatmul.mubr.msk.bf16.gmra.mxu0 %vm997_vm0, %v15672_v44  ;;  %14568 = vmatmul.mubr.msk.bf16.gmra.mxu1 %vm997_vm0, %v15672_v44 }
  0x86   :  { %1188 = vmatprep.mubr.bf16.mxu0 %v22569_v0  ;;  %1261 = vmatprep.mubr.bf16.mxu1 %v22569_v0 }
  0x8d   :  { %14569 = vmatmul.mubr.msk.bf16.vlgmr.msra.gmra.mxu0 %vm997_vm0, %v15624_v22  ;;  %14573 = vmatmul.mubr.msk.bf16.vlgmr.msra.gmra.mxu1 %vm997_vm0, %v15624_v22 }
  0x8e   :  { %1315 = vmatpush1.bf16.msra.mxu0 %v14505_v47  ;;  %1388 = vmatpush1.bf16.msra.mxu1 %v14507_v50  ;;  %v14455_v47 = vcombine.low %v212_v34, %v244_v35  ;;  %v213_v50 = vld [vmem:[%s22546_s0 + $0x60] sm:$0xff] }
  0x8f   :  { %1198 = vmatprep.mubr.bf16.mxu0 %v22569_v0  ;;  %1271 = vmatprep.mubr.bf16.mxu1 %v22569_v0 }
  0x90   :  { %1316 = vmatprep.subr.bf16.mxu0 %v14442_v51  ;;  %1389 = vmatprep.subr.bf16.mxu1 %v14444_v54  ;;  %v245_v51 = vld [vmem:[%s22546_s0 + $0x160] sm:$0xff]  ;;  %v246_v54 = vld [vmem:[%s22546_s0 + $0x168] sm:$0xff] }
  0x91   :  { %v14458_v56 = vcombine.high %v213_v50, %v245_v51  ;;  %v14457_v62 = vcombine.low %v213_v50, %v245_v51 }
  0x92   :  { %1317 = vmatpush1.bf16.msra.mxu0 %v14441_v57  ;;  %1390 = vmatpush1.bf16.msra.mxu1 %v14443_v58  ;;  %v279_v57 = vld [vmem:[%s22546_s0 + $0x270] sm:$0xff] }
  0x93   :  { %1460 = vmatprep.subr.bf16.mxu0 %v14510_v59  ;;  %1533 = vmatprep.subr.bf16.mxu1 %v14512_v60  ;;  %v311_v58 = vld [vmem:[%s22546_s0 + $0x370] sm:$0xff]  ;;  %v14460_v59 = vcombine.high %v214_v53, %v246_v54  ;;  %v280_v60 = vld [vmem:[%s22546_s0 + $0x278] sm:$0xff] }
  0x94   :  { %v14526_v1 = vcombine.high %v279_v57, %v311_v58  ;;  %v14528_v2 = vcombine.high %v280_v60, %v312_v61  ;;  %v14525_v5 = vcombine.low %v279_v57, %v311_v58  ;;  %v14527_v8 = vcombine.low %v280_v60, %v312_v61 }
  0x95   :  { %14570 = vmatmul.mubr.msk.bf16.gmra.mxu0 %vm997_vm0, %v15656_v41  ;;  %14574 = vmatmul.mubr.msk.bf16.gmra.mxu1 %vm997_vm0, %v15656_v41 }
  0x96   :  { %1208 = vmatprep.mubr.bf16.mxu0 %v22569_v0  ;;  %1281 = vmatprep.mubr.bf16.mxu1 %v22569_v0 }
  0x9d   :  { %14571 = vmatmul.mubr.msk.bf16.gmra.mxu0 %vm997_vm0, %v15664_v43  ;;  %14575 = vmatmul.mubr.msk.bf16.gmra.mxu1 %vm997_vm0, %v15664_v43 }
  0x9e   :  { %1218 = vmatprep.mubr.bf16.mxu0 %v22569_v0  ;;  %1291 = vmatprep.mubr.bf16.mxu1 %v22569_v0 }
  0xa5   :  { %14572 = vmatmul.mubr.msk.bf16.gmra.mxu0 %vm997_vm0, %v15672_v44  ;;  %14576 = vmatmul.mubr.msk.bf16.gmra.mxu1 %vm997_vm0, %v15672_v44 }
  0xa6   :  { %1334 = vmatprep.mubr.bf16.mxu0 %v22569_v0  ;;  %1407 = vmatprep.mubr.bf16.mxu1 %v22569_v0 }
  0xad   :  { %14577 = vmatmul.mubr.msk.bf16.vlgmr.msra.gmra.mxu0 %vm997_vm0, %v15624_v22  ;;  %14581 = vmatmul.mubr.msk.bf16.vlgmr.msra.gmra.mxu1 %vm997_vm0, %v15624_v22 }
  0xae   :  { %1461 = vmatpush1.bf16.msra.mxu0 %v14509_v63  ;;  %1534 = vmatpush1.bf16.msra.mxu1 %v14511_v3  ;;  %v14459_v63 = vcombine.low %v214_v53, %v246_v54  ;;  %v215_v3 = vld [vmem:[%s22546_s0 + $0x70] sm:$0xff] }
  0xaf   :  { %1344 = vmatprep.mubr.bf16.mxu0 %v22569_v0  ;;  %1417 = vmatprep.mubr.bf16.mxu1 %v22569_v0 }
  0xb0   :  { %1462 = vmatprep.subr.bf16.mxu0 %v14446_v4  ;;  %1535 = vmatprep.subr.bf16.mxu1 %v14448_v7  ;;  %v247_v4 = vld [vmem:[%s22546_s0 + $0x170] sm:$0xff]  ;;  %v248_v7 = vld [vmem:[%s22546_s0 + $0x178] sm:$0xff] }
  0xb1   :  { %v14462_v9 = vcombine.high %v215_v3, %v247_v4  ;;  %v14461_v17 = vcombine.low %v215_v3, %v247_v4  ;;  %v16044_v3 = vld [vmem:[%s22546_s0 + $0x80] sm:$0xff] }
  0xb2   :  { %1463 = vmatpush1.bf16.msra.mxu0 %v14445_v10  ;;  %1536 = vmatpush1.bf16.msra.mxu1 %v14447_v11  ;;  %v15935_v10 = vld [vmem:[%s22546_s0 + $0x280] sm:$0xff] }
  0xb3   :  { %1606 = vmatprep.subr.bf16.mxu0 %v14514_v12  ;;  %1679 = vmatprep.subr.bf16.mxu1 %v14516_v13  ;;  %v15940_v11 = vld [vmem:[%s22546_s0 + $0x380] sm:$0xff]  ;;  %v14464_v13 = vcombine.high %v216_v6, %v248_v7 }
  0xb4   :  { %v16049_v4 = vld [vmem:[%s22546_s0 + $0x180] sm:$0xff] }
  0xb5   :  { %14578 = vmatmul.mubr.msk.bf16.gmra.mxu0 %vm997_vm0, %v15656_v41  ;;  %14582 = vmatmul.mubr.msk.bf16.gmra.mxu1 %vm997_vm0, %v15656_v41 }
  0xb6   :  { %1354 = vmatprep.mubr.bf16.mxu0 %v22569_v0  ;;  %1427 = vmatprep.mubr.bf16.mxu1 %v22569_v0 }
  0xbd   :  { %14579 = vmatmul.mubr.msk.bf16.gmra.mxu0 %vm997_vm0, %v15664_v43  ;;  %14583 = vmatmul.mubr.msk.bf16.gmra.mxu1 %vm997_vm0, %v15664_v43 }
  0xbe   :  { %1364 = vmatprep.mubr.bf16.mxu0 %v22569_v0  ;;  %1437 = vmatprep.mubr.bf16.mxu1 %v22569_v0 }
  0xc5   :  { %14580 = vmatmul.mubr.msk.bf16.gmra.mxu0 %vm997_vm0, %v15672_v44  ;;  %14584 = vmatmul.mubr.msk.bf16.gmra.mxu1 %vm997_vm0, %v15672_v44 }
  0xc6   :  { %1480 = vmatprep.mubr.bf16.mxu0 %v22569_v0  ;;  %1553 = vmatprep.mubr.bf16.mxu1 %v22569_v0 }
  0xcd   :  { %14585 = vmatmul.mubr.msk.bf16.vlgmr.msra.gmra.mxu0 %vm997_vm0, %v15624_v22  ;;  %14589 = vmatmul.mubr.msk.bf16.vlgmr.msra.gmra.mxu1 %vm997_vm0, %v15624_v22 }
  0xce   :  { %1607 = vmatpush1.bf16.msra.mxu0 %v14513_v16  ;;  %1680 = vmatpush1.bf16.msra.mxu1 %v14515_v19  ;;  %v14463_v19 = vcombine.low %v216_v6, %v248_v7 }
  0xcf   :  { %1490 = vmatprep.mubr.bf16.mxu0 %v22569_v0  ;;  %1563 = vmatprep.mubr.bf16.mxu1 %v22569_v0 }
  0xd0   :  { %1608 = vmatprep.subr.bf16.mxu0 %v14450_v20  ;;  %1681 = vmatprep.subr.bf16.mxu1 %v14452_v24  ;;  %v14530_v20 = vcombine.high %v15935_v10, %v15940_v11  ;;  %v14532_v24 = vcombine.high %v15949_v14, %v15954_v15 }
  0xd2   :  { %1609 = vmatpush1.bf16.msra.mxu0 %v14449_v27  ;;  %1682 = vmatpush1.bf16.msra.mxu1 %v14451_v28 }
  0xd3   :  { %1752 = vmatprep.subr.bf16.mxu0 %v14518_v29  ;;  %1825 = vmatprep.subr.bf16.mxu1 %v14520_v30  ;;  %v15979_v29 = vand.u32 127, %v22556_v23  ;;  %v16302_v23 = vld [vmem:[%s22546_s0 + $0x98] sm:$0xff] }
  0xd5   :  { %14586 = vmatmul.mubr.msk.bf16.gmra.mxu0 %vm997_vm0, %v15656_v41  ;;  %14590 = vmatmul.mubr.msk.bf16.gmra.mxu1 %vm997_vm0, %v15656_v41  ;;  %v15990_v34 = vadd.s32 256, %v15979_v29  ;;  %v16000_v38 = vadd.s32 384, %v15979_v29 }
  0xd6   :  { %1500 = vmatprep.mubr.bf16.mxu0 %v22569_v0  ;;  %1573 = vmatprep.mubr.bf16.mxu1 %v22569_v0 }
  0xd7   :  { %22743 = vst [vmem:[#allocation20_spill] sm:$0xff] %v15990_v34  ;;  %22745 = vst [vmem:[#allocation22_spill] sm:$0xff] %v16000_v38  ;;  %v3348_v45 = vshra.s32 %v15990_v34, 8 }
  0xd9   :  { %v16016_v53 = vand.u32 3, %v3348_v45 }
  0xdb   :  { %vm3604_vm3 = vcmp.eq.s32.totalorder %v16016_v53, 2  ;;  %vm3476_vm5 = vcmp.eq.s32.totalorder %v16016_v53, 0  ;;  %vm3540_vm6 = vcmp.eq.s32.totalorder %v16016_v53, 1 }
  0xdd   :  { %14587 = vmatmul.mubr.msk.bf16.gmra.mxu0 %vm997_vm0, %v15664_v43  ;;  %14591 = vmatmul.mubr.msk.bf16.gmra.mxu1 %vm997_vm0, %v15664_v43 }
  0xde   :  { %1510 = vmatprep.mubr.bf16.mxu0 %v22569_v0  ;;  %1583 = vmatprep.mubr.bf16.mxu1 %v22569_v0 }
  0xe5   :  { %14588 = vmatmul.mubr.msk.bf16.gmra.mxu0 %vm997_vm0, %v15672_v44  ;;  %14592 = vmatmul.mubr.msk.bf16.gmra.mxu1 %vm997_vm0, %v15672_v44 }
  0xe6   :  { %1626 = vmatprep.mubr.bf16.mxu0 %v22569_v0  ;;  %1699 = vmatprep.mubr.bf16.mxu1 %v22569_v0 }
  0xed   :  { %14593 = vmatmul.mubr.msk.bf16.vlgmr.msra.gmra.mxu0 %vm997_vm0, %v15624_v22  ;;  %14597 = vmatmul.mubr.msk.bf16.vlgmr.msra.gmra.mxu1 %vm997_vm0, %v15624_v22 }
  0xee   :  { %1753 = vmatpush1.bf16.msra.mxu0 %v14517_v33  ;;  %1826 = vmatpush1.bf16.msra.mxu1 %v14519_v36  ;;  %v15995_v36 = vadd.s32 128, %v15979_v29 }
  0xef   :  { %1636 = vmatprep.mubr.bf16.mxu0 %v22569_v0  ;;  %1709 = vmatprep.mubr.bf16.mxu1 %v22569_v0 }
  0xf0   :  { %1754 = vmatprep.subr.bf16.mxu0 %v14454_v37  ;;  %1827 = vmatprep.subr.bf16.mxu1 %v14456_v40  ;;  %22744 = vst [vmem:[#allocation21_spill] sm:$0xff] %v15995_v36  ;;  %v3346_v40 = vshra.s32 %v15979_v29, 8 }
  0xf2   :  { %1755 = vmatpush1.bf16.msra.mxu0 %v14453_v46  ;;  %1828 = vmatpush1.bf16.msra.mxu1 %v14455_v47  ;;  %v3347_v47 = vshra.s32 %v15995_v36, 8  ;;  %v3410_v51 = vand.u32 3, %v3346_v40 }
  0xf3   :  { %1898 = vmatprep.subr.bf16.mxu0 %v14522_v48  ;;  %1971 = vmatprep.subr.bf16.mxu1 %v14524_v49  ;;  %v3349_v49 = vshra.s32 %v16000_v38, 8 }
  0xf4   :  { %vm3602_vm1 = vcmp.eq.s32.totalorder %v3410_v51, 2  ;;  %vm3538_vm2 = vcmp.eq.s32.totalorder %v3410_v51, 1  ;;  %vm3474_vm4 = vcmp.eq.s32.totalorder %v3410_v51, 0 }
  0xf5   :  { %14594 = vmatmul.mubr.msk.bf16.gmra.mxu0 %vm997_vm0, %v15656_v41  ;;  %14598 = vmatmul.mubr.msk.bf16.gmra.mxu1 %vm997_vm0, %v15656_v41  ;;  %v16020_v57 = vand.u32 3, %v3349_v49 }
  0xf6   :  { %1646 = vmatprep.mubr.bf16.mxu0 %v22569_v0  ;;  %1719 = vmatprep.mubr.bf16.mxu1 %v22569_v0 }
  0xf7   :  { %vm3605_vm10 = vcmp.eq.s32.totalorder %v16020_v57, 2  ;;  %vm3477_vm11 = vcmp.eq.s32.totalorder %v16020_v57, 0  ;;  %vm3541_vm12 = vcmp.eq.s32.totalorder %v16020_v57, 1 }
  0xfd   :  { %14595 = vmatmul.mubr.msk.bf16.gmra.mxu0 %vm997_vm0, %v15664_v43  ;;  %14599 = vmatmul.mubr.msk.bf16.gmra.mxu1 %vm997_vm0, %v15664_v43 }
  0xfe   :  { %1656 = vmatprep.mubr.bf16.mxu0 %v22569_v0  ;;  %1729 = vmatprep.mubr.bf16.mxu1 %v22569_v0 }
 0x105   :  { %14596 = vmatmul.mubr.msk.bf16.gmra.mxu0 %vm997_vm0, %v15672_v44  ;;  %14600 = vmatmul.mubr.msk.bf16.gmra.mxu1 %vm997_vm0, %v15672_v44 }
 0x106   :  { %1772 = vmatprep.mubr.bf16.mxu0 %v22569_v0  ;;  %1845 = vmatprep.mubr.bf16.mxu1 %v22569_v0 }
 0x10d   :  { %14601 = vmatmul.mubr.msk.bf16.vlgmr.msra.gmra.mxu0 %vm997_vm0, %v15624_v22  ;;  %14605 = vmatmul.mubr.msk.bf16.vlgmr.msra.gmra.mxu1 %vm997_vm0, %v15624_v22 }
 0x10e   :  { %1899 = vmatpush1.bf16.msra.mxu0 %v14521_v52  ;;  %1972 = vmatpush1.bf16.msra.mxu1 %v14523_v55  ;;  %v16018_v55 = vand.u32 3, %v3347_v47  ;;  %v16104_v47 = vld [vmem:[%s22546_s0 + $0x390] sm:$0xff] }
 0x10f   :  { %1782 = vmatprep.mubr.bf16.mxu0 %v22569_v0  ;;  %1855 = vmatprep.mubr.bf16.mxu1 %v22569_v0 }
 0x110   :  { %1900 = vmatprep.subr.bf16.mxu0 %v14458_v56  ;;  %1973 = vmatprep.subr.bf16.mxu1 %v14460_v59  ;;  %vm3603_vm7 = vcmp.eq.s32.totalorder %v16018_v55, 2  ;;  %vm3475_vm8 = vcmp.eq.s32.totalorder %v16018_v55, 0  ;;  %vm3539_vm9 = vcmp.eq.s32.totalorder %v16018_v55, 1 }
 0x112   :  { %1901 = vmatpush1.bf16.msra.mxu0 %v14457_v62  ;;  %1974 = vmatpush1.bf16.msra.mxu1 %v14459_v63 }
 0x113   :  { %2044 = vmatprep.subr.bf16.mxu0 %v14526_v1  ;;  %2117 = vmatprep.subr.bf16.mxu1 %v14528_v2 }
 0x115   :  { %14602 = vmatmul.mubr.msk.bf16.gmra.mxu0 %vm997_vm0, %v15656_v41  ;;  %14606 = vmatmul.mubr.msk.bf16.gmra.mxu1 %vm997_vm0, %v15656_v41 }
 0x116   :  { %1792 = vmatprep.mubr.bf16.mxu0 %v22569_v0  ;;  %1865 = vmatprep.mubr.bf16.mxu1 %v22569_v0 }
 0x11d   :  { %14603 = vmatmul.mubr.msk.bf16.gmra.mxu0 %vm997_vm0, %v15664_v43  ;;  %14607 = vmatmul.mubr.msk.bf16.gmra.mxu1 %vm997_vm0, %v15664_v43 }
 0x11e   :  { %1802 = vmatprep.mubr.bf16.mxu0 %v22569_v0  ;;  %1875 = vmatprep.mubr.bf16.mxu1 %v22569_v0 }
 0x125   :  { %14604 = vmatmul.mubr.msk.bf16.gmra.mxu0 %vm997_vm0, %v15672_v44  ;;  %14608 = vmatmul.mubr.msk.bf16.gmra.mxu1 %vm997_vm0, %v15672_v44 }
 0x126   :  { %1918 = vmatprep.mubr.bf16.mxu0 %v22569_v0  ;;  %1991 = vmatprep.mubr.bf16.mxu1 %v22569_v0 }
 0x12d   :  { %v15942_v12 = vpop.f32.mrf.mxu0  ;;  %14609 = vmatmul.mubr.msk.bf16.vlgmr.msra.gmra.mxu0 %vm997_vm0, %v15624_v22  ;;  %v15956_v16 = vpop.f32.mrf.mxu1  ;;  %14613 = vmatmul.mubr.msk.bf16.vlgmr.msra.gmra.mxu1 %vm997_vm0, %v15624_v22 }
 0x12e   :  { %2045 = vmatpush1.bf16.msra.mxu0 %v14525_v5  ;;  %2118 = vmatpush1.bf16.msra.mxu1 %v14527_v8 }
 0x12f   :  { %v15960_v18 = vpop.f32.mrf.mxu0  ;;  %1928 = vmatprep.mubr.bf16.mxu0 %v22569_v0  ;;  %v15965_v21 = vpop.f32.mrf.mxu1  ;;  %2001 = vmatprep.mubr.bf16.mxu1 %v22569_v0 }
 0x130   :  { %2046 = vmatprep.subr.bf16.mxu0 %v14462_v9  ;;  %2119 = vmatprep.subr.bf16.mxu1 %v14464_v13  ;;  %v16057_v9 = vpop.permute.xlu0 %4438  ;;  %v14529_v13 = vcombine.low %v15935_v10, %v15940_v11  ;;  %v250_v10 = vld [vmem:[%s22546_s0 + $0x188] sm:$0xff] }
 0x131   :  { %v15970_v25 = vpop.f32.mrf.mxu0  ;;  %v15972_v26 = vpop.f32.mrf.mxu1 }
 0x132   :  { %2047 = vmatpush1.bf16.msra.mxu0 %v14461_v17  ;;  %2120 = vmatpush1.bf16.msra.mxu1 %v14463_v19 }
 0x133   :  { %v15974_v27 = vpop.f32.mrf.mxu0  ;;  %2190 = vmatprep.subr.bf16.mxu0 %v14530_v20  ;;  %v15976_v28 = vpop.f32.mrf.mxu1  ;;  %2263 = vmatprep.subr.bf16.mxu1 %v14532_v24  ;;  %v14531_v24 = vcombine.low %v15949_v14, %v15954_v15  ;;  %v14465_v14 = vcombine.low %v16044_v3, %v16049_v4 }
 0x134   :  { %v16143_v53 = vpop.permute.xlu0 %4443 }
 0x135   :  { %v1054_v30 = vpop.f32.mrf.mxu0  ;;  %14610 = vmatmul.mubr.msk.bf16.gmra.mxu0 %vm997_vm0, %v15656_v41  ;;  %v1127_v31 = vpop.f32.mrf.mxu1  ;;  %14614 = vmatmul.mubr.msk.bf16.gmra.mxu1 %vm997_vm0, %v15656_v41 }
 0x136   :  { %1938 = vmatprep.mubr.bf16.mxu0 %v22569_v0  ;;  %2011 = vmatprep.mubr.bf16.mxu1 %v22569_v0 }
 0x137   :  { %v1056_v32 = vpop.f32.mrf.mxu0  ;;  %v15987_v33 = vpop.f32.mrf.mxu1 }
 0x139   :  { %v15992_v35 = vpop.f32.mrf.mxu0  ;;  %v15997_v37 = vpop.f32.mrf.mxu1 }
 0x13b   :  { %v16002_v39 = vpop.f32.mrf.mxu0  ;;  %v16005_v42 = vpop.f32.mrf.mxu1 }
 0x13d   :  { %v1064_v46 = vpop.f32.mrf.mxu0  ;;  %14611 = vmatmul.mubr.msk.bf16.gmra.mxu0 %vm997_vm0, %v15664_v43  ;;  %v1137_v48 = vpop.f32.mrf.mxu1  ;;  %14615 = vmatmul.mubr.msk.bf16.gmra.mxu1 %vm997_vm0, %v15664_v43 }
 0x13e   :  { %1948 = vmatprep.mubr.bf16.mxu0 %v22569_v0  ;;  %2021 = vmatprep.mubr.bf16.mxu1 %v22569_v0 }
 0x13f   :  { %v1066_v50 = vpop.f32.mrf.mxu0  ;;  %v1139_v52 = vpop.f32.mrf.mxu1 }
 0x141   :  { %v1068_v54 = vpop.f32.mrf.mxu0  ;;  %v1141_v56 = vpop.f32.mrf.mxu1 }
 0x143   :  { %v1070_v58 = vpop.f32.mrf.mxu0  ;;  %v1143_v59 = vpop.f32.mrf.mxu1 }
 0x145   :  { %v1074_v60 = vpop.f32.mrf.mxu0  ;;  %14612 = vmatmul.mubr.msk.bf16.gmra.mxu0 %vm997_vm0, %v15672_v44  ;;  %v1147_v62 = vpop.f32.mrf.mxu1  ;;  %14616 = vmatmul.mubr.msk.bf16.gmra.mxu1 %vm997_vm0, %v15672_v44 }
 0x146   :  { %v3794_v61 = vsel %vm3602_vm1, %v1064_v46, %v1074_v60  ;;  %2064 = vmatprep.mubr.bf16.mxu0 %v22569_v0  ;;  %v3796_v1 = vsel %vm3604_vm3, %v1137_v48, %v1147_v62  ;;  %2137 = vmatprep.mubr.bf16.mxu1 %v22569_v0  ;;  %v16099_v46 = vld [vmem:[%s22546_s0 + $0x290] sm:$0xff] }
 0x147   :  { %v4050_v63 = vsel %vm3538_vm2, %v1054_v30, %v3794_v61  ;;  %v1076_v2 = vpop.f32.mrf.mxu0  ;;  %v4052_v6 = vsel %vm3540_vm6, %v1127_v31, %v3796_v1  ;;  %v1149_v8 = vpop.f32.mrf.mxu1  ;;  %v218_v30 = vld [vmem:[%s22546_s0 + $0x88] sm:$0xff] }
 0x148   :  { %v4306_v5 = vsel %vm3474_vm4, %v15942_v12, %v4050_v63  ;;  %v3795_v7 = vsel %vm3603_vm7, %v1066_v50, %v1076_v2  ;;  %v16064_v17 = vsel %vm3476_vm5, %v15956_v16, %v4052_v6  ;;  %v3797_v19 = vsel %vm3605_vm10, %v1139_v52, %v1149_v8  ;;  %v16116_v52 = vld [vmem:[%s22546_s0 + $0x298] sm:$0xff] }
 0x149   :  { %v4051_v12 = vsel %vm3539_vm9, %v1056_v32, %v3795_v7  ;;  %v1078_v20 = vpop.f32.mrf.mxu0  ;;  %v4053_v16 = vsel %vm3541_vm12, %v15987_v33, %v3797_v19  ;;  %v1151_v32 = vpop.f32.mrf.mxu1  ;;  %v14466_v33 = vcombine.high %v16044_v3, %v16049_v4  ;;  %v14468_v50 = vcombine.high %v218_v30, %v250_v10 }
 0x14a   :  { %v4307_v11 = vsel %vm3475_vm8, %v15960_v18, %v4051_v12  ;;  %v3858_v31 = vsel %vm3602_vm1, %v1068_v54, %v1078_v20  ;;  %v4309_v15 = vsel %vm3477_vm11, %v15965_v21, %v4053_v16  ;;  %v3860_v18 = vsel %vm3604_vm3, %v1141_v56, %v1151_v32  ;;  %v16121_v54 = vld [vmem:[%s22546_s0 + $0x398] sm:$0xff] }
 0x14b   :  { %v4114_v40 = vsel %vm3538_vm2, %v15992_v35, %v3858_v31  ;;  %v1080_v45 = vpop.f32.mrf.mxu0  ;;  %v4116_v35 = vsel %vm3540_vm6, %v15997_v37, %v3860_v18  ;;  %v1153_v49 = vpop.f32.mrf.mxu1  ;;  %v4449_v57 = vadd.f32 %v16057_v9, %v4309_v15  ;;  %v4446_v2 = vadd.f32 %v16057_v9, %v4306_v5 }
 0x14c   :  { %v4370_v21 = vsel %vm3474_vm4, %v15970_v25, %v4114_v40  ;;  %v3859_v48 = vsel %vm3603_vm7, %v1070_v58, %v1080_v45  ;;  %v13833_v25 = vld [vmem:[#allocation13] sm:$0xff]  ;;  %v16126_v37 = vsel %vm3476_vm5, %v15972_v26, %v4116_v35  ;;  %v3861_v56 = vsel %vm3605_vm10, %v1143_v59, %v1153_v49 }
 0x14d   :  { %v4115_v51 = vsel %vm3539_vm9, %v16002_v39, %v3859_v48  ;;  %v16133_v58 = vpop.f32.mrf.mxu0  ;;  %14617 = vmatmul.mubr.msk.bf16.vlgmr.msra.gmra.mxu0 %vm997_vm0, %v15624_v22  ;;  %13836 = vperm.xlu0 %15028, %v13833_v25   ;;  %v4117_v26 = vsel %vm3541_vm12, %v16005_v42, %v3861_v56  ;;  %v16145_v39 = vpop.f32.mrf.mxu1  ;;  %v14467_v59 = vcombine.low %v218_v30, %v250_v10  ;;  %v16175_v7 = vadd.s32 512, %v15979_v29 }
 0x14e   :  { %v4371_v60 = vsel %vm3475_vm8, %v15974_v27, %v4115_v51  ;;  %14621 = vmatmul.mubr.msk.bf16.vlgmr.msra.gmra.mxu1 %vm997_vm0, %v15624_v22  ;;  %2191 = vmatpush1.bf16.msra.mxu0 %v14529_v13  ;;  %v4373_v61 = vsel %vm3477_vm11, %v15976_v28, %v4117_v26  ;;  %v14534_v27 = vcombine.high %v16099_v46, %v16104_v47  ;;  %vm4577_vm15 = vcmp.ge.f32.partialorder %v4449_v57, 0.0 }
 0x14f   :  { %2264 = vmatpush1.bf16.msra.mxu1 %v14531_v24  ;;  %v16152_v55 = vpop.f32.mrf.mxu0  ;;  %2074 = vmatprep.mubr.bf16.mxu0 %v22569_v0  ;;  %v14536_v42 = vcombine.high %v16116_v52, %v16121_v54  ;;  %v16159_v62 = vpop.f32.mrf.mxu1  ;;  %v4447_v22 = vadd.f32 %v16057_v9, %v4307_v11  ;;  %v4511_v28 = vadd.f32 %v16143_v53, %v4371_v60  ;;  %v4705_v19 = vmul.f32 0.01, %v4449_v57 }
 0x150   :  { %2147 = vmatprep.mubr.bf16.mxu1 %v22569_v0  ;;  %2192 = vmatprep.subr.bf16.mxu0 %v14466_v33  ;;  %v4513_v1 = vadd.f32 %v16143_v53, %v4373_v61  ;;  %v4510_v3 = vadd.f32 %v16143_v53, %v4370_v21  ;;  %22746 = vst [vmem:[#allocation23_spill] sm:$0xff] %v16175_v7  ;;  %vm4574_vm2 = vcmp.ge.f32.partialorder %v4446_v2, 0.0  ;;  %v4702_v32 = vmul.f32 0.01, %v4446_v2 }
 0x151   :  { %v16165_v63 = vpop.f32.mrf.mxu0  ;;  %2265 = vmatprep.subr.bf16.mxu1 %v14468_v50  ;;  %v16170_v4 = vpop.f32.mrf.mxu1  ;;  %vm4575_vm13 = vcmp.ge.f32.partialorder %v4447_v22, 0.0  ;;  %vm4639_vm14 = vcmp.ge.f32.partialorder %v4511_v28, 0.0  ;;  %v4703_v8 = vmul.f32 0.01, %v4447_v22  ;;  %v4767_v13 = vmul.f32 0.01, %v4511_v28 }
 0x152   :  { %2193 = vmatpush1.bf16.msra.mxu0 %v14465_v14  ;;  %v4448_v12 = vadd.f32 %v16057_v9, %v16064_v17  ;;  %vm4641_vm1 = vcmp.ge.f32.partialorder %v4513_v1, 0.0  ;;  %v4769_v20 = vmul.f32 0.01, %v4513_v1  ;;  %vm4638_vm3 = vcmp.ge.f32.partialorder %v4510_v3, 0.0 }
 0x153   :  { %v16172_v6 = vpop.f32.mrf.mxu0  ;;  %2266 = vmatpush1.bf16.msra.mxu1 %v14467_v59  ;;  %2336 = vmatprep.subr.bf16.mxu0 %v14534_v27  ;;  %v16179_v5 = vpop.f32.mrf.mxu1  ;;  %v16186_v30 = vsel %vm4575_vm13, %v4447_v22, %v4703_v8  ;;  %v16189_v10 = vsel %vm4639_vm14, %v4511_v28, %v4767_v13  ;;  %v16198_v16 = vsel %vm4577_vm15, %v4449_v57, %v4705_v19  ;;  %v16206_v15 = vadd.s32 768, %v15979_v29 }
 0x154   :  { %2409 = vmatprep.subr.bf16.mxu1 %v14536_v42  ;;  %v16200_v31 = vsel %vm4641_vm1, %v4513_v1, %v4769_v20  ;;  %v4766_v40 = vmul.f32 0.01, %v4510_v3  ;;  %v4512_v18 = vadd.f32 %v16143_v53, %v16126_v37  ;;  %v16215_v33 = vadd.s32 640, %v15979_v29 }
 0x155   :  { %v16181_v24 = vpop.f32.mrf.mxu0  ;;  %14618 = vmatmul.mubr.msk.bf16.gmra.mxu0 %vm997_vm0, %v15656_v41  ;;  %v16191_v17 = vpop.f32.mrf.mxu1  ;;  %22747 = vst [vmem:[#allocation24_spill] sm:$0xff] %v16206_v15  ;;  %v16218_v21 = vadd.s32 896, %v15979_v29  ;;  %vm4576_vm4 = vcmp.ge.f32.partialorder %v4448_v12, 0.0  ;;  %v4704_v35 = vmul.f32 0.01, %v4448_v12  ;;  %v16223_v49 = vsel %vm4574_vm2, %v4446_v2, %v4702_v32 }
 0x156   :  { %14622 = vmatmul.mubr.msk.bf16.gmra.mxu1 %vm997_vm0, %v15656_v41  ;;  %2084 = vmatprep.mubr.bf16.mxu0 %v22569_v0  ;;  %22748 = vst [vmem:[#allocation25_spill] sm:$0xff] %v16215_v33  ;;  %v16226_v50 = vsel %vm4638_vm3, %v4510_v3, %v4766_v40  ;;  %vm4640_vm5 = vcmp.ge.f32.partialorder %v4512_v18, 0.0  ;;  %v4768_v25 = vmul.f32 0.01, %v4512_v18  ;;  %v3350_v60 = vshra.s32 %v16175_v7, 8 }
 0x157   :  { %v16202_v14 = vpop.f32.mrf.mxu0  ;;  %2157 = vmatprep.mubr.bf16.mxu1 %v22569_v0  ;;  %v16212_v45 = vpop.f32.mrf.mxu1  ;;  %22749 = vst [vmem:[#allocation26_spill] sm:$0xff] %v16218_v21  ;;  %v16235_v26 = vsel %vm4576_vm4, %v4448_v12, %v4704_v35  ;;  %v3352_v27 = vshra.s32 %v16206_v15, 8  ;;  %v3351_v28 = vshra.s32 %v16215_v33, 8  ;;  %v3353_v57 = vshra.s32 %v16218_v21, 8  ;;  %v16274_v35 = vld [vmem:[%s22546_s0 + $0x90] sm:$0xff] }
 0x158   :  { %v16237_v59 = vsel %vm4640_vm5, %v4512_v18, %v4768_v25  ;;  %v16252_v3 = vand.u32 3, %v3350_v60  ;;  %v16279_v25 = vld [vmem:[%s22546_s0 + $0x190] sm:$0xff]  ;;  %v22757_v33 = vmov 0  }
 0x159   :  { %v16220_v48 = vpop.f32.mrf.mxu0  ;;  %v16228_v37 = vpop.f32.mrf.mxu1  ;;  %v16254_v13 = vand.u32 3, %v3352_v27  ;;  %v16256_v19 = vand.u32 3, %v3351_v28  ;;  %v16258_v20 = vand.u32 3, %v3353_v57 }
 0x15a   :  { %vm3606_vm6 = vcmp.eq.s32.totalorder %v16252_v3, 2  ;;  %vm3478_vm7 = vcmp.eq.s32.totalorder %v16252_v3, 0  ;;  %vm3542_vm8 = vcmp.eq.s32.totalorder %v16252_v3, 1 }
 0x15b   :  { %v16232_v56 = vpop.f32.mrf.mxu0  ;;  %v16239_v61 = vpop.f32.mrf.mxu1  ;;  %vm3544_vm9 = vcmp.eq.s32.totalorder %v16254_v13, 1  ;;  %vm3608_vm10 = vcmp.eq.s32.totalorder %v16254_v13, 2  ;;  %vm3480_vm11 = vcmp.eq.s32.totalorder %v16254_v13, 0  ;;  %vm3543_vm12 = vcmp.eq.s32.totalorder %v16256_v19, 1 }
 0x15c   :  { %vm3607_vm13 = vcmp.eq.s32.totalorder %v16256_v19, 2  ;;  %vm3545_vm14 = vcmp.eq.s32.totalorder %v16258_v20, 1  ;;  %vm3479_vm15 = vcmp.eq.s32.totalorder %v16256_v19, 0  ;;  %vm3481_vm1 = vcmp.eq.s32.totalorder %v16258_v20, 0 }
 0x15d   :  { %v1210_v22 = vpop.f32.mrf.mxu0  ;;  %14619 = vmatmul.mubr.msk.bf16.gmra.mxu0 %vm997_vm0, %v15664_v43  ;;  %v1283_v1 = vpop.f32.mrf.mxu1  ;;  %vm3609_vm2 = vcmp.eq.s32.totalorder %v16258_v20, 2 }
 0x15e   :  { %14623 = vmatmul.mubr.msk.bf16.gmra.mxu1 %vm997_vm0, %v15664_v43  ;;  %2094 = vmatprep.mubr.bf16.mxu0 %v22569_v0 }
 0x15f   :  { %v1212_v2 = vpop.f32.mrf.mxu0  ;;  %2167 = vmatprep.mubr.bf16.mxu1 %v22569_v0  ;;  %v1285_v8 = vpop.f32.mrf.mxu1 }
 0x161   :  { %v1214_v12 = vpop.f32.mrf.mxu0  ;;  %v1287_v32 = vpop.f32.mrf.mxu1 }
 0x163   :  { %v1216_v40 = vpop.f32.mrf.mxu0  ;;  %v1289_v43 = vpop.f32.mrf.mxu1 }
 0x165   :  { %v1220_v18 = vpop.f32.mrf.mxu0  ;;  %14620 = vmatmul.mubr.msk.bf16.gmra.mxu0 %vm997_vm0, %v15672_v44  ;;  %v1293_v27 = vpop.f32.mrf.mxu1 }
 0x166   :  { %v3798_v60 = vsel %vm3606_vm6, %v1210_v22, %v1220_v18  ;;  %14624 = vmatmul.mubr.msk.bf16.gmra.mxu1 %vm997_vm0, %v15672_v44  ;;  %2210 = vmatprep.mubr.bf16.mxu0 %v22569_v0  ;;  %v3800_v57 = vsel %vm3608_vm10, %v1283_v1, %v1293_v27  ;;  %v14533_v44 = vcombine.low %v16099_v46, %v16104_v47 }
 0x167   :  { %v4054_v28 = vsel %vm3542_vm8, %v16181_v24, %v3798_v60  ;;  %v1222_v22 = vpop.f32.mrf.mxu0  ;;  %2283 = vmatprep.mubr.bf16.mxu1 %v22569_v0  ;;  %v14535_v18 = vcombine.low %v16116_v52, %v16121_v54  ;;  %v16307_v24 = vld [vmem:[%s22546_s0 + $0x198] sm:$0xff]  ;;  %v4056_v46 = vsel %vm3544_vm9, %v16191_v17, %v3800_v57  ;;  %v1295_v52 = vpop.f32.mrf.mxu1  ;;  %v14469_v54 = vcombine.low %v16274_v35, %v16279_v25  ;;  %v16322_v60 = vld [vmem:[%s22546_s0 + $0x2a0] sm:$0xff] }
 0x168   :  { %v4310_v1 = vsel %vm3478_vm7, %v16133_v58, %v4054_v28  ;;  %v3799_v47 = vsel %vm3607_vm13, %v1212_v2, %v1222_v22  ;;  %v16327_v58 = vld [vmem:[%s22546_s0 + $0x3a0] sm:$0xff]  ;;  %v4312_v17 = vsel %vm3480_vm11, %v16145_v39, %v4056_v46  ;;  %v3801_v27 = vsel %vm3609_vm2, %v1285_v8, %v1295_v52  ;;  %v16342_v22 = vld [vmem:[%s22546_s0 + $0x2a8] sm:$0xff] }
 0x169   :  { %v4055_v2 = vsel %vm3543_vm12, %v16202_v14, %v3799_v47  ;;  %v1224_v28 = vpop.f32.mrf.mxu0  ;;  %v14470_v57 = vcombine.high %v16274_v35, %v16279_v25  ;;  %v16347_v39 = vld [vmem:[%s22546_s0 + $0x3a8] sm:$0xff]  ;;  %v4057_v8 = vsel %vm3545_vm14, %v16212_v45, %v3801_v27  ;;  %v1297_v25 = vpop.f32.mrf.mxu1  ;;  %v14471_v46 = vcombine.low %v16302_v23, %v16307_v24 }
 0x16a   :  { %v4311_v14 = vsel %vm3479_vm15, %v16152_v55, %v4055_v2  ;;  %v3862_v35 = vsel %vm3606_vm6, %v1214_v12, %v1224_v28  ;;  %v4313_v47 = vsel %vm3481_vm1, %v16159_v62, %v4057_v8  ;;  %v14472_v2 = vcombine.high %v16302_v23, %v16307_v24 }
 0x16b   :  { %v4118_v52 = vsel %vm3542_vm8, %v16220_v48, %v3862_v35  ;;  %v1226_v55 = vpop.f32.mrf.mxu0  ;;  %v14538_v45 = vcombine.high %v16322_v60, %v16327_v58  ;;  %v16370_v12 = vadd.f32 %v16057_v9, %v4310_v1  ;;  %v3864_v62 = vsel %vm3608_vm10, %v1287_v32, %v1297_v25  ;;  %v1299_v28 = vpop.f32.mrf.mxu1  ;;  %v16391_v32 = vld [vmem:[#allocation2] sm:$0xff]  }
 0x16c   :  { %v4374_v27 = vsel %vm3478_vm7, %v16165_v63, %v4118_v52  ;;  %v14540_v48 = vcombine.high %v16342_v22, %v16347_v39  ;;  %v16380_v8 = vadd.f32 %v16057_v9, %v4312_v17  ;;  %v4120_v23 = vsel %vm3544_vm9, %v16228_v37, %v3864_v62 }
 0x16d   :  { %v3863_v24 = vsel %vm3607_vm13, %v1216_v40, %v1226_v55  ;;  %v3865_v63 = vsel %vm3609_vm2, %v1289_v43, %v1299_v28  ;;  %v16389_v3 = vpop.f32.mrf.mxu0  ;;  %14625 = vmatmul.mubr.msk.bf16.vlgmr.msra.gmra.mxu0 %vm997_vm0, %v16391_v32  ;;  %v4376_v1 = vsel %vm3480_vm11, %v16170_v4, %v4120_v23  ;;  %v16404_v43 = vpop.f32.mrf.mxu1  ;;  %v4514_v17 = vadd.f32 %v16143_v53, %v4374_v27  ;;  %v16447_v28 = vld [vmem:[#allocation2 + $0x8] sm:$0xff]  }
 0x16e   :  { %v4119_v37 = vsel %vm3543_vm12, %v16232_v56, %v3863_v24  ;;  %v4121_v40 = vsel %vm3545_vm14, %v16239_v61, %v3865_v63  ;;  %14629 = vmatmul.mubr.msk.bf16.vlgmr.msra.gmra.mxu1 %vm997_vm0, %v16391_v32  ;;  %2337 = vmatpush1.bf16.msra.mxu0 %v14533_v44  ;;  %v4451_v61 = vadd.f32 %v16057_v9, %v4311_v14  ;;  %v4706_v14 = vmul.f32 0.01, %v16370_v12 }
 0x16f   :  { %v4375_v4 = vsel %vm3479_vm15, %v16172_v6, %v4119_v37  ;;  %v4377_v56 = vsel %vm3481_vm1, %v16179_v5, %v4121_v40  ;;  %2410 = vmatpush1.bf16.msra.mxu1 %v14535_v18  ;;  %v16415_v13 = vpop.f32.mrf.mxu0  ;;  %2220 = vmatprep.mubr.bf16.mxu0 %v22569_v0  ;;  %v4516_v35 = vadd.f32 %v16143_v53, %v4376_v1  ;;  %v16421_v25 = vpop.f32.mrf.mxu1  ;;  %v16431_v18 = vadd.s32 1024, %v15979_v29 }
 0x170   :  { %v4515_v44 = vadd.f32 %v16143_v53, %v4375_v4  ;;  %2293 = vmatprep.mubr.bf16.mxu1 %v22569_v0  ;;  %2338 = vmatprep.subr.bf16.mxu0 %v14470_v57  ;;  %v4453_v6 = vadd.f32 %v16057_v9, %v4313_v47  ;;  %v4517_v5 = vadd.f32 %v16143_v53, %v4377_v56  ;;  %v4770_v52 = vmul.f32 0.01, %v4514_v17 }
 0x171   :  { %v16426_v19 = vpop.f32.mrf.mxu0  ;;  %2411 = vmatprep.subr.bf16.mxu1 %v14472_v2  ;;  %v16428_v20 = vpop.f32.mrf.mxu1  ;;  %22750 = vst [vmem:[#allocation27_spill] sm:$0xff] %v16431_v18  ;;  %v16437_v57 = vadd.s32 1280, %v15979_v29  ;;  %v16440_v47 = vadd.s32 1152, %v15979_v29  ;;  %v4708_v2 = vmul.f32 0.01, %v16380_v8  ;;  %vm4579_vm3 = vcmp.ge.f32.partialorder %v4451_v61, 0.0 }
 0x172   :  { %2339 = vmatpush1.bf16.msra.mxu0 %v14469_v54  ;;  %v4772_v27 = vmul.f32 0.01, %v4516_v35  ;;  %vm4643_vm4 = vcmp.ge.f32.partialorder %v4515_v44, 0.0  ;;  %v4771_v23 = vmul.f32 0.01, %v4515_v44  ;;  %vm4581_vm5 = vcmp.ge.f32.partialorder %v4453_v6, 0.0 }
 0x173   :  { %v16434_v55 = vpop.f32.mrf.mxu0  ;;  %2412 = vmatpush1.bf16.msra.mxu1 %v14471_v46  ;;  %22751 = vst [vmem:[#allocation28_spill] sm:$0xff] %v16437_v57  ;;  %22752 = vst [vmem:[#allocation29_spill] sm:$0xff] %v16440_v47  ;;  %2482 = vmatprep.subr.bf16.mxu0 %v14538_v45  ;;  %v16443_v54 = vpop.f32.mrf.mxu1  ;;  %v4707_v46 = vmul.f32 0.01, %v4451_v61  ;;  %vm4645_vm6 = vcmp.ge.f32.partialorder %v4517_v5, 0.0  ;;  %vm4578_vm7 = vcmp.ge.f32.partialorder %v16370_v12, 0.0  ;;  %v14539_v36 = vcombine.low %v16342_v22, %v16347_v39 }
 0x174   :  { %2555 = vmatprep.subr.bf16.mxu1 %v14540_v48  ;;  %v4709_v48 = vmul.f32 0.01, %v4453_v6  ;;  %v4773_v24 = vmul.f32 0.01, %v4517_v5  ;;  %vm4642_vm8 = vcmp.ge.f32.partialorder %v4514_v17, 0.0  ;;  %v16464_v37 = vsel %vm4643_vm4, %v4515_v44, %v4771_v23 }
 0x175   :  { %v16445_v62 = vpop.f32.mrf.mxu0  ;;  %14626 = vmatmul.mubr.msk.bf16.gmra.mxu0 %vm997_vm0, %v16447_v28  ;;  %v16451_v45 = vpop.f32.mrf.mxu1  ;;  %v16461_v1 = vsel %vm4579_vm3, %v4451_v61, %v4707_v46  ;;  %v16467_v40 = vsel %vm4578_vm7, %v16370_v12, %v4706_v14  ;;  %v16469_v4 = vsel %vm4642_vm8, %v4514_v17, %v4770_v52  ;;  %v16486_v12 = vadd.s32 1408, %v15979_v29  ;;  %v16506_v17 = vld [vmem:[#allocation2 + $0x10] sm:$0xff]  }
 0x176   :  { %14630 = vmatmul.mubr.msk.bf16.gmra.mxu1 %vm997_vm0, %v16447_v28  ;;  %2230 = vmatprep.mubr.bf16.mxu0 %v22569_v0  ;;  %22753 = vst [vmem:[#allocation30_spill] sm:$0xff] %v16467_v40  ;;  %v16476_v51 = vsel %vm4581_vm5, %v4453_v6, %v4709_v48  ;;  %v16479_v41 = vsel %vm4645_vm6, %v4517_v5, %v4773_v24  ;;  %vm4580_vm9 = vcmp.ge.f32.partialorder %v16380_v8, 0.0  ;;  %vm4644_vm10 = vcmp.ge.f32.partialorder %v4516_v35, 0.0 }
 0x177   :  { %v16457_v63 = vpop.f32.mrf.mxu0  ;;  %2303 = vmatprep.mubr.bf16.mxu1 %v22569_v0  ;;  %v16471_v56 = vpop.f32.mrf.mxu1  ;;  %22754 = vst [vmem:[#allocation31_spill] sm:$0xff] %v16486_v12  ;;  %v16494_v6 = vsel %vm4580_vm9, %v16380_v8, %v4708_v2  ;;  %v16496_v5 = vsel %vm4644_vm10, %v4516_v35, %v4772_v27  ;;  %v3354_v46 = vshra.s32 %v16431_v18, 8  ;;  %v3356_v24 = vshra.s32 %v16437_v57, 8 }
 0x178   :  { %22755 = vst [vmem:[#allocation32_spill] sm:$0xff] %v16494_v6  ;;  %22756 = vst [vmem:[#allocation33_spill] sm:$0xff] %v16496_v5  ;;  %v3355_v8 = vshra.s32 %v16440_v47, 8  ;;  %v3357_v35 = vshra.s32 %v16486_v12, 8  ;;  %v16570_v6 = vld [vmem:[%s22546_s0 + $0xa8] sm:$0xff] }
 0x179   :  { %v16483_v44 = vpop.f32.mrf.mxu0  ;;  %v16491_v14 = vpop.f32.mrf.mxu1  ;;  %v16516_v23 = vand.u32 3, %v3354_v46  ;;  %v16518_v11 = vand.u32 3, %v3356_v24  ;;  %v16532_v24 = vld [vmem:[#allocation2 + $0x18] sm:$0xff]  }
 0x17a   :  { %v16520_v18 = vand.u32 3, %v3355_v8  ;;  %v16522_v47 = vand.u32 3, %v3357_v35  ;;  %v16542_v8 = vld [vmem:[%s22546_s0 + $0xa0] sm:$0xff] }
 0x17b   :  { %v16498_v52 = vpop.f32.mrf.mxu0  ;;  %v16503_v48 = vpop.f32.mrf.mxu1  ;;  %vm3610_vm11 = vcmp.eq.s32.totalorder %v16516_v23, 2  ;;  %vm3482_vm12 = vcmp.eq.s32.totalorder %v16516_v23, 0  ;;  %vm3546_vm13 = vcmp.eq.s32.totalorder %v16516_v23, 1  ;;  %vm3548_vm14 = vcmp.eq.s32.totalorder %v16518_v11, 1  ;;  %v16547_v35 = vld [vmem:[%s22546_s0 + $0x1a0] sm:$0xff] }
 0x17c   :  { %vm3612_vm15 = vcmp.eq.s32.totalorder %v16518_v11, 2  ;;  %vm3484_vm1 = vcmp.eq.s32.totalorder %v16518_v11, 0  ;;  %vm3547_vm2 = vcmp.eq.s32.totalorder %v16520_v18, 1  ;;  %vm3611_vm3 = vcmp.eq.s32.totalorder %v16520_v18, 2 }
 0x17d   :  { %v1356_v61 = vpop.f32.mrf.mxu0  ;;  %14627 = vmatmul.mubr.msk.bf16.gmra.mxu0 %vm997_vm0, %v16506_v17  ;;  %v1429_v2 = vpop.f32.mrf.mxu1  ;;  %vm3549_vm4 = vcmp.eq.s32.totalorder %v16522_v47, 1  ;;  %vm3483_vm5 = vcmp.eq.s32.totalorder %v16520_v18, 0  ;;  %vm3485_vm6 = vcmp.eq.s32.totalorder %v16522_v47, 0  ;;  %vm3613_vm7 = vcmp.eq.s32.totalorder %v16522_v47, 2 }
 0x17e   :  { %14631 = vmatmul.mubr.msk.bf16.gmra.mxu1 %vm997_vm0, %v16506_v17  ;;  %2240 = vmatprep.mubr.bf16.mxu0 %v22569_v0  ;;  %v14473_v39 = vcombine.low %v16542_v8, %v16547_v35 }
 0x17f   :  { %v1358_v27 = vpop.f32.mrf.mxu0  ;;  %2313 = vmatprep.mubr.bf16.mxu1 %v22569_v0  ;;  %v1431_v42 = vpop.f32.mrf.mxu1 }
 0x181   :  { %v1360_v57 = vpop.f32.mrf.mxu0  ;;  %v1433_v12 = vpop.f32.mrf.mxu1 }
 0x183   :  { %v16524_v15 = vpop.f32.mrf.mxu0  ;;  %v1435_v7 = vpop.f32.mrf.mxu1 }
 0x185   :  { %v1366_v46 = vpop.f32.mrf.mxu0  ;;  %14628 = vmatmul.mubr.msk.bf16.gmra.mxu0 %vm997_vm0, %v16532_v24  ;;  %v1439_v21 = vpop.f32.mrf.mxu1 }
 0x186   :  { %v3802_v0 = vsel %vm3610_vm11, %v1356_v61, %v1366_v46  ;;  %14632 = vmatmul.mubr.msk.bf16.gmra.mxu1 %vm997_vm0, %v16532_v24  ;;  %2356 = vmatprep.mubr.bf16.mxu0 %v22757_v33  ;;  %v3804_v38 = vsel %vm3612_vm15, %v1429_v2, %v1439_v21  ;;  %v14537_v46 = vcombine.low %v16322_v60, %v16327_v58 }
 0x187   :  { %v4058_v34 = vsel %vm3546_vm13, %v16445_v62, %v3802_v0  ;;  %v1368_v61 = vpop.f32.mrf.mxu0  ;;  %2429 = vmatprep.mubr.bf16.mxu1 %v22757_v33  ;;  %v16575_v0 = vld [vmem:[%s22546_s0 + $0x1a8] sm:$0xff]  ;;  %v4060_v60 = vsel %vm3548_vm14, %v16451_v45, %v3804_v38  ;;  %v1441_v22 = vpop.f32.mrf.mxu1  ;;  %v16590_v62 = vld [vmem:[%s22546_s0 + $0x2b0] sm:$0xff] }
 0x188   :  { %v4314_v21 = vsel %vm3482_vm12, %v16389_v3, %v4058_v34  ;;  %v3803_v58 = vsel %vm3611_vm3, %v1358_v27, %v1368_v61  ;;  %v16595_v34 = vld [vmem:[%s22546_s0 + $0x3b0] sm:$0xff]  ;;  %v4316_v38 = vsel %vm3484_vm1, %v16404_v43, %v4060_v60  ;;  %v3805_v45 = vsel %vm3613_vm7, %v1431_v42, %v1441_v22  ;;  %v16610_v61 = vld [vmem:[%s22546_s0 + $0x2b8] sm:$0xff] }
 0x189   :  { %v4059_v3 = vsel %vm3547_vm2, %v16457_v63, %v3803_v58  ;;  %v1370_v2 = vpop.f32.mrf.mxu0  ;;  %v14474_v27 = vcombine.high %v16542_v8, %v16547_v35  ;;  %v16615_v43 = vld [vmem:[%s22546_s0 + $0x3b8] sm:$0xff]  ;;  %v4061_v42 = vsel %vm3549_vm4, %v16471_v56, %v3805_v45  ;;  %v1443_v35 = vpop.f32.mrf.mxu1  ;;  %v14475_v60 = vcombine.low %v16570_v6, %v16575_v0 }
 0x18a   :  { %v4315_v63 = vsel %vm3483_vm5, %v16415_v13, %v4059_v3  ;;  %v3866_v8 = vsel %vm3610_vm11, %v1360_v57, %v1370_v2  ;;  %v4317_v58 = vsel %vm3485_vm6, %v16421_v25, %v4061_v42  ;;  %v14476_v3 = vcombine.high %v16570_v6, %v16575_v0 }
 0x18b   :  { %v4122_v22 = vsel %vm3546_vm13, %v16483_v44, %v3866_v8  ;;  %v1372_v13 = vpop.f32.mrf.mxu0  ;;  %v14542_v56 = vcombine.high %v16590_v62, %v16595_v34  ;;  %v16638_v57 = vadd.f32 %v16057_v9, %v4314_v21  ;;  %v3868_v25 = vsel %vm3612_vm15, %v1433_v12, %v1443_v35  ;;  %v1445_v2 = vpop.f32.mrf.mxu1 }
 0x18c   :  { %v4378_v45 = vsel %vm3482_vm12, %v16426_v19, %v4122_v22  ;;  %v14544_v44 = vcombine.high %v16610_v61, %v16615_v43  ;;  %v16648_v42 = vadd.f32 %v16057_v9, %v4316_v38  ;;  %v4124_v6 = vsel %vm3548_vm14, %v16491_v14, %v3868_v25 }
 0x18d   :  { %v3867_v0 = vsel %vm3611_vm3, %v16524_v15, %v1372_v13  ;;  %v3869_v19 = vsel %vm3613_vm7, %v1435_v7, %v1445_v2  ;;  %v16658_v23 = vpop.f32.mrf.mxu0  ;;  %14633 = vmatmul.mubr.msk.bf16.vlgmr.msra.gmra.mxu0 %vm997_vm0, %v16391_v32  ;;  %v4380_v12 = vsel %vm3484_vm1, %v16428_v20, %v4124_v6  ;;  %v16671_v21 = vpop.f32.mrf.mxu1  ;;  %v4518_v7 = vadd.f32 %v16143_v53, %v4378_v45 }
 0x18e   :  { %v4123_v14 = vsel %vm3547_vm2, %v16498_v52, %v3867_v0  ;;  %v4125_v15 = vsel %vm3549_vm4, %v16503_v48, %v3869_v19  ;;  %14637 = vmatmul.mubr.msk.bf16.vlgmr.msra.gmra.mxu1 %vm997_vm0, %v16391_v32  ;;  %2483 = vmatpush1.bf16.msra.mxu0 %v14537_v46  ;;  %v4455_v48 = vadd.f32 %v16057_v9, %v4315_v63  ;;  %v16701_v22 = vadd.s32 1536, %v15979_v29 }
 0x18f   :  { %v4379_v11 = vsel %vm3483_vm5, %v16434_v55, %v4123_v14  ;;  %v4381_v20 = vsel %vm3485_vm6, %v16443_v54, %v4125_v15  ;;  %2556 = vmatpush1.bf16.msra.mxu1 %v14539_v36  ;;  %v16682_v52 = vpop.f32.mrf.mxu0  ;;  %2366 = vmatprep.mubr.bf16.mxu0 %v22757_v33  ;;  %v4520_v38 = vadd.f32 %v16143_v53, %v4380_v12  ;;  %v16688_v8 = vpop.f32.mrf.mxu1  ;;  %v4710_v54 = vmul.f32 0.01, %v16638_v57 }
 0x190   :  { %v4519_v46 = vadd.f32 %v16143_v53, %v4379_v11  ;;  %2439 = vmatprep.mubr.bf16.mxu1 %v22757_v33  ;;  %2484 = vmatprep.subr.bf16.mxu0 %v14474_v27  ;;  %v4457_v18 = vadd.f32 %v16057_v9, %v4317_v58  ;;  %v4521_v55 = vadd.f32 %v16143_v53, %v4381_v20  ;;  %v4774_v63 = vmul.f32 0.01, %v4518_v7 }
 0x191   :  { %v16693_v36 = vpop.f32.mrf.mxu0  ;;  %2557 = vmatprep.subr.bf16.mxu1 %v14476_v3  ;;  %v16695_v47 = vpop.f32.mrf.mxu1  ;;  %22758 = vst [vmem:[#allocation34_spill] sm:$0xff] %v16701_v22  ;;  %v16704_v27 = vadd.s32 1792, %v15979_v29  ;;  %v4712_v58 = vmul.f32 0.01, %v16648_v42  ;;  %v4776_v13 = vmul.f32 0.01, %v4520_v38 }
 0x192   :  { %2485 = vmatpush1.bf16.msra.mxu0 %v14473_v39  ;;  %vm4583_vm8 = vcmp.ge.f32.partialorder %v4455_v48, 0.0  ;;  %vm4647_vm9 = vcmp.ge.f32.partialorder %v4519_v46, 0.0  ;;  %v4775_v45 = vmul.f32 0.01, %v4519_v46  ;;  %vm4585_vm10 = vcmp.ge.f32.partialorder %v4457_v18, 0.0 }
 0x193   :  { %v16698_v35 = vpop.f32.mrf.mxu0  ;;  %2558 = vmatpush1.bf16.msra.mxu1 %v14475_v60  ;;  %22759 = vst [vmem:[#allocation35_spill] sm:$0xff] %v16704_v27  ;;  %2628 = vmatprep.subr.bf16.mxu0 %v14542_v56  ;;  %v16707_v3 = vpop.f32.mrf.mxu1  ;;  %v4711_v60 = vmul.f32 0.01, %v4455_v48  ;;  %vm4649_vm11 = vcmp.ge.f32.partialorder %v4521_v55, 0.0  ;;  %v4713_v56 = vmul.f32 0.01, %v4457_v18 }
 0x194   :  { %2701 = vmatprep.subr.bf16.mxu1 %v14544_v44  ;;  %v4777_v2 = vmul.f32 0.01, %v4521_v55  ;;  %vm4582_vm12 = vcmp.ge.f32.partialorder %v16638_v57, 0.0  ;;  %vm4646_vm13 = vcmp.ge.f32.partialorder %v4518_v7, 0.0  ;;  %v16726_v0 = vsel %vm4647_vm9, %v4519_v46, %v4775_v45 }
 0x195   :  { %v16709_v39 = vpop.f32.mrf.mxu0  ;;  %14634 = vmatmul.mubr.msk.bf16.gmra.mxu0 %vm997_vm0, %v16447_v28  ;;  %v16713_v25 = vpop.f32.mrf.mxu1  ;;  %v16723_v6 = vsel %vm4583_vm8, %v4455_v48, %v4711_v60  ;;  %22761 = vst [vmem:[#allocation37_spill] sm:$0xff] %v16726_v0  ;;  %v16729_v19 = vsel %vm4582_vm12, %v16638_v57, %v4710_v54  ;;  %v16731_v12 = vsel %vm4646_vm13, %v4518_v7, %v4774_v63  ;;  %v16748_v57 = vadd.s32 1664, %v15979_v29  ;;  %v16865_v0 = vld [vmem:[%s22546_s0 + $0x2c8] sm:$0xff] }
 0x196   :  { %14638 = vmatmul.mubr.msk.bf16.gmra.mxu1 %vm997_vm0, %v16447_v28  ;;  %2376 = vmatprep.mubr.bf16.mxu0 %v22757_v33  ;;  %22760 = vst [vmem:[#allocation36_spill] sm:$0xff] %v16723_v6  ;;  %22762 = vst [vmem:[#allocation38_spill] sm:$0xff] %v16729_v19  ;;  %v16738_v11 = vsel %vm4585_vm10, %v4457_v18, %v4713_v56  ;;  %v16741_v20 = vsel %vm4649_vm11, %v4521_v55, %v4777_v2  ;;  %vm4584_vm14 = vcmp.ge.f32.partialorder %v16648_v42, 0.0 }
 0x197   :  { %v16719_v44 = vpop.f32.mrf.mxu0  ;;  %2449 = vmatprep.mubr.bf16.mxu1 %v22757_v33  ;;  %22763 = vst [vmem:[#allocation39_spill] sm:$0xff] %v16731_v12  ;;  %v16733_v14 = vpop.f32.mrf.mxu1  ;;  %22764 = vst [vmem:[#allocation40_spill] sm:$0xff] %v16738_v11  ;;  %vm4648_vm15 = vcmp.ge.f32.partialorder %v4520_v38, 0.0  ;;  %v16756_v18 = vadd.s32 1920, %v15979_v29  ;;  %v16759_v55 = vsel %vm4584_vm14, %v16648_v42, %v4712_v58  ;;  %v3358_v45 = vshra.s32 %v16701_v22, 8 }
 0x198   :  { %22765 = vst [vmem:[#allocation41_spill] sm:$0xff] %v16741_v20  ;;  %22766 = vst [vmem:[#allocation42_spill] sm:$0xff] %v16748_v57  ;;  %v16761_v63 = vsel %vm4648_vm15, %v4520_v38, %v4776_v13  ;;  %v3360_v48 = vshra.s32 %v16704_v27, 8  ;;  %v3359_v42 = vshra.s32 %v16748_v57, 8  ;;  %v256_v20 = vld [vmem:[%s22546_s0 + $0x1b8] sm:$0xff] }
 0x199   :  { %v16745_v46 = vpop.f32.mrf.mxu0  ;;  %v16753_v54 = vpop.f32.mrf.mxu1  ;;  %22767 = vst [vmem:[#allocation43_spill] sm:$0xff] %v16756_v18  ;;  %22768 = vst [vmem:[#allocation44_spill] sm:$0xff] %v16759_v55  ;;  %v3361_v38 = vshra.s32 %v16756_v18, 8  ;;  %v3422_v56 = vand.u32 3, %v3358_v45 }
 0x19a   :  { %22769 = vst [vmem:[#allocation45_spill] sm:$0xff] %v16761_v63  ;;  %v16779_v27 = vand.u32 3, %v3360_v48  ;;  %v16781_v55 = vand.u32 3, %v3359_v42 }
 0x19b   :  { %v16763_v60 = vpop.f32.mrf.mxu0  ;;  %v16768_v2 = vpop.f32.mrf.mxu1  ;;  %v16783_v57 = vand.u32 3, %v3361_v38  ;;  %vm3614_vm1 = vcmp.eq.s32.totalorder %v3422_v56, 2  ;;  %vm3550_vm2 = vcmp.eq.s32.totalorder %v3422_v56, 1  ;;  %vm3486_vm4 = vcmp.eq.s32.totalorder %v3422_v56, 0 }
 0x19c   :  { %vm3616_vm3 = vcmp.eq.s32.totalorder %v16779_v27, 2  ;;  %vm3552_vm5 = vcmp.eq.s32.totalorder %v16779_v27, 1  ;;  %vm3615_vm6 = vcmp.eq.s32.totalorder %v16781_v55, 2  ;;  %vm3488_vm7 = vcmp.eq.s32.totalorder %v16779_v27, 0 }
 0x19d   :  { %v1502_v7 = vpop.f32.mrf.mxu0  ;;  %14635 = vmatmul.mubr.msk.bf16.gmra.mxu0 %vm997_vm0, %v16506_v17  ;;  %v1575_v58 = vpop.f32.mrf.mxu1  ;;  %vm3551_vm8 = vcmp.eq.s32.totalorder %v16781_v55, 1  ;;  %vm3617_vm9 = vcmp.eq.s32.totalorder %v16783_v57, 2  ;;  %vm3487_vm10 = vcmp.eq.s32.totalorder %v16781_v55, 0  ;;  %vm3553_vm11 = vcmp.eq.s32.totalorder %v16783_v57, 1 }
 0x19e   :  { %14639 = vmatmul.mubr.msk.bf16.gmra.mxu1 %vm997_vm0, %v16506_v17  ;;  %2386 = vmatprep.mubr.bf16.mxu0 %v22757_v33  ;;  %vm3489_vm12 = vcmp.eq.s32.totalorder %v16783_v57, 0 }
 0x19f   :  { %v1504_v13 = vpop.f32.mrf.mxu0  ;;  %2459 = vmatprep.mubr.bf16.mxu1 %v22757_v33  ;;  %v1577_v15 = vpop.f32.mrf.mxu1 }
 0x1a1   :  { %v1506_v22 = vpop.f32.mrf.mxu0  ;;  %v1579_v63 = vpop.f32.mrf.mxu1 }
 0x1a3   :  { %v1508_v19 = vpop.f32.mrf.mxu0  ;;  %v1581_v12 = vpop.f32.mrf.mxu1 }
 0x1a5   :  { %v1512_v18 = vpop.f32.mrf.mxu0  ;;  %14636 = vmatmul.mubr.msk.bf16.gmra.mxu0 %vm997_vm0, %v16532_v24  ;;  %v1585_v45 = vpop.f32.mrf.mxu1 }
 0x1a6   :  { %v3806_v48 = vsel %vm3614_vm1, %v1502_v7, %v1512_v18  ;;  %14640 = vmatmul.mubr.msk.bf16.gmra.mxu1 %vm997_vm0, %v16532_v24  ;;  %2502 = vmatprep.mubr.bf16.mxu0 %v22757_v33  ;;  %v3808_v38 = vsel %vm3616_vm3, %v1575_v58, %v1585_v45  ;;  %v223_v58 = vld [vmem:[%s22546_s0 + $0xb0] sm:$0xff] }
 0x1a7   :  { %v4062_v42 = vsel %vm3550_vm2, %v16709_v39, %v3806_v48  ;;  %v1514_v11 = vpop.f32.mrf.mxu0  ;;  %2575 = vmatprep.mubr.bf16.mxu1 %v22757_v33  ;;  %v4064_v18 = vsel %vm3552_vm5, %v16713_v25, %v3808_v38  ;;  %v1587_v48 = vpop.f32.mrf.mxu1  ;;  %v255_v45 = vld [vmem:[%s22546_s0 + $0x1b0] sm:$0xff]  ;;  %v224_v38 = vld [vmem:[%s22546_s0 + $0xb8] sm:$0xff] }
 0x1a8   :  { %v4318_v7 = vsel %vm3486_vm4, %v16658_v23, %v4062_v42  ;;  %v3807_v39 = vsel %vm3615_vm6, %v1504_v13, %v1514_v11  ;;  %v4320_v23 = vsel %vm3488_vm7, %v16671_v21, %v4064_v18  ;;  %v3809_v11 = vsel %vm3617_vm9, %v1577_v15, %v1587_v48 }
 0x1a9   :  { %v4063_v25 = vsel %vm3551_vm8, %v16719_v44, %v3807_v39  ;;  %v1516_v13 = vpop.f32.mrf.mxu0  ;;  %v14541_v42 = vcombine.low %v16590_v62, %v16595_v34  ;;  %v4065_v44 = vsel %vm3553_vm11, %v16733_v14, %v3809_v11  ;;  %v1589_v18 = vpop.f32.mrf.mxu1  ;;  %v14543_v62 = vcombine.low %v16610_v61, %v16615_v43  ;;  %v16846_v34 = vld [vmem:[%s22546_s0 + $0x2c0] sm:$0xff] }
 0x1aa   :  { %v4319_v21 = vsel %vm3487_vm10, %v16682_v52, %v4063_v25  ;;  %v3870_v15 = vsel %vm3614_vm1, %v1506_v22, %v1516_v13  ;;  %v16851_v39 = vld [vmem:[%s22546_s0 + $0x3c0] sm:$0xff]  ;;  %v4321_v52 = vsel %vm3489_vm12, %v16688_v8, %v4065_v44  ;;  %v14477_v48 = vcombine.low %v223_v58, %v255_v45  ;;  %v16870_v8 = vld [vmem:[%s22546_s0 + $0x3c8] sm:$0xff] }
 0x1ab   :  { %v4126_v22 = vsel %vm3550_vm2, %v16745_v46, %v3870_v15  ;;  %v1518_v14 = vpop.f32.mrf.mxu0  ;;  %v14478_v61 = vcombine.high %v223_v58, %v255_v45  ;;  %v3872_v25 = vsel %vm3616_vm3, %v1579_v63, %v1589_v18  ;;  %v1591_v11 = vpop.f32.mrf.mxu1  ;;  %v14479_v13 = vcombine.low %v224_v38, %v256_v20 }
 0x1ac   :  { %v4382_v43 = vsel %vm3486_vm4, %v16693_v36, %v4126_v22  ;;  %v14480_v6 = vcombine.high %v224_v38, %v256_v20  ;;  %v4128_v36 = vsel %vm3552_vm5, %v16753_v54, %v3872_v25  ;;  %v3871_v46 = vsel %vm3615_vm6, %v1508_v19, %v1518_v14 }
 0x1ad   :  { %v3873_v20 = vsel %vm3617_vm9, %v1581_v12, %v1591_v11  ;;  %v16879_v63 = vpop.f32.mrf.mxu0  ;;  %14641 = vmatmul.mubr.msk.bf16.vlgmr.msra.gmra.mxu0 %vm997_vm0, %v16391_v32  ;;  %v14546_v56 = vcombine.high %v16846_v34, %v16851_v39  ;;  %v4384_v58 = vsel %vm3488_vm7, %v16695_v47, %v4128_v36  ;;  %v4127_v54 = vsel %vm3551_vm8, %v16763_v60, %v3871_v46  ;;  %v16894_v12 = vpop.f32.mrf.mxu1 }
 0x1ae   :  { %v4129_v19 = vsel %vm3553_vm11, %v16768_v2, %v3873_v20  ;;  %14645 = vmatmul.mubr.msk.bf16.vlgmr.msra.gmra.mxu1 %vm997_vm0, %v16391_v32  ;;  %2629 = vmatpush1.bf16.msra.mxu0 %v14541_v42  ;;  %v4383_v45 = vsel %vm3487_vm10, %v16698_v35, %v4127_v54  ;;  %v14548_v60 = vcombine.high %v16865_v0, %v16870_v8  ;;  %v16933_v22 = vadd.s32 2176, %v15979_v29 }
 0x1af   :  { %v4385_v47 = vsel %vm3489_vm12, %v16707_v3, %v4129_v19  ;;  %2702 = vmatpush1.bf16.msra.mxu1 %v14543_v62  ;;  %v16904_v27 = vpop.f32.mrf.mxu0  ;;  %2512 = vmatprep.mubr.bf16.mxu0 %v22757_v33  ;;  %v4458_v2 = vadd.f32 %v16057_v9, %v4318_v7  ;;  %v4460_v42 = vadd.f32 %v16057_v9, %v4320_v23  ;;  %v16912_v55 = vpop.f32.mrf.mxu1  ;;  %v16927_v62 = vadd.s32 2048, %v15979_v29 }
 0x1b0   :  { %v4522_v38 = vadd.f32 %v16143_v53, %v4382_v43  ;;  %2585 = vmatprep.mubr.bf16.mxu1 %v22757_v33  ;;  %2630 = vmatprep.subr.bf16.mxu0 %v14478_v61  ;;  %v4459_v35 = vadd.f32 %v16057_v9, %v4319_v21  ;;  %v4524_v3 = vadd.f32 %v16143_v53, %v4384_v58  ;;  %v16930_v21 = vadd.s32 2304, %v15979_v29 }
 0x1b1   :  { %v4523_v57 = vadd.f32 %v16143_v53, %v4383_v45  ;;  %v16918_v44 = vpop.f32.mrf.mxu0  ;;  %2703 = vmatprep.subr.bf16.mxu1 %v14480_v6  ;;  %v4461_v7 = vadd.f32 %v16057_v9, %v4321_v52  ;;  %v4525_v23 = vadd.f32 %v16143_v53, %v4385_v47  ;;  %v16922_v15 = vpop.f32.mrf.mxu1  ;;  %22770 = vst [vmem:[#allocation46_spill] sm:$0xff] %v16927_v62  ;;  %22772 = vst [vmem:[#allocation48_spill] sm:$0xff] %v16933_v22 }
 0x1b2   :  { %2631 = vmatpush1.bf16.msra.mxu0 %v14477_v48  ;;  %22771 = vst [vmem:[#allocation47_spill] sm:$0xff] %v16930_v21  ;;  %v4714_v6 = vmul.f32 0.01, %v4458_v2  ;;  %v4716_v52 = vmul.f32 0.01, %v4460_v42  ;;  %vm4587_vm13 = vcmp.ge.f32.partialorder %v4459_v35, 0.0 }
 0x1b3   :  { %v16924_v18 = vpop.f32.mrf.mxu0  ;;  %2704 = vmatpush1.bf16.msra.mxu1 %v14479_v13  ;;  %2774 = vmatprep.subr.bf16.mxu0 %v14546_v56  ;;  %v4778_v14 = vmul.f32 0.01, %v4522_v38  ;;  %v16935_v61 = vpop.f32.mrf.mxu1  ;;  %v4780_v48 = vmul.f32 0.01, %v4524_v3  ;;  %vm4651_vm14 = vcmp.ge.f32.partialorder %v4523_v57, 0.0  ;;  %vm4589_vm15 = vcmp.ge.f32.partialorder %v4461_v7, 0.0 }
 0x1b4   :  { %2847 = vmatprep.subr.bf16.mxu1 %v14548_v60  ;;  %v4715_v25 = vmul.f32 0.01, %v4459_v35  ;;  %v4779_v13 = vmul.f32 0.01, %v4523_v57  ;;  %vm4653_vm1 = vcmp.ge.f32.partialorder %v4525_v23, 0.0  ;;  %vm4586_vm2 = vcmp.ge.f32.partialorder %v4458_v2, 0.0 }
 0x1b5   :  { %v16937_v43 = vpop.f32.mrf.mxu0  ;;  %14642 = vmatmul.mubr.msk.bf16.gmra.mxu0 %vm997_vm0, %v16447_v28  ;;  %v16941_v11 = vpop.f32.mrf.mxu1  ;;  %v4717_v36 = vmul.f32 0.01, %v4461_v7  ;;  %v4781_v56 = vmul.f32 0.01, %v4525_v23  ;;  %vm4650_vm3 = vcmp.ge.f32.partialorder %v4522_v38, 0.0  ;;  %v16958_v45 = vsel %vm4586_vm2, %v4458_v2, %v4714_v6 }
 0x1b6   :  { %14646 = vmatmul.mubr.msk.bf16.gmra.mxu1 %vm997_vm0, %v16447_v28  ;;  %2522 = vmatprep.mubr.bf16.mxu0 %v22757_v33  ;;  %v16949_v20 = vsel %vm4587_vm13, %v4459_v35, %v4715_v25  ;;  %v16954_v54 = vsel %vm4651_vm14, %v4523_v57, %v4779_v13  ;;  %22774 = vst [vmem:[#allocation50_spill] sm:$0xff] %v16958_v45  ;;  %vm4588_vm4 = vcmp.ge.f32.partialorder %v4460_v42, 0.0  ;;  %v16973_v57 = vadd.s32 2432, %v15979_v29 }
 0x1b7   :  { %v16946_v46 = vpop.f32.mrf.mxu0  ;;  %2595 = vmatprep.mubr.bf16.mxu1 %v22757_v33  ;;  %v16951_v58 = vpop.f32.mrf.mxu1  ;;  %v16956_v19 = vsel %vm4589_vm15, %v4461_v7, %v4717_v36  ;;  %v16960_v47 = vsel %vm4650_vm3, %v4522_v38, %v4778_v14  ;;  %v16966_v25 = vsel %vm4653_vm1, %v4525_v23, %v4781_v56  ;;  %vm4652_vm5 = vcmp.ge.f32.partialorder %v4524_v3, 0.0 }
 0x1b8   :  { %22773 = vst [vmem:[#allocation49_spill] sm:$0xff] %v16956_v19  ;;  %22775 = vst [vmem:[#allocation51_spill] sm:$0xff] %v16960_v47  ;;  %v3362_v7 = vshra.s32 %v16927_v62, 8  ;;  %v16980_v6 = vsel %vm4588_vm4, %v4460_v42, %v4716_v52  ;;  %v16982_v23 = vsel %vm4652_vm5, %v4524_v3, %v4780_v48  ;;  %v3364_v13 = vshra.s32 %v16930_v21, 8  ;;  %v258_v47 = vld [vmem:[%s22546_s0 + $0x1c8] sm:$0xff] }
 0x1b9   :  { %v16962_v60 = vpop.f32.mrf.mxu0  ;;  %22776 = vst [vmem:[#allocation52_spill] sm:$0xff] %v16966_v25  ;;  %v16970_v40 = vpop.f32.mrf.mxu1  ;;  %22777 = vst [vmem:[#allocation53_spill] sm:$0xff] %v16973_v57  ;;  %v3363_v5 = vshra.s32 %v16933_v22, 8  ;;  %v3365_v42 = vshra.s32 %v16973_v57, 8 }
 0x1ba   :  { %22778 = vst [vmem:[#allocation54_spill] sm:$0xff] %v16980_v6  ;;  %22779 = vst [vmem:[#allocation55_spill] sm:$0xff] %v16982_v23  ;;  %v3426_v52 = vand.u32 3, %v3362_v7  ;;  %v16997_v36 = vand.u32 3, %v3364_v13 }
 0x1bb   :  { %v16977_v38 = vpop.f32.mrf.mxu0  ;;  %v16984_v14 = vpop.f32.mrf.mxu1  ;;  %v16999_v21 = vand.u32 3, %v3363_v5  ;;  %v17001_v22 = vand.u32 3, %v3365_v42 }
 0x1bc   :  { %vm3618_vm6 = vcmp.eq.s32.totalorder %v3426_v52, 2  ;;  %vm3554_vm7 = vcmp.eq.s32.totalorder %v3426_v52, 1  ;;  %vm3620_vm8 = vcmp.eq.s32.totalorder %v16997_v36, 2  ;;  %vm3490_vm9 = vcmp.eq.s32.totalorder %v3426_v52, 0  ;;  %v17095_v52 = vld [vmem:[%s22546_s0 + $0x2d8] sm:$0xff] }
 0x1bd   :  { %v1648_v56 = vpop.f32.mrf.mxu0  ;;  %14643 = vmatmul.mubr.msk.bf16.gmra.mxu0 %vm997_vm0, %v16506_v17  ;;  %v1721_v2 = vpop.f32.mrf.mxu1  ;;  %vm3556_vm10 = vcmp.eq.s32.totalorder %v16997_v36, 1  ;;  %vm3619_vm11 = vcmp.eq.s32.totalorder %v16999_v21, 2  ;;  %vm3492_vm12 = vcmp.eq.s32.totalorder %v16997_v36, 0  ;;  %vm3555_vm13 = vcmp.eq.s32.totalorder %v16999_v21, 1 }
 0x1be   :  { %14647 = vmatmul.mubr.msk.bf16.gmra.mxu1 %vm997_vm0, %v16506_v17  ;;  %2532 = vmatprep.mubr.bf16.mxu0 %v22757_v33  ;;  %vm3621_vm14 = vcmp.eq.s32.totalorder %v17001_v22, 2  ;;  %vm3491_vm15 = vcmp.eq.s32.totalorder %v16999_v21, 0  ;;  %vm3557_vm1 = vcmp.eq.s32.totalorder %v17001_v22, 1  ;;  %vm3493_vm2 = vcmp.eq.s32.totalorder %v17001_v22, 0 }
 0x1bf   :  { %v1650_v3 = vpop.f32.mrf.mxu0  ;;  %2605 = vmatprep.mubr.bf16.mxu1 %v22757_v33  ;;  %v1723_v48 = vpop.f32.mrf.mxu1 }
 0x1c1   :  { %v1652_v35 = vpop.f32.mrf.mxu0  ;;  %v1725_v62 = vpop.f32.mrf.mxu1 }
 0x1c3   :  { %v1654_v6 = vpop.f32.mrf.mxu0  ;;  %v1727_v23 = vpop.f32.mrf.mxu1 }
 0x1c5   :  { %v1658_v57 = vpop.f32.mrf.mxu0  ;;  %14644 = vmatmul.mubr.msk.bf16.gmra.mxu0 %vm997_vm0, %v16532_v24  ;;  %v1731_v7 = vpop.f32.mrf.mxu1 }
 0x1c6   :  { %v3810_v5 = vsel %vm3618_vm6, %v1648_v56, %v1658_v57  ;;  %14648 = vmatmul.mubr.msk.bf16.gmra.mxu1 %vm997_vm0, %v16532_v24  ;;  %2648 = vmatprep.mubr.bf16.mxu0 %v22757_v33  ;;  %v3812_v42 = vsel %vm3620_vm8, %v1721_v2, %v1731_v7  ;;  %v225_v2 = vld [vmem:[%s22546_s0 + $0xc0] sm:$0xff] }
 0x1c7   :  { %v4066_v13 = vsel %vm3554_vm7, %v16937_v43, %v3810_v5  ;;  %v1660_v45 = vpop.f32.mrf.mxu0  ;;  %2721 = vmatprep.mubr.bf16.mxu1 %v22757_v33  ;;  %v4068_v56 = vsel %vm3556_vm10, %v16941_v11, %v3812_v42  ;;  %v1733_v5 = vpop.f32.mrf.mxu1  ;;  %v257_v7 = vld [vmem:[%s22546_s0 + $0x1c0] sm:$0xff]  ;;  %v226_v42 = vld [vmem:[%s22546_s0 + $0xc8] sm:$0xff] }
 0x1c8   :  { %v4322_v57 = vsel %vm3490_vm9, %v16879_v63, %v4066_v13  ;;  %v3811_v43 = vsel %vm3619_vm11, %v1650_v3, %v1660_v45  ;;  %v4324_v63 = vsel %vm3492_vm12, %v16894_v12, %v4068_v56  ;;  %v3813_v45 = vsel %vm3621_vm14, %v1723_v48, %v1733_v5 }
 0x1c9   :  { %v4067_v11 = vsel %vm3555_vm13, %v16946_v46, %v3811_v43  ;;  %v1662_v3 = vpop.f32.mrf.mxu0  ;;  %v14545_v13 = vcombine.low %v16846_v34, %v16851_v39  ;;  %v4069_v46 = vsel %vm3557_vm1, %v16951_v58, %v3813_v45  ;;  %v1735_v56 = vpop.f32.mrf.mxu1  ;;  %v14547_v34 = vcombine.low %v16865_v0, %v16870_v8  ;;  %v17073_v0 = vld [vmem:[%s22546_s0 + $0x2d0] sm:$0xff] }
 0x1ca   :  { %v4323_v12 = vsel %vm3491_vm15, %v16904_v27, %v4067_v11  ;;  %v3874_v48 = vsel %vm3618_vm6, %v1652_v35, %v1662_v3  ;;  %v4325_v39 = vsel %vm3493_vm2, %v16912_v55, %v4069_v46  ;;  %v14481_v19 = vcombine.low %v225_v2, %v257_v7  ;;  %v17078_v8 = vld [vmem:[%s22546_s0 + $0x3d0] sm:$0xff] }
 0x1cb   :  { %v4130_v43 = vsel %vm3554_vm7, %v16962_v60, %v3874_v48  ;;  %v1664_v5 = vpop.f32.mrf.mxu0  ;;  %v14482_v27 = vcombine.high %v225_v2, %v257_v7  ;;  %v3876_v58 = vsel %vm3620_vm8, %v1725_v62, %v1735_v56  ;;  %v1737_v35 = vpop.f32.mrf.mxu1  ;;  %v14483_v45 = vcombine.low %v226_v42, %v258_v47 }
 0x1cc   :  { %v4386_v11 = vsel %vm3490_vm9, %v16918_v44, %v4130_v43  ;;  %v14484_v3 = vcombine.high %v226_v42, %v258_v47  ;;  %v4463_v55 = vadd.f32 %v16057_v9, %v4323_v12  ;;  %v4132_v44 = vsel %vm3556_vm10, %v16970_v40, %v3876_v58  ;;  %v17100_v40 = vld [vmem:[%s22546_s0 + $0x3d8] sm:$0xff] }
 0x1cd   :  { %v3875_v62 = vsel %vm3619_vm11, %v1654_v6, %v1664_v5  ;;  %v3877_v47 = vsel %vm3621_vm14, %v1727_v23, %v1737_v35  ;;  %v17088_v60 = vpop.f32.mrf.mxu0  ;;  %14649 = vmatmul.mubr.msk.bf16.vlgmr.msra.gmra.mxu0 %vm997_vm0, %v16391_v32  ;;  %v4388_v6 = vsel %vm3492_vm12, %v16922_v15, %v4132_v44  ;;  %v17111_v7 = vpop.f32.mrf.mxu1  ;;  %v4465_v36 = vadd.f32 %v16057_v9, %v4325_v39 }
 0x1ce   :  { %v4131_v23 = vsel %vm3555_vm13, %v16977_v38, %v3875_v62  ;;  %v4133_v2 = vsel %vm3557_vm1, %v16984_v14, %v3877_v47  ;;  %14653 = vmatmul.mubr.msk.bf16.vlgmr.msra.gmra.mxu1 %vm997_vm0, %v16391_v32  ;;  %2775 = vmatpush1.bf16.msra.mxu0 %v14545_v13  ;;  %v14550_v14 = vcombine.high %v17073_v0, %v17078_v8  ;;  %vm4591_vm3 = vcmp.ge.f32.partialorder %v4463_v55, 0.0 }
 0x1cf   :  { %v4387_v42 = vsel %vm3491_vm15, %v16924_v18, %v4131_v23  ;;  %v4389_v15 = vsel %vm3493_vm2, %v16935_v61, %v4133_v2  ;;  %2848 = vmatpush1.bf16.msra.mxu1 %v14547_v34  ;;  %v17121_v38 = vpop.f32.mrf.mxu0  ;;  %2658 = vmatprep.mubr.bf16.mxu0 %v22757_v33  ;;  %v17128_v13 = vpop.f32.mrf.mxu1  ;;  %v14552_v18 = vcombine.high %v17095_v52, %v17100_v40  ;;  %v4719_v48 = vmul.f32 0.01, %v4463_v55 }
 0x1d0   :  { %v4527_v32 = vadd.f32 %v16143_v53, %v4387_v42  ;;  %2731 = vmatprep.mubr.bf16.mxu1 %v22757_v33  ;;  %2776 = vmatprep.subr.bf16.mxu0 %v14482_v27  ;;  %v4462_v21 = vadd.f32 %v16057_v9, %v4322_v57  ;;  %v4526_v22 = vadd.f32 %v16143_v53, %v4386_v11  ;;  %v4721_v27 = vmul.f32 0.01, %v4465_v36 }
 0x1d1   :  { %v4529_v61 = vadd.f32 %v16143_v53, %v4389_v15  ;;  %v17136_v12 = vpop.f32.mrf.mxu0  ;;  %2849 = vmatprep.subr.bf16.mxu1 %v14484_v3  ;;  %v17138_v46 = vpop.f32.mrf.mxu1  ;;  %v4464_v34 = vadd.f32 %v16057_v9, %v4324_v63  ;;  %v4528_v39 = vadd.f32 %v16143_v53, %v4388_v6  ;;  %vm4593_vm5 = vcmp.ge.f32.partialorder %v4465_v36, 0.0 }
 0x1d2   :  { %2777 = vmatpush1.bf16.msra.mxu0 %v14481_v19  ;;  %vm4655_vm4 = vcmp.ge.f32.partialorder %v4527_v32, 0.0  ;;  %v4783_v56 = vmul.f32 0.01, %v4527_v32  ;;  %v17152_v19 = vsel %vm4591_vm3, %v4463_v55, %v4719_v48  ;;  %v4718_v63 = vmul.f32 0.01, %v4462_v21 }
 0x1d3   :  { %v17142_v43 = vpop.f32.mrf.mxu0  ;;  %2850 = vmatpush1.bf16.msra.mxu1 %v14483_v45  ;;  %2920 = vmatprep.subr.bf16.mxu0 %v14550_v14  ;;  %v17144_v57 = vpop.f32.mrf.mxu1  ;;  %22781 = vst [vmem:[#allocation57_spill] sm:$0xff] %v17152_v19  ;;  %vm4657_vm6 = vcmp.ge.f32.partialorder %v4529_v61, 0.0  ;;  %v4782_v58 = vmul.f32 0.01, %v4526_v22  ;;  %v4785_v3 = vmul.f32 0.01, %v4529_v61  ;;  %v17173_v23 = vsel %vm4593_vm5, %v4465_v36, %v4721_v27 }
 0x1d4   :  { %2993 = vmatprep.subr.bf16.mxu1 %v14552_v18  ;;  %v17146_v5 = vsel %vm4655_vm4, %v4527_v32, %v4783_v56  ;;  %v4720_v44 = vmul.f32 0.01, %v4464_v34  ;;  %v4784_v62 = vmul.f32 0.01, %v4528_v39  ;;  %v17165_v55 = vadd.s32 2560, %v15979_v29  ;;  %22784 = vst [vmem:[#allocation60_spill] sm:$0xff] %v17173_v23 }
 0x1d5   :  { %22780 = vst [vmem:[#allocation56_spill] sm:$0xff] %v17146_v5  ;;  %v17148_v11 = vpop.f32.mrf.mxu0  ;;  %14650 = vmatmul.mubr.msk.bf16.gmra.mxu0 %vm997_vm0, %v16447_v28  ;;  %v17154_v35 = vpop.f32.mrf.mxu1  ;;  %vm4590_vm7 = vcmp.ge.f32.partialorder %v4462_v21, 0.0  ;;  %v17176_v2 = vsel %vm4657_vm6, %v4529_v61, %v4785_v3  ;;  %v17181_v15 = vadd.s32 2688, %v15979_v29  ;;  %vm4654_vm8 = vcmp.ge.f32.partialorder %v4526_v22, 0.0 }
 0x1d6   :  { %14654 = vmatmul.mubr.msk.bf16.gmra.mxu1 %vm997_vm0, %v16447_v28  ;;  %2668 = vmatprep.mubr.bf16.mxu0 %v22757_v33  ;;  %22782 = vst [vmem:[#allocation58_spill] sm:$0xff] %v17165_v55  ;;  %v17170_v28 = vadd.s32 2816, %v15979_v29  ;;  %22785 = vst [vmem:[#allocation61_spill] sm:$0xff] %v17176_v2  ;;  %vm4592_vm9 = vcmp.ge.f32.partialorder %v4464_v34, 0.0  ;;  %v17188_v18 = vadd.s32 2944, %v15979_v29  ;;  %v17190_v36 = vsel %vm4590_vm7, %v4462_v21, %v4718_v63 }
 0x1d7   :  { %v17161_v47 = vpop.f32.mrf.mxu0  ;;  %2741 = vmatprep.mubr.bf16.mxu1 %v22757_v33  ;;  %v17167_v6 = vpop.f32.mrf.mxu1  ;;  %22786 = vst [vmem:[#allocation62_spill] sm:$0xff] %v17181_v15  ;;  %22788 = vst [vmem:[#allocation64_spill] sm:$0xff] %v17190_v36  ;;  %v17192_v48 = vsel %vm4654_vm8, %v4526_v22, %v4782_v58  ;;  %vm4656_vm10 = vcmp.ge.f32.partialorder %v4528_v39, 0.0  ;;  %v3366_v56 = vshra.s32 %v17165_v55, 8  ;;  %v17199_v3 = vsel %vm4592_vm9, %v4464_v34, %v4720_v44 }
 0x1d8   :  { %22783 = vst [vmem:[#allocation59_spill] sm:$0xff] %v17170_v28  ;;  %22787 = vst [vmem:[#allocation63_spill] sm:$0xff] %v17188_v18  ;;  %v17201_v14 = vsel %vm4656_vm10, %v4528_v39, %v4784_v62  ;;  %v3368_v23 = vshra.s32 %v17170_v28, 8  ;;  %v3367_v63 = vshra.s32 %v17181_v15, 8  ;;  %v3369_v34 = vshra.s32 %v17188_v18, 8 }
 0x1d9   :  { %v17178_v42 = vpop.f32.mrf.mxu0  ;;  %v17185_v32 = vpop.f32.mrf.mxu1  ;;  %22789 = vst [vmem:[#allocation65_spill] sm:$0xff] %v17192_v48  ;;  %22790 = vst [vmem:[#allocation66_spill] sm:$0xff] %v17199_v3  ;;  %v3430_v44 = vand.u32 3, %v3366_v56 }
 0x1da   :  { %22791 = vst [vmem:[#allocation67_spill] sm:$0xff] %v17201_v14  ;;  %v17216_v21 = vand.u32 3, %v3368_v23  ;;  %v17218_v28 = vand.u32 3, %v3367_v63  ;;  %v17220_v15 = vand.u32 3, %v3369_v34  ;;  %v14549_v63 = vcombine.low %v17073_v0, %v17078_v8  ;;  %v259_v0 = vld [vmem:[%s22546_s0 + $0x1d0] sm:$0xff] }
 0x1db   :  { %v17194_v61 = vpop.f32.mrf.mxu0  ;;  %v17203_v45 = vpop.f32.mrf.mxu1  ;;  %vm3622_vm11 = vcmp.eq.s32.totalorder %v3430_v44, 2  ;;  %vm3558_vm12 = vcmp.eq.s32.totalorder %v3430_v44, 1  ;;  %vm3494_vm14 = vcmp.eq.s32.totalorder %v3430_v44, 0 }
 0x1dc   :  { %vm3624_vm13 = vcmp.eq.s32.totalorder %v17216_v21, 2  ;;  %vm3496_vm15 = vcmp.eq.s32.totalorder %v17216_v21, 0  ;;  %vm3560_vm1 = vcmp.eq.s32.totalorder %v17216_v21, 1  ;;  %vm3623_vm2 = vcmp.eq.s32.totalorder %v17218_v28, 2 }
 0x1dd   :  { %v1794_v22 = vpop.f32.mrf.mxu0  ;;  %14651 = vmatmul.mubr.msk.bf16.gmra.mxu0 %vm997_vm0, %v16506_v17  ;;  %v1867_v58 = vpop.f32.mrf.mxu1  ;;  %vm3559_vm3 = vcmp.eq.s32.totalorder %v17218_v28, 1  ;;  %vm3625_vm4 = vcmp.eq.s32.totalorder %v17220_v15, 2  ;;  %vm3495_vm5 = vcmp.eq.s32.totalorder %v17218_v28, 0  ;;  %vm3561_vm6 = vcmp.eq.s32.totalorder %v17220_v15, 1 }
 0x1de   :  { %14655 = vmatmul.mubr.msk.bf16.gmra.mxu1 %vm997_vm0, %v16506_v17  ;;  %2678 = vmatprep.mubr.bf16.mxu0 %v22757_v33  ;;  %vm3497_vm7 = vcmp.eq.s32.totalorder %v17220_v15, 0 }
 0x1df   :  { %v1796_v39 = vpop.f32.mrf.mxu0  ;;  %2751 = vmatprep.mubr.bf16.mxu1 %v22757_v33  ;;  %v1869_v62 = vpop.f32.mrf.mxu1 }
 0x1e1   :  { %v1798_v27 = vpop.f32.mrf.mxu0  ;;  %v1871_v55 = vpop.f32.mrf.mxu1 }
 0x1e3   :  { %v1800_v3 = vpop.f32.mrf.mxu0  ;;  %v1873_v17 = vpop.f32.mrf.mxu1 }
 0x1e5   :  { %v1804_v18 = vpop.f32.mrf.mxu0  ;;  %14652 = vmatmul.mubr.msk.bf16.gmra.mxu0 %vm997_vm0, %v16532_v24  ;;  %v1877_v56 = vpop.f32.mrf.mxu1 }
 0x1e6   :  { %v3814_v23 = vsel %vm3622_vm11, %v1794_v22, %v1804_v18  ;;  %14656 = vmatmul.mubr.msk.bf16.gmra.mxu1 %vm997_vm0, %v16532_v24  ;;  %2794 = vmatprep.mubr.bf16.mxu0 %v22757_v33  ;;  %v3816_v14 = vsel %vm3624_vm13, %v1867_v58, %v1877_v56  ;;  %v17246_v24 = vld [vmem:[%s22546_s0 + $0xd0] sm:$0xff]  ;;  %v260_v56 = vld [vmem:[%s22546_s0 + $0x1d8] sm:$0xff] }
 0x1e7   :  { %v4070_v34 = vsel %vm3558_vm12, %v17148_v11, %v3814_v23  ;;  %v1806_v18 = vpop.f32.mrf.mxu0  ;;  %2867 = vmatprep.mubr.bf16.mxu1 %v22757_v33  ;;  %v4072_v11 = vsel %vm3560_vm1, %v17154_v35, %v3816_v14  ;;  %v1879_v58 = vpop.f32.mrf.mxu1  ;;  %v17262_v23 = vld [vmem:[%s22546_s0 + $0xd8] sm:$0xff]  ;;  %v14486_v48 = vcombine.high %v17246_v24, %v259_v0 }
 0x1e8   :  { %v4326_v8 = vsel %vm3494_vm14, %v17088_v60, %v4070_v34  ;;  %v3815_v22 = vsel %vm3623_vm2, %v1796_v39, %v1806_v18  ;;  %v4328_v60 = vsel %vm3496_vm15, %v17111_v7, %v4072_v11  ;;  %v3817_v14 = vsel %vm3625_vm4, %v1869_v62, %v1879_v58  ;;  %v17280_v18 = vld [vmem:[%s22546_s0 + $0x2e0] sm:$0xff] }
 0x1e9   :  { %v4071_v35 = vsel %vm3559_vm3, %v17161_v47, %v3815_v22  ;;  %v1808_v39 = vpop.f32.mrf.mxu0  ;;  %v14551_v34 = vcombine.low %v17095_v52, %v17100_v40  ;;  %v17285_v7 = vld [vmem:[%s22546_s0 + $0x3e0] sm:$0xff]  ;;  %v4073_v62 = vsel %vm3561_vm6, %v17167_v6, %v3817_v14  ;;  %v1881_v40 = vpop.f32.mrf.mxu1  ;;  %v14485_v11 = vcombine.low %v17246_v24, %v259_v0  ;;  %v17317_v24 = vld [vmem:[%s22546_s0 + $0x3e8] sm:$0xff] }
 0x1ea   :  { %v4327_v47 = vsel %vm3495_vm5, %v17121_v38, %v4071_v35  ;;  %v3878_v52 = vsel %vm3622_vm11, %v1798_v27, %v1808_v39  ;;  %v4329_v22 = vsel %vm3497_vm7, %v17128_v13, %v4073_v62  ;;  %v14487_v38 = vcombine.low %v17262_v23, %v260_v56 }
 0x1eb   :  { %v4134_v58 = vsel %vm3558_vm12, %v17178_v42, %v3878_v52  ;;  %v1810_v36 = vpop.f32.mrf.mxu0  ;;  %v3880_v27 = vsel %vm3624_vm13, %v1871_v55, %v1881_v40  ;;  %v1883_v35 = vpop.f32.mrf.mxu1  ;;  %v14488_v14 = vcombine.high %v17262_v23, %v260_v56  ;;  %v14554_v13 = vcombine.high %v17280_v18, %v17285_v7  ;;  %v17312_v42 = vld [vmem:[%s22546_s0 + $0x2e8] sm:$0xff]  ;;  %v17329_v56 = vld [vmem:[#allocation2] sm:$0xff]  }
 0x1ec   :  { %v4390_v6 = vsel %vm3494_vm14, %v17136_v12, %v4134_v58  ;;  %v4467_v12 = vadd.f32 %v16057_v9, %v4327_v47  ;;  %v4136_v55 = vsel %vm3560_vm1, %v17185_v32, %v3880_v27  ;;  %v3879_v44 = vsel %vm3623_vm2, %v1800_v3, %v1810_v36 }
 0x1ed   :  { %v3881_v0 = vsel %vm3625_vm4, %v1873_v17, %v1883_v35  ;;  %v17327_v23 = vpop.f32.mrf.mxu0  ;;  %14657 = vmatmul.mubr.msk.bf16.vlgmr.msra.gmra.mxu0 %vm997_vm0, %v17329_v56  ;;  %v4392_v39 = vsel %vm3496_vm15, %v17138_v46, %v4136_v55  ;;  %v4135_v32 = vsel %vm3559_vm3, %v17194_v61, %v3879_v44  ;;  %v17342_v3 = vpop.f32.mrf.mxu1  ;;  %v4466_v21 = vadd.f32 %v16057_v9, %v4326_v8 }
 0x1ee   :  { %v4137_v36 = vsel %vm3561_vm6, %v17203_v45, %v3881_v0  ;;  %14661 = vmatmul.mubr.msk.bf16.vlgmr.msra.gmra.mxu1 %vm997_vm0, %v17329_v56  ;;  %2921 = vmatpush1.bf16.msra.mxu0 %v14549_v63  ;;  %v4391_v17 = vsel %vm3495_vm5, %v17142_v43, %v4135_v32  ;;  %v14556_v45 = vcombine.high %v17312_v42, %v17317_v24  ;;  %vm4595_vm8 = vcmp.ge.f32.partialorder %v4467_v12, 0.0 }
 0x1ef   :  { %v4393_v46 = vsel %vm3497_vm7, %v17144_v57, %v4137_v36  ;;  %2994 = vmatpush1.bf16.msra.mxu1 %v14551_v34  ;;  %v17352_v61 = vpop.f32.mrf.mxu0  ;;  %2804 = vmatprep.mubr.bf16.mxu0 %v22757_v33  ;;  %v4530_v63 = vadd.f32 %v16143_v53, %v4390_v6  ;;  %v4531_v47 = vadd.f32 %v16143_v53, %v4391_v17  ;;  %v17360_v28 = vpop.f32.mrf.mxu1  ;;  %v4723_v8 = vmul.f32 0.01, %v4467_v12 }
 0x1f0   :  { %2877 = vmatprep.mubr.bf16.mxu1 %v22757_v33  ;;  %2922 = vmatprep.subr.bf16.mxu0 %v14486_v48  ;;  %v4469_v43 = vadd.f32 %v16057_v9, %v4329_v22  ;;  %v4533_v15 = vadd.f32 %v16143_v53, %v4393_v46  ;;  %v4468_v62 = vadd.f32 %v16057_v9, %v4328_v60  ;;  %v4722_v22 = vmul.f32 0.01, %v4466_v21 }
 0x1f1   :  { %v17364_v57 = vpop.f32.mrf.mxu0  ;;  %2995 = vmatprep.subr.bf16.mxu1 %v14488_v14  ;;  %v17367_v34 = vpop.f32.mrf.mxu1  ;;  %vm4659_vm9 = vcmp.ge.f32.partialorder %v4531_v47, 0.0  ;;  %v4532_v52 = vadd.f32 %v16143_v53, %v4392_v39  ;;  %v4787_v48 = vmul.f32 0.01, %v4531_v47  ;;  %v4786_v58 = vmul.f32 0.01, %v4530_v63 }
 0x1f2   :  { %2923 = vmatpush1.bf16.msra.mxu0 %v14485_v11  ;;  %v17377_v11 = vld [vmem:[#allocation2 + $0x8] sm:$0xff]   ;;  %v17382_v60 = vsel %vm4595_vm8, %v4467_v12, %v4723_v8  ;;  %vm4597_vm10 = vcmp.ge.f32.partialorder %v4469_v43, 0.0  ;;  %vm4661_vm11 = vcmp.ge.f32.partialorder %v4533_v15, 0.0  ;;  %v4789_v55 = vmul.f32 0.01, %v4533_v15 }
 0x1f3   :  { %v17371_v40 = vpop.f32.mrf.mxu0  ;;  %2996 = vmatpush1.bf16.msra.mxu1 %v14487_v38  ;;  %3066 = vmatprep.subr.bf16.mxu0 %v14554_v13  ;;  %v17373_v6 = vpop.f32.mrf.mxu1  ;;  %22792 = vst [vmem:[#allocation68_spill] sm:$0xff] %v17382_v60  ;;  %v17385_v35 = vsel %vm4659_vm9, %v4531_v47, %v4787_v48  ;;  %v4725_v38 = vmul.f32 0.01, %v4469_v43  ;;  %vm4594_vm12 = vcmp.ge.f32.partialorder %v4466_v21, 0.0  ;;  %v4724_v12 = vmul.f32 0.01, %v4468_v62 }
 0x1f4   :  { %3139 = vmatprep.subr.bf16.mxu1 %v14556_v45  ;;  %22793 = vst [vmem:[#allocation69_spill] sm:$0xff] %v17385_v35  ;;  %v4788_v44 = vmul.f32 0.01, %v4532_v52  ;;  %v17398_v39 = vadd.s32 3072, %v15979_v29  ;;  %v17403_v36 = vadd.s32 3328, %v15979_v29  ;;  %v17406_v17 = vadd.s32 3200, %v15979_v29 }
 0x1f5   :  { %v17375_v27 = vpop.f32.mrf.mxu0  ;;  %14658 = vmatmul.mubr.msk.bf16.gmra.mxu0 %vm997_vm0, %v17377_v11  ;;  %v17387_v14 = vpop.f32.mrf.mxu1  ;;  %v17409_v46 = vadd.s32 3456, %v15979_v29  ;;  %v17414_v47 = vsel %vm4597_vm10, %v4469_v43, %v4725_v38  ;;  %v17416_v8 = vsel %vm4661_vm11, %v4533_v15, %v4789_v55  ;;  %vm4658_vm13 = vcmp.ge.f32.partialorder %v4530_v63, 0.0  ;;  %v17440_v55 = vld [vmem:[#allocation2 + $0x10] sm:$0xff]  }
 0x1f6   :  { %14662 = vmatmul.mubr.msk.bf16.gmra.mxu1 %vm997_vm0, %v17377_v11  ;;  %2814 = vmatprep.mubr.bf16.mxu0 %v22757_v33  ;;  %22794 = vst [vmem:[#allocation70_spill] sm:$0xff] %v17398_v39  ;;  %22795 = vst [vmem:[#allocation71_spill] sm:$0xff] %v17403_v36  ;;  %v17418_v48 = vsel %vm4594_vm12, %v4466_v21, %v4722_v22  ;;  %v17424_v35 = vsel %vm4658_vm13, %v4530_v63, %v4786_v58  ;;  %vm4596_vm14 = vcmp.ge.f32.partialorder %v4468_v62, 0.0 }
 0x1f7   :  { %v17394_v0 = vpop.f32.mrf.mxu0  ;;  %2887 = vmatprep.mubr.bf16.mxu1 %v22757_v33  ;;  %v17400_v32 = vpop.f32.mrf.mxu1  ;;  %22796 = vst [vmem:[#allocation72_spill] sm:$0xff] %v17406_v17  ;;  %22797 = vst [vmem:[#allocation73_spill] sm:$0xff] %v17409_v46  ;;  %vm4660_vm15 = vcmp.ge.f32.partialorder %v4532_v52, 0.0  ;;  %v3370_v19 = vshra.s32 %v17398_v39, 8  ;;  %v17431_v15 = vsel %vm4596_vm14, %v4468_v62, %v4724_v12  ;;  %v3372_v38 = vshra.s32 %v17403_v36, 8 }
 0x1f8   :  { %22798 = vst [vmem:[#allocation74_spill] sm:$0xff] %v17414_v47  ;;  %22799 = vst [vmem:[#allocation75_spill] sm:$0xff] %v17416_v8  ;;  %v17433_v21 = vsel %vm4660_vm15, %v4532_v52, %v4788_v44  ;;  %v3371_v60 = vshra.s32 %v17406_v17, 8  ;;  %v3373_v62 = vshra.s32 %v17409_v46, 8  ;;  %v262_v8 = vld [vmem:[%s22546_s0 + $0x1e8] sm:$0xff] }
 0x1f9   :  { %v17411_v45 = vpop.f32.mrf.mxu0  ;;  %22800 = vst [vmem:[#allocation76_spill] sm:$0xff] %v17418_v48  ;;  %v17420_v13 = vpop.f32.mrf.mxu1  ;;  %22801 = vst [vmem:[#allocation77_spill] sm:$0xff] %v17424_v35  ;;  %v3434_v12 = vand.u32 3, %v3370_v19  ;;  %v17450_v63 = vand.u32 3, %v3372_v38  ;;  %v17458_v19 = vld [vmem:[#allocation2 + $0x18] sm:$0xff]  }
 0x1fa   :  { %22802 = vst [vmem:[#allocation78_spill] sm:$0xff] %v17431_v15  ;;  %22803 = vst [vmem:[#allocation79_spill] sm:$0xff] %v17433_v21  ;;  %v17452_v39 = vand.u32 3, %v3371_v60  ;;  %v17454_v17 = vand.u32 3, %v3373_v62 }
 0x1fb   :  { %v17426_v2 = vpop.f32.mrf.mxu0  ;;  %v17435_v22 = vpop.f32.mrf.mxu1  ;;  %vm3626_vm1 = vcmp.eq.s32.totalorder %v3434_v12, 2  ;;  %vm3562_vm2 = vcmp.eq.s32.totalorder %v3434_v12, 1  ;;  %vm3628_vm3 = vcmp.eq.s32.totalorder %v17450_v63, 2  ;;  %vm3498_vm4 = vcmp.eq.s32.totalorder %v3434_v12, 0  ;;  %v17550_v12 = vld [vmem:[%s22546_s0 + $0x2f8] sm:$0xff] }
 0x1fc   :  { %vm3564_vm5 = vcmp.eq.s32.totalorder %v17450_v63, 1  ;;  %vm3627_vm6 = vcmp.eq.s32.totalorder %v17452_v39, 2  ;;  %vm3500_vm7 = vcmp.eq.s32.totalorder %v17450_v63, 0  ;;  %vm3563_vm8 = vcmp.eq.s32.totalorder %v17452_v39, 1 }
 0x1fd   :  { %v1940_v58 = vpop.f32.mrf.mxu0  ;;  %14659 = vmatmul.mubr.msk.bf16.gmra.mxu0 %vm997_vm0, %v17440_v55  ;;  %v2013_v43 = vpop.f32.mrf.mxu1  ;;  %vm3629_vm9 = vcmp.eq.s32.totalorder %v17454_v17, 2  ;;  %vm3499_vm10 = vcmp.eq.s32.totalorder %v17452_v39, 0  ;;  %vm3565_vm11 = vcmp.eq.s32.totalorder %v17454_v17, 1  ;;  %vm3501_vm12 = vcmp.eq.s32.totalorder %v17454_v17, 0 }
 0x1fe   :  { %14663 = vmatmul.mubr.msk.bf16.gmra.mxu1 %vm997_vm0, %v17440_v55  ;;  %2824 = vmatprep.mubr.bf16.mxu0 %v22757_v33 }
 0x1ff   :  { %v1942_v52 = vpop.f32.mrf.mxu0  ;;  %2897 = vmatprep.mubr.bf16.mxu1 %v22757_v33  ;;  %v2015_v44 = vpop.f32.mrf.mxu1 }
 0x201   :  { %v1944_v36 = vpop.f32.mrf.mxu0  ;;  %v2017_v15 = vpop.f32.mrf.mxu1 }
 0x203   :  { %v1946_v21 = vpop.f32.mrf.mxu0  ;;  %v2019_v48 = vpop.f32.mrf.mxu1 }
 0x205   :  { %v1950_v46 = vpop.f32.mrf.mxu0  ;;  %14660 = vmatmul.mubr.msk.bf16.gmra.mxu0 %vm997_vm0, %v17458_v19  ;;  %v2023_v38 = vpop.f32.mrf.mxu1 }
 0x206   :  { %v3818_v60 = vsel %vm3626_vm1, %v1940_v58, %v1950_v46  ;;  %14664 = vmatmul.mubr.msk.bf16.gmra.mxu1 %vm997_vm0, %v17458_v19  ;;  %2940 = vmatprep.mubr.bf16.mxu0 %v22757_v33  ;;  %v3820_v35 = vsel %vm3628_vm3, %v2013_v43, %v2023_v38  ;;  %v229_v43 = vld [vmem:[%s22546_s0 + $0xe0] sm:$0xff] }
 0x207   :  { %v4074_v62 = vsel %vm3562_vm2, %v17375_v27, %v3818_v60  ;;  %v1952_v47 = vpop.f32.mrf.mxu0  ;;  %3013 = vmatprep.mubr.bf16.mxu1 %v22757_v33  ;;  %v4076_v58 = vsel %vm3564_vm5, %v17387_v14, %v3820_v35  ;;  %v2025_v60 = vpop.f32.mrf.mxu1  ;;  %v261_v38 = vld [vmem:[%s22546_s0 + $0x1e0] sm:$0xff] }
 0x208   :  { %v4330_v46 = vsel %vm3498_vm4, %v17327_v23, %v4074_v62  ;;  %v3819_v27 = vsel %vm3627_vm6, %v1942_v52, %v1952_v47  ;;  %v4332_v23 = vsel %vm3500_vm7, %v17342_v3, %v4076_v58  ;;  %v3821_v14 = vsel %vm3629_vm9, %v2015_v44, %v2025_v60  ;;  %v230_v62 = vld [vmem:[%s22546_s0 + $0xe8] sm:$0xff] }
 0x209   :  { %v4075_v35 = vsel %vm3563_vm8, %v17394_v0, %v3819_v27  ;;  %v1954_v47 = vpop.f32.mrf.mxu0  ;;  %v14553_v52 = vcombine.low %v17280_v18, %v17285_v7  ;;  %v4077_v0 = vsel %vm3565_vm11, %v17400_v32, %v3821_v14  ;;  %v2027_v58 = vpop.f32.mrf.mxu1  ;;  %v14555_v18 = vcombine.low %v17312_v42, %v17317_v24  ;;  %v17528_v42 = vld [vmem:[%s22546_s0 + $0x2f0] sm:$0xff] }
 0x20a   :  { %v4331_v3 = vsel %vm3499_vm10, %v17352_v61, %v4075_v35  ;;  %v3882_v44 = vsel %vm3626_vm1, %v1944_v36, %v1954_v47  ;;  %v4333_v7 = vsel %vm3501_vm12, %v17360_v28, %v4077_v0  ;;  %v14489_v5 = vcombine.low %v229_v43, %v261_v38  ;;  %v17533_v24 = vld [vmem:[%s22546_s0 + $0x3f0] sm:$0xff] }
 0x20b   :  { %v4138_v27 = vsel %vm3562_vm2, %v17411_v45, %v3882_v44  ;;  %v1956_v60 = vpop.f32.mrf.mxu0  ;;  %v14490_v61 = vcombine.high %v229_v43, %v261_v38  ;;  %v3884_v32 = vsel %vm3628_vm3, %v2017_v15, %v2027_v58  ;;  %v2029_v36 = vpop.f32.mrf.mxu1  ;;  %v14491_v14 = vcombine.low %v230_v62, %v262_v8 }
 0x20c   :  { %v4394_v35 = vsel %vm3498_vm4, %v17364_v57, %v4138_v27  ;;  %v14492_v47 = vcombine.high %v230_v62, %v262_v8  ;;  %v4471_v28 = vadd.f32 %v16057_v9, %v4331_v3  ;;  %v4140_v57 = vsel %vm3564_vm5, %v17420_v13, %v3884_v32  ;;  %v17555_v13 = vld [vmem:[%s22546_s0 + $0x3f8] sm:$0xff] }
 0x20d   :  { %v3883_v45 = vsel %vm3627_vm6, %v1946_v21, %v1956_v60  ;;  %v3885_v8 = vsel %vm3629_vm9, %v2019_v48, %v2029_v36  ;;  %v17543_v15 = vpop.f32.mrf.mxu0  ;;  %14665 = vmatmul.mubr.msk.bf16.vlgmr.msra.gmra.mxu0 %vm997_vm0, %v17329_v56  ;;  %v4396_v21 = vsel %vm3500_vm7, %v17367_v34, %v4140_v57  ;;  %v4470_v63 = vadd.f32 %v16057_v9, %v4330_v46 }
 0x20e   :  { %v4139_v48 = vsel %vm3563_vm8, %v17426_v2, %v3883_v45  ;;  %v4141_v43 = vsel %vm3565_vm11, %v17435_v22, %v3885_v8  ;;  %v17566_v38 = vpop.f32.mrf.mxu1  ;;  %14669 = vmatmul.mubr.msk.bf16.vlgmr.msra.gmra.mxu1 %vm997_vm0, %v17329_v56  ;;  %3067 = vmatpush1.bf16.msra.mxu0 %v14553_v52  ;;  %v14558_v22 = vcombine.high %v17528_v42, %v17533_v24  ;;  %vm4599_vm13 = vcmp.ge.f32.partialorder %v4471_v28, 0.0 }
 0x20f   :  { %v4395_v62 = vsel %vm3499_vm10, %v17371_v40, %v4139_v48  ;;  %v4397_v34 = vsel %vm3501_vm12, %v17373_v6, %v4141_v43  ;;  %3140 = vmatpush1.bf16.msra.mxu1 %v14555_v18  ;;  %v17576_v2 = vpop.f32.mrf.mxu0  ;;  %2950 = vmatprep.mubr.bf16.mxu0 %v22757_v33  ;;  %v14560_v40 = vcombine.high %v17550_v12, %v17555_v13  ;;  %v4727_v44 = vmul.f32 0.01, %v4471_v28 }
 0x210   :  { %v4535_v52 = vadd.f32 %v16143_v53, %v4395_v62  ;;  %v17583_v3 = vpop.f32.mrf.mxu1  ;;  %3023 = vmatprep.mubr.bf16.mxu1 %v22757_v33  ;;  %3068 = vmatprep.subr.bf16.mxu0 %v14490_v61  ;;  %v4473_v6 = vadd.f32 %v16057_v9, %v4333_v7  ;;  %v4534_v39 = vadd.f32 %v16143_v53, %v4394_v35  ;;  %v4726_v7 = vmul.f32 0.01, %v4470_v63 }
 0x211   :  { %v4537_v17 = vadd.f32 %v16143_v53, %v4397_v34  ;;  %v17591_v0 = vpop.f32.mrf.mxu0  ;;  %3141 = vmatprep.subr.bf16.mxu1 %v14492_v47  ;;  %v4472_v18 = vadd.f32 %v16057_v9, %v4332_v23  ;;  %v4536_v27 = vadd.f32 %v16143_v53, %v4396_v21  ;;  %v17601_v35 = vsel %vm4599_vm13, %v4471_v28, %v4727_v44 }
 0x212   :  { %v17593_v46 = vpop.f32.mrf.mxu1  ;;  %3069 = vmatpush1.bf16.msra.mxu0 %v14489_v5  ;;  %vm4663_vm14 = vcmp.ge.f32.partialorder %v4535_v52, 0.0  ;;  %v4791_v58 = vmul.f32 0.01, %v4535_v52  ;;  %22804 = vst [vmem:[#allocation80_spill] sm:$0xff] %v17601_v35  ;;  %v4790_v5 = vmul.f32 0.01, %v4534_v39 }
 0x213   :  { %v17597_v60 = vpop.f32.mrf.mxu0  ;;  %3142 = vmatpush1.bf16.msra.mxu1 %v14491_v14  ;;  %3212 = vmatprep.subr.bf16.mxu0 %v14558_v22  ;;  %vm4601_vm15 = vcmp.ge.f32.partialorder %v4473_v6, 0.0  ;;  %v4729_v14 = vmul.f32 0.01, %v4473_v6  ;;  %vm4665_vm1 = vcmp.ge.f32.partialorder %v4537_v17, 0.0  ;;  %v4793_v28 = vmul.f32 0.01, %v4537_v17 }
 0x214   :  { %v17599_v61 = vpop.f32.mrf.mxu1  ;;  %3285 = vmatprep.subr.bf16.mxu1 %v14560_v40  ;;  %v17603_v32 = vsel %vm4663_vm14, %v4535_v52, %v4791_v58  ;;  %vm4598_vm2 = vcmp.ge.f32.partialorder %v4470_v63, 0.0  ;;  %vm4662_vm3 = vcmp.ge.f32.partialorder %v4534_v39, 0.0  ;;  %v4728_v57 = vmul.f32 0.01, %v4472_v18 }
 0x215   :  { %22805 = vst [vmem:[#allocation81_spill] sm:$0xff] %v17603_v32  ;;  %v17605_v36 = vpop.f32.mrf.mxu0  ;;  %14666 = vmatmul.mubr.msk.bf16.gmra.mxu0 %vm997_vm0, %v17377_v11  ;;  %v4792_v45 = vmul.f32 0.01, %v4536_v27  ;;  %v17620_v21 = vadd.s32 3584, %v15979_v29  ;;  %v17625_v43 = vadd.s32 3840, %v15979_v29  ;;  %v17628_v62 = vadd.s32 3712, %v15979_v29 }
 0x216   :  { %v17611_v47 = vpop.f32.mrf.mxu1  ;;  %14670 = vmatmul.mubr.msk.bf16.gmra.mxu1 %vm997_vm0, %v17377_v11  ;;  %2960 = vmatprep.mubr.bf16.mxu0 %v22757_v33  ;;  %v17631_v34 = vadd.s32 3968, %v15979_v29  ;;  %v17636_v52 = vsel %vm4601_vm15, %v4473_v6, %v4729_v14  ;;  %v17638_v40 = vsel %vm4665_vm1, %v4537_v17, %v4793_v28  ;;  %v17640_v44 = vsel %vm4598_vm2, %v4470_v63, %v4726_v7 }
 0x217   :  { %v17616_v8 = vpop.f32.mrf.mxu0  ;;  %3033 = vmatprep.mubr.bf16.mxu1 %v22757_v33  ;;  %22806 = vst [vmem:[#allocation82_spill] sm:$0xff] %v17620_v21  ;;  %22807 = vst [vmem:[#allocation83_spill] sm:$0xff] %v17625_v43  ;;  %v17642_v58 = vsel %vm4662_vm3, %v4534_v39, %v4790_v5  ;;  %vm4600_vm4 = vcmp.ge.f32.partialorder %v4472_v18, 0.0  ;;  %vm4664_vm5 = vcmp.ge.f32.partialorder %v4536_v27, 0.0  ;;  %v3374_v6 = vshra.s32 %v17620_v21, 8 }
 0x218   :  { %v17622_v48 = vpop.f32.mrf.mxu1  ;;  %22808 = vst [vmem:[#allocation84_spill] sm:$0xff] %v17628_v62  ;;  %22809 = vst [vmem:[#allocation85_spill] sm:$0xff] %v17631_v34  ;;  %v17653_v17 = vsel %vm4600_vm4, %v4472_v18, %v4728_v57  ;;  %v17655_v63 = vsel %vm4664_vm5, %v4536_v27, %v4792_v45  ;;  %v3376_v7 = vshra.s32 %v17625_v43, 8  ;;  %v3375_v28 = vshra.s32 %v17628_v62, 8 }
 0x219   :  { %v17633_v22 = vpop.f32.mrf.mxu0  ;;  %22810 = vst [vmem:[#allocation86_spill] sm:$0xff] %v17636_v52  ;;  %22811 = vst [vmem:[#allocation87_spill] sm:$0xff] %v17640_v44  ;;  %v3377_v18 = vshra.s32 %v17631_v34, 8  ;;  %v3438_v57 = vand.u32 3, %v3374_v6 }
 0x21a   :  { %22812 = vst [vmem:[#allocation88_spill] sm:$0xff] %v17642_v58  ;;  %v17644_v23 = vpop.f32.mrf.mxu1  ;;  %22813 = vst [vmem:[#allocation89_spill] sm:$0xff] %v17653_v17  ;;  %v17670_v5 = vand.u32 3, %v3376_v7  ;;  %v17672_v43 = vand.u32 3, %v3375_v28 }
 0x21b   :  { %v17650_v25 = vpop.f32.mrf.mxu0  ;;  %22814 = vst [vmem:[#allocation90_spill] sm:$0xff] %v17655_v63  ;;  %v17674_v62 = vand.u32 3, %v3377_v18  ;;  %vm3630_vm6 = vcmp.eq.s32.totalorder %v3438_v57, 2  ;;  %vm3566_vm7 = vcmp.eq.s32.totalorder %v3438_v57, 1  ;;  %vm3502_vm9 = vcmp.eq.s32.totalorder %v3438_v57, 0 }
 0x21c   :  { %v17657_v39 = vpop.f32.mrf.mxu1  ;;  %vm3632_vm8 = vcmp.eq.s32.totalorder %v17670_v5, 2  ;;  %vm3568_vm10 = vcmp.eq.s32.totalorder %v17670_v5, 1  ;;  %vm3631_vm11 = vcmp.eq.s32.totalorder %v17672_v43, 2  ;;  %vm3504_vm12 = vcmp.eq.s32.totalorder %v17670_v5, 0 }
 0x21d   :  { %v2086_v14 = vpop.f32.mrf.mxu0  ;;  %14667 = vmatmul.mubr.msk.bf16.gmra.mxu0 %vm997_vm0, %v17440_v55  ;;  %vm3567_vm13 = vcmp.eq.s32.totalorder %v17672_v43, 1  ;;  %vm3633_vm14 = vcmp.eq.s32.totalorder %v17674_v62, 2  ;;  %vm3503_vm15 = vcmp.eq.s32.totalorder %v17672_v43, 0  ;;  %vm3569_vm1 = vcmp.eq.s32.totalorder %v17674_v62, 1 }
 0x21e   :  { %v2159_v32 = vpop.f32.mrf.mxu1  ;;  %14671 = vmatmul.mubr.msk.bf16.gmra.mxu1 %vm997_vm0, %v17440_v55  ;;  %2970 = vmatprep.mubr.bf16.mxu0 %v22757_v33  ;;  %vm3505_vm2 = vcmp.eq.s32.totalorder %v17674_v62, 0 }
 0x21f   :  { %v2088_v27 = vpop.f32.mrf.mxu0  ;;  %3043 = vmatprep.mubr.bf16.mxu1 %v22757_v33 }
 0x220   :  { %v2161_v45 = vpop.f32.mrf.mxu1 }
 0x221   :  { %v2090_v35 = vpop.f32.mrf.mxu0 }
 0x222   :  { %v2163_v21 = vpop.f32.mrf.mxu1 }
 0x223   :  { %v2092_v17 = vpop.f32.mrf.mxu0 }
 0x224   :  { %v2165_v63 = vpop.f32.mrf.mxu1 }
 0x225   :  { %v2096_v34 = vpop.f32.mrf.mxu0  ;;  %14668 = vmatmul.mubr.msk.bf16.gmra.mxu0 %vm997_vm0, %v17458_v19 }
 0x226   :  { %v3822_v6 = vsel %vm3630_vm6, %v2086_v14, %v2096_v34  ;;  %v2169_v7 = vpop.f32.mrf.mxu1  ;;  %14672 = vmatmul.mubr.msk.bf16.gmra.mxu1 %vm997_vm0, %v17458_v19  ;;  %3086 = vmatprep.mubr.bf16.mxu0 %v22757_v33 }
 0x227   :  { %v4078_v28 = vsel %vm3566_vm7, %v17605_v36, %v3822_v6  ;;  %v3824_v18 = vsel %vm3632_vm8, %v2159_v32, %v2169_v7  ;;  %v2098_v44 = vpop.f32.mrf.mxu0  ;;  %3159 = vmatprep.mubr.bf16.mxu1 %v22757_v33  ;;  %v231_v32 = vld [vmem:[%s22546_s0 + $0xf0] sm:$0xff] }
 0x228   :  { %v4334_v34 = vsel %vm3502_vm9, %v17543_v15, %v4078_v28  ;;  %v4080_v14 = vsel %vm3568_vm10, %v17611_v47, %v3824_v18  ;;  %v3823_v36 = vsel %vm3631_vm11, %v2088_v27, %v2098_v44  ;;  %v2171_v6 = vpop.f32.mrf.mxu1  ;;  %v263_v7 = vld [vmem:[%s22546_s0 + $0x1f0] sm:$0xff]  ;;  %v232_v28 = vld [vmem:[%s22546_s0 + $0xf8] sm:$0xff] }
 0x229   :  { %v4336_v15 = vsel %vm3504_vm12, %v17566_v38, %v4080_v14  ;;  %v4079_v47 = vsel %vm3567_vm13, %v17616_v8, %v3823_v36  ;;  %v3825_v44 = vsel %vm3633_vm14, %v2161_v45, %v2171_v6  ;;  %v2100_v27 = vpop.f32.mrf.mxu0  ;;  %v264_v18 = vld [vmem:[%s22546_s0 + $0x1f8] sm:$0xff]  ;;  %v14557_v36 = vcombine.low %v17528_v42, %v17533_v24 }
 0x22a   :  { %v4335_v38 = vsel %vm3503_vm15, %v17576_v2, %v4079_v47  ;;  %v4081_v8 = vsel %vm3569_vm1, %v17622_v48, %v3825_v44  ;;  %v3886_v14 = vsel %vm3630_vm6, %v2090_v35, %v2100_v27  ;;  %v2173_v45 = vpop.f32.mrf.mxu1  ;;  %v14559_v2 = vcombine.low %v17550_v12, %v17555_v13 }
 0x22b   :  { %v4337_v6 = vsel %vm3505_vm2, %v17583_v3, %v4081_v8  ;;  %v4142_v58 = vsel %vm3566_vm7, %v17633_v22, %v3886_v14  ;;  %v2102_v52 = vpop.f32.mrf.mxu0  ;;  %v14494_v47 = vcombine.high %v231_v32, %v263_v7  ;;  %v3888_v35 = vsel %vm3632_vm8, %v2163_v21, %v2173_v45 }
 0x22c   :  { %v4398_v48 = vsel %vm3502_vm9, %v17591_v0, %v4142_v58  ;;  %v2175_v44 = vpop.f32.mrf.mxu1  ;;  %v14493_v42 = vcombine.low %v231_v32, %v263_v7  ;;  %v14496_v24 = vcombine.high %v232_v28, %v264_v18  ;;  %v4475_v27 = vadd.f32 %v16057_v9, %v4335_v38 }
 0x22d   :  { %v4144_v3 = vsel %vm3568_vm10, %v17644_v23, %v3888_v35  ;;  %v3887_v22 = vsel %vm3631_vm11, %v2092_v17, %v2102_v52  ;;  %v3889_v12 = vsel %vm3633_vm14, %v2165_v63, %v2175_v44  ;;  %v17751_v13 = vpop.f32.mrf.mxu0  ;;  %14673 = vmatmul.mubr.msk.bf16.vlgmr.msra.gmra.mxu0 %vm997_vm0, %v17329_v56  ;;  %v14495_v17 = vcombine.low %v232_v28, %v264_v18 }
 0x22e   :  { %v4400_v0 = vsel %vm3504_vm12, %v17593_v46, %v4144_v3  ;;  %v4143_v21 = vsel %vm3567_vm13, %v17650_v25, %v3887_v22  ;;  %v4145_v23 = vsel %vm3569_vm1, %v17657_v39, %v3889_v12  ;;  %v17764_v52 = vpop.f32.mrf.mxu1  ;;  %14677 = vmatmul.mubr.msk.bf16.vlgmr.msra.gmra.mxu1 %vm997_vm0, %v17329_v56  ;;  %3213 = vmatpush1.bf16.msra.mxu0 %v14557_v36  ;;  %vm4603_vm3 = vcmp.ge.f32.partialorder %v4475_v27, 0.0 }
 0x22f   :  { %v4399_v58 = vsel %vm3503_vm15, %v17597_v60, %v4143_v21  ;;  %v4401_v46 = vsel %vm3505_vm2, %v17599_v61, %v4145_v23  ;;  %3286 = vmatpush1.bf16.msra.mxu1 %v14559_v2  ;;  %v17774_v25 = vpop.f32.mrf.mxu0  ;;  %3214 = vmatprep.subr.bf16.mxu0 %v14494_v47  ;;  %v4474_v63 = vadd.f32 %v16057_v9, %v4334_v34  ;;  %v4731_v34 = vmul.f32 0.01, %v4475_v27 }
 0x230   :  { %v4539_v39 = vadd.f32 %v16143_v53, %v4399_v58  ;;  %v17778_v5 = vpop.f32.mrf.mxu1  ;;  %3287 = vmatprep.subr.bf16.mxu1 %v14496_v24  ;;  %3096 = vmatprep.mubr.bf16.mxu0 %v22757_v33  ;;  %v4477_v60 = vadd.f32 %v16057_v9, %v4337_v6  ;;  %v4538_v43 = vadd.f32 %v16143_v53, %v4398_v48  ;;  %v17820_v44 = vadd.s32 4096, %v15979_v29 }
 0x231   :  { %v4541_v61 = vadd.f32 %v16143_v53, %v4401_v46  ;;  %v17784_v62 = vpop.f32.mrf.mxu0  ;;  %3169 = vmatprep.mubr.bf16.mxu1 %v22757_v33  ;;  %v4476_v7 = vadd.f32 %v16057_v9, %v4336_v15  ;;  %v4540_v28 = vadd.f32 %v16143_v53, %v4400_v0  ;;  %v22815_v18 = vpack.c.bf16 %v16189_v10, %v16186_v30 }
 0x232   :  { %v17787_v57 = vpop.f32.mrf.mxu1  ;;  %3215 = vmatpush1.bf16.msra.mxu0 %v14493_v42  ;;  %vm4667_vm4 = vcmp.ge.f32.partialorder %v4539_v39, 0.0  ;;  %v4795_v32 = vmul.f32 0.01, %v4539_v39  ;;  %v4730_v8 = vmul.f32 0.01, %v4474_v63  ;;  %v22816_v14 = vpack.c.bf16 %v16200_v31, %v16198_v16  ;;  %22817 = vst [vmem:[#allocation91_spill] sm:$0xff] %v17820_v44 }
 0x233   :  { %3288 = vmatpush1.bf16.msra.mxu1 %v14495_v17  ;;  %5057 = vmatprep.subr.bf16.mxu0 %v22815_v18  ;;  %v17794_v38 = vpop.f32.mrf.mxu0  ;;  %v17801_v36 = vsel %vm4603_vm3, %v4475_v27, %v4731_v34  ;;  %v4794_v15 = vmul.f32 0.01, %v4538_v43  ;;  %vm4605_vm5 = vcmp.ge.f32.partialorder %v4477_v60, 0.0  ;;  %v4733_v10 = vmul.f32 0.01, %v4477_v60 }
 0x234   :  { %5110 = vmatprep.subr.bf16.mxu1 %v22816_v14  ;;  %v17799_v45 = vpop.f32.mrf.mxu1  ;;  %v17803_v6 = vsel %vm4667_vm4, %v4539_v39, %v4795_v32  ;;  %vm4669_vm6 = vcmp.ge.f32.partialorder %v4541_v61, 0.0  ;;  %v4797_v16 = vmul.f32 0.01, %v4541_v61  ;;  %vm4602_vm7 = vcmp.ge.f32.partialorder %v4474_v63, 0.0 }
 0x235   :  { %v17805_v2 = vpop.f32.mrf.mxu0  ;;  %14674 = vmatmul.mubr.msk.bf16.gmra.mxu0 %vm997_vm0, %v17377_v11  ;;  %vm4666_vm8 = vcmp.ge.f32.partialorder %v4538_v43, 0.0  ;;  %v4732_v31 = vmul.f32 0.01, %v4476_v7  ;;  %v4796_v48 = vmul.f32 0.01, %v4540_v28  ;;  %v17825_v24 = vadd.s32 4352, %v15979_v29 }
 0x236   :  { %v17811_v47 = vpop.f32.mrf.mxu1  ;;  %14678 = vmatmul.mubr.msk.bf16.gmra.mxu1 %vm997_vm0, %v17377_v11  ;;  %3106 = vmatprep.mubr.bf16.mxu0 %v22757_v33  ;;  %v17828_v27 = vadd.s32 4224, %v15979_v29  ;;  %v17831_v3 = vadd.s32 4480, %v15979_v29  ;;  %v17836_v12 = vsel %vm4605_vm5, %v4477_v60, %v4733_v10  ;;  %v17838_v0 = vsel %vm4669_vm6, %v4541_v61, %v4797_v16 }
 0x237   :  { %v17816_v35 = vpop.f32.mrf.mxu0  ;;  %3179 = vmatprep.mubr.bf16.mxu1 %v22757_v33  ;;  %22818 = vst [vmem:[#allocation92_spill] sm:$0xff] %v17825_v24  ;;  %v17840_v21 = vsel %vm4602_vm7, %v4474_v63, %v4730_v8  ;;  %v17842_v23 = vsel %vm4666_vm8, %v4538_v43, %v4794_v15  ;;  %vm4604_vm9 = vcmp.ge.f32.partialorder %v4476_v7, 0.0  ;;  %vm4668_vm10 = vcmp.ge.f32.partialorder %v4540_v28, 0.0 }
 0x238   :  { %v17822_v42 = vpop.f32.mrf.mxu1  ;;  %22819 = vst [vmem:[#allocation93_spill] sm:$0xff] %v17828_v27  ;;  %22820 = vst [vmem:[#allocation94_spill] sm:$0xff] %v17831_v3  ;;  %v3378_v60 = vshra.s32 %v17820_v44, 8  ;;  %v17853_v61 = vsel %vm4604_vm9, %v4476_v7, %v4732_v31  ;;  %v17855_v63 = vsel %vm4668_vm10, %v4540_v28, %v4796_v48  ;;  %v3380_v34 = vshra.s32 %v17825_v24, 8  ;;  %v7635_v31 = vld [vmem:[#allocation7] sm:$0xff] }
 0x239   :  { %v17833_v22 = vpop.f32.mrf.mxu0  ;;  %22821 = vst [vmem:[#allocation95_spill] sm:$0xff] %v17853_v61  ;;  %v3379_v8 = vshra.s32 %v17828_v27, 8  ;;  %v3381_v7 = vshra.s32 %v17831_v3, 8  ;;  %7638 = vperm.xlu1 %15029, %v7635_v31  }
 0x23a   :  { %v17844_v58 = vpop.f32.mrf.mxu1  ;;  %v3442_v15 = vand.u32 3, %v3378_v60  ;;  %v3444_v16 = vand.u32 3, %v3380_v34 }
 0x23b   :  { %v17850_v39 = vpop.f32.mrf.mxu0  ;;  %v3443_v32 = vand.u32 3, %v3379_v8  ;;  %v3445_v46 = vand.u32 3, %v3381_v7 }
 0x23c   :  { %v17857_v43 = vpop.f32.mrf.mxu1  ;;  %vm3634_vm11 = vcmp.eq.s32.totalorder %v3442_v15, 2  ;;  %vm3570_vm12 = vcmp.eq.s32.totalorder %v3442_v15, 1  ;;  %vm3636_vm13 = vcmp.eq.s32.totalorder %v3444_v16, 2  ;;  %vm3506_vm14 = vcmp.eq.s32.totalorder %v3442_v15, 0 }
 0x23d   :  { %v2232_v18 = vpop.f32.mrf.mxu0  ;;  %14675 = vmatmul.mubr.msk.bf16.gmra.mxu0 %vm997_vm0, %v17440_v55  ;;  %vm3572_vm15 = vcmp.eq.s32.totalorder %v3444_v16, 1  ;;  %vm3635_vm1 = vcmp.eq.s32.totalorder %v3443_v32, 2  ;;  %vm3508_vm2 = vcmp.eq.s32.totalorder %v3444_v16, 0  ;;  %vm3571_vm3 = vcmp.eq.s32.totalorder %v3443_v32, 1 }
 0x23e   :  { %v2305_v14 = vpop.f32.mrf.mxu1  ;;  %14679 = vmatmul.mubr.msk.bf16.gmra.mxu1 %vm997_vm0, %v17440_v55  ;;  %3116 = vmatprep.mubr.bf16.mxu0 %v22757_v33  ;;  %vm3637_vm4 = vcmp.eq.s32.totalorder %v3445_v46, 2  ;;  %vm3507_vm5 = vcmp.eq.s32.totalorder %v3443_v32, 0  ;;  %vm3573_vm6 = vcmp.eq.s32.totalorder %v3445_v46, 1  ;;  %vm3509_vm7 = vcmp.eq.s32.totalorder %v3445_v46, 0 }
 0x23f   :  { %v2234_v28 = vpop.f32.mrf.mxu0  ;;  %3189 = vmatprep.mubr.bf16.mxu1 %v22757_v33 }
 0x240   :  { %v2307_v10 = vpop.f32.mrf.mxu1 }
 0x241   :  { %v2236_v48 = vpop.f32.mrf.mxu0 }
 0x242   :  { %v2309_v17 = vpop.f32.mrf.mxu1 }
 0x243   :  { %v2238_v30 = vpop.f32.mrf.mxu0 }
 0x244   :  { %v2311_v24 = vpop.f32.mrf.mxu1 }
 0x245   :  { %v2242_v44 = vpop.f32.mrf.mxu0  ;;  %14676 = vmatmul.mubr.msk.bf16.gmra.mxu0 %vm997_vm0, %v17458_v19 }
 0x246   :  { %v3826_v60 = vsel %vm3634_vm11, %v2232_v18, %v2242_v44  ;;  %v2315_v34 = vpop.f32.mrf.mxu1  ;;  %14680 = vmatmul.mubr.msk.bf16.gmra.mxu1 %vm997_vm0, %v17458_v19  ;;  %3232 = vmatprep.mubr.bf16.mxu0 %v22757_v33 }
 0x247   :  { %v4082_v8 = vsel %vm3570_vm12, %v17805_v2, %v3826_v60  ;;  %v3828_v7 = vsel %vm3636_vm13, %v2305_v14, %v2315_v34  ;;  %v2244_v31 = vpop.f32.mrf.mxu0  ;;  %3305 = vmatprep.mubr.bf16.mxu1 %v22757_v33 }
 0x248   :  { %v4338_v44 = vsel %vm3506_vm14, %v17751_v13, %v4082_v8  ;;  %v4084_v18 = vsel %vm3572_vm15, %v17811_v47, %v3828_v7  ;;  %v3827_v3 = vsel %vm3635_vm1, %v2234_v28, %v2244_v31  ;;  %v2317_v27 = vpop.f32.mrf.mxu1 }
 0x249   :  { %v4340_v2 = vsel %vm3508_vm2, %v17764_v52, %v4084_v18  ;;  %v4083_v14 = vsel %vm3571_vm3, %v17816_v35, %v3827_v3  ;;  %v3829_v60 = vsel %vm3637_vm4, %v2307_v10, %v2317_v27  ;;  %v2246_v34 = vpop.f32.mrf.mxu0 }
 0x24a   :  { %v4339_v61 = vsel %vm3507_vm5, %v17774_v25, %v4083_v14  ;;  %v4085_v13 = vsel %vm3573_vm6, %v17822_v42, %v3829_v60  ;;  %v3890_v47 = vsel %vm3634_vm11, %v2236_v48, %v2246_v34  ;;  %v2319_v28 = vpop.f32.mrf.mxu1  ;;  %v4480_v46 = vadd.f32 %v16057_v9, %v4340_v2 }
 0x24b   :  { %v4341_v8 = vsel %vm3509_vm7, %v17778_v5, %v4085_v13  ;;  %v4146_v52 = vsel %vm3570_vm12, %v17833_v22, %v3890_v47  ;;  %v2248_v7 = vpop.f32.mrf.mxu0  ;;  %v3892_v27 = vsel %vm3636_vm13, %v2309_v17, %v2319_v28  ;;  %v4479_v25 = vadd.f32 %v16057_v9, %v4339_v61 }
 0x24c   :  { %v4402_v35 = vsel %vm3506_vm14, %v17784_v62, %v4146_v52  ;;  %v2321_v3 = vpop.f32.mrf.mxu1  ;;  %v4148_v42 = vsel %vm3572_vm15, %v17844_v58, %v3892_v27  ;;  %v3891_v10 = vsel %vm3635_vm1, %v2238_v30, %v2248_v7  ;;  %v22822_v30 = vpack.c.bf16 %v16226_v50, %v16223_v49 }
 0x24d   :  { %v3893_v48 = vsel %vm3637_vm4, %v2311_v24, %v2321_v3  ;;  %v17907_v5 = vpop.f32.mrf.mxu0  ;;  %14681 = vmatmul.mubr.msk.bf16.vlgmr.msra.gmra.mxu0 %vm997_vm0, %v17329_v56  ;;  %v4404_v62 = vsel %vm3508_vm2, %v17787_v57, %v4148_v42  ;;  %v4147_v22 = vsel %vm3571_vm3, %v17850_v39, %v3891_v10  ;;  %v22823_v58 = vpack.c.bf16 %v16237_v59, %v16235_v26 }
 0x24e   :  { %v4149_v17 = vsel %vm3573_vm6, %v17857_v43, %v3893_v48  ;;  %v17917_v61 = vpop.f32.mrf.mxu1  ;;  %14685 = vmatmul.mubr.msk.bf16.vlgmr.msra.gmra.mxu1 %vm997_vm0, %v17329_v56  ;;  %5058 = vmatpush1.bf16.msra.mxu0 %v22822_v30  ;;  %v4403_v24 = vsel %vm3507_vm5, %v17794_v38, %v4147_v22  ;;  %v22824_v39 = vpack.c.bf16 %v16464_v37, %v16461_v1  ;;  %vm4607_vm8 = vcmp.ge.f32.partialorder %v4479_v25, 0.0  ;;  %v10767_v30 = vld [vmem:[#allocation10] sm:$0xff] }
 0x24f   :  { %v4405_v57 = vsel %vm3509_vm7, %v17799_v45, %v4149_v17  ;;  %5111 = vmatpush1.bf16.msra.mxu1 %v22823_v58  ;;  %v17934_v43 = vpop.f32.mrf.mxu0  ;;  %v4478_v56 = vadd.f32 %v16057_v9, %v4338_v44  ;;  %v4543_v49 = vadd.f32 %v16143_v53, %v4403_v24  ;;  %v22825_v50 = vpack.c.bf16 %v16479_v41, %v16476_v51 }
 0x250   :  { %5163 = vmatprep.subr.bf16.mxu0 %v22824_v39  ;;  %v17941_v38 = vpop.f32.mrf.mxu1  ;;  %3242 = vmatprep.mubr.bf16.mxu0 %v22757_v33  ;;  %v4481_v26 = vadd.f32 %v16057_v9, %v4341_v8  ;;  %v4542_v59 = vadd.f32 %v16143_v53, %v4402_v35  ;;  %v4545_v1 = vadd.f32 %v16143_v53, %v4405_v57  ;;  %v4735_v41 = vmul.f32 0.01, %v4479_v25 }
 0x251   :  { %5216 = vmatprep.subr.bf16.mxu1 %v22825_v50  ;;  %v17947_v37 = vpop.f32.mrf.mxu0  ;;  %3315 = vmatprep.mubr.bf16.mxu1 %v22757_v33  ;;  %vm4671_vm9 = vcmp.ge.f32.partialorder %v4543_v49, 0.0  ;;  %v4799_v51 = vmul.f32 0.01, %v4543_v49  ;;  %v4544_v32 = vadd.f32 %v16143_v53, %v4404_v62  ;;  %v4734_v16 = vmul.f32 0.01, %v4478_v56 }
 0x252   :  { %v17950_v45 = vpop.f32.mrf.mxu1  ;;  %v17958_v44 = vsel %vm4607_vm8, %v4479_v25, %v4735_v41  ;;  %v4798_v14 = vmul.f32 0.01, %v4542_v59  ;;  %vm4609_vm10 = vcmp.ge.f32.partialorder %v4481_v26, 0.0  ;;  %v4737_v34 = vmul.f32 0.01, %v4481_v26  ;;  %10770 = vperm.xlu1 %15029, %v10767_v30  }
 0x253   :  { %v17954_v15 = vpop.f32.mrf.mxu0  ;;  %v17960_v18 = vsel %vm4671_vm9, %v4543_v49, %v4799_v51  ;;  %vm4673_vm11 = vcmp.ge.f32.partialorder %v4545_v1, 0.0  ;;  %v4801_v47 = vmul.f32 0.01, %v4545_v1  ;;  %vm4606_vm12 = vcmp.ge.f32.partialorder %v4478_v56, 0.0 }
 0x254   :  { %v17956_v31 = vpop.f32.mrf.mxu1  ;;  %vm4670_vm13 = vcmp.ge.f32.partialorder %v4542_v59, 0.0  ;;  %v4736_v28 = vmul.f32 0.01, %v4480_v46  ;;  %v4800_v8 = vmul.f32 0.01, %v4544_v32  ;;  %v17977_v7 = vadd.s32 4608, %v15979_v29 }
 0x255   :  { %v17962_v60 = vpop.f32.mrf.mxu0  ;;  %14682 = vmatmul.mubr.msk.bf16.gmra.mxu0 %vm997_vm0, %v17377_v11  ;;  %v17982_v27 = vadd.s32 4864, %v15979_v29  ;;  %v17988_v3 = vadd.s32 4992, %v15979_v29  ;;  %v17993_v42 = vsel %vm4609_vm10, %v4481_v26, %v4737_v34  ;;  %v17995_v10 = vsel %vm4673_vm11, %v4545_v1, %v4801_v47 }
 0x256   :  { %v17968_v13 = vpop.f32.mrf.mxu1  ;;  %14686 = vmatmul.mubr.msk.bf16.gmra.mxu1 %vm997_vm0, %v17377_v11  ;;  %3252 = vmatprep.mubr.bf16.mxu0 %v22757_v33  ;;  %22826 = vst [vmem:[#allocation96_spill] sm:$0xff] %v17977_v7  ;;  %v17985_v11 = vadd.s32 4736, %v15979_v29  ;;  %v17997_v48 = vsel %vm4606_vm12, %v4478_v56, %v4734_v16  ;;  %v17999_v62 = vsel %vm4670_vm13, %v4542_v59, %v4798_v14  ;;  %vm4608_vm14 = vcmp.ge.f32.partialorder %v4480_v46, 0.0 }
 0x257   :  { %v17973_v52 = vpop.f32.mrf.mxu0  ;;  %3325 = vmatprep.mubr.bf16.mxu1 %v22757_v33  ;;  %22827 = vst [vmem:[#allocation97_spill] sm:$0xff] %v17982_v27  ;;  %22829 = vst [vmem:[#allocation99_spill] sm:$0xff] %v17988_v3  ;;  %vm4672_vm15 = vcmp.ge.f32.partialorder %v4544_v32, 0.0  ;;  %v3382_v58 = vshra.s32 %v17977_v7, 8  ;;  %v18010_v39 = vsel %vm4608_vm14, %v4480_v46, %v4736_v28  ;;  %v3384_v50 = vshra.s32 %v17982_v27, 8  ;;  %v22852_v27 = vld [vmem:[#allocation45_spill] sm:$0xff] }
 0x258   :  { %v17979_v35 = vpop.f32.mrf.mxu1  ;;  %22828 = vst [vmem:[#allocation98_spill] sm:$0xff] %v17985_v11  ;;  %v18012_v56 = vsel %vm4672_vm15, %v4544_v32, %v4800_v8  ;;  %v3383_v1 = vshra.s32 %v17985_v11, 8  ;;  %v3385_v51 = vshra.s32 %v17988_v3, 8  ;;  %vm5036_vm12 = vcmask 130048   ;;  %v22853_v7 = vld [vmem:[#allocation44_spill] sm:$0xff] }
 0x259   :  { %v17990_v25 = vpop.f32.mrf.mxu0  ;;  %v3446_v32 = vand.u32 3, %v3382_v58  ;;  %v3448_v14 = vand.u32 3, %v3384_v50  ;;  %v22854_v3 = vpack.c.bf16 %v22852_v27, %v22853_v7 }
 0x25a   :  { %v18001_v22 = vpop.f32.mrf.mxu1  ;;  %v18027_v47 = vand.u32 3, %v3383_v1  ;;  %v18029_v8 = vand.u32 3, %v3385_v51 }
 0x25b   :  { %v18007_v57 = vpop.f32.mrf.mxu0  ;;  %vm3638_vm1 = vcmp.eq.s32.totalorder %v3446_v32, 2  ;;  %vm3574_vm2 = vcmp.eq.s32.totalorder %v3446_v32, 1  ;;  %vm3640_vm3 = vcmp.eq.s32.totalorder %v3448_v14, 2  ;;  %vm3510_vm4 = vcmp.eq.s32.totalorder %v3446_v32, 0 }
 0x25c   :  { %v18014_v49 = vpop.f32.mrf.mxu1  ;;  %vm3576_vm5 = vcmp.eq.s32.totalorder %v3448_v14, 1  ;;  %vm3639_vm6 = vcmp.eq.s32.totalorder %v18027_v47, 2  ;;  %vm3512_vm7 = vcmp.eq.s32.totalorder %v3448_v14, 0  ;;  %vm3575_vm8 = vcmp.eq.s32.totalorder %v18027_v47, 1 }
 0x25d   :  { %v2378_v59 = vpop.f32.mrf.mxu0  ;;  %14683 = vmatmul.mubr.msk.bf16.gmra.mxu0 %vm997_vm0, %v17440_v55  ;;  %vm3641_vm9 = vcmp.eq.s32.totalorder %v18029_v8, 2  ;;  %vm3511_vm10 = vcmp.eq.s32.totalorder %v18027_v47, 0  ;;  %vm3577_vm11 = vcmp.eq.s32.totalorder %v18029_v8, 1  ;;  %v22838_v47 = vld [vmem:[#allocation41_spill] sm:$0xff] }
 0x25e   :  { %v2451_v41 = vpop.f32.mrf.mxu1  ;;  %14687 = vmatmul.mubr.msk.bf16.gmra.mxu1 %vm997_vm0, %v17440_v55  ;;  %3262 = vmatprep.mubr.bf16.mxu0 %v22757_v33 }
 0x25f   :  { %v2380_v46 = vpop.f32.mrf.mxu0  ;;  %3335 = vmatprep.mubr.bf16.mxu1 %v22757_v33 }
 0x260   :  { %v2453_v16 = vpop.f32.mrf.mxu1 }
 0x261   :  { %v2382_v34 = vpop.f32.mrf.mxu0 }
 0x262   :  { %v2455_v28 = vpop.f32.mrf.mxu1 }
 0x263   :  { %v2384_v30 = vpop.f32.mrf.mxu0 }
 0x264   :  { %v2457_v26 = vpop.f32.mrf.mxu1 }
 0x265   :  { %v2388_v55 = vpop.f32.mrf.mxu0  ;;  %14684 = vmatmul.mubr.msk.bf16.gmra.mxu0 %vm997_vm0, %v17458_v19 }
 0x266   :  { %v3830_v58 = vsel %vm3638_vm1, %v2378_v59, %v2388_v55  ;;  %v2461_v50 = vpop.f32.mrf.mxu1  ;;  %14688 = vmatmul.mubr.msk.bf16.gmra.mxu1 %vm997_vm0, %v17458_v19  ;;  %5075 = vmatprep.mubr.bf16.mxu0 %v22757_v33  ;;  %vm3513_vm0 = vcmp.eq.s32.totalorder %v18029_v8, 0 }
 0x267   :  { %v4086_v1 = vsel %vm3574_vm2, %v17962_v60, %v3830_v58  ;;  %v3832_v51 = vsel %vm3640_vm3, %v2451_v41, %v2461_v50  ;;  %v2390_v24 = vpop.f32.mrf.mxu0  ;;  %5128 = vmatprep.mubr.bf16.mxu1 %v22757_v33  ;;  %v18060_v50 = vld [vmem:[#allocation6] sm:$0xff]  }
 0x268   :  { %v4342_v19 = vsel %vm3510_vm4, %v17907_v5, %v4086_v1  ;;  %v4088_v59 = vsel %vm3576_vm5, %v17968_v13, %v3832_v51  ;;  %v3831_v55 = vsel %vm3639_vm6, %v2380_v46, %v2390_v24  ;;  %v2463_v17 = vpop.f32.mrf.mxu1 }
 0x269   :  { %v4344_v60 = vsel %vm3512_vm7, %v17917_v61, %v4088_v59  ;;  %v4087_v41 = vsel %vm3575_vm8, %v17973_v52, %v3831_v55  ;;  %v3833_v58 = vsel %vm3641_vm9, %v2453_v16, %v2463_v17  ;;  %v2392_v5 = vpop.f32.mrf.mxu0  ;;  %v18075_v1 = vadd.f32 %v16057_v9, %v4342_v19 }
 0x26a   :  { %v4343_v13 = vsel %vm3511_vm10, %v17934_v43, %v4087_v41  ;;  %v4089_v24 = vsel %vm3577_vm11, %v17979_v35, %v3833_v58  ;;  %v3894_v61 = vsel %vm3638_vm1, %v2382_v34, %v2392_v5  ;;  %v2465_v46 = vpop.f32.mrf.mxu1  ;;  %v22833_v41 = vld [vmem:[#allocation32_spill] sm:$0xff]  ;;  %v22835_v5 = vld [vmem:[#allocation37_spill] sm:$0xff] }
 0x26b   :  { %v4345_v52 = vsel %vm3513_vm0, %v17941_v38, %v4089_v24  ;;  %v4150_v17 = vsel %vm3574_vm2, %v17990_v25, %v3894_v61  ;;  %v2394_v16 = vpop.f32.mrf.mxu0  ;;  %v4483_v43 = vadd.f32 %v16057_v9, %v4343_v13  ;;  %v3896_v34 = vsel %vm3640_vm3, %v2455_v28, %v2465_v46  ;;  %v22836_v13 = vld [vmem:[#allocation36_spill] sm:$0xff] }
 0x26c   :  { %v4406_v35 = vsel %vm3510_vm4, %v17947_v37, %v4150_v17  ;;  %v2467_v51 = vpop.f32.mrf.mxu1  ;;  %v4485_v59 = vadd.f32 %v16057_v9, %v4345_v52  ;;  %v4152_v38 = vsel %vm3576_vm5, %v18001_v22, %v3896_v34  ;;  %v3895_v25 = vsel %vm3639_vm6, %v2384_v30, %v2394_v16  ;;  %v22839_v52 = vld [vmem:[#allocation40_spill] sm:$0xff] }
 0x26d   :  { %v3897_v19 = vsel %vm3641_vm9, %v2457_v26, %v2467_v51  ;;  %v18088_v55 = vpop.f32.mrf.mxu0  ;;  %14691 = vmatmul.mubr.msk.bf16.vlgmr.msra.gmra.mxu0 %vm5036_vm12, %v18060_v50  ;;  %v4408_v37 = vsel %vm3512_vm7, %v17950_v45, %v4152_v38  ;;  %v4151_v32 = vsel %vm3575_vm8, %v18007_v57, %v3895_v25  ;;  %v22830_v26 = vld [vmem:[#allocation30_spill] sm:$0xff]  ;;  %v4546_v14 = vadd.f32 %v16143_v53, %v4406_v35  ;;  %v18135_v34 = vld [vmem:[#allocation6 + $0x8] sm:$0xff]  }
 0x26e   :  { %v4153_v22 = vsel %vm3577_vm11, %v18014_v49, %v3897_v19  ;;  %v18100_v28 = vpop.f32.mrf.mxu1  ;;  %14693 = vmatmul.mubr.msk.bf16.vlgmr.msra.gmra.mxu1 %vm5036_vm12, %v18060_v50  ;;  %v22831_v30 = vpack.c.bf16 %v16469_v4, %v22830_v26  ;;  %v4407_v45 = vsel %vm3511_vm10, %v17954_v15, %v4151_v32  ;;  %v22832_v49 = vld [vmem:[#allocation33_spill] sm:$0xff]  ;;  %v22837_v24 = vpack.c.bf16 %v22835_v5, %v22836_v13 }
 0x26f   :  { %v4409_v57 = vsel %vm3513_vm0, %v17956_v31, %v4153_v22  ;;  %v22834_v58 = vpack.c.bf16 %v22832_v49, %v22833_v41  ;;  %v18120_v4 = vpop.f32.mrf.mxu0  ;;  %v4548_v61 = vadd.f32 %v16143_v53, %v4408_v37  ;;  %v4547_v46 = vadd.f32 %v16143_v53, %v4407_v45  ;;  %5085 = vmatprep.mubr.bf16.mxu0 %v22757_v33 }
 0x270   :  { %5164 = vmatpush1.bf16.msra.mxu0 %v22831_v30  ;;  %v4549_v15 = vadd.f32 %v16143_v53, %v4409_v57  ;;  %v22840_v8 = vpack.c.bf16 %v22838_v47, %v22839_v52  ;;  %v18128_v31 = vpop.f32.mrf.mxu1  ;;  %v4739_v17 = vmul.f32 0.01, %v4483_v43  ;;  %v4484_v16 = vadd.f32 %v16057_v9, %v4344_v60  ;;  %5138 = vmatprep.mubr.bf16.mxu1 %v22757_v33 }
 0x271   :  { %5217 = vmatpush1.bf16.msra.mxu1 %v22834_v58  ;;  %5269 = vmatprep.subr.bf16.mxu0 %v22837_v24  ;;  %v18132_v35 = vpop.f32.mrf.mxu0  ;;  %vm4611_vm13 = vcmp.ge.f32.partialorder %v4483_v43, 0.0  ;;  %v4741_v51 = vmul.f32 0.01, %v4485_v59  ;;  %vm4675_vm14 = vcmp.ge.f32.partialorder %v4547_v46, 0.0  ;;  %v4803_v25 = vmul.f32 0.01, %v4547_v46 }
 0x272   :  { %5322 = vmatprep.subr.bf16.mxu1 %v22840_v8  ;;  %v18137_v38 = vpop.f32.mrf.mxu1  ;;  %vm4613_vm15 = vcmp.ge.f32.partialorder %v4485_v59, 0.0  ;;  %vm4677_vm1 = vcmp.ge.f32.partialorder %v4549_v15, 0.0  ;;  %v4738_v19 = vmul.f32 0.01, %v18075_v1  ;;  %v4802_v37 = vmul.f32 0.01, %v4546_v14 }
 0x273   :  { %v18140_v32 = vpop.f32.mrf.mxu0  ;;  %v4805_v60 = vmul.f32 0.01, %v4549_v15  ;;  %v4804_v22 = vmul.f32 0.01, %v4548_v61  ;;  %v18144_v30 = vsel %vm4611_vm13, %v4483_v43, %v4739_v17  ;;  %v18146_v45 = vsel %vm4675_vm14, %v4547_v46, %v4803_v25 }
 0x274   :  { %v18142_v26 = vpop.f32.mrf.mxu1  ;;  %vm4610_vm2 = vcmp.ge.f32.partialorder %v18075_v1, 0.0  ;;  %v18155_v41 = vsel %vm4613_vm15, %v4485_v59, %v4741_v51  ;;  %vm4674_vm3 = vcmp.ge.f32.partialorder %v4546_v14, 0.0  ;;  %v4740_v5 = vmul.f32 0.01, %v4484_v16 }
 0x275   :  { %v18149_v57 = vpop.f32.mrf.mxu0  ;;  %14692 = vmatmul.mubr.msk.bf16.gmra.mxu0 %vm5036_vm12, %v18135_v34  ;;  %v18157_v58 = vsel %vm4677_vm1, %v4549_v15, %v4805_v60  ;;  %v18165_v13 = vadd.s32 5120, %v15979_v29  ;;  %v18173_v59 = vsel %vm4610_vm2, %v18075_v1, %v4738_v19  ;;  %v18175_v15 = vsel %vm4674_vm3, %v4546_v14, %v4802_v37 }
 0x276   :  { %v18159_v43 = vpop.f32.mrf.mxu1  ;;  %14694 = vmatmul.mubr.msk.bf16.gmra.mxu1 %vm5036_vm12, %v18135_v34  ;;  %5181 = vmatprep.mubr.bf16.mxu0 %v22757_v33  ;;  %22842 = vst [vmem:[#allocation33_spill] sm:$0xff] %v18173_v59  ;;  %22843 = vst [vmem:[#allocation32_spill] sm:$0xff] %v18175_v15  ;;  %vm4612_vm4 = vcmp.ge.f32.partialorder %v4484_v16, 0.0  ;;  %vm4676_vm5 = vcmp.ge.f32.partialorder %v4548_v61, 0.0  ;;  %v18180_v52 = vadd.s32 5376, %v15979_v29  ;;  %v18187_v51 = vadd.s32 5248, %v15979_v29 }
 0x277   :  { %22841 = vst [vmem:[#allocation30_spill] sm:$0xff] %v18165_v13  ;;  %v18169_v46 = vpop.f32.mrf.mxu0  ;;  %5234 = vmatprep.mubr.bf16.mxu1 %v22757_v33  ;;  %v18189_v25 = vsel %vm4676_vm5, %v4548_v61, %v4804_v22  ;;  %v18194_v14 = vadd.s32 5504, %v15979_v29  ;;  %v18196_v19 = vsel %vm4612_vm4, %v4484_v16, %v4740_v5  ;;  %v3386_v60 = vshra.s32 %v18165_v13, 8  ;;  %v22849_v16 = vld [vmem:[#allocation39_spill] sm:$0xff]  ;;  %v22850_v5 = vld [vmem:[#allocation38_spill] sm:$0xff] }
 0x278   :  { %v18177_v47 = vpop.f32.mrf.mxu1  ;;  %22844 = vst [vmem:[#allocation37_spill] sm:$0xff] %v18180_v52  ;;  %22845 = vst [vmem:[#allocation36_spill] sm:$0xff] %v18187_v51  ;;  %v3388_v49 = vshra.s32 %v18180_v52, 8  ;;  %v3387_v22 = vshra.s32 %v18187_v51, 8  ;;  %v22851_v13 = vpack.c.bf16 %v22849_v16, %v22850_v5  ;;  %v22855_v52 = vpack.c.bf16 %v16954_v54, %v16949_v20 }
 0x279   :  { %v18184_v17 = vpop.f32.mrf.mxu0  ;;  %22846 = vst [vmem:[#allocation41_spill] sm:$0xff] %v18189_v25  ;;  %22847 = vst [vmem:[#allocation40_spill] sm:$0xff] %v18194_v14  ;;  %v3389_v8 = vshra.s32 %v18194_v14, 8  ;;  %v3450_v51 = vand.u32 3, %v3386_v60  ;;  %v22857_v25 = vld [vmem:[#allocation49_spill] sm:$0xff]  ;;  %v22887_v14 = vld [vmem:[#allocation66_spill] sm:$0xff] }
 0x27a   :  { %v18191_v1 = vpop.f32.mrf.mxu1  ;;  %22848 = vst [vmem:[#allocation100_spill] sm:$0xff] %v18196_v19  ;;  %v22856_v19 = vld [vmem:[#allocation52_spill] sm:$0xff]  ;;  %v18226_v5 = vand.u32 3, %v3387_v22 }
 0x27b   :  { %v18198_v37 = vpop.f32.mrf.mxu0  ;;  %v22858_v59 = vpack.c.bf16 %v22856_v19, %v22857_v25  ;;  %v18228_v27 = vand.u32 3, %v3389_v8  ;;  %vm3642_vm6 = vcmp.eq.s32.totalorder %v3450_v51, 2  ;;  %vm3578_vm7 = vcmp.eq.s32.totalorder %v3450_v51, 1 }
 0x27c   :  { %v18203_v24 = vpop.f32.mrf.mxu1  ;;  %vm3514_vm9 = vcmp.eq.s32.totalorder %v3450_v51, 0  ;;  %vm3643_vm11 = vcmp.eq.s32.totalorder %v18226_v5, 2  ;;  %vm3579_vm13 = vcmp.eq.s32.totalorder %v18226_v5, 1  ;;  %vm3515_vm15 = vcmp.eq.s32.totalorder %v18226_v5, 0  ;;  %v22868_v5 = vld [vmem:[#allocation61_spill] sm:$0xff] }
 0x27d   :  { %v2524_v61 = vpop.f32.mrf.mxu0  ;;  %14695 = vmatmul.mubr.msk.bf16.vlgmr.msra.gmra.mxu0 %vm5036_vm12, %v18060_v50  ;;  %vm3645_vm14 = vcmp.eq.s32.totalorder %v18228_v27, 2  ;;  %vm3581_vm1 = vcmp.eq.s32.totalorder %v18228_v27, 1  ;;  %vm3517_vm2 = vcmp.eq.s32.totalorder %v18228_v27, 0 }
 0x27e   :  { %v2597_v2 = vpop.f32.mrf.mxu1  ;;  %14697 = vmatmul.mubr.msk.bf16.vlgmr.msra.gmra.mxu1 %vm5036_vm12, %v18060_v50  ;;  %5270 = vmatpush1.bf16.msra.mxu0 %v22851_v13  ;;  %v3452_v13 = vand.u32 3, %v3388_v49 }
 0x27f   :  { %5323 = vmatpush1.bf16.msra.mxu1 %v22854_v3  ;;  %5375 = vmatprep.subr.bf16.mxu0 %v22855_v52  ;;  %v2526_v11 = vpop.f32.mrf.mxu0 }
 0x280   :  { %5428 = vmatprep.subr.bf16.mxu1 %v22858_v59  ;;  %v2599_v15 = vpop.f32.mrf.mxu1  ;;  %5191 = vmatprep.mubr.bf16.mxu0 %v22757_v33  ;;  %vm3644_vm8 = vcmp.eq.s32.totalorder %v3452_v13, 2  ;;  %vm3580_vm10 = vcmp.eq.s32.totalorder %v3452_v13, 1  ;;  %vm3516_vm0 = vcmp.eq.s32.totalorder %v3452_v13, 0 }
 0x281   :  { %v2528_v16 = vpop.f32.mrf.mxu0  ;;  %5244 = vmatprep.mubr.bf16.mxu1 %v22757_v33 }
 0x282   :  { %v2601_v7 = vpop.f32.mrf.mxu1 }
 0x283   :  { %v2530_v20 = vpop.f32.mrf.mxu0 }
 0x284   :  { %v2603_v54 = vpop.f32.mrf.mxu1 }
 0x285   :  { %v2534_v3 = vpop.f32.mrf.mxu0  ;;  %14696 = vmatmul.mubr.msk.bf16.gmra.mxu0 %vm5036_vm12, %v18135_v34 }
 0x286   :  { %v3834_v49 = vsel %vm3642_vm6, %v2524_v61, %v2534_v3  ;;  %v2607_v59 = vpop.f32.mrf.mxu1  ;;  %14698 = vmatmul.mubr.msk.bf16.gmra.mxu1 %vm5036_vm12, %v18135_v34  ;;  %5287 = vmatprep.mubr.bf16.mxu0 %v22757_v33 }
 0x287   :  { %v4090_v52 = vsel %vm3578_vm7, %v18149_v57, %v3834_v49  ;;  %v3836_v8 = vsel %vm3644_vm8, %v2597_v2, %v2607_v59  ;;  %v2536_v25 = vpop.f32.mrf.mxu0  ;;  %5340 = vmatprep.mubr.bf16.mxu1 %v22757_v33 }
 0x288   :  { %v4346_v19 = vsel %vm3514_vm9, %v18088_v55, %v4090_v52  ;;  %v4092_v60 = vsel %vm3580_vm10, %v18159_v43, %v3836_v8  ;;  %v3835_v61 = vsel %vm3643_vm11, %v2526_v11, %v2536_v25  ;;  %v2609_v22 = vpop.f32.mrf.mxu1 }
 0x289   :  { %v4486_v2 = vadd.f32 %v16057_v9, %v4346_v19  ;;  %v4348_v57 = vsel %vm3516_vm0, %v18100_v28, %v4092_v60  ;;  %v4091_v3 = vsel %vm3579_vm13, %v18169_v46, %v3835_v61  ;;  %v3837_v55 = vsel %vm3645_vm14, %v2599_v15, %v2609_v22  ;;  %v2538_v49 = vpop.f32.mrf.mxu0 }
 0x28a   :  { %v18261_v43 = vadd.f32 %v16057_v9, %v4348_v57  ;;  %v4347_v11 = vsel %vm3515_vm15, %v18120_v4, %v4091_v3  ;;  %v4093_v59 = vsel %vm3581_vm1, %v18177_v47, %v3837_v55  ;;  %v3898_v28 = vsel %vm3642_vm6, %v2528_v16, %v2538_v49  ;;  %v2611_v52 = vpop.f32.mrf.mxu1  ;;  %v22862_v49 = vld [vmem:[#allocation55_spill] sm:$0xff] }
 0x28b   :  { %v4742_v8 = vmul.f32 0.01, %v4486_v2  ;;  %v4487_v46 = vadd.f32 %v16057_v9, %v4347_v11  ;;  %v4349_v15 = vsel %vm3517_vm2, %v18128_v31, %v4093_v59  ;;  %v4154_v25 = vsel %vm3578_vm7, %v18184_v17, %v3898_v28  ;;  %v2540_v19 = vpop.f32.mrf.mxu0  ;;  %v22863_v11 = vld [vmem:[#allocation54_spill] sm:$0xff]  ;;  %v22865_v28 = vld [vmem:[#allocation56_spill] sm:$0xff] }
 0x28c   :  { %v4744_v4 = vmul.f32 0.01, %v18261_v43  ;;  %v4489_v60 = vadd.f32 %v16057_v9, %v4349_v15  ;;  %v4410_v47 = vsel %vm3514_vm9, %v18132_v35, %v4154_v25  ;;  %v3900_v16 = vsel %vm3644_vm8, %v2601_v7, %v2611_v52  ;;  %v2613_v61 = vpop.f32.mrf.mxu1  ;;  %v22866_v52 = vld [vmem:[#allocation57_spill] sm:$0xff] }
 0x28d   :  { %v4550_v22 = vadd.f32 %v16143_v53, %v4410_v47  ;;  %v4156_v57 = vsel %vm3580_vm10, %v18191_v1, %v3900_v16  ;;  %v3899_v31 = vsel %vm3643_vm11, %v2530_v20, %v2540_v19  ;;  %v3901_v17 = vsel %vm3645_vm14, %v2603_v54, %v2613_v61  ;;  %v18288_v3 = vpop.f32.mrf.mxu0  ;;  %14699 = vmatmul.mubr.msk.bf16.vlgmr.msra.gmra.mxu0 %vm5036_vm12, %v18060_v50  ;;  %v22859_v20 = vld [vmem:[#allocation51_spill] sm:$0xff]  ;;  %v22860_v54 = vld [vmem:[#allocation50_spill] sm:$0xff] }
 0x28e   :  { %v4412_v35 = vsel %vm3516_vm0, %v18137_v38, %v4156_v57  ;;  %v4155_v51 = vsel %vm3579_vm13, %v18198_v37, %v3899_v31  ;;  %v4157_v1 = vsel %vm3581_vm1, %v18203_v24, %v3901_v17  ;;  %v18300_v7 = vpop.f32.mrf.mxu1  ;;  %14701 = vmatmul.mubr.msk.bf16.vlgmr.msra.gmra.mxu1 %vm5036_vm12, %v18060_v50  ;;  %v22861_v55 = vpack.c.bf16 %v22859_v20, %v22860_v54 }
 0x28f   :  { %vm4615_vm3 = vcmp.ge.f32.partialorder %v4487_v46, 0.0  ;;  %v4806_v13 = vmul.f32 0.01, %v4550_v22  ;;  %v4552_v38 = vadd.f32 %v16143_v53, %v4412_v35  ;;  %v4411_v37 = vsel %vm3515_vm15, %v18140_v32, %v4155_v51  ;;  %v18320_v25 = vpop.f32.mrf.mxu0  ;;  %v22869_v32 = vld [vmem:[#allocation60_spill] sm:$0xff]  ;;  %5297 = vmatprep.mubr.bf16.mxu0 %v22757_v33  ;;  %5350 = vmatprep.mubr.bf16.mxu1 %v22757_v33 }
 0x290   :  { %5376 = vmatpush1.bf16.msra.mxu0 %v22861_v55  ;;  %v4413_v24 = vsel %vm3517_vm2, %v18142_v26, %v4157_v1  ;;  %v22864_v59 = vpack.c.bf16 %v22862_v49, %v22863_v11  ;;  %v22867_v15 = vpack.c.bf16 %v22865_v28, %v22866_v52  ;;  %v4551_v19 = vadd.f32 %v16143_v53, %v4411_v37  ;;  %v18327_v27 = vpop.f32.mrf.mxu1  ;;  %v22883_v28 = vld [vmem:[#allocation65_spill] sm:$0xff]  ;;  %v22884_v11 = vld [vmem:[#allocation64_spill] sm:$0xff] }
 0x291   :  { %v4553_v47 = vadd.f32 %v16143_v53, %v4413_v24  ;;  %v22870_v16 = vpack.c.bf16 %v22868_v5, %v22869_v32  ;;  %v4743_v26 = vmul.f32 0.01, %v4487_v46  ;;  %vm4617_vm4 = vcmp.ge.f32.partialorder %v4489_v60, 0.0  ;;  %v18330_v57 = vpop.f32.mrf.mxu0 }
 0x292   :  { %5429 = vmatpush1.bf16.msra.mxu1 %v22864_v59  ;;  %5481 = vmatprep.subr.bf16.mxu0 %v22867_v15  ;;  %v4808_v61 = vmul.f32 0.01, %v4552_v38  ;;  %v4745_v31 = vmul.f32 0.01, %v4489_v60  ;;  %vm4614_vm5 = vcmp.ge.f32.partialorder %v4486_v2, 0.0  ;;  %vm4678_vm6 = vcmp.ge.f32.partialorder %v4550_v22, 0.0  ;;  %v18333_v17 = vpop.f32.mrf.mxu1 }
 0x293   :  { %5534 = vmatprep.subr.bf16.mxu1 %v22870_v16  ;;  %vm4679_vm7 = vcmp.ge.f32.partialorder %v4551_v19, 0.0  ;;  %v4807_v35 = vmul.f32 0.01, %v4551_v19  ;;  %v18336_v51 = vsel %vm4615_vm3, %v4487_v46, %v4743_v26  ;;  %vm4681_vm8 = vcmp.ge.f32.partialorder %v4553_v47, 0.0  ;;  %v18338_v1 = vpop.f32.mrf.mxu0 }
 0x294   :  { %22871 = vst [vmem:[#allocation39_spill] sm:$0xff] %v18336_v51  ;;  %v4809_v20 = vmul.f32 0.01, %v4553_v47  ;;  %v18340_v54 = vsel %vm4617_vm4, %v4489_v60, %v4745_v31  ;;  %v18342_v55 = vsel %vm4614_vm5, %v4486_v2, %v4742_v8  ;;  %v18344_v37 = vsel %vm4678_vm6, %v4550_v22, %v4806_v13  ;;  %v18346_v24 = vpop.f32.mrf.mxu1 }
 0x295   :  { %22872 = vst [vmem:[#allocation38_spill] sm:$0xff] %v18340_v54  ;;  %22873 = vst [vmem:[#allocation45_spill] sm:$0xff] %v18342_v55  ;;  %v18348_v49 = vsel %vm4679_vm7, %v4551_v19, %v4807_v35  ;;  %vm4616_vm9 = vcmp.ge.f32.partialorder %v18261_v43, 0.0  ;;  %vm4680_vm10 = vcmp.ge.f32.partialorder %v4552_v38, 0.0  ;;  %v2660_v46 = vpop.f32.mrf.mxu0  ;;  %14700 = vmatmul.mubr.msk.bf16.gmra.mxu0 %vm5036_vm12, %v18135_v34  ;;  %v18387_v19 = vadd.s32 5760, %v15979_v29  ;;  %v22892_v54 = vld [vmem:[#allocation75_spill] sm:$0xff] }
 0x296   :  { %22874 = vst [vmem:[#allocation44_spill] sm:$0xff] %v18344_v37  ;;  %22875 = vst [vmem:[#allocation52_spill] sm:$0xff] %v18348_v49  ;;  %v18357_v8 = vsel %vm4681_vm8, %v4553_v47, %v4809_v20  ;;  %v18360_v60 = vsel %vm4616_vm9, %v18261_v43, %v4744_v4  ;;  %v18362_v22 = vsel %vm4680_vm10, %v4552_v38, %v4808_v61  ;;  %v18364_v13 = vpop.f32.mrf.mxu1  ;;  %14702 = vmatmul.mubr.msk.bf16.gmra.mxu1 %vm5036_vm12, %v18135_v34 }
 0x297   :  { %22876 = vst [vmem:[#allocation49_spill] sm:$0xff] %v18357_v8  ;;  %22877 = vst [vmem:[#allocation51_spill] sm:$0xff] %v18360_v60  ;;  %5393 = vmatprep.mubr.bf16.mxu0 %v22757_v33  ;;  %v18373_v52 = vpop.f32.mrf.mxu0  ;;  %5446 = vmatprep.mubr.bf16.mxu1 %v22757_v33  ;;  %v18377_v43 = vadd.s32 5632, %v15979_v29  ;;  %v18382_v38 = vadd.s32 5888, %v15979_v29  ;;  %v18392_v5 = vadd.s32 6016, %v15979_v29  ;;  %v3391_v35 = vshra.s32 %v18387_v19, 8 }
 0x298   :  { %22878 = vst [vmem:[#allocation50_spill] sm:$0xff] %v18362_v22  ;;  %v18379_v4 = vpop.f32.mrf.mxu1  ;;  %22881 = vst [vmem:[#allocation56_spill] sm:$0xff] %v18387_v19  ;;  %v22885_v59 = vpack.c.bf16 %v22883_v28, %v22884_v11  ;;  %v22890_v22 = vld [vmem:[#allocation68_spill] sm:$0xff]  ;;  %v22893_v8 = vld [vmem:[#allocation74_spill] sm:$0xff] }
 0x299   :  { %22879 = vst [vmem:[#allocation55_spill] sm:$0xff] %v18377_v43  ;;  %22880 = vst [vmem:[#allocation54_spill] sm:$0xff] %v18382_v38  ;;  %v18384_v15 = vpop.f32.mrf.mxu0  ;;  %v3390_v16 = vshra.s32 %v18377_v43, 8  ;;  %v3392_v61 = vshra.s32 %v18382_v38, 8  ;;  %v3393_v2 = vshra.s32 %v18392_v5, 8  ;;  %v22886_v43 = vld [vmem:[#allocation67_spill] sm:$0xff]  ;;  %v22894_v51 = vpack.c.bf16 %v22892_v54, %v22893_v8 }
 0x29a   :  { %v18389_v47 = vpop.f32.mrf.mxu1  ;;  %22882 = vst [vmem:[#allocation57_spill] sm:$0xff] %v18392_v5  ;;  %v22888_v60 = vpack.c.bf16 %v22886_v43, %v22887_v14  ;;  %v22889_v38 = vld [vmem:[#allocation69_spill] sm:$0xff]  ;;  %v18420_v28 = vand.u32 3, %v3391_v35 }
 0x29b   :  { %v18394_v32 = vpop.f32.mrf.mxu0  ;;  %v22891_v55 = vpack.c.bf16 %v22889_v38, %v22890_v22  ;;  %v3454_v19 = vand.u32 3, %v3390_v16  ;;  %v3456_v11 = vand.u32 3, %v3392_v61 }
 0x29c   :  { %v18397_v26 = vpop.f32.mrf.mxu1  ;;  %vm3647_vm1 = vcmp.eq.s32.totalorder %v18420_v28, 2  ;;  %vm3583_vm3 = vcmp.eq.s32.totalorder %v18420_v28, 1  ;;  %vm3519_vm5 = vcmp.eq.s32.totalorder %v18420_v28, 0 }
 0x29d   :  { %v2670_v31 = vpop.f32.mrf.mxu0  ;;  %14703 = vmatmul.mubr.msk.bf16.vlgmr.msra.gmra.mxu0 %vm5036_vm12, %v18060_v50  ;;  %vm3646_vm11 = vcmp.eq.s32.totalorder %v3454_v19, 2  ;;  %vm3582_vm0 = vcmp.eq.s32.totalorder %v3454_v19, 1  ;;  %vm3648_vm13 = vcmp.eq.s32.totalorder %v3456_v11, 2  ;;  %vm3518_vm14 = vcmp.eq.s32.totalorder %v3454_v19, 0 }
 0x29e   :  { %v2743_v20 = vpop.f32.mrf.mxu1  ;;  %14705 = vmatmul.mubr.msk.bf16.vlgmr.msra.gmra.mxu1 %vm5036_vm12, %v18060_v50  ;;  %5482 = vmatpush1.bf16.msra.mxu0 %v22885_v59  ;;  %vm3584_vm15 = vcmp.eq.s32.totalorder %v3456_v11, 1  ;;  %vm3520_vm2 = vcmp.eq.s32.totalorder %v3456_v11, 0 }
 0x29f   :  { %5535 = vmatpush1.bf16.msra.mxu1 %v22888_v60  ;;  %5587 = vmatprep.subr.bf16.mxu0 %v22891_v55  ;;  %v2672_v37 = vpop.f32.mrf.mxu0  ;;  %v18422_v60 = vand.u32 3, %v3393_v2 }
 0x2a0   :  { %5640 = vmatprep.subr.bf16.mxu1 %v22894_v51  ;;  %v2745_v49 = vpop.f32.mrf.mxu1  ;;  %5403 = vmatprep.mubr.bf16.mxu0 %v22757_v33 }
 0x2a1   :  { %v2674_v59 = vpop.f32.mrf.mxu0  ;;  %5456 = vmatprep.mubr.bf16.mxu1 %v22757_v33  ;;  %vm3649_vm4 = vcmp.eq.s32.totalorder %v18422_v60, 2  ;;  %vm3585_vm6 = vcmp.eq.s32.totalorder %v18422_v60, 1  ;;  %vm3521_vm7 = vcmp.eq.s32.totalorder %v18422_v60, 0 }
 0x2a2   :  { %v2747_v14 = vpop.f32.mrf.mxu1 }
 0x2a3   :  { %v2676_v22 = vpop.f32.mrf.mxu0 }
 0x2a4   :  { %v2749_v55 = vpop.f32.mrf.mxu1 }
 0x2a5   :  { %v2680_v43 = vpop.f32.mrf.mxu0  ;;  %14704 = vmatmul.mubr.msk.bf16.gmra.mxu0 %vm5036_vm12, %v18135_v34 }
 0x2a6   :  { %v3838_v51 = vsel %vm3646_vm11, %v2670_v31, %v2680_v43  ;;  %v2753_v54 = vpop.f32.mrf.mxu1  ;;  %14706 = vmatmul.mubr.msk.bf16.gmra.mxu1 %vm5036_vm12, %v18135_v34  ;;  %5499 = vmatprep.mubr.bf16.mxu0 %v22757_v33 }
 0x2a7   :  { %v4094_v2 = vsel %vm3582_vm0, %v2660_v46, %v3838_v51  ;;  %v3840_v8 = vsel %vm3648_vm13, %v2743_v20, %v2753_v54  ;;  %v2682_v38 = vpop.f32.mrf.mxu0  ;;  %5552 = vmatprep.mubr.bf16.mxu1 %v22757_v33 }
 0x2a8   :  { %v4350_v16 = vsel %vm3518_vm14, %v18288_v3, %v4094_v2  ;;  %v4096_v61 = vsel %vm3584_vm15, %v18364_v13, %v3840_v8  ;;  %v3839_v31 = vsel %vm3647_vm1, %v2672_v37, %v2682_v38  ;;  %v2755_v35 = vpop.f32.mrf.mxu1 }
 0x2a9   :  { %v4490_v46 = vadd.f32 %v16057_v9, %v4350_v16  ;;  %v4352_v20 = vsel %vm3520_vm2, %v18300_v7, %v4096_v61  ;;  %v4095_v43 = vsel %vm3583_vm3, %v18373_v52, %v3839_v31  ;;  %v3841_v3 = vsel %vm3649_vm4, %v2745_v49, %v2755_v35  ;;  %v2684_v51 = vpop.f32.mrf.mxu0 }
 0x2aa   :  { %v18454_v13 = vadd.f32 %v16057_v9, %v4352_v20  ;;  %v4351_v37 = vsel %vm3519_vm5, %v18320_v25, %v4095_v43  ;;  %v4097_v54 = vsel %vm3585_vm6, %v18379_v4, %v3841_v3  ;;  %v3902_v7 = vsel %vm3646_vm11, %v2674_v59, %v2684_v51  ;;  %v2757_v2 = vpop.f32.mrf.mxu1  ;;  %v22898_v51 = vld [vmem:[#allocation79_spill] sm:$0xff] }
 0x2ab   :  { %v4746_v8 = vmul.f32 0.01, %v4490_v46  ;;  %v4491_v52 = vadd.f32 %v16057_v9, %v4351_v37  ;;  %v4353_v49 = vsel %vm3521_vm7, %v18327_v27, %v4097_v54  ;;  %v4158_v38 = vsel %vm3582_vm0, %v18384_v15, %v3902_v7  ;;  %v2686_v16 = vpop.f32.mrf.mxu0  ;;  %v22899_v37 = vld [vmem:[#allocation78_spill] sm:$0xff]  ;;  %v22901_v7 = vld [vmem:[#allocation81_spill] sm:$0xff] }
 0x2ac   :  { %v4748_v25 = vmul.f32 0.01, %v18454_v13  ;;  %v4493_v61 = vadd.f32 %v16057_v9, %v4353_v49  ;;  %v4414_v4 = vsel %vm3518_vm14, %v18330_v57, %v4158_v38  ;;  %v3904_v59 = vsel %vm3648_vm13, %v2747_v14, %v2757_v2  ;;  %v2759_v31 = vpop.f32.mrf.mxu1  ;;  %v22902_v2 = vld [vmem:[#allocation80_spill] sm:$0xff] }
 0x2ad   :  { %v4554_v35 = vadd.f32 %v16143_v53, %v4414_v4  ;;  %v4160_v20 = vsel %vm3584_vm15, %v18389_v47, %v3904_v59  ;;  %v3903_v27 = vsel %vm3647_vm1, %v2676_v22, %v2686_v16  ;;  %v3905_v15 = vsel %vm3649_vm4, %v2749_v55, %v2759_v31  ;;  %v18481_v43 = vpop.f32.mrf.mxu0  ;;  %14707 = vmatmul.mubr.msk.bf16.vlgmr.msra.gmra.mxu0 %vm5036_vm12, %v18060_v50  ;;  %v22895_v22 = vld [vmem:[#allocation77_spill] sm:$0xff]  ;;  %v22896_v55 = vld [vmem:[#allocation76_spill] sm:$0xff] }
 0x2ae   :  { %v4416_v57 = vsel %vm3520_vm2, %v18333_v17, %v4160_v20  ;;  %v4159_v19 = vsel %vm3583_vm3, %v18394_v32, %v3903_v27  ;;  %v4161_v47 = vsel %vm3585_vm6, %v18397_v26, %v3905_v15  ;;  %v18493_v14 = vpop.f32.mrf.mxu1  ;;  %14709 = vmatmul.mubr.msk.bf16.vlgmr.msra.gmra.mxu1 %vm5036_vm12, %v18060_v50  ;;  %v22897_v3 = vpack.c.bf16 %v22895_v22, %v22896_v55 }
 0x2af   :  { %vm4619_vm8 = vcmp.ge.f32.partialorder %v4491_v52, 0.0  ;;  %v4810_v11 = vmul.f32 0.01, %v4554_v35  ;;  %v4556_v17 = vadd.f32 %v16143_v53, %v4416_v57  ;;  %v4415_v32 = vsel %vm3519_vm5, %v18338_v1, %v4159_v19  ;;  %v18513_v38 = vpop.f32.mrf.mxu0  ;;  %v22904_v1 = vld [vmem:[#allocation86_spill] sm:$0xff]  ;;  %5509 = vmatprep.mubr.bf16.mxu0 %v22757_v33  ;;  %5562 = vmatprep.mubr.bf16.mxu1 %v22757_v33 }
 0x2b0   :  { %5588 = vmatpush1.bf16.msra.mxu0 %v22897_v3  ;;  %v4417_v26 = vsel %vm3521_vm7, %v18346_v24, %v4161_v47  ;;  %v22900_v54 = vpack.c.bf16 %v22898_v51, %v22899_v37  ;;  %v22903_v49 = vpack.c.bf16 %v22901_v7, %v22902_v2  ;;  %v4555_v16 = vadd.f32 %v16143_v53, %v4415_v32  ;;  %v18520_v60 = vpop.f32.mrf.mxu1  ;;  %v22914_v37 = vld [vmem:[#allocation87_spill] sm:$0xff] }
 0x2b1   :  { %v4557_v4 = vadd.f32 %v16143_v53, %v4417_v26  ;;  %v22905_v28 = vpack.c.bf16 %v17638_v40, %v22904_v1  ;;  %v4747_v24 = vmul.f32 0.01, %v4491_v52  ;;  %vm4621_vm9 = vcmp.ge.f32.partialorder %v4493_v61, 0.0  ;;  %v18523_v31 = vpop.f32.mrf.mxu0 }
 0x2b2   :  { %5641 = vmatpush1.bf16.msra.mxu1 %v22900_v54  ;;  %5693 = vmatprep.subr.bf16.mxu0 %v22903_v49  ;;  %v4812_v59 = vmul.f32 0.01, %v4556_v17  ;;  %v4749_v20 = vmul.f32 0.01, %v4493_v61  ;;  %vm4618_vm10 = vcmp.ge.f32.partialorder %v4490_v46, 0.0  ;;  %vm4682_vm11 = vcmp.ge.f32.partialorder %v4554_v35, 0.0  ;;  %v18526_v27 = vpop.f32.mrf.mxu1 }
 0x2b3   :  { %5746 = vmatprep.subr.bf16.mxu1 %v22905_v28  ;;  %vm4683_vm0 = vcmp.ge.f32.partialorder %v4555_v16, 0.0  ;;  %v4811_v15 = vmul.f32 0.01, %v4555_v16  ;;  %v18529_v40 = vsel %vm4619_vm8, %v4491_v52, %v4747_v24  ;;  %vm4685_vm13 = vcmp.ge.f32.partialorder %v4557_v4, 0.0  ;;  %v18531_v57 = vpop.f32.mrf.mxu0 }
 0x2b4   :  { %v4813_v19 = vmul.f32 0.01, %v4557_v4  ;;  %v18533_v47 = vsel %vm4621_vm9, %v4493_v61, %v4749_v20  ;;  %v18535_v22 = vsel %vm4618_vm10, %v4490_v46, %v4746_v8  ;;  %v18537_v55 = vsel %vm4682_vm11, %v4554_v35, %v4810_v11  ;;  %v18539_v3 = vpop.f32.mrf.mxu1  ;;  %v22916_v46 = vld [vmem:[#allocation90_spill] sm:$0xff] }
 0x2b5   :  { %22906 = vst [vmem:[#allocation61_spill] sm:$0xff] %v18535_v22  ;;  %v18541_v32 = vsel %vm4683_vm0, %v4555_v16, %v4811_v15  ;;  %vm4620_vm14 = vcmp.ge.f32.partialorder %v18454_v13, 0.0  ;;  %vm4684_vm15 = vcmp.ge.f32.partialorder %v4556_v17, 0.0  ;;  %v2806_v52 = vpop.f32.mrf.mxu0  ;;  %14708 = vmatmul.mubr.msk.bf16.gmra.mxu0 %vm5036_vm12, %v18135_v34  ;;  %v18580_v2 = vadd.s32 6272, %v15979_v29 }
 0x2b6   :  { %v18550_v8 = vsel %vm4685_vm13, %v4557_v4, %v4813_v19  ;;  %v18553_v61 = vsel %vm4620_vm14, %v18454_v13, %v4748_v25  ;;  %v18555_v35 = vsel %vm4684_vm15, %v4556_v17, %v4812_v59  ;;  %v18557_v11 = vpop.f32.mrf.mxu1  ;;  %14710 = vmatmul.mubr.msk.bf16.gmra.mxu1 %vm5036_vm12, %v18135_v34  ;;  %5605 = vmatprep.mubr.bf16.mxu0 %v22757_v33  ;;  %v18570_v13 = vadd.s32 6144, %v15979_v29  ;;  %v22913_v19 = vld [vmem:[#allocation88_spill] sm:$0xff] }
 0x2b7   :  { %22907 = vst [vmem:[#allocation60_spill] sm:$0xff] %v18553_v61  ;;  %22908 = vst [vmem:[#allocation65_spill] sm:$0xff] %v18555_v35  ;;  %v18566_v54 = vpop.f32.mrf.mxu0  ;;  %5658 = vmatprep.mubr.bf16.mxu1 %v22757_v33  ;;  %v18575_v17 = vadd.s32 6400, %v15979_v29  ;;  %v18585_v16 = vadd.s32 6528, %v15979_v29  ;;  %v3395_v20 = vshra.s32 %v18580_v2, 8  ;;  %v22915_v26 = vpack.c.bf16 %v22913_v19, %v22914_v37 }
 0x2b8   :  { %22909 = vst [vmem:[#allocation64_spill] sm:$0xff] %v18570_v13  ;;  %v18572_v25 = vpop.f32.mrf.mxu1  ;;  %22911 = vst [vmem:[#allocation66_spill] sm:$0xff] %v18580_v2  ;;  %v3394_v1 = vshra.s32 %v18570_v13, 8  ;;  %v22917_v13 = vld [vmem:[#allocation89_spill] sm:$0xff]  ;;  %v22920_v35 = vpack.c.bf16 %v17838_v0, %v17836_v12 }
 0x2b9   :  { %22910 = vst [vmem:[#allocation67_spill] sm:$0xff] %v18575_v17  ;;  %v18577_v7 = vpop.f32.mrf.mxu0  ;;  %22912 = vst [vmem:[#allocation69_spill] sm:$0xff] %v18585_v16  ;;  %v3396_v24 = vshra.s32 %v18575_v17, 8  ;;  %v3397_v51 = vshra.s32 %v18585_v16, 8  ;;  %v22918_v5 = vpack.c.bf16 %v22916_v46, %v22917_v13  ;;  %v22919_v17 = vpack.c.bf16 %v17803_v6, %v17801_v36 }
 0x2ba   :  { %v18582_v49 = vpop.f32.mrf.mxu1  ;;  %v3458_v2 = vand.u32 3, %v3394_v1  ;;  %v18613_v19 = vand.u32 3, %v3395_v20 }
 0x2bb   :  { %v18587_v4 = vpop.f32.mrf.mxu0  ;;  %v18615_v46 = vand.u32 3, %v3397_v51 }
 0x2bc   :  { %v18590_v28 = vpop.f32.mrf.mxu1  ;;  %vm3650_vm1 = vcmp.eq.s32.totalorder %v3458_v2, 2  ;;  %vm3586_vm2 = vcmp.eq.s32.totalorder %v3458_v2, 1  ;;  %vm3522_vm4 = vcmp.eq.s32.totalorder %v3458_v2, 0  ;;  %vm3651_vm6 = vcmp.eq.s32.totalorder %v18613_v19, 2 }
 0x2bd   :  { %v2816_v59 = vpop.f32.mrf.mxu0  ;;  %14711 = vmatmul.mubr.msk.bf16.vlgmr.msra.gmra.mxu0 %vm5036_vm12, %v18060_v50  ;;  %vm3587_vm8 = vcmp.eq.s32.totalorder %v18613_v19, 1  ;;  %vm3653_vm9 = vcmp.eq.s32.totalorder %v18615_v46, 2  ;;  %vm3523_vm10 = vcmp.eq.s32.totalorder %v18613_v19, 0  ;;  %vm3589_vm11 = vcmp.eq.s32.totalorder %v18615_v46, 1 }
 0x2be   :  { %v2889_v15 = vpop.f32.mrf.mxu1  ;;  %14713 = vmatmul.mubr.msk.bf16.vlgmr.msra.gmra.mxu1 %vm5036_vm12, %v18060_v50  ;;  %5694 = vmatpush1.bf16.msra.mxu0 %v22915_v26  ;;  %v3460_v26 = vand.u32 3, %v3396_v24  ;;  %vm3525_vm0 = vcmp.eq.s32.totalorder %v18615_v46, 0 }
 0x2bf   :  { %5747 = vmatpush1.bf16.msra.mxu1 %v22918_v5  ;;  %5799 = vmatprep.subr.bf16.mxu0 %v22919_v17  ;;  %v2818_v61 = vpop.f32.mrf.mxu0 }
 0x2c0   :  { %5852 = vmatprep.subr.bf16.mxu1 %v22920_v35  ;;  %v2891_v22 = vpop.f32.mrf.mxu1  ;;  %5615 = vmatprep.mubr.bf16.mxu0 %v22757_v33  ;;  %vm3652_vm3 = vcmp.eq.s32.totalorder %v3460_v26, 2  ;;  %vm3588_vm5 = vcmp.eq.s32.totalorder %v3460_v26, 1  ;;  %vm3524_vm7 = vcmp.eq.s32.totalorder %v3460_v26, 0 }
 0x2c1   :  { %v2820_v37 = vpop.f32.mrf.mxu0  ;;  %5668 = vmatprep.mubr.bf16.mxu1 %v22757_v33 }
 0x2c2   :  { %v2893_v5 = vpop.f32.mrf.mxu1 }
 0x2c3   :  { %v2822_v36 = vpop.f32.mrf.mxu0 }
 0x2c4   :  { %v2895_v6 = vpop.f32.mrf.mxu1 }
 0x2c5   :  { %v2826_v13 = vpop.f32.mrf.mxu0  ;;  %14712 = vmatmul.mubr.msk.bf16.gmra.mxu0 %vm5036_vm12, %v18135_v34 }
 0x2c6   :  { %v3842_v12 = vsel %vm3650_vm1, %v2816_v59, %v2826_v13  ;;  %v2899_v0 = vpop.f32.mrf.mxu1  ;;  %14714 = vmatmul.mubr.msk.bf16.gmra.mxu1 %vm5036_vm12, %v18135_v34  ;;  %5711 = vmatprep.mubr.bf16.mxu0 %v22757_v33 }
 0x2c7   :  { %v4098_v35 = vsel %vm3586_vm2, %v2806_v52, %v3842_v12  ;;  %v3844_v51 = vsel %vm3652_vm3, %v2889_v15, %v2899_v0  ;;  %v2828_v17 = vpop.f32.mrf.mxu0  ;;  %5764 = vmatprep.mubr.bf16.mxu1 %v22757_v33 }
 0x2c8   :  { %v4354_v1 = vsel %vm3522_vm4, %v18481_v43, %v4098_v35  ;;  %v4100_v24 = vsel %vm3588_vm5, %v18557_v11, %v3844_v51  ;;  %v3843_v59 = vsel %vm3651_vm6, %v2818_v61, %v2828_v17  ;;  %v2901_v20 = vpop.f32.mrf.mxu1 }
 0x2c9   :  { %v4494_v52 = vadd.f32 %v16057_v9, %v4354_v1  ;;  %v4356_v15 = vsel %vm3524_vm7, %v18493_v14, %v4100_v24  ;;  %v4099_v13 = vsel %vm3587_vm8, %v18566_v54, %v3843_v59  ;;  %v3845_v43 = vsel %vm3653_vm9, %v2891_v22, %v2901_v20  ;;  %v2830_v12 = vpop.f32.mrf.mxu0 }
 0x2ca   :  { %v18647_v11 = vadd.f32 %v16057_v9, %v4356_v15  ;;  %v4355_v61 = vsel %vm3523_vm10, %v18513_v38, %v4099_v13  ;;  %v4101_v0 = vsel %vm3589_vm11, %v18572_v25, %v3845_v43  ;;  %v3906_v14 = vsel %vm3650_vm1, %v2820_v37, %v2830_v12  ;;  %v2903_v35 = vpop.f32.mrf.mxu1 }
 0x2cb   :  { %v4750_v51 = vmul.f32 0.01, %v4494_v52  ;;  %v4495_v54 = vadd.f32 %v16057_v9, %v4355_v61  ;;  %v4357_v22 = vsel %vm3525_vm0, %v18520_v60, %v4101_v0  ;;  %v4162_v17 = vsel %vm3586_vm2, %v18577_v7, %v3906_v14  ;;  %v2832_v1 = vpop.f32.mrf.mxu0 }
 0x2cc   :  { %v4752_v38 = vmul.f32 0.01, %v18647_v11  ;;  %v4497_v24 = vadd.f32 %v16057_v9, %v4357_v22  ;;  %v4418_v25 = vsel %vm3522_vm4, %v18523_v31, %v4162_v17  ;;  %v3908_v37 = vsel %vm3652_vm3, %v2893_v5, %v2903_v35  ;;  %v2905_v59 = vpop.f32.mrf.mxu1 }
 0x2cd   :  { %v4558_v20 = vadd.f32 %v16143_v53, %v4418_v25  ;;  %v4164_v15 = vsel %vm3588_vm5, %v18582_v49, %v3908_v37  ;;  %v3907_v60 = vsel %vm3651_vm6, %v2822_v36, %v2832_v1  ;;  %v3909_v7 = vsel %vm3653_vm9, %v2895_v6, %v2905_v59  ;;  %v18674_v13 = vpop.f32.mrf.mxu0  ;;  %14715 = vmatmul.mubr.msk.bf16.vlgmr.msra.gmra.mxu0 %vm5036_vm12, %v18060_v50  ;;  %v22922_v6 = vld [vmem:[#allocation95_spill] sm:$0xff] }
 0x2ce   :  { %v4420_v31 = vsel %vm3524_vm7, %v18526_v27, %v4164_v15  ;;  %v4163_v2 = vsel %vm3587_vm8, %v18587_v4, %v3907_v60  ;;  %v4165_v49 = vsel %vm3589_vm11, %v18590_v28, %v3909_v7  ;;  %v18686_v5 = vpop.f32.mrf.mxu1  ;;  %14717 = vmatmul.mubr.msk.bf16.vlgmr.msra.gmra.mxu1 %vm5036_vm12, %v18060_v50  ;;  %v22921_v36 = vpack.c.bf16 %v17842_v23, %v17840_v21 }
 0x2cf   :  { %vm4623_vm13 = vcmp.ge.f32.partialorder %v4495_v54, 0.0  ;;  %v4814_v26 = vmul.f32 0.01, %v4558_v20  ;;  %v4560_v27 = vadd.f32 %v16143_v53, %v4420_v31  ;;  %v4419_v4 = vsel %vm3523_vm10, %v18531_v57, %v4163_v2  ;;  %v18706_v23 = vpop.f32.mrf.mxu0  ;;  %5721 = vmatprep.mubr.bf16.mxu0 %v22757_v33  ;;  %5774 = vmatprep.mubr.bf16.mxu1 %v22757_v33 }
 0x2d0   :  { %5800 = vmatpush1.bf16.msra.mxu0 %v22921_v36  ;;  %v4421_v28 = vsel %vm3525_vm0, %v18539_v3, %v4165_v49  ;;  %v22923_v43 = vpack.c.bf16 %v17855_v63, %v22922_v6  ;;  %v22924_v21 = vpack.c.bf16 %v17960_v18, %v17958_v44  ;;  %v4559_v50 = vadd.f32 %v16143_v53, %v4419_v4  ;;  %v18713_v19 = vpop.f32.mrf.mxu1 }
 0x2d1   :  { %v4561_v12 = vadd.f32 %v16143_v53, %v4421_v28  ;;  %v22925_v57 = vpack.c.bf16 %v17995_v10, %v17993_v42  ;;  %v4751_v63 = vmul.f32 0.01, %v4495_v54  ;;  %vm4625_vm14 = vcmp.ge.f32.partialorder %v4497_v24, 0.0  ;;  %v18716_v46 = vpop.f32.mrf.mxu0 }
 0x2d2   :  { %5853 = vmatpush1.bf16.msra.mxu1 %v22923_v43  ;;  %5905 = vmatprep.subr.bf16.mxu0 %v22924_v21  ;;  %v4816_v3 = vmul.f32 0.01, %v4560_v27  ;;  %v4753_v44 = vmul.f32 0.01, %v4497_v24  ;;  %vm4622_vm15 = vcmp.ge.f32.partialorder %v4494_v52, 0.0  ;;  %vm4686_vm1 = vcmp.ge.f32.partialorder %v4558_v20, 0.0  ;;  %v18719_v18 = vpop.f32.mrf.mxu1 }
 0x2d3   :  { %5958 = vmatprep.subr.bf16.mxu1 %v22925_v57  ;;  %vm4687_vm2 = vcmp.ge.f32.partialorder %v4559_v50, 0.0  ;;  %v4815_v61 = vmul.f32 0.01, %v4559_v50  ;;  %v18722_v42 = vsel %vm4623_vm13, %v4495_v54, %v4751_v63  ;;  %vm4689_vm3 = vcmp.ge.f32.partialorder %v4561_v12, 0.0  ;;  %v18724_v10 = vpop.f32.mrf.mxu0  ;;  %v18788_v43 = vld [vmem:[#allocation6] sm:$0xff]  }
 0x2d4   :  { %v4817_v0 = vmul.f32 0.01, %v4561_v12  ;;  %v18726_v14 = vsel %vm4625_vm14, %v4497_v24, %v4753_v44  ;;  %v18728_v35 = vsel %vm4622_vm15, %v4494_v52, %v4750_v51  ;;  %v18730_v22 = vsel %vm4686_vm1, %v4558_v20, %v4814_v26  ;;  %v18732_v17 = vpop.f32.mrf.mxu1 }
 0x2d5   :  { %v18734_v1 = vsel %vm4687_vm2, %v4559_v50, %v4815_v61  ;;  %vm4624_vm4 = vcmp.ge.f32.partialorder %v18647_v11, 0.0  ;;  %vm4688_vm5 = vcmp.ge.f32.partialorder %v4560_v27, 0.0  ;;  %v18739_v54 = vpop.f32.mrf.mxu0  ;;  %14716 = vmatmul.mubr.msk.bf16.gmra.mxu0 %vm5036_vm12, %v18135_v34  ;;  %v18770_v7 = vadd.s32 6912, %v15979_v29 }
 0x2d6   :  { %v18745_v51 = vsel %vm4689_vm3, %v4561_v12, %v4817_v0  ;;  %v18748_v24 = vsel %vm4624_vm4, %v18647_v11, %v4752_v38  ;;  %v18750_v37 = vsel %vm4688_vm5, %v4560_v27, %v4816_v3  ;;  %v18752_v59 = vpop.f32.mrf.mxu1  ;;  %14718 = vmatmul.mubr.msk.bf16.gmra.mxu1 %vm5036_vm12, %v18135_v34  ;;  %5817 = vmatprep.mubr.bf16.mxu0 %v22757_v33  ;;  %v18765_v11 = vadd.s32 6656, %v15979_v29 }
 0x2d7   :  { %v18761_v60 = vpop.f32.mrf.mxu0  ;;  %5870 = vmatprep.mubr.bf16.mxu1 %v22757_v33  ;;  %22927 = vst [vmem:[#allocation75_spill] sm:$0xff] %v18770_v7  ;;  %v18775_v2 = vadd.s32 6784, %v15979_v29  ;;  %v18780_v36 = vadd.s32 7040, %v15979_v29  ;;  %v3400_v28 = vshra.s32 %v18770_v7, 8  ;;  %v22930_v12 = vpack.c.bf16 %v17999_v62, %v17997_v48 }
 0x2d8   :  { %22926 = vst [vmem:[#allocation68_spill] sm:$0xff] %v18765_v11  ;;  %v18767_v38 = vpop.f32.mrf.mxu1  ;;  %v3398_v27 = vshra.s32 %v18765_v11, 8  ;;  %v22931_v63 = vpack.c.bf16 %v18012_v56, %v18010_v39  ;;  %v22932_v3 = vpack.c.bf16 %v18146_v45, %v18144_v30  ;;  %v22933_v0 = vpack.c.bf16 %v18157_v58, %v18155_v41 }
 0x2d9   :  { %v18772_v31 = vpop.f32.mrf.mxu0  ;;  %22928 = vst [vmem:[#allocation74_spill] sm:$0xff] %v18775_v2  ;;  %22929 = vst [vmem:[#allocation77_spill] sm:$0xff] %v18780_v36  ;;  %v3399_v21 = vshra.s32 %v18775_v2, 8  ;;  %v3401_v57 = vshra.s32 %v18780_v36, 8  ;;  %v3464_v48 = vand.u32 3, %v3400_v28  ;;  %v22955_v52 = vpack.c.bf16 %v18550_v8, %v18533_v47 }
 0x2da   :  { %v18777_v49 = vpop.f32.mrf.mxu1  ;;  %v3462_v61 = vand.u32 3, %v3398_v27 }
 0x2db   :  { %v18782_v26 = vpop.f32.mrf.mxu0  ;;  %v18812_v56 = vand.u32 3, %v3401_v57  ;;  %vm3656_vm8 = vcmp.eq.s32.totalorder %v3464_v48, 2  ;;  %vm3592_vm10 = vcmp.eq.s32.totalorder %v3464_v48, 1  ;;  %vm3528_vm0 = vcmp.eq.s32.totalorder %v3464_v48, 0 }
 0x2dc   :  { %v18785_v4 = vpop.f32.mrf.mxu1  ;;  %vm3654_vm6 = vcmp.eq.s32.totalorder %v3462_v61, 2  ;;  %vm3590_vm7 = vcmp.eq.s32.totalorder %v3462_v61, 1  ;;  %vm3526_vm9 = vcmp.eq.s32.totalorder %v3462_v61, 0 }
 0x2dd   :  { %v2962_v6 = vpop.f32.mrf.mxu0  ;;  %14719 = vmatmul.mubr.msk.bf16.vlgmr.msra.gmra.mxu0 %vm5036_vm12, %v18788_v43  ;;  %vm3657_vm14 = vcmp.eq.s32.totalorder %v18812_v56, 2  ;;  %vm3593_vm1 = vcmp.eq.s32.totalorder %v18812_v56, 1  ;;  %vm3529_vm2 = vcmp.eq.s32.totalorder %v18812_v56, 0 }
 0x2de   :  { %v3035_v50 = vpop.f32.mrf.mxu1  ;;  %14721 = vmatmul.mubr.msk.bf16.vlgmr.msra.gmra.mxu1 %vm5036_vm12, %v18788_v43  ;;  %5906 = vmatpush1.bf16.msra.mxu0 %v22930_v12  ;;  %v18810_v12 = vand.u32 3, %v3399_v21 }
 0x2df   :  { %5959 = vmatpush1.bf16.msra.mxu1 %v22931_v63  ;;  %6011 = vmatprep.subr.bf16.mxu0 %v22932_v3  ;;  %v2964_v44 = vpop.f32.mrf.mxu0 }
 0x2e0   :  { %6064 = vmatprep.subr.bf16.mxu1 %v22933_v0  ;;  %v3037_v15 = vpop.f32.mrf.mxu1  ;;  %5827 = vmatprep.mubr.bf16.mxu0 %v22757_v33  ;;  %vm3655_vm11 = vcmp.eq.s32.totalorder %v18810_v12, 2  ;;  %vm3591_vm13 = vcmp.eq.s32.totalorder %v18810_v12, 1  ;;  %vm3527_vm15 = vcmp.eq.s32.totalorder %v18810_v12, 0  ;;  %v22943_v12 = vld [vmem:[#allocation49_spill] sm:$0xff] }
 0x2e1   :  { %v2966_v62 = vpop.f32.mrf.mxu0  ;;  %5880 = vmatprep.mubr.bf16.mxu1 %v22757_v33 }
 0x2e2   :  { %v3039_v39 = vpop.f32.mrf.mxu1 }
 0x2e3   :  { %v2968_v30 = vpop.f32.mrf.mxu0 }
 0x2e4   :  { %v3041_v45 = vpop.f32.mrf.mxu1 }
 0x2e5   :  { %v2972_v27 = vpop.f32.mrf.mxu0  ;;  %14720 = vmatmul.mubr.msk.bf16.gmra.mxu0 %vm5036_vm12, %v18135_v34 }
 0x2e6   :  { %v3846_v41 = vsel %vm3654_vm6, %v2962_v6, %v2972_v27  ;;  %v3045_v58 = vpop.f32.mrf.mxu1  ;;  %14722 = vmatmul.mubr.msk.bf16.gmra.mxu1 %vm5036_vm12, %v18135_v34  ;;  %5923 = vmatprep.mubr.bf16.mxu0 %v22757_v33 }
 0x2e7   :  { %v4102_v28 = vsel %vm3590_vm7, %v18739_v54, %v3846_v41  ;;  %v3848_v21 = vsel %vm3656_vm8, %v3035_v50, %v3045_v58  ;;  %v2974_v57 = vpop.f32.mrf.mxu0  ;;  %5976 = vmatprep.mubr.bf16.mxu1 %v22757_v33 }
 0x2e8   :  { %v4358_v34 = vsel %vm3526_vm9, %v18674_v13, %v4102_v28  ;;  %v4104_v6 = vsel %vm3592_vm10, %v18752_v59, %v3848_v21  ;;  %v3847_v63 = vsel %vm3655_vm11, %v2964_v44, %v2974_v57  ;;  %v3047_v3 = vpop.f32.mrf.mxu1 }
 0x2e9   :  { %v4498_v54 = vadd.f32 %v16057_v9, %v4358_v34  ;;  %v4360_v50 = vsel %vm3528_vm0, %v18686_v5, %v4104_v6  ;;  %v4103_v0 = vsel %vm3591_vm13, %v18761_v60, %v3847_v63  ;;  %v3849_v13 = vsel %vm3657_vm14, %v3037_v15, %v3047_v3  ;;  %v2976_v27 = vpop.f32.mrf.mxu0 }
 0x2ea   :  { %v18845_v59 = vadd.f32 %v16057_v9, %v4360_v50  ;;  %v4359_v44 = vsel %vm3527_vm15, %v18706_v23, %v4103_v0  ;;  %v4105_v41 = vsel %vm3593_vm1, %v18767_v38, %v3849_v13  ;;  %v3910_v5 = vsel %vm3654_vm6, %v2966_v62, %v2976_v27  ;;  %v3049_v58 = vpop.f32.mrf.mxu1  ;;  %v22937_v13 = vld [vmem:[#allocation41_spill] sm:$0xff]  ;;  %v22938_v27 = vld [vmem:[#allocation100_spill] sm:$0xff] }
 0x2eb   :  { %v4754_v28 = vmul.f32 0.01, %v4498_v54  ;;  %v4499_v60 = vadd.f32 %v16057_v9, %v4359_v44  ;;  %v4361_v15 = vsel %vm3529_vm2, %v18713_v19, %v4105_v41  ;;  %v4166_v21 = vsel %vm3590_vm7, %v18772_v31, %v3910_v5  ;;  %v2978_v57 = vpop.f32.mrf.mxu0  ;;  %v22940_v41 = vld [vmem:[#allocation52_spill] sm:$0xff]  ;;  %v22941_v5 = vld [vmem:[#allocation39_spill] sm:$0xff] }
 0x2ec   :  { %v4756_v23 = vmul.f32 0.01, %v18845_v59  ;;  %v4501_v34 = vadd.f32 %v16057_v9, %v4361_v15  ;;  %v4422_v38 = vsel %vm3526_vm9, %v18716_v46, %v4166_v21  ;;  %v3912_v62 = vsel %vm3656_vm8, %v3039_v39, %v3049_v58  ;;  %v3051_v6 = vpop.f32.mrf.mxu1 }
 0x2ed   :  { %v4562_v63 = vadd.f32 %v16143_v53, %v4422_v38  ;;  %v4168_v3 = vsel %vm3592_vm10, %v18777_v49, %v3912_v62  ;;  %v3911_v19 = vsel %vm3655_vm11, %v2968_v30, %v2978_v57  ;;  %v3913_v31 = vsel %vm3657_vm14, %v3041_v45, %v3051_v6  ;;  %v18872_v50 = vpop.f32.mrf.mxu0  ;;  %14723 = vmatmul.mubr.msk.bf16.vlgmr.msra.gmra.mxu0 %vm5036_vm12, %v18788_v43  ;;  %v22934_v30 = vld [vmem:[#allocation32_spill] sm:$0xff]  ;;  %v22935_v45 = vld [vmem:[#allocation33_spill] sm:$0xff] }
 0x2ee   :  { %v4424_v46 = vsel %vm3528_vm0, %v18719_v18, %v4168_v3  ;;  %v4167_v61 = vsel %vm3591_vm13, %v18782_v26, %v3911_v19  ;;  %v4169_v49 = vsel %vm3593_vm1, %v18785_v4, %v3913_v31  ;;  %v18884_v39 = vpop.f32.mrf.mxu1  ;;  %14725 = vmatmul.mubr.msk.bf16.vlgmr.msra.gmra.mxu1 %vm5036_vm12, %v18788_v43  ;;  %v22936_v0 = vpack.c.bf16 %v22934_v30, %v22935_v45 }
 0x2ef   :  { %vm4627_vm3 = vcmp.ge.f32.partialorder %v4499_v60, 0.0  ;;  %v4818_v48 = vmul.f32 0.01, %v4562_v63  ;;  %v4564_v18 = vadd.f32 %v16143_v53, %v4424_v46  ;;  %v4423_v26 = vsel %vm3527_vm15, %v18724_v10, %v4167_v61  ;;  %v18904_v15 = vpop.f32.mrf.mxu0  ;;  %v22944_v10 = vld [vmem:[#allocation38_spill] sm:$0xff]  ;;  %5933 = vmatprep.mubr.bf16.mxu0 %v22757_v33  ;;  %5986 = vmatprep.mubr.bf16.mxu1 %v22757_v33 }
 0x2f0   :  { %6012 = vmatpush1.bf16.msra.mxu0 %v22936_v0  ;;  %v4425_v4 = vsel %vm3529_vm2, %v18732_v17, %v4169_v49  ;;  %v22939_v44 = vpack.c.bf16 %v22937_v13, %v22938_v27  ;;  %v22942_v58 = vpack.c.bf16 %v22940_v41, %v22941_v5  ;;  %v4563_v21 = vadd.f32 %v16143_v53, %v4423_v26  ;;  %v18911_v56 = vpop.f32.mrf.mxu1  ;;  %v18937_v27 = vld [vmem:[#allocation6 + $0x8] sm:$0xff]   ;;  %v22951_v41 = vld [vmem:[#allocation50_spill] sm:$0xff]  ;;  %v22952_v13 = vld [vmem:[#allocation51_spill] sm:$0xff] }
 0x2f1   :  { %v4565_v57 = vadd.f32 %v16143_v53, %v4425_v4  ;;  %v22945_v38 = vpack.c.bf16 %v22943_v12, %v22944_v10  ;;  %v4755_v17 = vmul.f32 0.01, %v4499_v60  ;;  %vm4629_vm4 = vcmp.ge.f32.partialorder %v4501_v34, 0.0  ;;  %v18914_v6 = vpop.f32.mrf.mxu0 }
 0x2f2   :  { %6065 = vmatpush1.bf16.msra.mxu1 %v22939_v44  ;;  %6117 = vmatprep.subr.bf16.mxu0 %v22942_v58  ;;  %v4820_v62 = vmul.f32 0.01, %v4564_v18  ;;  %v4757_v3 = vmul.f32 0.01, %v4501_v34  ;;  %vm4626_vm5 = vcmp.ge.f32.partialorder %v4498_v54, 0.0  ;;  %vm4690_vm6 = vcmp.ge.f32.partialorder %v4562_v63, 0.0  ;;  %v18917_v19 = vpop.f32.mrf.mxu1 }
 0x2f3   :  { %6170 = vmatprep.subr.bf16.mxu1 %v22945_v38  ;;  %vm4691_vm7 = vcmp.ge.f32.partialorder %v4563_v21, 0.0  ;;  %v4819_v31 = vmul.f32 0.01, %v4563_v21  ;;  %v18920_v46 = vsel %vm4627_vm3, %v4499_v60, %v4755_v17  ;;  %vm4693_vm8 = vcmp.ge.f32.partialorder %v4565_v57, 0.0  ;;  %v18922_v61 = vpop.f32.mrf.mxu0 }
 0x2f4   :  { %v4821_v49 = vmul.f32 0.01, %v4565_v57  ;;  %v18924_v30 = vsel %vm4629_vm4, %v4501_v34, %v4757_v3  ;;  %v18926_v45 = vsel %vm4626_vm5, %v4498_v54, %v4754_v28  ;;  %v18928_v0 = vsel %vm4690_vm6, %v4562_v63, %v4818_v48  ;;  %v18930_v26 = vpop.f32.mrf.mxu1  ;;  %v22948_v3 = vld [vmem:[#allocation44_spill] sm:$0xff] }
 0x2f5   :  { %v18932_v4 = vsel %vm4691_vm7, %v4563_v21, %v4819_v31  ;;  %vm4628_vm9 = vcmp.ge.f32.partialorder %v18845_v59, 0.0  ;;  %vm4692_vm10 = vcmp.ge.f32.partialorder %v4564_v18, 0.0  ;;  %v3098_v60 = vpop.f32.mrf.mxu0  ;;  %14724 = vmatmul.mubr.msk.bf16.gmra.mxu0 %vm5036_vm12, %v18937_v27  ;;  %v22949_v31 = vld [vmem:[#allocation45_spill] sm:$0xff]  ;;  %v22953_v44 = vpack.c.bf16 %v22951_v41, %v22952_v13 }
 0x2f6   :  { %v18943_v28 = vsel %vm4693_vm8, %v4565_v57, %v4821_v49  ;;  %v18946_v34 = vsel %vm4628_vm9, %v18845_v59, %v4756_v23  ;;  %v18948_v63 = vsel %vm4692_vm10, %v4564_v18, %v4820_v62  ;;  %v3171_v48 = vpop.f32.mrf.mxu1  ;;  %14726 = vmatmul.mubr.msk.bf16.gmra.mxu1 %vm5036_vm12, %v18937_v27  ;;  %6029 = vmatprep.mubr.bf16.mxu0 %v22757_v33  ;;  %v18961_v59 = vadd.s32 7168, %v15979_v29 }
 0x2f7   :  { %v18957_v5 = vpop.f32.mrf.mxu0  ;;  %6082 = vmatprep.mubr.bf16.mxu1 %v22757_v33  ;;  %v18966_v18 = vadd.s32 7424, %v15979_v29  ;;  %v22950_v49 = vpack.c.bf16 %v22948_v3, %v22949_v31  ;;  %v22954_v54 = vpack.c.bf16 %v18541_v32, %v18529_v40 }
 0x2f8   :  { %22946 = vst [vmem:[#allocation76_spill] sm:$0xff] %v18961_v59  ;;  %v18963_v23 = vpop.f32.mrf.mxu1  ;;  %v3402_v12 = vshra.s32 %v18961_v59, 8 }
 0x2f9   :  { %22947 = vst [vmem:[#allocation79_spill] sm:$0xff] %v18966_v18  ;;  %v3102_v58 = vpop.f32.mrf.mxu0  ;;  %v3404_v38 = vshra.s32 %v18966_v18, 8 }
 0x2fa   :  { %v3175_v21 = vpop.f32.mrf.mxu1  ;;  %v3466_v20 = vand.u32 3, %v3402_v12 }
 0x2fb   :  { %v18968_v57 = vpop.f32.mrf.mxu0  ;;  %v3468_v3 = vand.u32 3, %v3404_v38 }
 0x2fc   :  { %v18971_v10 = vpop.f32.mrf.mxu1  ;;  %vm3658_vm11 = vcmp.eq.s32.totalorder %v3466_v20, 2  ;;  %vm3594_vm0 = vcmp.eq.s32.totalorder %v3466_v20, 1  ;;  %vm3530_vm14 = vcmp.eq.s32.totalorder %v3466_v20, 0  ;;  %v22959_v20 = vld [vmem:[#allocation61_spill] sm:$0xff] }
 0x2fd   :  { %v3108_v17 = vpop.f32.mrf.mxu0  ;;  %14727 = vmatmul.mubr.msk.bf16.vlgmr.msra.gmra.mxu0 %vm5036_vm12, %v18788_v43  ;;  %vm3660_vm13 = vcmp.eq.s32.totalorder %v3468_v3, 2  ;;  %vm3596_vm15 = vcmp.eq.s32.totalorder %v3468_v3, 1  ;;  %vm3532_vm1 = vcmp.eq.s32.totalorder %v3468_v3, 0 }
 0x2fe   :  { %v3181_v62 = vpop.f32.mrf.mxu1  ;;  %14729 = vmatmul.mubr.msk.bf16.vlgmr.msra.gmra.mxu1 %vm5036_vm12, %v18788_v43  ;;  %6118 = vmatpush1.bf16.msra.mxu0 %v22950_v49 }
 0x2ff   :  { %6171 = vmatpush1.bf16.msra.mxu1 %v22953_v44  ;;  %6223 = vmatprep.subr.bf16.mxu0 %v22954_v54  ;;  %v18987_v25 = vpop.f32.mrf.mxu0 }
 0x300   :  { %6276 = vmatprep.subr.bf16.mxu1 %v22955_v52  ;;  %v18992_v18 = vpop.f32.mrf.mxu1  ;;  %6039 = vmatprep.mubr.bf16.mxu0 %v22757_v33 }
 0x301   :  { %v3112_v31 = vpop.f32.mrf.mxu0  ;;  %6092 = vmatprep.mubr.bf16.mxu1 %v22757_v33 }
 0x302   :  { %v3185_v13 = vpop.f32.mrf.mxu1 }
 0x303   :  { %v18996_v44 = vpop.f32.mrf.mxu0 }
 0x304   :  { %v18998_v40 = vpop.f32.mrf.mxu1 }
 0x305   :  { %v3118_v32 = vpop.f32.mrf.mxu0  ;;  %14728 = vmatmul.mubr.msk.bf16.gmra.mxu0 %vm5036_vm12, %v18937_v27 }
 0x306   :  { %v3850_v47 = vsel %vm3658_vm11, %v3108_v17, %v3118_v32  ;;  %v3191_v8 = vpop.f32.mrf.mxu1  ;;  %14730 = vmatmul.mubr.msk.bf16.gmra.mxu1 %vm5036_vm12, %v18937_v27  ;;  %6135 = vmatprep.mubr.bf16.mxu0 %v22757_v33 }
 0x307   :  { %v4106_v52 = vsel %vm3594_vm0, %v3098_v60, %v3850_v47  ;;  %v3852_v54 = vsel %vm3660_vm13, %v3181_v62, %v3191_v8  ;;  %v19008_v41 = vpop.f32.mrf.mxu0  ;;  %6188 = vmatprep.mubr.bf16.mxu1 %v22757_v33  ;;  %v19021_v8 = vadd.s32 7296, %v15979_v29 }
 0x308   :  { %v4362_v12 = vsel %vm3530_vm14, %v18872_v50, %v4106_v52  ;;  %v4108_v38 = vsel %vm3596_vm15, %v3171_v48, %v3852_v54  ;;  %v19014_v17 = vpop.f32.mrf.mxu1  ;;  %v19025_v50 = vadd.s32 7552, %v15979_v29 }
 0x309   :  { %v3122_v49 = vpop.f32.mrf.mxu0  ;;  %v4364_v32 = vsel %vm3532_vm1, %v18884_v39, %v4108_v38  ;;  %v4502_v62 = vadd.f32 %v16057_v9, %v4362_v12  ;;  %22956 = vst [vmem:[#allocation78_spill] sm:$0xff] %v19021_v8 }
 0x30a   :  { %v3914_v60 = vsel %vm3658_vm11, %v3112_v31, %v3122_v49  ;;  %v3195_v47 = vpop.f32.mrf.mxu1  ;;  %22957 = vst [vmem:[#allocation81_spill] sm:$0xff] %v19025_v50  ;;  %v4504_v31 = vadd.f32 %v16057_v9, %v4364_v32 }
 0x30b   :  { %v4170_v59 = vsel %vm3594_vm0, %v3102_v58, %v3914_v60  ;;  %v3124_v7 = vpop.f32.mrf.mxu0  ;;  %v3916_v52 = vsel %vm3660_vm13, %v3185_v13, %v3195_v47  ;;  %v22961_v60 = vld [vmem:[#allocation65_spill] sm:$0xff]  ;;  %v22962_v47 = vld [vmem:[#allocation60_spill] sm:$0xff]  ;;  %vm4630_vm2 = vcmp.ge.f32.partialorder %v4502_v62, 0.0 }
 0x30c   :  { %v4426_v48 = vsel %vm3530_vm14, %v18914_v6, %v4170_v59  ;;  %v3197_v39 = vpop.f32.mrf.mxu1  ;;  %v4172_v12 = vsel %vm3596_vm15, %v3175_v21, %v3916_v52  ;;  %v22960_v6 = vpack.c.bf16 %v18537_v55, %v22959_v20  ;;  %v4758_v59 = vmul.f32 0.01, %v4502_v62 }
 0x30d   :  { %v4566_v54 = vadd.f32 %v16143_v53, %v4426_v48  ;;  %v19033_v38 = vpop.f32.mrf.mxu0  ;;  %14731 = vmatmul.mubr.msk.bf16.vlgmr.msra.gmra.mxu0 %vm5036_vm12, %v18788_v43  ;;  %v4428_v58 = vsel %vm3532_vm1, %v18917_v19, %v4172_v12  ;;  %v3403_v21 = vshra.s32 %v19021_v8, 8  ;;  %v22963_v48 = vpack.c.bf16 %v22961_v60, %v22962_v47 }
 0x30e   :  { %v19039_v49 = vpop.f32.mrf.mxu1  ;;  %14733 = vmatmul.mubr.msk.bf16.vlgmr.msra.gmra.mxu1 %vm5036_vm12, %v18788_v43  ;;  %6224 = vmatpush1.bf16.msra.mxu0 %v22960_v6  ;;  %v4568_v32 = vadd.f32 %v16143_v53, %v4428_v58  ;;  %v22964_v19 = vpack.c.bf16 %v18734_v1, %v18722_v42  ;;  %v3405_v52 = vshra.s32 %v19025_v50, 8  ;;  %v22965_v55 = vpack.c.bf16 %v18745_v51, %v18726_v14 }
 0x30f   :  { %22958 = vst [vmem:[#allocation80_spill] sm:$0xff] %v19039_v49  ;;  %v4822_v13 = vmul.f32 0.01, %v4566_v54  ;;  %6277 = vmatpush1.bf16.msra.mxu1 %v22963_v48  ;;  %v19054_v3 = vpop.f32.mrf.mxu0  ;;  %6145 = vmatprep.mubr.bf16.mxu0 %v22757_v33  ;;  %v4760_v58 = vmul.f32 0.01, %v4504_v31  ;;  %vm4694_vm3 = vcmp.ge.f32.partialorder %v4566_v54, 0.0  ;;  %v19070_v47 = vsel %vm4630_vm2, %v4502_v62, %v4758_v59 }
 0x310   :  { %6329 = vmatprep.subr.bf16.mxu0 %v22964_v19  ;;  %6382 = vmatprep.subr.bf16.mxu1 %v22965_v55  ;;  %v19060_v12 = vpop.f32.mrf.mxu1  ;;  %v4824_v20 = vmul.f32 0.01, %v4568_v32  ;;  %v3467_v1 = vand.u32 3, %v3403_v21  ;;  %v3469_v51 = vand.u32 3, %v3405_v52  ;;  %vm4632_vm4 = vcmp.ge.f32.partialorder %v4504_v31, 0.0 }
 0x311   :  { %v19063_v6 = vpop.f32.mrf.mxu0  ;;  %6198 = vmatprep.mubr.bf16.mxu1 %v22757_v33  ;;  %v19072_v14 = vsel %vm4694_vm3, %v4566_v54, %v4822_v13  ;;  %vm4696_vm5 = vcmp.ge.f32.partialorder %v4568_v32, 0.0  ;;  %v19082_v21 = vsel %vm4632_vm4, %v4504_v31, %v4760_v58 }
 0x312   :  { %v19066_v42 = vpop.f32.mrf.mxu1  ;;  %v19084_v50 = vsel %vm4696_vm5, %v4568_v32, %v4824_v20  ;;  %vm3659_vm6 = vcmp.eq.s32.totalorder %v3467_v1, 2  ;;  %vm3661_vm7 = vcmp.eq.s32.totalorder %v3469_v51, 2  ;;  %vm3595_vm8 = vcmp.eq.s32.totalorder %v3467_v1, 1 }
 0x313   :  { %v19068_v60 = vpop.f32.mrf.mxu0  ;;  %v3915_v13 = vsel %vm3659_vm6, %v18996_v44, %v3124_v7  ;;  %v3917_v32 = vsel %vm3661_vm7, %v18998_v40, %v3197_v39  ;;  %v3851_v20 = vsel %vm3659_vm6, %v18987_v25, %v19008_v41  ;;  %vm3597_vm9 = vcmp.eq.s32.totalorder %v3469_v51, 1 }
 0x314   :  { %v19074_v48 = vpop.f32.mrf.mxu1  ;;  %v3853_v54 = vsel %vm3661_vm7, %v18992_v18, %v19014_v17  ;;  %v4171_v8 = vsel %vm3595_vm8, %v18968_v57, %v3915_v13  ;;  %v4173_v7 = vsel %vm3597_vm9, %v18971_v10, %v3917_v32  ;;  %v19115_v40 = vadd.s32 7808, %v15979_v29 }
 0x315   :  { %v19078_v55 = vpop.f32.mrf.mxu0  ;;  %14732 = vmatmul.mubr.msk.bf16.gmra.mxu0 %vm5036_vm12, %v18937_v27  ;;  %v19122_v25 = vadd.s32 8064, %v15979_v29  ;;  %vm3531_vm10 = vcmp.eq.s32.totalorder %v3467_v1, 0  ;;  %v4107_v18 = vsel %vm3595_vm8, %v18957_v5, %v3851_v20  ;;  %vm3533_vm11 = vcmp.eq.s32.totalorder %v3469_v51, 0 }
 0x316   :  { %v19086_v62 = vpop.f32.mrf.mxu1  ;;  %14734 = vmatmul.mubr.msk.bf16.gmra.mxu1 %vm5036_vm12, %v18937_v27  ;;  %6241 = vmatprep.mubr.bf16.mxu0 %v22757_v33  ;;  %22966 = vst [vmem:[#allocation86_spill] sm:$0xff] %v19115_v40  ;;  %v4109_v57 = vsel %vm3597_vm9, %v18963_v23, %v3853_v54  ;;  %v22968_v41 = vpack.c.bf16 %v18730_v22, %v18728_v35  ;;  %v3407_v22 = vshra.s32 %v19115_v40, 8 }
 0x317   :  { %v19093_v59 = vpop.f32.mrf.mxu0  ;;  %6294 = vmatprep.mubr.bf16.mxu1 %v22757_v33  ;;  %22967 = vst [vmem:[#allocation88_spill] sm:$0xff] %v19122_v25  ;;  %v4427_v17 = vsel %vm3531_vm10, %v18922_v61, %v4171_v8  ;;  %v4429_v13 = vsel %vm3533_vm11, %v18930_v26, %v4173_v7  ;;  %v22969_v5 = vpack.c.bf16 %v18750_v37, %v18748_v24  ;;  %v19169_v7 = vadd.s32 7680, %v15979_v29 }
 0x318   :  { %v19096_v31 = vpop.f32.mrf.mxu1  ;;  %v22970_v23 = vpack.c.bf16 %v18932_v4, %v18920_v46  ;;  %v22971_v54 = vpack.c.bf16 %v18943_v28, %v18924_v30  ;;  %v4363_v61 = vsel %vm3531_vm10, %v18904_v15, %v4107_v18  ;;  %v4365_v24 = vsel %vm3533_vm11, %v18911_v56, %v4109_v57 }
 0x319   :  { %v19100_v52 = vpop.f32.mrf.mxu0  ;;  %v3409_v46 = vshra.s32 %v19122_v25, 8  ;;  %v4567_v26 = vadd.f32 %v16143_v53, %v4427_v17  ;;  %v4569_v30 = vadd.f32 %v16143_v53, %v4429_v13  ;;  %v4503_v8 = vadd.f32 %v16057_v9, %v4363_v61  ;;  %22972 = vst [vmem:[#allocation87_spill] sm:$0xff] %v19169_v7 }
 0x31a   :  { %v19102_v58 = vpop.f32.mrf.mxu1  ;;  %v4505_v1 = vadd.f32 %v16057_v9, %v4365_v24  ;;  %v19160_v32 = vand.u32 3, %v3407_v22  ;;  %v19177_v17 = vadd.s32 7936, %v15979_v29  ;;  %v3406_v61 = vshra.s32 %v19169_v7, 8 }
 0x31b   :  { %v19108_v19 = vpop.f32.mrf.mxu0  ;;  %v19166_v20 = vand.u32 3, %v3409_v46  ;;  %v4823_v57 = vmul.f32 0.01, %v4567_v26  ;;  %vm4695_vm0 = vcmp.ge.f32.partialorder %v4567_v26, 0.0  ;;  %vm4697_vm13 = vcmp.ge.f32.partialorder %v4569_v30, 0.0 }
 0x31c   :  { %v19112_v44 = vpop.f32.mrf.mxu1  ;;  %22973 = vst [vmem:[#allocation90_spill] sm:$0xff] %v19177_v17  ;;  %vm3663_vm14 = vcmp.eq.s32.totalorder %v19160_v32, 2  ;;  %vm4631_vm1 = vcmp.ge.f32.partialorder %v4503_v8, 0.0  ;;  %vm4633_vm2 = vcmp.ge.f32.partialorder %v4505_v1, 0.0  ;;  %v3408_v40 = vshra.s32 %v19177_v17, 8 }
 0x31d   :  { %v19117_v39 = vpop.f32.mrf.mxu0  ;;  %14735 = vmatmul.mubr.msk.bf16.vlgmr.msra.gmra.mxu0 %vm5036_vm12, %v18788_v43  ;;  %vm3665_vm15 = vcmp.eq.s32.totalorder %v19166_v20, 2  ;;  %v4951_v46 = vsel %vm4695_vm0, %v4567_v26, %v4823_v57  ;;  %vm3535_vm3 = vcmp.eq.s32.totalorder %v19160_v32, 0  ;;  %vm3599_vm4 = vcmp.eq.s32.totalorder %v19160_v32, 1 }
 0x31e   :  { %v19126_v10 = vpop.f32.mrf.mxu1  ;;  %14737 = vmatmul.mubr.msk.bf16.vlgmr.msra.gmra.mxu1 %vm5036_vm12, %v18788_v43  ;;  %6330 = vmatpush1.bf16.msra.mxu0 %v22968_v41  ;;  %v4825_v41 = vmul.f32 0.01, %v4569_v30  ;;  %vm3601_vm5 = vcmp.eq.s32.totalorder %v19166_v20, 1  ;;  %vm3537_vm6 = vcmp.eq.s32.totalorder %v19166_v20, 0 }
 0x31f   :  { %6383 = vmatpush1.bf16.msra.mxu1 %v22969_v5  ;;  %6435 = vmatprep.subr.bf16.mxu0 %v22970_v23  ;;  %v3256_v51 = vpop.f32.mrf.mxu0  ;;  %v4759_v23 = vmul.f32 0.01, %v4503_v8 }
 0x320   :  { %6488 = vmatprep.subr.bf16.mxu1 %v22971_v54  ;;  %v3329_v35 = vpop.f32.mrf.mxu1  ;;  %6251 = vmatprep.mubr.bf16.mxu0 %v22757_v33  ;;  %v4761_v54 = vmul.f32 0.01, %v4505_v1  ;;  %v4953_v25 = vsel %vm4697_vm13, %v4569_v30, %v4825_v41 }
 0x321   :  { %v19150_v37 = vpop.f32.mrf.mxu0  ;;  %6304 = vmatprep.mubr.bf16.mxu1 %v22757_v33  ;;  %v4887_v16 = vsel %vm4631_vm1, %v4503_v8, %v4759_v23 }
 0x322   :  { %v19156_v4 = vpop.f32.mrf.mxu1  ;;  %v4889_v49 = vsel %vm4633_vm2, %v4505_v1, %v4761_v54 }
 0x323   :  { %v3260_v28 = vpop.f32.mrf.mxu0  ;;  %v5021_v41 = vpack.c.bf16 %v4953_v25, %v4889_v49 }
 0x324   :  { %v3333_v15 = vpop.f32.mrf.mxu1 }
 0x325   :  { %v19162_v56 = vpop.f32.mrf.mxu0  ;;  %14736 = vmatmul.mubr.msk.bf16.gmra.mxu0 %vm5036_vm12, %v18937_v27 }
 0x326   :  { %v19171_v18 = vpop.f32.mrf.mxu1  ;;  %14738 = vmatmul.mubr.msk.bf16.gmra.mxu1 %vm5036_vm12, %v18937_v27  ;;  %6347 = vmatprep.mubr.bf16.mxu0 %v22757_v33 }
 0x327   :  { %v3266_v13 = vpop.f32.mrf.mxu0  ;;  %6400 = vmatprep.mubr.bf16.mxu1 %v22757_v33 }
 0x328   :  { %v3339_v5 = vpop.f32.mrf.mxu1  ;;  %v3855_v11 = vsel %vm3663_vm14, %v3256_v51, %v3266_v13  ;;  %v5019_v51 = vpack.c.bf16 %v4951_v46, %v4887_v16 }
 0x329   :  { %v19182_v22 = vpop.f32.mrf.mxu0  ;;  %v3857_v2 = vsel %vm3665_vm15, %v3329_v35, %v3339_v5  ;;  %v4111_v13 = vsel %vm3599_vm4, %v19093_v59, %v3855_v11 }
 0x32a   :  { %v19185_v24 = vpop.f32.mrf.mxu1  ;;  %v4113_v11 = vsel %vm3601_vm5, %v19096_v31, %v3857_v2  ;;  %v6739_v2 = vshra.s32 %v15979_v29, 4  ;;  %v22977_v31 = vld [vmem:[#allocation22_spill] sm:$0xff] }
 0x32b   :  { %v3270_v36 = vpop.f32.mrf.mxu0  ;;  %v6742_v25 = vshra.s32 %v22977_v31, 4 }
 0x32c   :  { %v3343_v7 = vpop.f32.mrf.mxu1  ;;  %v3919_v26 = vsel %vm3663_vm14, %v3260_v28, %v3270_v36  ;;  %v22974_v36 = vpack.c.bf16 %v18928_v0, %v18926_v45  ;;  %v22975_v28 = vld [vmem:[#allocation21_spill] sm:$0xff]  ;;  %v19228_v45 = vand.u32 3, %v3406_v61  ;;  %v19258_v54 = vand.u32 3, %v6739_v2  ;;  %v22978_v61 = vld [vmem:[#allocation20_spill] sm:$0xff] }
 0x32d   :  { %v3921_v30 = vsel %vm3665_vm15, %v3333_v15, %v3343_v7  ;;  %v19199_v57 = vpop.f32.mrf.mxu0  ;;  %14739 = vmatmul.mubr.msk.bf16.vlgmr.msra.gmra.mxu0 %vm5036_vm12, %v18788_v43  ;;  %v4175_v35 = vsel %vm3599_vm4, %v19108_v19, %v3919_v26  ;;  %v6740_v16 = vshra.s32 %v22975_v28, 4  ;;  %v22976_v19 = vpack.c.bf16 %v18948_v63, %v18946_v34 }
 0x32e   :  { %v4177_v8 = vsel %vm3601_vm5, %v19112_v44, %v3921_v30  ;;  %v19208_v1 = vpop.f32.mrf.mxu1  ;;  %14741 = vmatmul.mubr.msk.bf16.vlgmr.msra.gmra.mxu1 %vm5036_vm12, %v18788_v43  ;;  %6436 = vmatpush1.bf16.msra.mxu0 %v22974_v36  ;;  %v4431_v49 = vsel %vm3535_vm3, %v19068_v60, %v4175_v35  ;;  %v19237_v60 = vand.u32 3, %v3408_v40  ;;  %v4367_v34 = vsel %vm3535_vm3, %v19054_v3, %v4111_v13 }
 0x32f   :  { %6489 = vmatpush1.bf16.msra.mxu1 %v22976_v19  ;;  %6541 = vmatprep.subr.bf16.mxu0 %v5019_v51  ;;  %v19226_v59 = vpop.f32.mrf.mxu0  ;;  %v4433_v0 = vsel %vm3537_vm6, %v19074_v48, %v4177_v8  ;;  %v4369_v48 = vsel %vm3537_vm6, %v19060_v12, %v4113_v11  ;;  %v4571_v15 = vadd.f32 %v16143_v53, %v4431_v49  ;;  %v19252_v40 = vand.u32 3, %v6740_v16 }
 0x330   :  { %6594 = vmatprep.subr.bf16.mxu1 %v5021_v41  ;;  %v19233_v44 = vpop.f32.mrf.mxu1  ;;  %6357 = vmatprep.mubr.bf16.mxu0 %v22757_v33  ;;  %v4573_v5 = vadd.f32 %v16143_v53, %v4433_v0  ;;  %vm3598_vm7 = vcmp.eq.s32.totalorder %v19228_v45, 1  ;;  %vm3662_vm8 = vcmp.eq.s32.totalorder %v19228_v45, 2  ;;  %v4507_v3 = vadd.f32 %v16057_v9, %v4367_v34 }
 0x331   :  { %v19242_v63 = vpop.f32.mrf.mxu0  ;;  %6410 = vmatprep.mubr.bf16.mxu1 %v22757_v33  ;;  %vm3534_vm9 = vcmp.eq.s32.totalorder %v19228_v45, 0  ;;  %vm3600_vm10 = vcmp.eq.s32.totalorder %v19237_v60, 1  ;;  %v4509_v12 = vadd.f32 %v16057_v9, %v4369_v48  ;;  %v6741_v46 = vshra.s32 %v22978_v61, 4 }
 0x332   :  { %v19250_v7 = vpop.f32.mrf.mxu1  ;;  %v6806_v26 = vand.u32 3, %v6742_v25  ;;  %vm3664_vm11 = vcmp.eq.s32.totalorder %v19237_v60, 2  ;;  %vm6868_vm0 = vcmp.eq.s32.totalorder %v19252_v40, 0  ;;  %vm6932_vm13 = vcmp.eq.s32.totalorder %v19252_v40, 1 }
 0x333   :  { %v5083_v32 = vpop.f32.mrf.mxu0  ;;  %v4827_v51 = vmul.f32 0.01, %v4571_v15  ;;  %vm6996_vm14 = vcmp.eq.s32.totalorder %v19252_v40, 2  ;;  %vm4699_vm1 = vcmp.ge.f32.partialorder %v4571_v15, 0.0  ;;  %v4829_v13 = vmul.f32 0.01, %v4573_v5 }
 0x334   :  { %v5136_v23 = vpop.f32.mrf.mxu1  ;;  %vm6870_vm15 = vcmp.eq.s32.totalorder %v6806_v26, 0  ;;  %v3854_v35 = vsel %vm3662_vm8, %v19117_v39, %v19162_v56  ;;  %v3918_v8 = vsel %vm3662_vm8, %v19150_v37, %v19182_v22  ;;  %v4763_v16 = vmul.f32 0.01, %v4507_v3 }
 0x335   :  { %v19263_v20 = vpop.f32.mrf.mxu0  ;;  %14740 = vmatmul.mubr.msk.bf16.gmra.mxu0 %vm5036_vm12, %v18937_v27  ;;  %vm4701_vm2 = vcmp.ge.f32.partialorder %v4573_v5, 0.0  ;;  %v3856_v11 = vsel %vm3664_vm11, %v19126_v10, %v19171_v18  ;;  %v3920_v49 = vsel %vm3664_vm11, %v19156_v4, %v19185_v24  ;;  %vm4635_vm3 = vcmp.ge.f32.partialorder %v4507_v3, 0.0  ;;  %v22979_v24 = vld [vmem:[#allocation25_spill] sm:$0xff] }
 0x336   :  { %v19269_v30 = vpop.f32.mrf.mxu1  ;;  %14742 = vmatmul.mubr.msk.bf16.gmra.mxu1 %vm5036_vm12, %v18937_v27  ;;  %6453 = vmatprep.mubr.bf16.mxu0 %v22757_v33  ;;  %v4765_v39 = vmul.f32 0.01, %v4509_v12  ;;  %vm6934_vm4 = vcmp.eq.s32.totalorder %v6806_v26, 1  ;;  %vm6998_vm5 = vcmp.eq.s32.totalorder %v6806_v26, 2  ;;  %v4955_v37 = vsel %vm4699_vm1, %v4571_v15, %v4827_v51 }
 0x337   :  { %v5089_v41 = vpop.f32.mrf.mxu0  ;;  %6506 = vmatprep.mubr.bf16.mxu1 %v22757_v33  ;;  %vm4637_vm6 = vcmp.ge.f32.partialorder %v4509_v12, 0.0  ;;  %v4110_v22 = vsel %vm3598_vm7, %v19078_v55, %v3854_v35  ;;  %v4174_v10 = vsel %vm3598_vm7, %v19100_v52, %v3918_v8  ;;  %v4957_v4 = vsel %vm4701_vm2, %v4573_v5, %v4829_v13 }
 0x338   :  { %v5142_v36 = vpop.f32.mrf.mxu1  ;;  %v6744_v0 = vshra.s32 %v22979_v24, 4  ;;  %v4112_v2 = vsel %vm3600_vm10, %v19086_v62, %v3856_v11  ;;  %v4176_v34 = vsel %vm3600_vm10, %v19102_v58, %v3920_v49  ;;  %v4891_v48 = vsel %vm4635_vm3, %v4507_v3, %v4763_v16 }
 0x339   :  { %v19294_v19 = vpop.f32.mrf.mxu0  ;;  %v5023_v62 = vpack.c.bf16 %v4955_v37, %v4891_v48  ;;  %v4893_v51 = vsel %vm4637_vm6, %v4509_v12, %v4765_v39  ;;  %vm3536_vm7 = vcmp.eq.s32.totalorder %v19237_v60, 0  ;;  %v4430_v58 = vsel %vm3534_vm9, %v19063_v6, %v4174_v10  ;;  %v22984_v37 = vld [vmem:[#allocation23_spill] sm:$0xff]  ;;  %v22985_v10 = vld [vmem:[#allocation24_spill] sm:$0xff] }
 0x33a   :  { %v19296_v56 = vpop.f32.mrf.mxu1  ;;  %v5025_v13 = vpack.c.bf16 %v4957_v4, %v4893_v51  ;;  %v4432_v12 = vsel %vm3536_vm7, %v19066_v42, %v4176_v34  ;;  %v19336_v35 = vand.u32 3, %v6741_v46  ;;  %vm6867_vm8 = vcmp.eq.s32.totalorder %v19258_v54, 0 }
 0x33b   :  { %v5093_v18 = vpop.f32.mrf.mxu0  ;;  %v4570_v46 = vadd.f32 %v16143_v53, %v4430_v58  ;;  %v4572_v26 = vadd.f32 %v16143_v53, %v4432_v12  ;;  %vm6995_vm10 = vcmp.eq.s32.totalorder %v19258_v54, 2 }
 0x33c   :  { %v7188_v25 = vsel %vm6996_vm14, %v5089_v41, %v5093_v18  ;;  %v5146_v55 = vpop.f32.mrf.mxu1  ;;  %vm6869_vm11 = vcmp.eq.s32.totalorder %v19336_v35, 0  ;;  %v6745_v18 = vshra.s32 %v22985_v10, 4 }
 0x33d   :  { %v7380_v52 = vsel %vm6932_vm13, %v5083_v32, %v7188_v25  ;;  %v7190_v15 = vsel %vm6998_vm5, %v5142_v36, %v5146_v55  ;;  %v19316_v5 = vpop.f32.mrf.mxu0  ;;  %14743 = vmatmul.mubr.msk.bf16.vlgmr.msra.gmra.mxu0 %vm5036_vm12, %v18788_v43  ;;  %v22980_v32 = vpack.c.bf16 %v19072_v14, %v19070_v47  ;;  %v4366_v47 = vsel %vm3534_vm9, %v19033_v38, %v4110_v22  ;;  %v19361_v38 = vpop.permute.xlu1 %7638 }
 0x33e   :  { %v7382_v3 = vsel %vm6934_vm4, %v5136_v23, %v7190_v15  ;;  %v19326_v41 = vpop.f32.mrf.mxu1  ;;  %14745 = vmatmul.mubr.msk.bf16.vlgmr.msra.gmra.mxu1 %vm5036_vm12, %v18788_v43  ;;  %v7572_v6 = vsel %vm6868_vm0, %v19226_v59, %v7380_v52  ;;  %v22981_v23 = vpack.c.bf16 %v19084_v50, %v19082_v21  ;;  %6463 = vmatprep.mubr.bf16.mxu0 %v22757_v33  ;;  %v22982_v59 = vld [vmem:[#allocation26_spill] sm:$0xff]  ;;  %v22983_v21 = vld [vmem:[#allocation80_spill] sm:$0xff]  ;;  %vm6931_vm9 = vcmp.eq.s32.totalorder %v19258_v54, 1 }
 0x33f   :  { %6542 = vmatpush1.bf16.msra.mxu0 %v22980_v32  ;;  %v19344_v8 = vpop.f32.mrf.mxu0  ;;  %v7574_v42 = vsel %vm6870_vm15, %v19233_v44, %v7382_v3  ;;  %v6746_v50 = vshra.s32 %v22982_v59, 4  ;;  %v4368_v40 = vsel %vm3536_vm7, %v22983_v21, %v4112_v2  ;;  %6516 = vmatprep.mubr.bf16.mxu1 %v22757_v33  ;;  %v19366_v44 = vand.u32 3, %v6744_v0 }
 0x340   :  { %6595 = vmatpush1.bf16.msra.mxu1 %v22981_v23  ;;  %6647 = vmatprep.subr.bf16.mxu0 %v5023_v62  ;;  %v19352_v14 = vpop.f32.mrf.mxu1  ;;  %v7642_v36 = vadd.f32 %v19361_v38, %v7572_v6  ;;  %v4506_v16 = vadd.f32 %v16057_v9, %v4366_v47  ;;  %vm6933_vm0 = vcmp.eq.s32.totalorder %v19336_v35, 1  ;;  %vm6997_vm13 = vcmp.eq.s32.totalorder %v19336_v35, 2 }
 0x341   :  { %6700 = vmatprep.subr.bf16.mxu1 %v5025_v13  ;;  %v19363_v45 = vpop.f32.mrf.mxu0  ;;  %v7644_v49 = vadd.f32 %v19361_v38, %v7574_v42  ;;  %v4508_v39 = vadd.f32 %v16057_v9, %v4368_v40  ;;  %v6743_v22 = vshra.s32 %v22984_v37, 4  ;;  %v19381_v4 = vand.u32 3, %v6746_v50 }
 0x342   :  { %v19371_v60 = vpop.f32.mrf.mxu1  ;;  %v4826_v0 = vmul.f32 0.01, %v4570_v46  ;;  %v7187_v2 = vsel %vm6995_vm10, %v19263_v20, %v19294_v19  ;;  %vm6872_vm14 = vcmp.eq.s32.totalorder %v19366_v44, 0  ;;  %vm6936_vm15 = vcmp.eq.s32.totalorder %v19366_v44, 1 }
 0x343   :  { %v5189_v11 = vpop.f32.mrf.mxu0  ;;  %v4828_v9 = vmul.f32 0.01, %v4572_v26  ;;  %v7189_v25 = vsel %vm6997_vm13, %v19269_v30, %v19296_v56  ;;  %vm4698_vm1 = vcmp.ge.f32.partialorder %v4570_v46, 0.0  ;;  %v7770_v20 = vmul.f32 0.01, %v7642_v36 }
 0x344   :  { %v5242_v53 = vpop.f32.mrf.mxu1  ;;  %v4762_v19 = vmul.f32 0.01, %v4506_v16  ;;  %vm4700_vm3 = vcmp.ge.f32.partialorder %v4572_v26, 0.0  ;;  %vm7706_vm4 = vcmp.ge.f32.partialorder %v7642_v36, 0.0  ;;  %v7772_v52 = vmul.f32 0.01, %v7644_v49 }
 0x345   :  { %v19385_v34 = vpop.f32.mrf.mxu0  ;;  %14744 = vmatmul.mubr.msk.bf16.gmra.mxu0 %vm5036_vm12, %v18937_v27  ;;  %v4764_v15 = vmul.f32 0.01, %v4508_v39  ;;  %v7379_v30 = vsel %vm6931_vm9, %v19242_v63, %v7187_v2  ;;  %vm4634_vm5 = vcmp.ge.f32.partialorder %v4506_v16, 0.0  ;;  %vm7708_vm6 = vcmp.ge.f32.partialorder %v7644_v49, 0.0 }
 0x346   :  { %v19393_v55 = vpop.f32.mrf.mxu1  ;;  %14746 = vmatmul.mubr.msk.bf16.gmra.mxu1 %vm5036_vm12, %v18937_v27  ;;  %6559 = vmatprep.mubr.bf16.mxu0 %v22757_v33  ;;  %v7381_v62 = vsel %vm6933_vm0, %v19250_v7, %v7189_v25  ;;  %vm7000_vm7 = vcmp.eq.s32.totalorder %v19366_v44, 2  ;;  %v4954_v58 = vsel %vm4698_vm1, %v4570_v46, %v4826_v0  ;;  %vm4636_vm10 = vcmp.ge.f32.partialorder %v4508_v39, 0.0 }
 0x347   :  { %v5195_v48 = vpop.f32.mrf.mxu0  ;;  %6612 = vmatprep.mubr.bf16.mxu1 %v22757_v33  ;;  %vm6874_vm13 = vcmp.eq.s32.totalorder %v19381_v4, 0  ;;  %vm7002_vm2 = vcmp.eq.s32.totalorder %v19381_v4, 2  ;;  %v4956_v63 = vsel %vm4700_vm3, %v4572_v26, %v4828_v9  ;;  %v7834_v32 = vsel %vm7706_vm4, %v7642_v36, %v7770_v20 }
 0x348   :  { %v5248_v56 = vpop.f32.mrf.mxu1  ;;  %v7571_v13 = vsel %vm6867_vm8, %v19199_v57, %v7379_v30  ;;  %vm6938_vm9 = vcmp.eq.s32.totalorder %v19381_v4, 1  ;;  %v4890_v12 = vsel %vm4634_vm5, %v4506_v16, %v4762_v19  ;;  %v7836_v6 = vsel %vm7708_vm6, %v7644_v49, %v7772_v52  ;;  %v22989_v4 = vld [vmem:[#allocation31_spill] sm:$0xff] }
 0x349   :  { %v5197_v51 = vpop.f32.mrf.mxu0  ;;  %v7573_v23 = vsel %vm6869_vm11, %v19208_v1, %v7381_v62  ;;  %v5022_v50 = vpack.c.bf16 %v4954_v58, %v4890_v12  ;;  %v4892_v21 = vsel %vm4636_vm10, %v4508_v39, %v4764_v15  ;;  %v7902_v54 = vpack.c.bf16 %v7834_v32, %v7834_v32  ;;  %v22990_v15 = vld [vmem:[#allocation27_spill] sm:$0xff] }
 0x34a   :  { %v5250_v3 = vpop.f32.mrf.mxu1  ;;  %v5024_v57 = vpack.c.bf16 %v4956_v63, %v4892_v21  ;;  %v19424_v36 = vand.u32 3, %v6743_v22  ;;  %v7904_v1 = vpack.c.bf16 %v7836_v6, %v7836_v6  ;;  %v19431_v49 = vand.u32 3, %v6745_v18 }
 0x34b   :  { %v5199_v7 = vpop.f32.mrf.mxu0  ;;  %vm22986_vm8 = vcmask 1043456   ;;  %v6747_v30 = vshra.s32 %v22990_v15, 4 }
 0x34c   :  { %v7192_v47 = vsel %vm7000_vm7, %v5195_v48, %v5199_v7  ;;  %v5252_v42 = vpop.f32.mrf.mxu1  ;;  %vm22987_vm11 = vmmov %vm22986_vm8  ;;  %vm6999_vm0 = vcmp.eq.s32.totalorder %v19424_v36, 2  ;;  %vm6937_vm3 = vcmp.eq.s32.totalorder %v19431_v49, 1  ;;  %vm6871_vm5 = vcmp.eq.s32.totalorder %v19424_v36, 0 }
 0x34d   :  { %v7384_v40 = vsel %vm6936_vm15, %v5189_v11, %v7192_v47  ;;  %v7194_v46 = vsel %vm7002_vm2, %v5248_v56, %v5252_v42  ;;  %v19420_v26 = vpop.f32.mrf.mxu0  ;;  %14747 = vmatmul.mubr.msk.bf16.vlgmr.msra.gmra.mxu0 %vm5036_vm12, %v18788_v43  ;;  %v7641_v11 = vadd.f32 %v19361_v38, %v7571_v13  ;;  %vm6935_vm2 = vcmp.eq.s32.totalorder %v19424_v36, 1 }
 0x34e   :  { %v7386_v16 = vsel %vm6938_vm9, %v5242_v53, %v7194_v46  ;;  %v19426_v35 = vpop.f32.mrf.mxu1  ;;  %14749 = vmatmul.mubr.msk.bf16.vlgmr.msra.gmra.mxu1 %vm5036_vm12, %v18788_v43  ;;  %6648 = vmatpush1.bf16.msra.mxu0 %v5022_v50  ;;  %v7576_v39 = vsel %vm6872_vm14, %v19344_v8, %v7384_v40  ;;  %v7643_v53 = vadd.f32 %v19361_v38, %v7573_v23  ;;  %v22988_v8 = vld [vmem:[#allocation29_spill] sm:$0xff]  ;;  %vm7001_vm14 = vcmp.eq.s32.totalorder %v19431_v49, 2 }
 0x34f   :  { %6701 = vmatpush1.bf16.msra.mxu1 %v5024_v57  ;;  %14757 = vmatprep.subr.msk.bf16.mxu0 %vm22986_vm8, %v7902_v54  ;;  %v19437_v22 = vpop.f32.mrf.mxu0  ;;  %v7578_v43 = vsel %vm6874_vm13, %v19352_v14, %v7386_v16  ;;  %v6748_v44 = vshra.s32 %v22988_v8, 4  ;;  %v7646_v2 = vadd.f32 %v19361_v38, %v7576_v39  ;;  %v6750_v14 = vshra.s32 %v22989_v4, 4  ;;  %v22991_v57 = vld [vmem:[#allocation28_spill] sm:$0xff] }
 0x350   :  { %14760 = vmatprep.subr.msk.bf16.mxu1 %vm22987_vm11, %v7904_v1  ;;  %v19444_v0 = vpop.f32.mrf.mxu1  ;;  %6569 = vmatprep.mubr.bf16.mxu0 %v22757_v33  ;;  %v7769_v25 = vmul.f32 0.01, %v7641_v11  ;;  %v7648_v20 = vadd.f32 %v19361_v38, %v7578_v43  ;;  %vm7705_vm15 = vcmp.ge.f32.partialorder %v7641_v11, 0.0  ;;  %v7771_v48 = vmul.f32 0.01, %v7643_v53 }
 0x351   :  { %v19447_v18 = vpop.f32.mrf.mxu0  ;;  %6622 = vmatprep.mubr.bf16.mxu1 %v22757_v33  ;;  %vm7707_vm1 = vcmp.ge.f32.partialorder %v7643_v53, 0.0  ;;  %v7191_v56 = vsel %vm6999_vm0, %v19385_v34, %v5197_v51  ;;  %v6812_v58 = vand.u32 3, %v6748_v44  ;;  %v7193_v63 = vsel %vm7001_vm14, %v19393_v55, %v5250_v3  ;;  %v15306_v44 = vld [vmem:[#allocation6] sm:$0xff]  }
 0x352   :  { %v19453_v9 = vpop.f32.mrf.mxu1  ;;  %v7774_v32 = vmul.f32 0.01, %v7646_v2  ;;  %v6814_v7 = vand.u32 3, %v6750_v14  ;;  %v7833_v34 = vsel %vm7705_vm15, %v7641_v11, %v7769_v25  ;;  %v7776_v51 = vmul.f32 0.01, %v7648_v20 }
 0x353   :  { %v5295_v19 = vpop.f32.mrf.mxu0  ;;  %v7835_v6 = vsel %vm7707_vm1, %v7643_v53, %v7771_v48  ;;  %vm7710_vm4 = vcmp.ge.f32.partialorder %v7646_v2, 0.0  ;;  %v7383_v55 = vsel %vm6935_vm2, %v19363_v45, %v7191_v56  ;;  %vm6873_vm6 = vcmp.eq.s32.totalorder %v19431_v49, 0 }
 0x354   :  { %v5348_v52 = vpop.f32.mrf.mxu1  ;;  %vm7712_vm7 = vcmp.ge.f32.partialorder %v7648_v20, 0.0  ;;  %v7385_v23 = vsel %vm6937_vm3, %v19371_v60, %v7193_v63  ;;  %v19483_v42 = vand.u32 3, %v6747_v30  ;;  %vm7004_vm10 = vcmp.eq.s32.totalorder %v6812_v58, 2 }
 0x355   :  { %v19462_v62 = vpop.f32.mrf.mxu0  ;;  %14748 = vmatmul.mubr.msk.bf16.gmra.mxu0 %vm5036_vm12, %v18937_v27  ;;  %v7901_v50 = vpack.c.bf16 %v7833_v34, %v7833_v34  ;;  %vm6940_vm13 = vcmp.eq.s32.totalorder %v6812_v58, 1  ;;  %vm7006_vm9 = vcmp.eq.s32.totalorder %v6814_v7, 2  ;;  %v7903_v40 = vpack.c.bf16 %v7835_v6, %v7835_v6 }
 0x356   :  { %v19467_v13 = vpop.f32.mrf.mxu1  ;;  %14750 = vmatmul.mubr.msk.bf16.gmra.mxu1 %vm5036_vm12, %v18937_v27  ;;  %6665 = vmatprep.mubr.bf16.mxu0 %v22757_v33  ;;  %v7838_v46 = vsel %vm7710_vm4, %v7646_v2, %v7774_v32  ;;  %v7575_v45 = vsel %vm6871_vm5, %v19316_v5, %v7383_v55  ;;  %v6749_v54 = vshra.s32 %v22991_v57, 4  ;;  %vm6942_vm8 = vcmp.eq.s32.totalorder %v6814_v7, 1 }
 0x357   :  { %v5301_v12 = vpop.f32.mrf.mxu0  ;;  %6718 = vmatprep.mubr.bf16.mxu1 %v22757_v33  ;;  %v7840_v16 = vsel %vm7712_vm7, %v7648_v20, %v7776_v51  ;;  %v7577_v60 = vsel %vm6873_vm6, %v19326_v41, %v7385_v23  ;;  %vm6876_vm11 = vcmp.eq.s32.totalorder %v6812_v58, 0  ;;  %vm6878_vm0 = vcmp.eq.s32.totalorder %v6814_v7, 0  ;;  %v22996_v58 = vld [vmem:[#allocation42_spill] sm:$0xff]  ;;  %v22997_v7 = vld [vmem:[#allocation43_spill] sm:$0xff] }
 0x358   :  { %v5354_v3 = vpop.f32.mrf.mxu1  ;;  %vm22992_vm14 = vcmask 1043456   ;;  %v7906_v2 = vpack.c.bf16 %v7838_v46, %v7838_v46  ;;  %v7645_v14 = vadd.f32 %v19361_v38, %v7575_v45  ;;  %v7908_v49 = vpack.c.bf16 %v7840_v16, %v7840_v16 }
 0x359   :  { %v5303_v47 = vpop.f32.mrf.mxu0  ;;  %v7984_v5 = vsel %vm22992_vm14, %v7901_v50, 0  ;;  %vm22993_vm15 = vmmov %vm22992_vm14  ;;  %v19500_v48 = vand.u32 3, %v6749_v54  ;;  %vm7003_vm3 = vcmp.eq.s32.totalorder %v19483_v42, 2  ;;  %vm6875_vm6 = vcmp.eq.s32.totalorder %v19483_v42, 0 }
 0x35a   :  { %v5356_v21 = vpop.f32.mrf.mxu1  ;;  %v7990_v41 = vsel %vm22993_vm15, %v7903_v40, 0  ;;  %vm22994_vm1 = vmmov %vm22992_vm14  ;;  %vm7709_vm5 = vcmp.ge.f32.partialorder %v7645_v14, 0.0  ;;  %v7195_v50 = vsel %vm7003_vm3, %v19462_v62, %v5303_v47 }
 0x35b   :  { %v5305_v36 = vpop.f32.mrf.mxu0  ;;  %vm22995_vm2 = vmmov %vm22994_vm1  ;;  %vm7005_vm4 = vcmp.eq.s32.totalorder %v19500_v48, 2 }
 0x35c   :  { %v7196_v1 = vsel %vm7004_vm10, %v5301_v12, %v5305_v36  ;;  %v5358_v11 = vpop.f32.mrf.mxu1  ;;  %v7773_v12 = vmul.f32 0.01, %v7645_v14  ;;  %vm6939_vm10 = vcmp.eq.s32.totalorder %v19483_v42, 1  ;;  %v7197_v45 = vsel %vm7005_vm4, %v19467_v13, %v5356_v21  ;;  %v22999_v21 = vld [vmem:[#allocation35_spill] sm:$0xff] }
 0x35d   :  { %v7388_v39 = vsel %vm6940_vm13, %v5295_v19, %v7196_v1  ;;  %v7198_v53 = vsel %vm7006_vm9, %v5354_v3, %v5358_v11  ;;  %v19490_v43 = vpop.f32.mrf.mxu0  ;;  %14751 = vmatmul.mubr.msk.bf16.vlgmr.msra.gmra.mxu0 %vm5036_vm12, %v15306_v44  ;;  %v7647_v19 = vadd.f32 %v19361_v38, %v7577_v60  ;;  %vm6941_vm13 = vcmp.eq.s32.totalorder %v19500_v48, 1  ;;  %v22998_v1 = vld [vmem:[#allocation34_spill] sm:$0xff] }
 0x35e   :  { %v7390_v25 = vsel %vm6942_vm8, %v5348_v52, %v7198_v53  ;;  %v19495_v20 = vpop.f32.mrf.mxu1  ;;  %14753 = vmatmul.mubr.msk.bf16.vlgmr.msra.gmra.mxu1 %vm5036_vm12, %v15306_v44  ;;  %8190 = vmatpush1.bf16.msra.mxu0 %v7984_v5  ;;  %v7580_v30 = vsel %vm6876_vm11, %v19437_v22, %v7388_v39  ;;  %v6752_v22 = vshra.s32 %v22996_v58, 4  ;;  %v7837_v62 = vsel %vm7709_vm5, %v7645_v14, %v7773_v12 }
 0x35f   :  { %8243 = vmatpush1.bf16.msra.mxu1 %v7990_v41  ;;  %14763 = vmatprep.subr.msk.bf16.mxu0 %vm22994_vm1, %v7906_v2  ;;  %v19505_v56 = vpop.f32.mrf.mxu0  ;;  %v7582_v52 = vsel %vm6878_vm0, %v19444_v0, %v7390_v25  ;;  %v7650_v34 = vadd.f32 %v19361_v38, %v7580_v30  ;;  %v6754_v0 = vshra.s32 %v22997_v7, 4  ;;  %v7775_v3 = vmul.f32 0.01, %v7647_v19  ;;  %v19550_v2 = vld [vmem:[#allocation9] sm:$0xff]  }
 0x360   :  { %14766 = vmatprep.subr.msk.bf16.mxu1 %vm22995_vm2, %v7908_v49  ;;  %v19510_v63 = vpop.f32.mrf.mxu1  ;;  %6675 = vmatprep.mubr.bf16.mxu0 %v22757_v33  ;;  %v7652_v6 = vadd.f32 %v19361_v38, %v7582_v52  ;;  %vm7711_vm7 = vcmp.ge.f32.partialorder %v7647_v19, 0.0  ;;  %v6816_v46 = vand.u32 3, %v6752_v22  ;;  %v6751_v11 = vshra.s32 %v22998_v1, 4 }
 0x361   :  { %v19513_v32 = vpop.f32.mrf.mxu0  ;;  %6728 = vmatprep.mubr.bf16.mxu1 %v22757_v33  ;;  %v7778_v54 = vmul.f32 0.01, %v7650_v34  ;;  %v6818_v16 = vand.u32 3, %v6754_v0  ;;  %v7839_v39 = vsel %vm7711_vm7, %v7647_v19, %v7775_v3  ;;  %vm7714_vm9 = vcmp.ge.f32.partialorder %v7650_v34, 0.0 }
 0x362   :  { %v19519_v51 = vpop.f32.mrf.mxu1  ;;  %v7780_v47 = vmul.f32 0.01, %v7652_v6  ;;  %v7387_v13 = vsel %vm6939_vm10, %v19447_v18, %v7195_v50  ;;  %v6753_v53 = vshra.s32 %v22999_v21, 4  ;;  %vm7716_vm8 = vcmp.ge.f32.partialorder %v7652_v6, 0.0 }
 0x363   :  { %v5401_v55 = vpop.f32.mrf.mxu0  ;;  %v7389_v44 = vsel %vm6941_vm13, %v19453_v9, %v7197_v45  ;;  %vm7008_vm11 = vcmp.eq.s32.totalorder %v6816_v46, 2  ;;  %vm22742_vm0 = vcmask 64512   ;;  %v7905_v14 = vpack.c.bf16 %v7837_v62, %v7837_v62 }
 0x364   :  { %v5454_v23 = vpop.f32.mrf.mxu1  ;;  %vm6944_vm14 = vcmp.eq.s32.totalorder %v6816_v46, 1  ;;  %vm7010_vm15 = vcmp.eq.s32.totalorder %v6818_v16, 2  ;;  %v7907_v18 = vpack.c.bf16 %v7839_v39, %v7839_v39  ;;  %v7842_v41 = vsel %vm7714_vm9, %v7650_v34, %v7778_v54 }
 0x365   :  { %v19528_v40 = vpop.f32.mrf.mxu0  ;;  %14752 = vmatmul.mubr.msk.bf16.gmra.mxu0 %vm5036_vm12, %v18937_v27  ;;  %v7579_v49 = vsel %vm6875_vm6, %v19420_v26, %v7387_v13  ;;  %v19556_v19 = vand.u32 3, %v6751_v11  ;;  %vm6946_vm1 = vcmp.eq.s32.totalorder %v6818_v16, 1  ;;  %v7844_v9 = vsel %vm7716_vm8, %v7652_v6, %v7780_v47 }
 0x366   :  { %v19533_v36 = vpop.f32.mrf.mxu1  ;;  %14754 = vmatmul.mubr.msk.bf16.gmra.mxu1 %vm5036_vm12, %v18937_v27  ;;  %8207 = vmatprep.mubr.bf16.mxu0 %v22757_v33  ;;  %vm6877_vm12 = vcmp.eq.s32.totalorder %v19500_v48, 0  ;;  %vm6880_vm2 = vcmp.eq.s32.totalorder %v6816_v46, 0  ;;  %vm6882_vm3 = vcmp.eq.s32.totalorder %v6818_v16, 0  ;;  %vm23000_vm4 = vcmask 1043456   ;;  %v19591_v46 = vld [vmem:[#allocation9 + $0x8] sm:$0xff]  }
 0x367   :  { %v5407_v60 = vpop.f32.mrf.mxu0  ;;  %8260 = vmatprep.mubr.bf16.mxu1 %v22757_v33  ;;  %v7581_v52 = vsel %vm6877_vm12, %v19426_v35, %v7389_v44  ;;  %v7996_v26 = vsel %vm23000_vm4, %v7905_v14, 0  ;;  %v7910_v42 = vpack.c.bf16 %v7842_v41, %v7842_v41  ;;  %v7649_v6 = vadd.f32 %v19361_v38, %v7579_v49  ;;  %vm23001_vm5 = vmmov %vm23000_vm4  ;;  %v23006_v49 = vld [vmem:[#allocation46_spill] sm:$0xff] }
 0x368   :  { %v5460_v27 = vpop.f32.mrf.mxu1  ;;  %v8002_v35 = vsel %vm23001_vm5, %v7907_v18, 0  ;;  %v7651_v45 = vadd.f32 %v19361_v38, %v7581_v52  ;;  %v19575_v54 = vand.u32 3, %v6753_v53  ;;  %vm23002_vm6 = vmmov %vm23000_vm4  ;;  %vm7007_vm10 = vcmp.eq.s32.totalorder %v19556_v19, 2 }
 0x369   :  { %v5409_v5 = vpop.f32.mrf.mxu0  ;;  %vm23003_vm7 = vmmov %vm23000_vm4  ;;  %v7777_v53 = vmul.f32 0.01, %v7649_v6  ;;  %vm7713_vm9 = vcmp.ge.f32.partialorder %v7649_v6, 0.0  ;;  %vm6943_vm8 = vcmp.eq.s32.totalorder %v19556_v19, 1 }
 0x36a   :  { %v5462_v25 = vpop.f32.mrf.mxu1  ;;  %vm7009_vm13 = vcmp.eq.s32.totalorder %v19575_v54, 2  ;;  %v7779_v18 = vmul.f32 0.01, %v7651_v45  ;;  %vm7715_vm12 = vcmp.ge.f32.partialorder %v7651_v45, 0.0 }
 0x36b   :  { %v5411_v30 = vpop.f32.mrf.mxu0 }
 0x36c   :  { %v7200_v22 = vsel %vm7008_vm11, %v5407_v60, %v5411_v30  ;;  %v5464_v0 = vpop.f32.mrf.mxu1  ;;  %v6755_v30 = vshra.s32 %v23006_v49, 4  ;;  %vm6945_vm11 = vcmp.eq.s32.totalorder %v19575_v54, 1 }
 0x36d   :  { %v7392_v34 = vsel %vm6944_vm14, %v5401_v55, %v7200_v22  ;;  %v7202_v12 = vsel %vm7010_vm15, %v5460_v27, %v5464_v0  ;;  %v19563_v3 = vpop.f32.mrf.mxu0  ;;  %14758 = vmatmul.mubr.msk.bf16.vlgmr.msra.gmra.mxu0 %vm22742_vm0, %v19550_v2  ;;  %v7912_v55 = vpack.c.bf16 %v7844_v9, %v7844_v9  ;;  %v7199_v9 = vsel %vm7007_vm10, %v19528_v40, %v5409_v5 }
 0x36e   :  { %v7394_v50 = vsel %vm6946_vm1, %v5454_v23, %v7202_v12  ;;  %v19569_v48 = vpop.f32.mrf.mxu1  ;;  %14761 = vmatmul.mubr.msk.bf16.vlgmr.msra.gmra.mxu1 %vm22742_vm0, %v19550_v2  ;;  %8296 = vmatpush1.bf16.msra.mxu0 %v7996_v26  ;;  %v7584_v62 = vsel %vm6880_vm2, %v19505_v56, %v7392_v34  ;;  %v23004_v56 = vld [vmem:[#allocation48_spill] sm:$0xff]  ;;  %v7201_v0 = vsel %vm7009_vm13, %v19533_v36, %v5462_v25  ;;  %vm6879_vm15 = vcmp.eq.s32.totalorder %v19556_v19, 0  ;;  %v23007_v19 = vld [vmem:[#allocation47_spill] sm:$0xff] }
 0x36f   :  { %8349 = vmatpush1.bf16.msra.mxu1 %v8002_v35  ;;  %14769 = vmatprep.subr.msk.bf16.mxu0 %vm23002_vm6, %v7910_v42  ;;  %v19580_v23 = vpop.f32.mrf.mxu0  ;;  %v7586_v47 = vsel %vm6882_vm3, %v19510_v63, %v7394_v50  ;;  %v6756_v39 = vshra.s32 %v23004_v56, 4  ;;  %v7654_v13 = vadd.f32 %v19361_v38, %v7584_v62  ;;  %v23005_v63 = vld [vmem:[#allocation53_spill] sm:$0xff]  ;;  %v7841_v40 = vsel %vm7713_vm9, %v7649_v6, %v7777_v53 }
 0x370   :  { %14772 = vmatprep.subr.msk.bf16.mxu1 %vm23003_vm7, %v7912_v55  ;;  %v19585_v60 = vpop.f32.mrf.mxu1  ;;  %8217 = vmatprep.mubr.bf16.mxu0 %v22757_v33  ;;  %v6758_v27 = vshra.s32 %v23005_v63, 4  ;;  %v7656_v44 = vadd.f32 %v19361_v38, %v7586_v47  ;;  %v7843_v50 = vsel %vm7715_vm12, %v7651_v45, %v7779_v18  ;;  %v7391_v36 = vsel %vm6943_vm8, %v19513_v32, %v7199_v9 }
 0x371   :  { %v19588_v11 = vpop.f32.mrf.mxu0  ;;  %8270 = vmatprep.mubr.bf16.mxu1 %v22757_v33  ;;  %v6820_v22 = vand.u32 3, %v6756_v39  ;;  %v7782_v34 = vmul.f32 0.01, %v7654_v13  ;;  %vm7718_vm14 = vcmp.ge.f32.partialorder %v7654_v13, 0.0  ;;  %vm6881_vm1 = vcmp.eq.s32.totalorder %v19575_v54, 0 }
 0x372   :  { %v19596_v16 = vpop.f32.mrf.mxu1  ;;  %v6822_v26 = vand.u32 3, %v6758_v27  ;;  %v7784_v5 = vmul.f32 0.01, %v7656_v44  ;;  %vm7720_vm2 = vcmp.ge.f32.partialorder %v7656_v44, 0.0  ;;  %v7393_v6 = vsel %vm6945_vm11, %v19519_v51, %v7201_v0 }
 0x373   :  { %v5507_v14 = vpop.f32.mrf.mxu0  ;;  %v19626_v55 = vand.u32 3, %v6755_v30  ;;  %vm7012_vm3 = vcmp.eq.s32.totalorder %v6820_v22, 2  ;;  %v7909_v45 = vpack.c.bf16 %v7841_v40, %v7841_v40  ;;  %vm6948_vm4 = vcmp.eq.s32.totalorder %v6820_v22, 1 }
 0x374   :  { %v5560_v41 = vpop.f32.mrf.mxu1  ;;  %vm7014_vm5 = vcmp.eq.s32.totalorder %v6822_v26, 2  ;;  %v7911_v47 = vpack.c.bf16 %v7843_v50, %v7843_v50  ;;  %v7846_v39 = vsel %vm7718_vm14, %v7654_v13, %v7782_v34  ;;  %v7583_v32 = vsel %vm6879_vm15, %v19490_v43, %v7391_v36 }
 0x375   :  { %v19605_v52 = vpop.f32.mrf.mxu0  ;;  %14759 = vmatmul.mubr.msk.bf16.gmra.mxu0 %vm22742_vm0, %v19591_v46  ;;  %v6757_v27 = vshra.s32 %v23007_v19, 4  ;;  %vm6950_vm6 = vcmp.eq.s32.totalorder %v6822_v26, 1  ;;  %v7848_v18 = vsel %vm7720_vm2, %v7656_v44, %v7784_v5  ;;  %v7585_v51 = vsel %vm6881_vm1, %v19495_v20, %v7393_v6 }
 0x376   :  { %v19610_v12 = vpop.f32.mrf.mxu1  ;;  %14762 = vmatmul.mubr.msk.bf16.gmra.mxu1 %vm22742_vm0, %v19591_v46  ;;  %8313 = vmatprep.mubr.bf16.mxu0 %v22757_v33  ;;  %vm6884_vm7 = vcmp.eq.s32.totalorder %v6820_v22, 0  ;;  %vm6886_vm10 = vcmp.eq.s32.totalorder %v6822_v26, 0  ;;  %vm23008_vm13 = vcmask 1043456   ;;  %v7914_v13 = vpack.c.bf16 %v7846_v39, %v7846_v39  ;;  %v23012_v22 = vld [vmem:[#allocation62_spill] sm:$0xff]  ;;  %v23013_v26 = vld [vmem:[#allocation63_spill] sm:$0xff] }
 0x377   :  { %v5513_v42 = vpop.f32.mrf.mxu0  ;;  %8366 = vmatprep.mubr.bf16.mxu1 %v22757_v33  ;;  %v8008_v43 = vsel %vm23008_vm13, %v7909_v45, 0  ;;  %v7653_v44 = vadd.f32 %v19361_v38, %v7583_v32  ;;  %vm23009_vm9 = vmmov %vm23008_vm13  ;;  %v7916_v54 = vpack.c.bf16 %v7848_v18, %v7848_v18  ;;  %vm7011_vm11 = vcmp.eq.s32.totalorder %v19626_v55, 2 }
 0x378   :  { %v5566_v25 = vpop.f32.mrf.mxu1  ;;  %v8014_v20 = vsel %vm23009_vm9, %v7911_v47, 0  ;;  %vm23010_vm12 = vmmov %vm23009_vm9  ;;  %vm6947_vm2 = vcmp.eq.s32.totalorder %v19626_v55, 1 }
 0x379   :  { %v5515_v35 = vpop.f32.mrf.mxu0  ;;  %vm23011_vm8 = vmmov %vm23009_vm9  ;;  %v7781_v39 = vmul.f32 0.01, %v7653_v44  ;;  %vm7717_vm15 = vcmp.ge.f32.partialorder %v7653_v44, 0.0 }
 0x37a   :  { %v5568_v62 = vpop.f32.mrf.mxu1 }
 0x37b   :  { %v5517_v53 = vpop.f32.mrf.mxu0 }
 0x37c   :  { %v7204_v30 = vsel %vm7012_vm3, %v5513_v42, %v5517_v53  ;;  %v5570_v9 = vpop.f32.mrf.mxu1  ;;  %v19645_v42 = vand.u32 3, %v6757_v27 }
 0x37d   :  { %v7396_v0 = vsel %vm6948_vm4, %v5507_v14, %v7204_v30  ;;  %v7206_v40 = vsel %vm7014_vm5, %v5566_v25, %v5570_v9  ;;  %v19633_v49 = vpop.f32.mrf.mxu0  ;;  %14764 = vmatmul.mubr.msk.bf16.vlgmr.msra.gmra.mxu0 %vm22742_vm0, %v19550_v2  ;;  %v7655_v14 = vadd.f32 %v19361_v38, %v7585_v51  ;;  %v7203_v51 = vsel %vm7011_vm11, %v19605_v52, %v5515_v35 }
 0x37e   :  { %v7398_v34 = vsel %vm6950_vm6, %v5560_v41, %v7206_v40  ;;  %v19639_v5 = vpop.f32.mrf.mxu1  ;;  %14767 = vmatmul.mubr.msk.bf16.vlgmr.msra.gmra.mxu1 %vm22742_vm0, %v19550_v2  ;;  %8402 = vmatpush1.bf16.msra.mxu0 %v8008_v43  ;;  %v7588_v50 = vsel %vm6884_vm7, %v19580_v23, %v7396_v0  ;;  %v6760_v23 = vshra.s32 %v23012_v22, 4  ;;  %vm7013_vm14 = vcmp.eq.s32.totalorder %v19645_v42, 2 }
 0x37f   :  { %8455 = vmatpush1.bf16.msra.mxu1 %v8014_v20  ;;  %14775 = vmatprep.subr.msk.bf16.mxu0 %vm23010_vm12, %v7914_v13  ;;  %v19650_v41 = vpop.f32.mrf.mxu0  ;;  %v7590_v36 = vsel %vm6886_vm10, %v19585_v60, %v7398_v34  ;;  %v7658_v45 = vadd.f32 %v19361_v38, %v7588_v50  ;;  %v6762_v60 = vshra.s32 %v23013_v26, 4  ;;  %v7783_v53 = vmul.f32 0.01, %v7655_v14  ;;  %v23014_v20 = vld [vmem:[#allocation58_spill] sm:$0xff] }
 0x380   :  { %14778 = vmatprep.subr.msk.bf16.mxu1 %vm23011_vm8, %v7916_v54  ;;  %v19655_v25 = vpop.f32.mrf.mxu1  ;;  %8323 = vmatprep.mubr.bf16.mxu0 %v22757_v33  ;;  %v7660_v32 = vadd.f32 %v19361_v38, %v7590_v36  ;;  %vm7719_vm1 = vcmp.ge.f32.partialorder %v7655_v14, 0.0  ;;  %vm6949_vm3 = vcmp.eq.s32.totalorder %v19645_v42, 1  ;;  %v6824_v9 = vand.u32 3, %v6760_v23  ;;  %v23015_v23 = vld [vmem:[#allocation59_spill] sm:$0xff] }
 0x381   :  { %v19658_v6 = vpop.f32.mrf.mxu0  ;;  %8376 = vmatprep.mubr.bf16.mxu1 %v22757_v33  ;;  %v7205_v0 = vsel %vm7013_vm14, %v19610_v12, %v5568_v62  ;;  %v7786_v40 = vmul.f32 0.01, %v7658_v45  ;;  %v6826_v13 = vand.u32 3, %v6762_v60  ;;  %v7845_v52 = vsel %vm7717_vm15, %v7653_v44, %v7781_v39 }
 0x382   :  { %v19664_v47 = vpop.f32.mrf.mxu1  ;;  %v7788_v35 = vmul.f32 0.01, %v7660_v32  ;;  %v6759_v54 = vshra.s32 %v23014_v20, 4  ;;  %v7847_v50 = vsel %vm7719_vm1, %v7655_v14, %v7783_v53  ;;  %vm7722_vm4 = vcmp.ge.f32.partialorder %v7658_v45, 0.0 }
 0x383   :  { %v5613_v27 = vpop.f32.mrf.mxu0  ;;  %vm6883_vm5 = vcmp.eq.s32.totalorder %v19626_v55, 0  ;;  %v7395_v12 = vsel %vm6947_vm2, %v19588_v11, %v7203_v51  ;;  %vm6885_vm6 = vcmp.eq.s32.totalorder %v19645_v42, 0  ;;  %vm7724_vm7 = vcmp.ge.f32.partialorder %v7660_v32, 0.0 }
 0x384   :  { %v5666_v18 = vpop.f32.mrf.mxu1  ;;  %v7397_v44 = vsel %vm6949_vm3, %v19596_v16, %v7205_v0  ;;  %v6761_v60 = vshra.s32 %v23015_v23, 4  ;;  %vm7016_vm10 = vcmp.eq.s32.totalorder %v6824_v9, 2  ;;  %v7913_v14 = vpack.c.bf16 %v7845_v52, %v7845_v52 }
 0x385   :  { %v19672_v30 = vpop.f32.mrf.mxu0  ;;  %14765 = vmatmul.mubr.msk.bf16.gmra.mxu0 %vm22742_vm0, %v19591_v46  ;;  %vm6952_vm13 = vcmp.eq.s32.totalorder %v6824_v9, 1  ;;  %vm7018_vm9 = vcmp.eq.s32.totalorder %v6826_v13, 2  ;;  %v7915_v53 = vpack.c.bf16 %v7847_v50, %v7847_v50  ;;  %v7850_v20 = vsel %vm7722_vm4, %v7658_v45, %v7786_v40 }
 0x386   :  { %v19677_v43 = vpop.f32.mrf.mxu1  ;;  %14768 = vmatmul.mubr.msk.bf16.gmra.mxu1 %vm22742_vm0, %v19591_v46  ;;  %8419 = vmatprep.mubr.bf16.mxu0 %v22757_v33  ;;  %v7587_v11 = vsel %vm6883_vm5, %v19563_v3, %v7395_v12  ;;  %v19696_v55 = vand.u32 3, %v6759_v54  ;;  %vm6954_vm12 = vcmp.eq.s32.totalorder %v6826_v13, 1  ;;  %v7852_v26 = vsel %vm7724_vm7, %v7660_v32, %v7788_v35 }
 0x387   :  { %v5619_v34 = vpop.f32.mrf.mxu0  ;;  %8472 = vmatprep.mubr.bf16.mxu1 %v22757_v33  ;;  %v7589_v16 = vsel %vm6885_vm6, %v19569_v48, %v7397_v44  ;;  %vm6888_vm8 = vcmp.eq.s32.totalorder %v6824_v9, 0  ;;  %vm6890_vm11 = vcmp.eq.s32.totalorder %v6826_v13, 0  ;;  %vm23016_vm14 = vcmask 1043456   ;;  %v23020_v9 = vld [vmem:[#allocation72_spill] sm:$0xff]  ;;  %v23021_v13 = vld [vmem:[#allocation73_spill] sm:$0xff] }
 0x388   :  { %v5672_v62 = vpop.f32.mrf.mxu1  ;;  %v8020_v3 = vsel %vm23016_vm14, %v7913_v14, 0  ;;  %v7918_v45 = vpack.c.bf16 %v7850_v20, %v7850_v20  ;;  %v7657_v32 = vadd.f32 %v19361_v38, %v7587_v11  ;;  %vm23017_vm15 = vmmov %vm23016_vm14  ;;  %v7920_v42 = vpack.c.bf16 %v7852_v26, %v7852_v26 }
 0x389   :  { %v5621_v36 = vpop.f32.mrf.mxu0  ;;  %v8026_v48 = vsel %vm23017_vm15, %v7915_v53, 0  ;;  %vm23018_vm1 = vmmov %vm23016_vm14  ;;  %vm7015_vm3 = vcmp.eq.s32.totalorder %v19696_v55, 2  ;;  %v23022_v53 = vld [vmem:[#allocation70_spill] sm:$0xff]  ;;  %vm6951_vm7 = vcmp.eq.s32.totalorder %v19696_v55, 1 }
 0x38a   :  { %v5674_v39 = vpop.f32.mrf.mxu1  ;;  %vm23019_vm2 = vmmov %vm23018_vm1  ;;  %vm7721_vm5 = vcmp.ge.f32.partialorder %v7657_v32, 0.0  ;;  %v6763_v11 = vshra.s32 %v23022_v53, 4 }
 0x38b   :  { %v5623_v51 = vpop.f32.mrf.mxu0 }
 0x38c   :  { %v7208_v0 = vsel %vm7016_vm10, %v5619_v34, %v5623_v51  ;;  %v5676_v23 = vpop.f32.mrf.mxu1  ;;  %v19713_v34 = vand.u32 3, %v6761_v60  ;;  %v7207_v51 = vsel %vm7015_vm3, %v19672_v30, %v5621_v36 }
 0x38d   :  { %v7400_v52 = vsel %vm6952_vm13, %v5613_v27, %v7208_v0  ;;  %v7210_v22 = vsel %vm7018_vm9, %v5672_v62, %v5676_v23  ;;  %v19701_v19 = vpop.f32.mrf.mxu0  ;;  %14770 = vmatmul.mubr.msk.bf16.vlgmr.msra.gmra.mxu0 %vm22742_vm0, %v19550_v2  ;;  %v7659_v27 = vadd.f32 %v19361_v38, %v7589_v16  ;;  %v7785_v62 = vmul.f32 0.01, %v7657_v32 }
 0x38e   :  { %v7402_v40 = vsel %vm6954_vm12, %v5666_v18, %v7210_v22  ;;  %v19707_v35 = vpop.f32.mrf.mxu1  ;;  %14773 = vmatmul.mubr.msk.bf16.vlgmr.msra.gmra.mxu1 %vm22742_vm0, %v19550_v2  ;;  %8508 = vmatpush1.bf16.msra.mxu0 %v8020_v3  ;;  %v7592_v54 = vsel %vm6888_vm8, %v19650_v41, %v7400_v52  ;;  %v6764_v41 = vshra.s32 %v23020_v9, 4  ;;  %vm7017_vm4 = vcmp.eq.s32.totalorder %v19713_v34, 2 }
 0x38f   :  { %8561 = vmatpush1.bf16.msra.mxu1 %v8026_v48  ;;  %14781 = vmatprep.subr.msk.bf16.mxu0 %vm23018_vm1, %v7918_v45  ;;  %v19718_v22 = vpop.f32.mrf.mxu0  ;;  %v7594_v18 = vsel %vm6890_vm11, %v19655_v25, %v7402_v40  ;;  %v7662_v50 = vadd.f32 %v19361_v38, %v7592_v54  ;;  %v6766_v25 = vshra.s32 %v23021_v13, 4  ;;  %v7787_v60 = vmul.f32 0.01, %v7659_v27 }
 0x390   :  { %14784 = vmatprep.subr.msk.bf16.mxu1 %vm23019_vm2, %v7920_v42  ;;  %v19723_v20 = vpop.f32.mrf.mxu1  ;;  %8429 = vmatprep.mubr.bf16.mxu0 %v22757_v33  ;;  %v7664_v44 = vadd.f32 %v19361_v38, %v7594_v18  ;;  %vm7723_vm6 = vcmp.ge.f32.partialorder %v7659_v27, 0.0  ;;  %vm6953_vm10 = vcmp.eq.s32.totalorder %v19713_v34, 1  ;;  %v6828_v0 = vand.u32 3, %v6764_v41 }
 0x391   :  { %v19726_v26 = vpop.f32.mrf.mxu0  ;;  %8482 = vmatprep.mubr.bf16.mxu1 %v22757_v33  ;;  %v7209_v52 = vsel %vm7017_vm4, %v19677_v43, %v5674_v39  ;;  %v7790_v3 = vmul.f32 0.01, %v7662_v50  ;;  %v6830_v40 = vand.u32 3, %v6766_v25  ;;  %v7849_v30 = vsel %vm7721_vm5, %v7657_v32, %v7785_v62 }
 0x392   :  { %v19732_v12 = vpop.f32.mrf.mxu1  ;;  %v7792_v36 = vmul.f32 0.01, %v7664_v44  ;;  %v7851_v42 = vsel %vm7723_vm6, %v7659_v27, %v7787_v60  ;;  %vm7726_vm13 = vcmp.ge.f32.partialorder %v7662_v50, 0.0  ;;  %vm6887_vm9 = vcmp.eq.s32.totalorder %v19696_v55, 0  ;;  %v23023_v55 = vld [vmem:[#allocation71_spill] sm:$0xff] }
 0x393   :  { %v5719_v23 = vpop.f32.mrf.mxu0  ;;  %v7399_v43 = vsel %vm6951_vm7, %v19658_v6, %v7207_v51  ;;  %vm6889_vm12 = vcmp.eq.s32.totalorder %v19713_v34, 0  ;;  %vm7728_vm8 = vcmp.ge.f32.partialorder %v7664_v44, 0.0  ;;  %v7401_v32 = vsel %vm6953_vm10, %v19664_v47, %v7209_v52 }
 0x394   :  { %v5772_v14 = vpop.f32.mrf.mxu1  ;;  %v19762_v18 = vand.u32 3, %v6763_v11  ;;  %vm7020_vm11 = vcmp.eq.s32.totalorder %v6828_v0, 2  ;;  %v7917_v27 = vpack.c.bf16 %v7849_v30, %v7849_v30  ;;  %vm6956_vm14 = vcmp.eq.s32.totalorder %v6828_v0, 1 }
 0x395   :  { %v19741_v16 = vpop.f32.mrf.mxu0  ;;  %14771 = vmatmul.mubr.msk.bf16.gmra.mxu0 %vm22742_vm0, %v19591_v46  ;;  %vm7022_vm15 = vcmp.eq.s32.totalorder %v6830_v40, 2  ;;  %v7919_v25 = vpack.c.bf16 %v7851_v42, %v7851_v42  ;;  %v7854_v62 = vsel %vm7726_vm13, %v7662_v50, %v7790_v3  ;;  %v7591_v6 = vsel %vm6887_vm9, %v19633_v49, %v7399_v43 }
 0x396   :  { %v19746_v45 = vpop.f32.mrf.mxu1  ;;  %14774 = vmatmul.mubr.msk.bf16.gmra.mxu1 %vm22742_vm0, %v19591_v46  ;;  %8525 = vmatprep.mubr.bf16.mxu0 %v22757_v33  ;;  %v6765_v60 = vshra.s32 %v23023_v55, 4  ;;  %vm6958_vm1 = vcmp.eq.s32.totalorder %v6830_v40, 1  ;;  %v7856_v53 = vsel %vm7728_vm8, %v7664_v44, %v7792_v36  ;;  %v7593_v47 = vsel %vm6889_vm12, %v19639_v5, %v7401_v32 }
 0x397   :  { %v5725_v48 = vpop.f32.mrf.mxu0  ;;  %8578 = vmatprep.mubr.bf16.mxu1 %v22757_v33  ;;  %vm6892_vm2 = vcmp.eq.s32.totalorder %v6828_v0, 0  ;;  %vm6894_vm3 = vcmp.eq.s32.totalorder %v6830_v40, 0  ;;  %vm23024_vm4 = vcmask 1043456   ;;  %v7922_v50 = vpack.c.bf16 %v7854_v62, %v7854_v62  ;;  %v23028_v0 = vld [vmem:[#allocation84_spill] sm:$0xff]  ;;  %v23029_v40 = vld [vmem:[#allocation85_spill] sm:$0xff] }
 0x398   :  { %v5778_v39 = vpop.f32.mrf.mxu1  ;;  %v8032_v49 = vsel %vm23024_vm4, %v7917_v27, 0  ;;  %v7661_v44 = vadd.f32 %v19361_v38, %v7591_v6  ;;  %vm23025_vm5 = vmmov %vm23024_vm4  ;;  %v7924_v34 = vpack.c.bf16 %v7856_v53, %v7856_v53  ;;  %vm7019_vm10 = vcmp.eq.s32.totalorder %v19762_v18, 2 }
 0x399   :  { %v5727_v54 = vpop.f32.mrf.mxu0  ;;  %v8038_v5 = vsel %vm23025_vm5, %v7919_v25, 0  ;;  %vm23026_vm6 = vmmov %vm23024_vm4  ;;  %vm6955_vm8 = vcmp.eq.s32.totalorder %v19762_v18, 1 }
 0x39a   :  { %v5780_v41 = vpop.f32.mrf.mxu1  ;;  %vm23027_vm7 = vmmov %vm23024_vm4  ;;  %v7789_v27 = vmul.f32 0.01, %v7661_v44  ;;  %vm7725_vm9 = vcmp.ge.f32.partialorder %v7661_v44, 0.0 }
 0x39b   :  { %v5729_v51 = vpop.f32.mrf.mxu0 }
 0x39c   :  { %v7212_v11 = vsel %vm7020_vm11, %v5725_v48, %v5729_v51  ;;  %v5782_v52 = vpop.f32.mrf.mxu1  ;;  %v19781_v48 = vand.u32 3, %v6765_v60  ;;  %v7211_v51 = vsel %vm7019_vm10, %v19741_v16, %v5727_v54  ;;  %v7853_v16 = vsel %vm7725_vm9, %v7661_v44, %v7789_v27 }
 0x39d   :  { %v7404_v30 = vsel %vm6956_vm14, %v5719_v23, %v7212_v11  ;;  %v7214_v13 = vsel %vm7022_vm15, %v5778_v39, %v5782_v52  ;;  %v19769_v9 = vpop.f32.mrf.mxu0  ;;  %14776 = vmatmul.mubr.msk.bf16.vlgmr.msra.gmra.mxu0 %vm22742_vm0, %v19550_v2  ;;  %v7663_v23 = vadd.f32 %v19361_v38, %v7593_v47  ;;  %vm6891_vm15 = vcmp.eq.s32.totalorder %v19762_v18, 0 }
 0x39e   :  { %v7406_v3 = vsel %vm6958_vm1, %v5772_v14, %v7214_v13  ;;  %v19775_v36 = vpop.f32.mrf.mxu1  ;;  %14779 = vmatmul.mubr.msk.bf16.vlgmr.msra.gmra.mxu1 %vm22742_vm0, %v19550_v2  ;;  %8614 = vmatpush1.bf16.msra.mxu0 %v8032_v49  ;;  %v7596_v42 = vsel %vm6892_vm2, %v19718_v22, %v7404_v30  ;;  %v6768_v22 = vshra.s32 %v23028_v0, 4  ;;  %vm7021_vm13 = vcmp.eq.s32.totalorder %v19781_v48, 2 }
 0x39f   :  { %8667 = vmatpush1.bf16.msra.mxu1 %v8038_v5  ;;  %14787 = vmatprep.subr.msk.bf16.mxu0 %vm23026_vm6, %v7922_v50  ;;  %v19786_v13 = vpop.f32.mrf.mxu0  ;;  %v7598_v14 = vsel %vm6894_vm3, %v19723_v20, %v7406_v3  ;;  %v7666_v39 = vadd.f32 %v19361_v38, %v7596_v42  ;;  %v6770_v20 = vshra.s32 %v23029_v40, 4  ;;  %v7791_v6 = vmul.f32 0.01, %v7663_v23  ;;  %v23030_v5 = vld [vmem:[#allocation82_spill] sm:$0xff] }
 0x3a0   :  { %14790 = vmatprep.subr.msk.bf16.mxu1 %vm23027_vm7, %v7924_v34  ;;  %v19791_v43 = vpop.f32.mrf.mxu1  ;;  %8535 = vmatprep.mubr.bf16.mxu0 %v22757_v33  ;;  %v7668_v25 = vadd.f32 %v19361_v38, %v7598_v14  ;;  %vm7727_vm12 = vcmp.ge.f32.partialorder %v7663_v23, 0.0  ;;  %vm6957_vm11 = vcmp.eq.s32.totalorder %v19781_v48, 1  ;;  %v6832_v11 = vand.u32 3, %v6768_v22  ;;  %v23031_v22 = vld [vmem:[#allocation83_spill] sm:$0xff] }
 0x3a1   :  { %v19794_v53 = vpop.f32.mrf.mxu0  ;;  %8588 = vmatprep.mubr.bf16.mxu1 %v22757_v33  ;;  %v7213_v52 = vsel %vm7021_vm13, %v19746_v45, %v5780_v41  ;;  %v7794_v30 = vmul.f32 0.01, %v7666_v39  ;;  %v6834_v50 = vand.u32 3, %v6770_v20  ;;  %v6767_v34 = vshra.s32 %v23030_v5, 4 }
 0x3a2   :  { %v19800_v32 = vpop.f32.mrf.mxu1  ;;  %v7796_v54 = vmul.f32 0.01, %v7668_v25  ;;  %v7855_v42 = vsel %vm7727_vm12, %v7663_v23, %v7791_v6  ;;  %vm7730_vm14 = vcmp.ge.f32.partialorder %v7666_v39, 0.0  ;;  %v7403_v45 = vsel %vm6955_vm8, %v19726_v26, %v7211_v51 }
 0x3a3   :  { %v5825_v62 = vpop.f32.mrf.mxu0  ;;  %vm6893_vm1 = vcmp.eq.s32.totalorder %v19781_v48, 0  ;;  %vm7732_vm2 = vcmp.ge.f32.partialorder %v7668_v25, 0.0  ;;  %v7405_v44 = vsel %vm6957_vm11, %v19732_v12, %v7213_v52  ;;  %v6769_v20 = vshra.s32 %v23031_v22, 4 }
 0x3a4   :  { %v5878_v60 = vpop.f32.mrf.mxu1  ;;  %vm7024_vm3 = vcmp.eq.s32.totalorder %v6832_v11, 2  ;;  %v7921_v23 = vpack.c.bf16 %v7853_v16, %v7853_v16  ;;  %vm6960_vm4 = vcmp.eq.s32.totalorder %v6832_v11, 1  ;;  %vm7026_vm5 = vcmp.eq.s32.totalorder %v6834_v50, 2 }
 0x3a5   :  { %v19808_v47 = vpop.f32.mrf.mxu0  ;;  %14777 = vmatmul.mubr.msk.bf16.gmra.mxu0 %vm22742_vm0, %v19591_v46  ;;  %v7923_v6 = vpack.c.bf16 %v7855_v42, %v7855_v42  ;;  %v7858_v5 = vsel %vm7730_vm14, %v7666_v39, %v7794_v30  ;;  %v7595_v26 = vsel %vm6891_vm15, %v19701_v19, %v7403_v45  ;;  %v19832_v18 = vand.u32 3, %v6767_v34 }
 0x3a6   :  { %v19813_v49 = vpop.f32.mrf.mxu1  ;;  %14780 = vmatmul.mubr.msk.bf16.gmra.mxu1 %vm22742_vm0, %v19591_v46  ;;  %8631 = vmatprep.mubr.bf16.mxu0 %v22757_v33  ;;  %vm6962_vm6 = vcmp.eq.s32.totalorder %v6834_v50, 1  ;;  %v7860_v40 = vsel %vm7732_vm2, %v7668_v25, %v7796_v54  ;;  %v7597_v12 = vsel %vm6893_vm1, %v19707_v35, %v7405_v44  ;;  %vm6896_vm7 = vcmp.eq.s32.totalorder %v6832_v11, 0  ;;  %v23036_v11 = vld [vmem:[#allocation93_spill] sm:$0xff] }
 0x3a7   :  { %v5831_v3 = vpop.f32.mrf.mxu0  ;;  %8684 = vmatprep.mubr.bf16.mxu1 %v22757_v33  ;;  %vm6898_vm10 = vcmp.eq.s32.totalorder %v6834_v50, 0  ;;  %vm23032_vm13 = vcmask 1043456   ;;  %v7926_v39 = vpack.c.bf16 %v7858_v5, %v7858_v5  ;;  %v7665_v25 = vadd.f32 %v19361_v38, %v7595_v26  ;;  %v23037_v50 = vld [vmem:[#allocation94_spill] sm:$0xff] }
 0x3a8   :  { %v5884_v41 = vpop.f32.mrf.mxu1  ;;  %v8044_v19 = vsel %vm23032_vm13, %v7921_v23, 0  ;;  %vm23033_vm9 = vmmov %vm23032_vm13  ;;  %v7928_v48 = vpack.c.bf16 %v7860_v40, %v7860_v40  ;;  %vm7023_vm11 = vcmp.eq.s32.totalorder %v19832_v18, 2  ;;  %vm6959_vm2 = vcmp.eq.s32.totalorder %v19832_v18, 1 }
 0x3a9   :  { %v5833_v14 = vpop.f32.mrf.mxu0  ;;  %v8050_v35 = vsel %vm23033_vm9, %v7923_v6, 0  ;;  %vm23034_vm12 = vmmov %vm23033_vm9  ;;  %vm7729_vm15 = vcmp.ge.f32.partialorder %v7665_v25, 0.0  ;;  %v23038_v6 = vld [vmem:[#allocation91_spill] sm:$0xff] }
 0x3aa   :  { %v5886_v27 = vpop.f32.mrf.mxu1  ;;  %vm23035_vm8 = vmmov %vm23033_vm9  ;;  %v6771_v26 = vshra.s32 %v23038_v6, 4 }
 0x3ab   :  { %v5835_v51 = vpop.f32.mrf.mxu0 }
 0x3ac   :  { %v7216_v52 = vsel %vm7024_vm3, %v5831_v3, %v5835_v51  ;;  %v5888_v22 = vpop.f32.mrf.mxu1  ;;  %v19849_v3 = vand.u32 3, %v6769_v20  ;;  %v7215_v51 = vsel %vm7023_vm11, %v19808_v47, %v5833_v14 }
 0x3ad   :  { %v7408_v16 = vsel %vm6960_vm4, %v5825_v62, %v7216_v52  ;;  %v7218_v0 = vsel %vm7026_vm5, %v5884_v41, %v5888_v22  ;;  %v19837_v55 = vpop.f32.mrf.mxu0  ;;  %14782 = vmatmul.mubr.msk.bf16.vlgmr.msra.gmra.mxu0 %vm22742_vm0, %v19550_v2  ;;  %v7667_v62 = vadd.f32 %v19361_v38, %v7597_v12  ;;  %v7793_v41 = vmul.f32 0.01, %v7665_v25 }
 0x3ae   :  { %v7410_v30 = vsel %vm6962_vm6, %v5878_v60, %v7218_v0  ;;  %v19843_v54 = vpop.f32.mrf.mxu1  ;;  %14785 = vmatmul.mubr.msk.bf16.vlgmr.msra.gmra.mxu1 %vm22742_vm0, %v19550_v2  ;;  %8720 = vmatpush1.bf16.msra.mxu0 %v8044_v19  ;;  %v7600_v34 = vsel %vm6896_vm7, %v19786_v13, %v7408_v16  ;;  %v6772_v13 = vshra.s32 %v23036_v11, 4  ;;  %vm7025_vm14 = vcmp.eq.s32.totalorder %v19849_v3, 2 }
 0x3af   :  { %8773 = vmatpush1.bf16.msra.mxu1 %v8050_v35  ;;  %14793 = vmatprep.subr.msk.bf16.mxu0 %vm23034_vm12, %v7926_v39  ;;  %v19854_v0 = vpop.f32.mrf.mxu0  ;;  %v7602_v60 = vsel %vm6898_vm10, %v19791_v43, %v7410_v30  ;;  %v7670_v42 = vadd.f32 %v19361_v38, %v7600_v34  ;;  %v6774_v43 = vshra.s32 %v23037_v50, 4  ;;  %v7795_v20 = vmul.f32 0.01, %v7667_v62 }
 0x3b0   :  { %14796 = vmatprep.subr.msk.bf16.mxu1 %vm23035_vm8, %v7928_v48  ;;  %v19859_v5 = vpop.f32.mrf.mxu1  ;;  %8641 = vmatprep.mubr.bf16.mxu0 %v22757_v33  ;;  %v7672_v44 = vadd.f32 %v19361_v38, %v7602_v60  ;;  %vm7731_vm1 = vcmp.ge.f32.partialorder %v7667_v62, 0.0  ;;  %vm6961_vm3 = vcmp.eq.s32.totalorder %v19849_v3, 1  ;;  %v6836_v52 = vand.u32 3, %v6772_v13 }
 0x3b1   :  { %v19862_v40 = vpop.f32.mrf.mxu0  ;;  %8694 = vmatprep.mubr.bf16.mxu1 %v22757_v33  ;;  %v7217_v16 = vsel %vm7025_vm14, %v19813_v49, %v5886_v27  ;;  %v7798_v19 = vmul.f32 0.01, %v7670_v42  ;;  %v6838_v30 = vand.u32 3, %v6774_v43  ;;  %v7857_v47 = vsel %vm7729_vm15, %v7665_v25, %v7793_v41 }
 0x3b2   :  { %v19868_v45 = vpop.f32.mrf.mxu1  ;;  %v7800_v14 = vmul.f32 0.01, %v7672_v44  ;;  %v7859_v48 = vsel %vm7731_vm1, %v7667_v62, %v7795_v20  ;;  %vm7734_vm4 = vcmp.ge.f32.partialorder %v7670_v42, 0.0  ;;  %vm6895_vm5 = vcmp.eq.s32.totalorder %v19832_v18, 0  ;;  %v23039_v18 = vld [vmem:[#allocation92_spill] sm:$0xff] }
 0x3b3   :  { %v5931_v22 = vpop.f32.mrf.mxu0  ;;  %v7407_v49 = vsel %vm6959_vm2, %v19794_v53, %v7215_v51  ;;  %vm6897_vm6 = vcmp.eq.s32.totalorder %v19849_v3, 0  ;;  %vm7736_vm7 = vcmp.ge.f32.partialorder %v7672_v44, 0.0  ;;  %v7409_v25 = vsel %vm6961_vm3, %v19800_v32, %v7217_v16 }
 0x3b4   :  { %v5984_v23 = vpop.f32.mrf.mxu1  ;;  %v19898_v60 = vand.u32 3, %v6771_v26  ;;  %vm7028_vm10 = vcmp.eq.s32.totalorder %v6836_v52, 2  ;;  %v7925_v62 = vpack.c.bf16 %v7857_v47, %v7857_v47  ;;  %vm6964_vm13 = vcmp.eq.s32.totalorder %v6836_v52, 1 }
 0x3b5   :  { %v19877_v12 = vpop.f32.mrf.mxu0  ;;  %14783 = vmatmul.mubr.msk.bf16.gmra.mxu0 %vm22742_vm0, %v19591_v46  ;;  %vm7030_vm9 = vcmp.eq.s32.totalorder %v6838_v30, 2  ;;  %v7927_v43 = vpack.c.bf16 %v7859_v48, %v7859_v48  ;;  %v7862_v41 = vsel %vm7734_vm4, %v7670_v42, %v7798_v19  ;;  %v7599_v53 = vsel %vm6895_vm5, %v19769_v9, %v7407_v49 }
 0x3b6   :  { %v19882_v39 = vpop.f32.mrf.mxu1  ;;  %14786 = vmatmul.mubr.msk.bf16.gmra.mxu1 %vm22742_vm0, %v19591_v46  ;;  %8737 = vmatprep.mubr.bf16.mxu0 %v22757_v33  ;;  %v6773_v20 = vshra.s32 %v23039_v18, 4  ;;  %vm6966_vm12 = vcmp.eq.s32.totalorder %v6838_v30, 1  ;;  %v7864_v6 = vsel %vm7736_vm7, %v7672_v44, %v7800_v14  ;;  %v7601_v32 = vsel %vm6897_vm6, %v19775_v36, %v7409_v25 }
 0x3b7   :  { %v5937_v35 = vpop.f32.mrf.mxu0  ;;  %8790 = vmatprep.mubr.bf16.mxu1 %v22757_v33  ;;  %vm6900_vm8 = vcmp.eq.s32.totalorder %v6836_v52, 0  ;;  %vm6902_vm11 = vcmp.eq.s32.totalorder %v6838_v30, 0  ;;  %vm23040_vm14 = vcmask 1043456   ;;  %v7930_v42 = vpack.c.bf16 %v7862_v41, %v7862_v41  ;;  %v23044_v52 = vld [vmem:[#allocation98_spill] sm:$0xff]  ;;  %v23045_v30 = vld [vmem:[#allocation99_spill] sm:$0xff] }
 0x3b8   :  { %v5990_v27 = vpop.f32.mrf.mxu1  ;;  %v8056_v9 = vsel %vm23040_vm14, %v7925_v62, 0  ;;  %v7669_v44 = vadd.f32 %v19361_v38, %v7599_v53  ;;  %vm23041_vm15 = vmmov %vm23040_vm14  ;;  %v7932_v3 = vpack.c.bf16 %v7864_v6, %v7864_v6  ;;  %vm7027_vm3 = vcmp.eq.s32.totalorder %v19898_v60, 2 }
 0x3b9   :  { %v5939_v34 = vpop.f32.mrf.mxu0  ;;  %v8062_v36 = vsel %vm23041_vm15, %v7927_v43, 0  ;;  %vm23042_vm1 = vmmov %vm23040_vm14  ;;  %vm6963_vm6 = vcmp.eq.s32.totalorder %v19898_v60, 1 }
 0x3ba   :  { %v5992_v13 = vpop.f32.mrf.mxu1  ;;  %vm23043_vm2 = vmmov %vm23042_vm1  ;;  %v7797_v25 = vmul.f32 0.01, %v7669_v44  ;;  %vm7733_vm5 = vcmp.ge.f32.partialorder %v7669_v44, 0.0 }
 0x3bb   :  { %v5941_v51 = vpop.f32.mrf.mxu0 }
 0x3bc   :  { %v7220_v26 = vsel %vm7028_vm10, %v5937_v35, %v5941_v51  ;;  %v5994_v16 = vpop.f32.mrf.mxu1  ;;  %v19917_v35 = vand.u32 3, %v6773_v20  ;;  %v7219_v20 = vsel %vm7027_vm3, %v19877_v12, %v5939_v34  ;;  %v7861_v12 = vsel %vm7733_vm5, %v7669_v44, %v7797_v25 }
 0x3bd   :  { %v7412_v47 = vsel %vm6964_vm13, %v5931_v22, %v7220_v26  ;;  %v7222_v50 = vsel %vm7030_vm9, %v5990_v27, %v5994_v16  ;;  %v19905_v11 = vpop.f32.mrf.mxu0  ;;  %14788 = vmatmul.mubr.msk.bf16.vlgmr.msra.gmra.mxu0 %vm22742_vm0, %v19550_v2  ;;  %v7671_v22 = vadd.f32 %v19361_v38, %v7601_v32  ;;  %v23046_v32 = vld [vmem:[#allocation96_spill] sm:$0xff]  ;;  %vm6899_vm9 = vcmp.eq.s32.totalorder %v19898_v60, 0  ;;  %v23047_v60 = vld [vmem:[#allocation97_spill] sm:$0xff] }
 0x3be   :  { %v7414_v19 = vsel %vm6966_vm12, %v5984_v23, %v7222_v50  ;;  %v19911_v14 = vpop.f32.mrf.mxu1  ;;  %14791 = vmatmul.mubr.msk.bf16.vlgmr.msra.gmra.mxu1 %vm22742_vm0, %v19550_v2  ;;  %8826 = vmatpush1.bf16.msra.mxu0 %v8056_v9  ;;  %v7604_v48 = vsel %vm6900_vm8, %v19854_v0, %v7412_v47  ;;  %v6776_v0 = vshra.s32 %v23044_v52, 4  ;;  %vm7029_vm4 = vcmp.eq.s32.totalorder %v19917_v35, 2 }
 0x3bf   :  { %8879 = vmatpush1.bf16.msra.mxu1 %v8062_v36  ;;  %14799 = vmatprep.subr.msk.bf16.mxu0 %vm23042_vm1, %v7930_v42  ;;  %v19922_v50 = vpop.f32.mrf.mxu0  ;;  %v7606_v23 = vsel %vm6902_vm11, %v19859_v5, %v7414_v19  ;;  %v7674_v49 = vadd.f32 %v19361_v38, %v7604_v48  ;;  %v6778_v5 = vshra.s32 %v23045_v30, 4  ;;  %v7799_v41 = vmul.f32 0.01, %v7671_v22 }
 0x3c0   :  { %14802 = vmatprep.subr.msk.bf16.mxu1 %vm23043_vm2, %v7932_v3  ;;  %v19927_v2 = vpop.f32.mrf.mxu1  ;;  %8747 = vmatprep.mubr.bf16.mxu0 %v22757_v33  ;;  %v7676_v62 = vadd.f32 %v19361_v38, %v7606_v23  ;;  %vm7735_vm7 = vcmp.ge.f32.partialorder %v7671_v22, 0.0  ;;  %vm6965_vm10 = vcmp.eq.s32.totalorder %v19917_v35, 1  ;;  %v6775_v26 = vshra.s32 %v23046_v32, 4 }
 0x3c1   :  { %v19930_v6 = vpop.f32.mrf.mxu0  ;;  %8800 = vmatprep.mubr.bf16.mxu1 %v22757_v33  ;;  %v6840_v16 = vand.u32 3, %v6776_v0  ;;  %v7221_v47 = vsel %vm7029_vm4, %v19882_v39, %v5992_v13  ;;  %v7802_v9 = vmul.f32 0.01, %v7674_v49  ;;  %v6842_v19 = vand.u32 3, %v6778_v5 }
 0x3c2   :  { %v19936_v27 = vpop.f32.mrf.mxu1  ;;  %v7804_v34 = vmul.f32 0.01, %v7676_v62  ;;  %v7863_v3 = vsel %vm7735_vm7, %v7671_v22, %v7799_v41  ;;  %vm7738_vm13 = vcmp.ge.f32.partialorder %v7674_v49, 0.0  ;;  %v7411_v39 = vsel %vm6963_vm6, %v19862_v40, %v7219_v20 }
 0x3c3   :  { %v6037_v43 = vpop.f32.mrf.mxu0  ;;  %vm6901_vm12 = vcmp.eq.s32.totalorder %v19917_v35, 0  ;;  %vm7740_vm8 = vcmp.ge.f32.partialorder %v7676_v62, 0.0  ;;  %v7413_v44 = vsel %vm6965_vm10, %v19868_v45, %v7221_v47  ;;  %v19966_v23 = vand.u32 3, %v6775_v26 }
 0x3c4   :  { %v6090_v53 = vpop.f32.mrf.mxu1  ;;  %vm7032_vm11 = vcmp.eq.s32.totalorder %v6840_v16, 2  ;;  %v7929_v22 = vpack.c.bf16 %v7861_v12, %v7861_v12  ;;  %vm6968_vm14 = vcmp.eq.s32.totalorder %v6840_v16, 1  ;;  %vm7034_vm15 = vcmp.eq.s32.totalorder %v6842_v19, 2 }
 0x3c5   :  { %v19944_v51 = vpop.f32.mrf.mxu0  ;;  %14789 = vmatmul.mubr.msk.bf16.gmra.mxu0 %vm22742_vm0, %v19591_v46  ;;  %v7931_v5 = vpack.c.bf16 %v7863_v3, %v7863_v3  ;;  %v7866_v25 = vsel %vm7738_vm13, %v7674_v49, %v7802_v9  ;;  %v7603_v40 = vsel %vm6899_vm9, %v19837_v55, %v7411_v39  ;;  %v6777_v41 = vshra.s32 %v23047_v60, 4  ;;  %v19975_v49 = vld [vmem:[#allocation9] sm:$0xff]  }
 0x3c6   :  { %v19950_v42 = vpop.f32.mrf.mxu1  ;;  %14792 = vmatmul.mubr.msk.bf16.gmra.mxu1 %vm22742_vm0, %v19591_v46  ;;  %8843 = vmatprep.mubr.bf16.mxu0 %v22757_v33  ;;  %vm6970_vm1 = vcmp.eq.s32.totalorder %v6842_v19, 1  ;;  %v7868_v32 = vsel %vm7740_vm8, %v7676_v62, %v7804_v34  ;;  %v7605_v45 = vsel %vm6901_vm12, %v19843_v54, %v7413_v44  ;;  %vm6904_vm2 = vcmp.eq.s32.totalorder %v6840_v16, 0  ;;  %v23052_v16 = vld [vmem:[#allocation36_spill] sm:$0xff] }
 0x3c7   :  { %v6043_v36 = vpop.f32.mrf.mxu0  ;;  %8896 = vmatprep.mubr.bf16.mxu1 %v22757_v33  ;;  %vm6906_vm3 = vcmp.eq.s32.totalorder %v6842_v19, 0  ;;  %vm23048_vm4 = vcmask 1043456   ;;  %v7934_v62 = vpack.c.bf16 %v7866_v25, %v7866_v25  ;;  %v7673_v9 = vadd.f32 %v19361_v38, %v7603_v40  ;;  %v23053_v19 = vld [vmem:[#allocation40_spill] sm:$0xff] }
 0x3c8   :  { %v6096_v13 = vpop.f32.mrf.mxu1  ;;  %v8068_v55 = vsel %vm23048_vm4, %v7929_v22, 0  ;;  %vm23049_vm5 = vmmov %vm23048_vm4  ;;  %v7936_v34 = vpack.c.bf16 %v7868_v32, %v7868_v32  ;;  %v19987_v3 = vand.u32 3, %v6777_v41  ;;  %vm7031_vm10 = vcmp.eq.s32.totalorder %v19966_v23, 2 }
 0x3c9   :  { %v6045_v48 = vpop.f32.mrf.mxu0  ;;  %vm23050_vm6 = vmmov %vm23048_vm4  ;;  %vm7737_vm9 = vcmp.ge.f32.partialorder %v7673_v9, 0.0  ;;  %vm6967_vm12 = vcmp.eq.s32.totalorder %v19966_v23, 1 }
 0x3ca   :  { %v6098_v0 = vpop.f32.mrf.mxu1  ;;  %vm23051_vm7 = vmmov %vm23048_vm4  ;;  %vm7033_vm13 = vcmp.eq.s32.totalorder %v19987_v3, 2 }
 0x3cb   :  { %v6047_v20 = vpop.f32.mrf.mxu0 }
 0x3cc   :  { %v7224_v26 = vsel %vm7032_vm11, %v6043_v36, %v6047_v20  ;;  %v6100_v47 = vpop.f32.mrf.mxu1  ;;  %v7675_v36 = vadd.f32 %v19361_v38, %v7605_v45  ;;  %v7223_v45 = vsel %vm7031_vm10, %v19944_v51, %v6045_v48  ;;  %vm6969_vm11 = vcmp.eq.s32.totalorder %v19987_v3, 1 }
 0x3cd   :  { %v7416_v12 = vsel %vm6968_vm14, %v6037_v43, %v7224_v26  ;;  %v7226_v30 = vsel %vm7034_vm15, %v6096_v13, %v6100_v47  ;;  %v19973_v52 = vpop.f32.mrf.mxu0  ;;  %14794 = vmatmul.mubr.msk.bf16.vlgmr.msra.gmra.mxu0 %vm22742_vm0, %v19975_v49  ;;  %v8074_v43 = vsel %vm23049_vm5, %v7931_v5, 0  ;;  %v7801_v5 = vmul.f32 0.01, %v7673_v9  ;;  %v23054_v47 = vld [vmem:[#allocation30_spill] sm:$0xff] }
 0x3ce   :  { %v7418_v35 = vsel %vm6970_vm1, %v6090_v53, %v7226_v30  ;;  %v19981_v54 = vpop.f32.mrf.mxu1  ;;  %14797 = vmatmul.mubr.msk.bf16.vlgmr.msra.gmra.mxu1 %vm22742_vm0, %v19975_v49  ;;  %8932 = vmatpush1.bf16.msra.mxu0 %v8068_v55  ;;  %v7608_v39 = vsel %vm6904_vm2, %v19922_v50, %v7416_v12  ;;  %v6780_v50 = vshra.s32 %v23052_v16, 4  ;;  %v7803_v41 = vmul.f32 0.01, %v7675_v36 }
 0x3cf   :  { %8985 = vmatpush1.bf16.msra.mxu1 %v8074_v43  ;;  %14805 = vmatprep.subr.msk.bf16.mxu0 %vm23050_vm6, %v7934_v62  ;;  %v19992_v30 = vpop.f32.mrf.mxu0  ;;  %v7610_v53 = vsel %vm6906_vm3, %v19927_v2, %v7418_v35  ;;  %v7678_v44 = vadd.f32 %v19361_v38, %v7608_v39  ;;  %v6782_v2 = vshra.s32 %v23053_v19, 4  ;;  %vm7739_vm8 = vcmp.ge.f32.partialorder %v7675_v36, 0.0 }
 0x3d0   :  { %14808 = vmatprep.subr.msk.bf16.mxu1 %vm23051_vm7, %v7936_v34  ;;  %v19997_v13 = vpop.f32.mrf.mxu1  ;;  %8853 = vmatprep.mubr.bf16.mxu0 %v22757_v33  ;;  %v7680_v25 = vadd.f32 %v19361_v38, %v7610_v53  ;;  %v6779_v12 = vshra.s32 %v23054_v47, 4  ;;  %v6844_v55 = vand.u32 3, %v6780_v50  ;;  %v7225_v62 = vsel %vm7033_vm13, %v19950_v42, %v6098_v0  ;;  %v20022_v34 = vld [vmem:[#allocation9 + $0x8] sm:$0xff]  }
 0x3d1   :  { %v20000_v32 = vpop.f32.mrf.mxu0  ;;  %8906 = vmatprep.mubr.bf16.mxu1 %v22757_v33  ;;  %v7806_v35 = vmul.f32 0.01, %v7678_v44  ;;  %v6846_v51 = vand.u32 3, %v6782_v2  ;;  %v7865_v48 = vsel %vm7737_vm9, %v7673_v9, %v7801_v5  ;;  %v7867_v53 = vsel %vm7739_vm8, %v7675_v36, %v7803_v41 }
 0x3d2   :  { %v20006_v22 = vpop.f32.mrf.mxu1  ;;  %v7808_v39 = vmul.f32 0.01, %v7680_v25  ;;  %vm7742_vm14 = vcmp.ge.f32.partialorder %v7678_v44, 0.0  ;;  %vm6903_vm15 = vcmp.eq.s32.totalorder %v19966_v23, 0  ;;  %v7415_v42 = vsel %vm6967_vm12, %v19930_v6, %v7223_v45  ;;  %v23055_v23 = vld [vmem:[#allocation37_spill] sm:$0xff] }
 0x3d3   :  { %v6143_v40 = vpop.f32.mrf.mxu0  ;;  %vm6905_vm1 = vcmp.eq.s32.totalorder %v19987_v3, 0  ;;  %vm7744_vm2 = vcmp.ge.f32.partialorder %v7680_v25, 0.0  ;;  %v7417_v9 = vsel %vm6969_vm11, %v19936_v27, %v7225_v62  ;;  %v20038_v2 = vand.u32 3, %v6779_v12 }
 0x3d4   :  { %v6196_v20 = vpop.f32.mrf.mxu1  ;;  %vm7036_vm3 = vcmp.eq.s32.totalorder %v6844_v55, 2  ;;  %v7933_v36 = vpack.c.bf16 %v7865_v48, %v7865_v48  ;;  %vm6972_vm4 = vcmp.eq.s32.totalorder %v6844_v55, 1  ;;  %vm7038_vm5 = vcmp.eq.s32.totalorder %v6846_v51, 2 }
 0x3d5   :  { %v20014_v26 = vpop.f32.mrf.mxu0  ;;  %14795 = vmatmul.mubr.msk.bf16.gmra.mxu0 %vm22742_vm0, %v19591_v46  ;;  %v7935_v41 = vpack.c.bf16 %v7867_v53, %v7867_v53  ;;  %v7870_v47 = vsel %vm7742_vm14, %v7678_v44, %v7806_v35  ;;  %v7607_v6 = vsel %vm6903_vm15, %v19905_v11, %v7415_v42  ;;  %v6781_v45 = vshra.s32 %v23055_v23, 4 }
 0x3d6   :  { %v20020_v43 = vpop.f32.mrf.mxu1  ;;  %14798 = vmatmul.mubr.msk.bf16.gmra.mxu1 %vm22742_vm0, %v20022_v34  ;;  %8949 = vmatprep.mubr.bf16.mxu0 %v22757_v33  ;;  %vm6974_vm6 = vcmp.eq.s32.totalorder %v6846_v51, 1  ;;  %v7872_v16 = vsel %vm7744_vm2, %v7680_v25, %v7808_v39  ;;  %v7609_v27 = vsel %vm6905_vm1, %v19911_v14, %v7417_v9  ;;  %vm6908_vm7 = vcmp.eq.s32.totalorder %v6844_v55, 0  ;;  %v23060_v55 = vld [vmem:[#allocation56_spill] sm:$0xff] }
 0x3d7   :  { %v6149_v46 = vpop.f32.mrf.mxu0  ;;  %9002 = vmatprep.mubr.bf16.mxu1 %v22757_v33  ;;  %vm6910_vm10 = vcmp.eq.s32.totalorder %v6846_v51, 0  ;;  %vm23056_vm13 = vcmask 1043456   ;;  %v7938_v44 = vpack.c.bf16 %v7870_v47, %v7870_v47  ;;  %v7677_v25 = vadd.f32 %v19361_v38, %v7607_v6  ;;  %v23061_v51 = vld [vmem:[#allocation57_spill] sm:$0xff] }
 0x3d8   :  { %v6202_v0 = vpop.f32.mrf.mxu1  ;;  %v8080_v11 = vsel %vm23056_vm13, %v7933_v36, 0  ;;  %vm23057_vm9 = vmmov %vm23056_vm13  ;;  %v7940_v3 = vpack.c.bf16 %v7872_v16, %v7872_v16  ;;  %vm7035_vm11 = vcmp.eq.s32.totalorder %v20038_v2, 2  ;;  %vm6971_vm1 = vcmp.eq.s32.totalorder %v20038_v2, 1 }
 0x3d9   :  { %v6151_v50 = vpop.f32.mrf.mxu0  ;;  %v8086_v14 = vsel %vm23057_vm9, %v7935_v41, 0  ;;  %vm23058_vm12 = vmmov %vm23057_vm9  ;;  %vm7741_vm15 = vcmp.ge.f32.partialorder %v7677_v25, 0.0 }
 0x3da   :  { %v6204_v5 = vpop.f32.mrf.mxu1  ;;  %vm23059_vm8 = vmmov %vm23057_vm9 }
 0x3db   :  { %v6153_v19 = vpop.f32.mrf.mxu0 }
 0x3dc   :  { %v7228_v12 = vsel %vm7036_vm3, %v6149_v46, %v6153_v19  ;;  %v6206_v62 = vpop.f32.mrf.mxu1  ;;  %v7679_v19 = vadd.f32 %v19361_v38, %v7609_v27 }
 0x3dd   :  { %v7420_v48 = vsel %vm6972_vm4, %v6143_v40, %v7228_v12  ;;  %v7230_v60 = vsel %vm7038_vm5, %v6202_v0, %v6206_v62  ;;  %v20045_v18 = vpop.f32.mrf.mxu0  ;;  %14800 = vmatmul.mubr.msk.bf16.vlgmr.msra.gmra.mxu0 %vm22742_vm0, %v19975_v49  ;;  %v20057_v40 = vand.u32 3, %v6781_v45  ;;  %v7805_v0 = vmul.f32 0.01, %v7677_v25  ;;  %v23062_v12 = vld [vmem:[#allocation55_spill] sm:$0xff] }
 0x3de   :  { %v7422_v35 = vsel %vm6974_vm6, %v6196_v20, %v7230_v60  ;;  %v20051_v39 = vpop.f32.mrf.mxu1  ;;  %14803 = vmatmul.mubr.msk.bf16.vlgmr.msra.gmra.mxu1 %vm22742_vm0, %v19975_v49  ;;  %9038 = vmatpush1.bf16.msra.mxu0 %v8080_v11  ;;  %v7612_v46 = vsel %vm6908_vm7, %v19992_v30, %v7420_v48  ;;  %v6784_v30 = vshra.s32 %v23060_v55, 4  ;;  %v7807_v41 = vmul.f32 0.01, %v7679_v19 }
 0x3df   :  { %9091 = vmatpush1.bf16.msra.mxu1 %v8086_v14  ;;  %14811 = vmatprep.subr.msk.bf16.mxu0 %vm23058_vm12, %v7938_v44  ;;  %v20062_v60 = vpop.f32.mrf.mxu0  ;;  %v7614_v20 = vsel %vm6910_vm10, %v19997_v13, %v7422_v35  ;;  %v7682_v53 = vadd.f32 %v19361_v38, %v7612_v46  ;;  %v6786_v13 = vshra.s32 %v23061_v51, 4  ;;  %vm7037_vm14 = vcmp.eq.s32.totalorder %v20057_v40, 2 }
 0x3e0   :  { %14814 = vmatprep.subr.msk.bf16.mxu1 %vm23059_vm8, %v7940_v3  ;;  %v20067_v47 = vpop.f32.mrf.mxu1  ;;  %8959 = vmatprep.mubr.bf16.mxu0 %v22757_v33  ;;  %v7684_v9 = vadd.f32 %v19361_v38, %v7614_v20  ;;  %vm7743_vm2 = vcmp.ge.f32.partialorder %v7679_v19, 0.0  ;;  %v7227_v45 = vsel %vm7035_vm11, %v20014_v26, %v6151_v50  ;;  %vm6973_vm3 = vcmp.eq.s32.totalorder %v20057_v40, 1 }
 0x3e1   :  { %v20070_v16 = vpop.f32.mrf.mxu0  ;;  %9012 = vmatprep.mubr.bf16.mxu1 %v22757_v33  ;;  %v6783_v62 = vshra.s32 %v23062_v12, 4  ;;  %v6848_v48 = vand.u32 3, %v6784_v30  ;;  %v7229_v11 = vsel %vm7037_vm14, %v20020_v43, %v6204_v5  ;;  %v7810_v44 = vmul.f32 0.01, %v7682_v53 }
 0x3e2   :  { %v20076_v42 = vpop.f32.mrf.mxu1  ;;  %v6850_v14 = vand.u32 3, %v6786_v13  ;;  %v7869_v26 = vsel %vm7741_vm15, %v7677_v25, %v7805_v0  ;;  %v7812_v50 = vmul.f32 0.01, %v7684_v9  ;;  %v7871_v46 = vsel %vm7743_vm2, %v7679_v19, %v7807_v41 }
 0x3e3   :  { %v6249_v36 = vpop.f32.mrf.mxu0  ;;  %vm7746_vm4 = vcmp.ge.f32.partialorder %v7682_v53, 0.0  ;;  %vm6907_vm5 = vcmp.eq.s32.totalorder %v20038_v2, 0  ;;  %v7419_v43 = vsel %vm6971_vm1, %v20000_v32, %v7227_v45  ;;  %vm6909_vm6 = vcmp.eq.s32.totalorder %v20057_v40, 0  ;;  %v23063_v2 = vld [vmem:[#allocation54_spill] sm:$0xff] }
 0x3e4   :  { %v6302_v6 = vpop.f32.mrf.mxu1  ;;  %vm7748_vm7 = vcmp.ge.f32.partialorder %v7684_v9, 0.0  ;;  %v7421_v25 = vsel %vm6973_vm3, %v20006_v22, %v7229_v11  ;;  %v20106_v30 = vand.u32 3, %v6783_v62  ;;  %vm7040_vm10 = vcmp.eq.s32.totalorder %v6848_v48, 2 }
 0x3e5   :  { %v20084_v27 = vpop.f32.mrf.mxu0  ;;  %14801 = vmatmul.mubr.msk.bf16.gmra.mxu0 %vm22742_vm0, %v20022_v34  ;;  %v7937_v19 = vpack.c.bf16 %v7869_v26, %v7869_v26  ;;  %vm6976_vm13 = vcmp.eq.s32.totalorder %v6848_v48, 1  ;;  %vm7042_vm9 = vcmp.eq.s32.totalorder %v6850_v14, 2  ;;  %v7939_v0 = vpack.c.bf16 %v7871_v46, %v7871_v46 }
 0x3e6   :  { %v20090_v35 = vpop.f32.mrf.mxu1  ;;  %14804 = vmatmul.mubr.msk.bf16.gmra.mxu1 %vm22742_vm0, %v20022_v34  ;;  %9055 = vmatprep.mubr.bf16.mxu0 %v22757_v33  ;;  %v7874_v41 = vsel %vm7746_vm4, %v7682_v53, %v7810_v44  ;;  %v7611_v32 = vsel %vm6907_vm5, %v19973_v52, %v7419_v43  ;;  %v6785_v45 = vshra.s32 %v23063_v2, 4  ;;  %vm6978_vm12 = vcmp.eq.s32.totalorder %v6850_v14, 1 }
 0x3e7   :  { %v6255_v3 = vpop.f32.mrf.mxu0  ;;  %9108 = vmatprep.mubr.bf16.mxu1 %v22757_v33  ;;  %v7876_v51 = vsel %vm7748_vm7, %v7684_v9, %v7812_v50  ;;  %v7613_v22 = vsel %vm6909_vm6, %v19981_v54, %v7421_v25  ;;  %vm6912_vm8 = vcmp.eq.s32.totalorder %v6848_v48, 0  ;;  %vm6914_vm11 = vcmp.eq.s32.totalorder %v6850_v14, 0  ;;  %v23068_v48 = vld [vmem:[#allocation66_spill] sm:$0xff]  ;;  %v23069_v14 = vld [vmem:[#allocation69_spill] sm:$0xff] }
 0x3e8   :  { %v6308_v5 = vpop.f32.mrf.mxu1  ;;  %vm23064_vm14 = vcmask 1043456   ;;  %v7942_v53 = vpack.c.bf16 %v7874_v41, %v7874_v41  ;;  %v7681_v9 = vadd.f32 %v19361_v38, %v7611_v32  ;;  %v7944_v40 = vpack.c.bf16 %v7876_v51, %v7876_v51 }
 0x3e9   :  { %v6257_v20 = vpop.f32.mrf.mxu0  ;;  %v8092_v52 = vsel %vm23064_vm14, %v7937_v19, 0  ;;  %vm23065_vm15 = vmmov %vm23064_vm14  ;;  %vm7039_vm3 = vcmp.eq.s32.totalorder %v20106_v30, 2  ;;  %vm6975_vm6 = vcmp.eq.s32.totalorder %v20106_v30, 1 }
 0x3ea   :  { %v6310_v13 = vpop.f32.mrf.mxu1  ;;  %v8098_v54 = vsel %vm23065_vm15, %v7939_v0, 0  ;;  %vm23066_vm1 = vmmov %vm23064_vm14  ;;  %v7809_v25 = vmul.f32 0.01, %v7681_v9  ;;  %vm7745_vm5 = vcmp.ge.f32.partialorder %v7681_v9, 0.0 }
 0x3eb   :  { %v6259_v12 = vpop.f32.mrf.mxu0  ;;  %vm23067_vm2 = vmmov %vm23066_vm1 }
 0x3ec   :  { %v7232_v62 = vsel %vm7040_vm10, %v6255_v3, %v6259_v12  ;;  %v6312_v11 = vpop.f32.mrf.mxu1  ;;  %v20125_v12 = vand.u32 3, %v6785_v45  ;;  %v7231_v45 = vsel %vm7039_vm3, %v20084_v27, %v6257_v20  ;;  %v7873_v27 = vsel %vm7745_vm5, %v7681_v9, %v7809_v25 }
 0x3ed   :  { %v7424_v26 = vsel %vm6976_vm13, %v6249_v36, %v7232_v62  ;;  %v7234_v55 = vsel %vm7042_vm9, %v6308_v5, %v6312_v11  ;;  %v20113_v23 = vpop.f32.mrf.mxu0  ;;  %14806 = vmatmul.mubr.msk.bf16.vlgmr.msra.gmra.mxu0 %vm22742_vm0, %v19975_v49  ;;  %v7683_v36 = vadd.f32 %v19361_v38, %v7613_v22  ;;  %v23070_v62 = vld [vmem:[#allocation64_spill] sm:$0xff]  ;;  %vm6911_vm9 = vcmp.eq.s32.totalorder %v20106_v30, 0  ;;  %v23071_v30 = vld [vmem:[#allocation67_spill] sm:$0xff] }
 0x3ee   :  { %v7426_v44 = vsel %vm6978_vm12, %v6302_v6, %v7234_v55  ;;  %v20119_v50 = vpop.f32.mrf.mxu1  ;;  %14809 = vmatmul.mubr.msk.bf16.vlgmr.msra.gmra.mxu1 %vm22742_vm0, %v19975_v49  ;;  %9144 = vmatpush1.bf16.msra.mxu0 %v8092_v52  ;;  %v7616_v3 = vsel %vm6912_vm8, %v20062_v60, %v7424_v26  ;;  %v6788_v60 = vshra.s32 %v23068_v48, 4  ;;  %vm7041_vm4 = vcmp.eq.s32.totalorder %v20125_v12, 2 }
 0x3ef   :  { %9197 = vmatpush1.bf16.msra.mxu1 %v8098_v54  ;;  %14817 = vmatprep.subr.msk.bf16.mxu0 %vm23066_vm1, %v7942_v53  ;;  %v20130_v55 = vpop.f32.mrf.mxu0  ;;  %v7618_v6 = vsel %vm6914_vm11, %v20067_v47, %v7426_v44  ;;  %v7686_v43 = vadd.f32 %v19361_v38, %v7616_v3  ;;  %v6790_v47 = vshra.s32 %v23069_v14, 4  ;;  %v7811_v41 = vmul.f32 0.01, %v7683_v36 }
 0x3f0   :  { %14820 = vmatprep.subr.msk.bf16.mxu1 %vm23067_vm2, %v7944_v40  ;;  %v20135_v46 = vpop.f32.mrf.mxu1  ;;  %9065 = vmatprep.mubr.bf16.mxu0 %v22757_v33  ;;  %v7688_v19 = vadd.f32 %v19361_v38, %v7618_v6  ;;  %vm7747_vm7 = vcmp.ge.f32.partialorder %v7683_v36, 0.0  ;;  %vm6977_vm10 = vcmp.eq.s32.totalorder %v20125_v12, 1  ;;  %v6787_v11 = vshra.s32 %v23070_v62, 4 }
 0x3f1   :  { %v20138_v51 = vpop.f32.mrf.mxu0  ;;  %9118 = vmatprep.mubr.bf16.mxu1 %v22757_v33  ;;  %v6852_v26 = vand.u32 3, %v6788_v60  ;;  %v7233_v52 = vsel %vm7041_vm4, %v20090_v35, %v6310_v13  ;;  %v7814_v53 = vmul.f32 0.01, %v7686_v43  ;;  %v6854_v54 = vand.u32 3, %v6790_v47 }
 0x3f2   :  { %v20144_v5 = vpop.f32.mrf.mxu1  ;;  %v7816_v20 = vmul.f32 0.01, %v7688_v19  ;;  %v7875_v3 = vsel %vm7747_vm7, %v7683_v36, %v7811_v41  ;;  %vm7750_vm13 = vcmp.ge.f32.partialorder %v7686_v43, 0.0  ;;  %v7423_v35 = vsel %vm6975_vm6, %v20070_v16, %v7231_v45 }
 0x3f3   :  { %v6355_v0 = vpop.f32.mrf.mxu0  ;;  %vm6913_vm12 = vcmp.eq.s32.totalorder %v20125_v12, 0  ;;  %vm7752_vm8 = vcmp.ge.f32.partialorder %v7688_v19, 0.0  ;;  %v7425_v9 = vsel %vm6977_vm10, %v20076_v42, %v7233_v52  ;;  %v20174_v60 = vand.u32 3, %v6787_v11 }
 0x3f4   :  { %v6408_v32 = vpop.f32.mrf.mxu1  ;;  %vm7044_vm11 = vcmp.eq.s32.totalorder %v6852_v26, 2  ;;  %v7941_v36 = vpack.c.bf16 %v7873_v27, %v7873_v27  ;;  %vm6980_vm14 = vcmp.eq.s32.totalorder %v6852_v26, 1  ;;  %vm7046_vm15 = vcmp.eq.s32.totalorder %v6854_v54, 2 }
 0x3f5   :  { %v20152_v22 = vpop.f32.mrf.mxu0  ;;  %14807 = vmatmul.mubr.msk.bf16.gmra.mxu0 %vm22742_vm0, %v20022_v34  ;;  %v7943_v25 = vpack.c.bf16 %v7875_v3, %v7875_v3  ;;  %v7878_v41 = vsel %vm7750_vm13, %v7686_v43, %v7814_v53  ;;  %v7615_v16 = vsel %vm6911_vm9, %v20045_v18, %v7423_v35  ;;  %v6789_v45 = vshra.s32 %v23071_v30, 4 }
 0x3f6   :  { %v20158_v44 = vpop.f32.mrf.mxu1  ;;  %14810 = vmatmul.mubr.msk.bf16.gmra.mxu1 %vm22742_vm0, %v20022_v34  ;;  %9161 = vmatprep.mubr.bf16.mxu0 %v22757_v33  ;;  %vm6982_vm1 = vcmp.eq.s32.totalorder %v6854_v54, 1  ;;  %v7880_v14 = vsel %vm7752_vm8, %v7688_v19, %v7816_v20  ;;  %v7617_v42 = vsel %vm6913_vm12, %v20051_v39, %v7425_v9  ;;  %vm6916_vm2 = vcmp.eq.s32.totalorder %v6852_v26, 0  ;;  %v23076_v26 = vld [vmem:[#allocation74_spill] sm:$0xff] }
 0x3f7   :  { %v6361_v40 = vpop.f32.mrf.mxu0  ;;  %9214 = vmatprep.mubr.bf16.mxu1 %v22757_v33  ;;  %vm6918_vm3 = vcmp.eq.s32.totalorder %v6854_v54, 0  ;;  %vm23072_vm4 = vcmask 1043456   ;;  %v7946_v43 = vpack.c.bf16 %v7878_v41, %v7878_v41  ;;  %v7685_v19 = vadd.f32 %v19361_v38, %v7615_v16  ;;  %v23077_v54 = vld [vmem:[#allocation77_spill] sm:$0xff] }
 0x3f8   :  { %v6414_v13 = vpop.f32.mrf.mxu1  ;;  %v8104_v18 = vsel %vm23072_vm4, %v7941_v36, 0  ;;  %vm23073_vm5 = vmmov %vm23072_vm4  ;;  %v7948_v12 = vpack.c.bf16 %v7880_v14, %v7880_v14  ;;  %vm7043_vm10 = vcmp.eq.s32.totalorder %v20174_v60, 2  ;;  %vm6979_vm12 = vcmp.eq.s32.totalorder %v20174_v60, 1 }
 0x3f9   :  { %v6363_v6 = vpop.f32.mrf.mxu0  ;;  %v8110_v39 = vsel %vm23073_vm5, %v7943_v25, 0  ;;  %vm23074_vm6 = vmmov %vm23072_vm4  ;;  %v7813_v9 = vmul.f32 0.01, %v7685_v19  ;;  %vm7749_vm9 = vcmp.ge.f32.partialorder %v7685_v19, 0.0 }
 0x3fa   :  { %v6416_v47 = vpop.f32.mrf.mxu1  ;;  %vm23075_vm7 = vmmov %vm23072_vm4 }
 0x3fb   :  { %v6365_v62 = vpop.f32.mrf.mxu0 }
 0x3fc   :  { %v7236_v11 = vsel %vm7044_vm11, %v6361_v40, %v6365_v62  ;;  %v6418_v52 = vpop.f32.mrf.mxu1  ;;  %v20193_v62 = vand.u32 3, %v6789_v45  ;;  %v7235_v45 = vsel %vm7043_vm10, %v20152_v22, %v6363_v6  ;;  %v7877_v22 = vsel %vm7749_vm9, %v7685_v19, %v7813_v9 }
 0x3fd   :  { %v7428_v27 = vsel %vm6980_vm14, %v6355_v0, %v7236_v11  ;;  %v7238_v48 = vsel %vm7046_vm15, %v6414_v13, %v6418_v52  ;;  %v20181_v2 = vpop.f32.mrf.mxu0  ;;  %14812 = vmatmul.mubr.msk.bf16.vlgmr.msra.gmra.mxu0 %vm22742_vm0, %v19975_v49  ;;  %v7687_v0 = vadd.f32 %v19361_v38, %v7617_v42  ;;  %v23078_v11 = vld [vmem:[#allocation68_spill] sm:$0xff]  ;;  %vm6915_vm15 = vcmp.eq.s32.totalorder %v20174_v60, 0  ;;  %v23079_v60 = vld [vmem:[#allocation75_spill] sm:$0xff] }
 0x3fe   :  { %v7430_v53 = vsel %vm6982_vm1, %v6408_v32, %v7238_v48  ;;  %v20187_v20 = vpop.f32.mrf.mxu1  ;;  %14815 = vmatmul.mubr.msk.bf16.vlgmr.msra.gmra.mxu1 %vm22742_vm0, %v19975_v49  ;;  %9250 = vmatpush1.bf16.msra.mxu0 %v8104_v18  ;;  %v7620_v40 = vsel %vm6916_vm2, %v20130_v55, %v7428_v27  ;;  %v6792_v55 = vshra.s32 %v23076_v26, 4  ;;  %vm7045_vm13 = vcmp.eq.s32.totalorder %v20193_v62, 2 }
 0x3ff   :  { %9303 = vmatpush1.bf16.msra.mxu1 %v8110_v39  ;;  %14823 = vmatprep.subr.msk.bf16.mxu0 %vm23074_vm6, %v7946_v43  ;;  %v20198_v48 = vpop.f32.mrf.mxu0  ;;  %v7622_v32 = vsel %vm6918_vm3, %v20135_v46, %v7430_v53  ;;  %v7690_v35 = vadd.f32 %v19361_v38, %v7620_v40  ;;  %v6794_v46 = vshra.s32 %v23077_v54, 4  ;;  %v7815_v41 = vmul.f32 0.01, %v7687_v0 }
 0x400   :  { %14826 = vmatprep.subr.msk.bf16.mxu1 %vm23075_vm7, %v7948_v12  ;;  %v20203_v3 = vpop.f32.mrf.mxu1  ;;  %9171 = vmatprep.mubr.bf16.mxu0 %v22757_v33  ;;  %v7692_v36 = vadd.f32 %v19361_v38, %v7622_v32  ;;  %vm7751_vm8 = vcmp.ge.f32.partialorder %v7687_v0, 0.0  ;;  %vm6981_vm11 = vcmp.eq.s32.totalorder %v20193_v62, 1  ;;  %v6791_v52 = vshra.s32 %v23078_v11, 4 }
 0x401   :  { %v20206_v14 = vpop.f32.mrf.mxu0  ;;  %9224 = vmatprep.mubr.bf16.mxu1 %v22757_v33  ;;  %v6856_v27 = vand.u32 3, %v6792_v55  ;;  %v7237_v18 = vsel %vm7045_vm13, %v20158_v44, %v6416_v47  ;;  %v7818_v43 = vmul.f32 0.01, %v7690_v35  ;;  %v6858_v39 = vand.u32 3, %v6794_v46 }
 0x402   :  { %v20212_v13 = vpop.f32.mrf.mxu1  ;;  %v7820_v6 = vmul.f32 0.01, %v7692_v36  ;;  %v7879_v40 = vsel %vm7751_vm8, %v7687_v0, %v7815_v41  ;;  %vm7754_vm14 = vcmp.ge.f32.partialorder %v7690_v35, 0.0  ;;  %v7427_v44 = vsel %vm6979_vm12, %v20138_v51, %v7235_v45 }
 0x403   :  { %v6461_v25 = vpop.f32.mrf.mxu0  ;;  %vm6917_vm1 = vcmp.eq.s32.totalorder %v20193_v62, 0  ;;  %vm7756_vm2 = vcmp.ge.f32.partialorder %v7692_v36, 0.0  ;;  %v7429_v19 = vsel %vm6981_vm11, %v20144_v5, %v7237_v18  ;;  %v20242_v55 = vand.u32 3, %v6791_v52 }
 0x404   :  { %v6514_v16 = vpop.f32.mrf.mxu1  ;;  %vm7048_vm3 = vcmp.eq.s32.totalorder %v6856_v27, 2  ;;  %v7945_v0 = vpack.c.bf16 %v7877_v22, %v7877_v22  ;;  %vm6984_vm4 = vcmp.eq.s32.totalorder %v6856_v27, 1  ;;  %vm7050_vm5 = vcmp.eq.s32.totalorder %v6858_v39, 2 }
 0x405   :  { %v20220_v42 = vpop.f32.mrf.mxu0  ;;  %14813 = vmatmul.mubr.msk.bf16.gmra.mxu0 %vm22742_vm0, %v20022_v34  ;;  %v7947_v9 = vpack.c.bf16 %v7879_v40, %v7879_v40  ;;  %v7882_v41 = vsel %vm7754_vm14, %v7690_v35, %v7818_v43  ;;  %v7619_v51 = vsel %vm6915_vm15, %v20113_v23, %v7427_v44  ;;  %v6793_v45 = vshra.s32 %v23079_v60, 4 }
 0x406   :  { %v20226_v53 = vpop.f32.mrf.mxu1  ;;  %14816 = vmatmul.mubr.msk.bf16.gmra.mxu1 %vm22742_vm0, %v20022_v34  ;;  %9267 = vmatprep.mubr.bf16.mxu0 %v22757_v33  ;;  %vm6986_vm6 = vcmp.eq.s32.totalorder %v6858_v39, 1  ;;  %v7884_v54 = vsel %vm7756_vm2, %v7692_v36, %v7820_v6  ;;  %v7621_v5 = vsel %vm6917_vm1, %v20119_v50, %v7429_v19  ;;  %vm6920_vm7 = vcmp.eq.s32.totalorder %v6856_v27, 0  ;;  %v23084_v27 = vld [vmem:[#allocation78_spill] sm:$0xff] }
 0x407   :  { %v6467_v12 = vpop.f32.mrf.mxu0  ;;  %9320 = vmatprep.mubr.bf16.mxu1 %v22757_v33  ;;  %vm6922_vm10 = vcmp.eq.s32.totalorder %v6858_v39, 0  ;;  %vm23080_vm13 = vcmask 1043456   ;;  %v7950_v35 = vpack.c.bf16 %v7882_v41, %v7882_v41  ;;  %v7689_v36 = vadd.f32 %v19361_v38, %v7619_v51  ;;  %v23085_v39 = vld [vmem:[#allocation81_spill] sm:$0xff] }
 0x408   :  { %v6520_v47 = vpop.f32.mrf.mxu1  ;;  %v8116_v23 = vsel %vm23080_vm13, %v7945_v0, 0  ;;  %vm23081_vm9 = vmmov %vm23080_vm13  ;;  %v7952_v62 = vpack.c.bf16 %v7884_v54, %v7884_v54  ;;  %vm7047_vm11 = vcmp.eq.s32.totalorder %v20242_v55, 2  ;;  %vm6983_vm1 = vcmp.eq.s32.totalorder %v20242_v55, 1 }
 0x409   :  { %v6469_v32 = vpop.f32.mrf.mxu0  ;;  %v8122_v50 = vsel %vm23081_vm9, %v7947_v9, 0  ;;  %vm23082_vm12 = vmmov %vm23081_vm9  ;;  %v7817_v19 = vmul.f32 0.01, %v7689_v36  ;;  %vm7753_vm15 = vcmp.ge.f32.partialorder %v7689_v36, 0.0 }
 0x40a   :  { %v6522_v46 = vpop.f32.mrf.mxu1  ;;  %vm23083_vm8 = vmmov %vm23081_vm9 }
 0x40b   :  { %v6471_v11 = vpop.f32.mrf.mxu0 }
 0x40c   :  { %v7240_v52 = vsel %vm7048_vm3, %v6467_v12, %v6471_v11  ;;  %v6524_v18 = vpop.f32.mrf.mxu1  ;;  %v20261_v11 = vand.u32 3, %v6793_v45  ;;  %v7239_v45 = vsel %vm7047_vm11, %v20220_v42, %v6469_v32  ;;  %v7881_v42 = vsel %vm7753_vm15, %v7689_v36, %v7817_v19 }
 0x40d   :  { %v7432_v22 = vsel %vm6984_vm4, %v6461_v25, %v7240_v52  ;;  %v7242_v26 = vsel %vm7050_vm5, %v6520_v47, %v6524_v18  ;;  %v20249_v30 = vpop.f32.mrf.mxu0  ;;  %14818 = vmatmul.mubr.msk.bf16.vlgmr.msra.gmra.mxu0 %vm22742_vm0, %v19975_v49  ;;  %v7691_v25 = vadd.f32 %v19361_v38, %v7621_v5  ;;  %v23086_v52 = vld [vmem:[#allocation76_spill] sm:$0xff]  ;;  %vm6919_vm5 = vcmp.eq.s32.totalorder %v20242_v55, 0  ;;  %v23087_v55 = vld [vmem:[#allocation79_spill] sm:$0xff] }
 0x40e   :  { %v7434_v43 = vsel %vm6986_vm6, %v6514_v16, %v7242_v26  ;;  %v20255_v6 = vpop.f32.mrf.mxu1  ;;  %14821 = vmatmul.mubr.msk.bf16.vlgmr.msra.gmra.mxu1 %vm22742_vm0, %v19975_v49  ;;  %9356 = vmatpush1.bf16.msra.mxu0 %v8116_v23  ;;  %v7624_v12 = vsel %vm6920_vm7, %v20198_v48, %v7432_v22  ;;  %v6796_v48 = vshra.s32 %v23084_v27, 4  ;;  %vm7049_vm14 = vcmp.eq.s32.totalorder %v20261_v11, 2 }
 0x40f   :  { %9409 = vmatpush1.bf16.msra.mxu1 %v8122_v50  ;;  %14829 = vmatprep.subr.msk.bf16.mxu0 %vm23082_vm12, %v7950_v35  ;;  %v20266_v26 = vpop.f32.mrf.mxu0  ;;  %v7626_v16 = vsel %vm6922_vm10, %v20203_v3, %v7434_v43  ;;  %v7694_v44 = vadd.f32 %v19361_v38, %v7624_v12  ;;  %v6798_v3 = vshra.s32 %v23085_v39, 4  ;;  %v7819_v41 = vmul.f32 0.01, %v7691_v25 }
 0x410   :  { %14832 = vmatprep.subr.msk.bf16.mxu1 %vm23083_vm8, %v7952_v62  ;;  %v20271_v40 = vpop.f32.mrf.mxu1  ;;  %9277 = vmatprep.mubr.bf16.mxu0 %v22757_v33  ;;  %v7696_v0 = vadd.f32 %v19361_v38, %v7626_v16  ;;  %vm7755_vm2 = vcmp.ge.f32.partialorder %v7691_v25, 0.0  ;;  %vm6985_vm3 = vcmp.eq.s32.totalorder %v20261_v11, 1  ;;  %v6795_v18 = vshra.s32 %v23086_v52, 4 }
 0x411   :  { %v20274_v54 = vpop.f32.mrf.mxu0  ;;  %9330 = vmatprep.mubr.bf16.mxu1 %v22757_v33  ;;  %v6860_v22 = vand.u32 3, %v6796_v48  ;;  %v7241_v23 = vsel %vm7049_vm14, %v20226_v53, %v6522_v46  ;;  %v7822_v35 = vmul.f32 0.01, %v7694_v44  ;;  %v6862_v50 = vand.u32 3, %v6798_v3 }
 0x412   :  { %v20280_v47 = vpop.f32.mrf.mxu1  ;;  %v7824_v32 = vmul.f32 0.01, %v7696_v0  ;;  %v7883_v12 = vsel %vm7755_vm2, %v7691_v25, %v7819_v41  ;;  %vm7758_vm4 = vcmp.ge.f32.partialorder %v7694_v44, 0.0  ;;  %v7431_v53 = vsel %vm6983_vm1, %v20206_v14, %v7239_v45 }
 0x413   :  { %v6567_v9 = vpop.f32.mrf.mxu0  ;;  %vm6921_vm6 = vcmp.eq.s32.totalorder %v20261_v11, 0  ;;  %vm7760_vm7 = vcmp.ge.f32.partialorder %v7696_v0, 0.0  ;;  %v7433_v36 = vsel %vm6985_vm3, %v20212_v13, %v7241_v23  ;;  %v20310_v48 = vand.u32 3, %v6795_v18 }
 0x414   :  { %v6620_v51 = vpop.f32.mrf.mxu1  ;;  %vm7052_vm10 = vcmp.eq.s32.totalorder %v6860_v22, 2  ;;  %v7949_v25 = vpack.c.bf16 %v7881_v42, %v7881_v42  ;;  %vm6988_vm13 = vcmp.eq.s32.totalorder %v6860_v22, 1  ;;  %vm7054_vm9 = vcmp.eq.s32.totalorder %v6862_v50, 2 }
 0x415   :  { %v20288_v5 = vpop.f32.mrf.mxu0  ;;  %14819 = vmatmul.mubr.msk.bf16.gmra.mxu0 %vm22742_vm0, %v20022_v34  ;;  %v7951_v19 = vpack.c.bf16 %v7883_v12, %v7883_v12  ;;  %v7886_v41 = vsel %vm7758_vm4, %v7694_v44, %v7822_v35  ;;  %v7623_v14 = vsel %vm6919_vm5, %v20181_v2, %v7431_v53  ;;  %v6797_v45 = vshra.s32 %v23087_v55, 4 }
 0x416   :  { %v20294_v43 = vpop.f32.mrf.mxu1  ;;  %14822 = vmatmul.mubr.msk.bf16.gmra.mxu1 %vm22742_vm0, %v20022_v34  ;;  %9373 = vmatprep.mubr.bf16.mxu0 %v22757_v33  ;;  %vm6990_vm12 = vcmp.eq.s32.totalorder %v6862_v50, 1  ;;  %v7888_v39 = vsel %vm7760_vm7, %v7696_v0, %v7824_v32  ;;  %v7625_v13 = vsel %vm6921_vm6, %v20187_v20, %v7433_v36  ;;  %vm6924_vm8 = vcmp.eq.s32.totalorder %v6860_v22, 0  ;;  %v23092_v22 = vld [vmem:[#allocation86_spill] sm:$0xff] }
 0x417   :  { %v6573_v62 = vpop.f32.mrf.mxu0  ;;  %9426 = vmatprep.mubr.bf16.mxu1 %v22757_v33  ;;  %vm6926_vm11 = vcmp.eq.s32.totalorder %v6862_v50, 0  ;;  %vm23088_vm14 = vcmask 1043456   ;;  %v7954_v44 = vpack.c.bf16 %v7886_v41, %v7886_v41  ;;  %v7693_v0 = vadd.f32 %v19361_v38, %v7623_v14  ;;  %v23093_v50 = vld [vmem:[#allocation88_spill] sm:$0xff] }
 0x418   :  { %v6626_v46 = vpop.f32.mrf.mxu1  ;;  %v8128_v2 = vsel %vm23088_vm14, %v7949_v25, 0  ;;  %vm23089_vm15 = vmmov %vm23088_vm14  ;;  %v7956_v11 = vpack.c.bf16 %v7888_v39, %v7888_v39  ;;  %vm7051_vm3 = vcmp.eq.s32.totalorder %v20310_v48, 2  ;;  %vm6987_vm6 = vcmp.eq.s32.totalorder %v20310_v48, 1 }
 0x419   :  { %v6575_v16 = vpop.f32.mrf.mxu0  ;;  %v8134_v20 = vsel %vm23089_vm15, %v7951_v19, 0  ;;  %vm23090_vm1 = vmmov %vm23088_vm14  ;;  %v7821_v36 = vmul.f32 0.01, %v7693_v0  ;;  %vm7757_vm5 = vcmp.ge.f32.partialorder %v7693_v0, 0.0 }
 0x41a   :  { %v6628_v3 = vpop.f32.mrf.mxu1  ;;  %vm23091_vm2 = vmmov %vm23090_vm1 }
 0x41b   :  { %v6577_v52 = vpop.f32.mrf.mxu0 }
 0x41c   :  { %v7244_v18 = vsel %vm7052_vm10, %v6573_v62, %v6577_v52  ;;  %v6630_v23 = vpop.f32.mrf.mxu1  ;;  %v20329_v52 = vand.u32 3, %v6797_v45  ;;  %v7243_v45 = vsel %vm7051_vm3, %v20288_v5, %v6575_v16  ;;  %v7885_v5 = vsel %vm7757_vm5, %v7693_v0, %v7821_v36 }
 0x41d   :  { %v7436_v42 = vsel %vm6988_vm13, %v6567_v9, %v7244_v18  ;;  %v7246_v27 = vsel %vm7054_vm9, %v6626_v46, %v6630_v23  ;;  %v20317_v60 = vpop.f32.mrf.mxu0  ;;  %14824 = vmatmul.mubr.msk.bf16.vlgmr.msra.gmra.mxu0 %vm22742_vm0, %v19975_v49  ;;  %v7695_v9 = vadd.f32 %v19361_v38, %v7625_v13  ;;  %v23094_v18 = vld [vmem:[#allocation87_spill] sm:$0xff]  ;;  %vm6923_vm9 = vcmp.eq.s32.totalorder %v20310_v48, 0 }
 0x41e   :  { %v7438_v35 = vsel %vm6990_vm12, %v6620_v51, %v7246_v27  ;;  %v20323_v32 = vpop.f32.mrf.mxu1  ;;  %14827 = vmatmul.mubr.msk.bf16.vlgmr.msra.gmra.mxu1 %vm22742_vm0, %v19975_v49  ;;  %9462 = vmatpush1.bf16.msra.mxu0 %v8128_v2  ;;  %v7628_v62 = vsel %vm6924_vm8, %v20266_v26, %v7436_v42  ;;  %v6800_v26 = vshra.s32 %v23092_v22, 4  ;;  %vm7053_vm4 = vcmp.eq.s32.totalorder %v20329_v52, 2 }
 0x41f   :  { %9515 = vmatpush1.bf16.msra.mxu1 %v8134_v20  ;;  %14835 = vmatprep.subr.msk.bf16.mxu0 %vm23090_vm1, %v7954_v44  ;;  %v20334_v27 = vpop.f32.mrf.mxu0  ;;  %v7630_v51 = vsel %vm6926_vm11, %v20271_v40, %v7438_v35  ;;  %v7698_v53 = vadd.f32 %v19361_v38, %v7628_v62  ;;  %v6802_v40 = vshra.s32 %v23093_v50, 4  ;;  %v7823_v41 = vmul.f32 0.01, %v7695_v9 }
 0x420   :  { %14838 = vmatprep.subr.msk.bf16.mxu1 %vm23091_vm2, %v7956_v11  ;;  %v20339_v12 = vpop.f32.mrf.mxu1  ;;  %9383 = vmatprep.mubr.bf16.mxu0 %v22757_v33  ;;  %v7700_v25 = vadd.f32 %v19361_v38, %v7630_v51  ;;  %vm7759_vm7 = vcmp.ge.f32.partialorder %v7695_v9, 0.0  ;;  %vm6989_vm10 = vcmp.eq.s32.totalorder %v20329_v52, 1  ;;  %v6799_v23 = vshra.s32 %v23094_v18, 4 }
 0x421   :  { %v20342_v39 = vpop.f32.mrf.mxu0  ;;  %9436 = vmatprep.mubr.bf16.mxu1 %v22757_v33  ;;  %v6864_v42 = vand.u32 3, %v6800_v26  ;;  %v7245_v2 = vsel %vm7053_vm4, %v20294_v43, %v6628_v3  ;;  %v7826_v44 = vmul.f32 0.01, %v7698_v53  ;;  %v6866_v20 = vand.u32 3, %v6802_v40 }
 0x422   :  { %v20348_v46 = vpop.f32.mrf.mxu1  ;;  %v7828_v16 = vmul.f32 0.01, %v7700_v25  ;;  %v7887_v62 = vsel %vm7759_vm7, %v7695_v9, %v7823_v41  ;;  %vm7762_vm13 = vcmp.ge.f32.partialorder %v7698_v53, 0.0  ;;  %v7435_v43 = vsel %vm6987_vm6, %v20274_v54, %v7243_v45 }
 0x423   :  { %v6673_v19 = vpop.f32.mrf.mxu0  ;;  %vm6925_vm12 = vcmp.eq.s32.totalorder %v20329_v52, 0  ;;  %vm7764_vm8 = vcmp.ge.f32.partialorder %v7700_v25, 0.0  ;;  %v7437_v0 = vsel %vm6989_vm10, %v20280_v47, %v7245_v2  ;;  %v20378_v26 = vand.u32 3, %v6799_v23 }
 0x424   :  { %v6726_v14 = vpop.f32.mrf.mxu1  ;;  %vm7056_vm11 = vcmp.eq.s32.totalorder %v6864_v42, 2  ;;  %v7953_v9 = vpack.c.bf16 %v7885_v5, %v7885_v5  ;;  %vm6992_vm14 = vcmp.eq.s32.totalorder %v6864_v42, 1  ;;  %vm7058_vm15 = vcmp.eq.s32.totalorder %v6866_v20, 2 }
 0x425   :  { %v20356_v13 = vpop.f32.mrf.mxu0  ;;  %14825 = vmatmul.mubr.msk.bf16.gmra.mxu0 %vm22742_vm0, %v20022_v34  ;;  %v7955_v36 = vpack.c.bf16 %v7887_v62, %v7887_v62  ;;  %v7890_v41 = vsel %vm7762_vm13, %v7698_v53, %v7826_v44  ;;  %v7627_v54 = vsel %vm6923_vm9, %v20249_v30, %v7435_v43  ;;  %v6801_v48 = vshra.s32 %v19177_v17, 4 }
 0x426   :  { %v20362_v35 = vpop.f32.mrf.mxu1  ;;  %14828 = vmatmul.mubr.msk.bf16.gmra.mxu1 %vm22742_vm0, %v20022_v34  ;;  %9479 = vmatprep.mubr.bf16.mxu0 %v22757_v33  ;;  %vm6994_vm1 = vcmp.eq.s32.totalorder %v6866_v20, 1  ;;  %v7892_v50 = vsel %vm7764_vm8, %v7700_v25, %v7828_v16  ;;  %v7629_v47 = vsel %vm6925_vm12, %v20255_v6, %v7437_v0  ;;  %vm6928_vm2 = vcmp.eq.s32.totalorder %v6864_v42, 0 }
 0x427   :  { %v6679_v11 = vpop.f32.mrf.mxu0  ;;  %9532 = vmatprep.mubr.bf16.mxu1 %v22757_v33  ;;  %vm6930_vm3 = vcmp.eq.s32.totalorder %v6866_v20, 0  ;;  %vm23095_vm4 = vcmask 1043456   ;;  %v7958_v53 = vpack.c.bf16 %v7890_v41, %v7890_v41  ;;  %v7697_v25 = vadd.f32 %v19361_v38, %v7627_v54 }
 0x428   :  { %v6732_v3 = vpop.f32.mrf.mxu1  ;;  %v8140_v30 = vsel %vm23095_vm4, %v7953_v9, 0  ;;  %vm23096_vm5 = vmmov %vm23095_vm4  ;;  %v7960_v52 = vpack.c.bf16 %v7892_v50, %v7892_v50  ;;  %vm7055_vm10 = vcmp.eq.s32.totalorder %v20378_v26, 2  ;;  %vm6991_vm12 = vcmp.eq.s32.totalorder %v20378_v26, 1 }
 0x429   :  { %v6681_v51 = vpop.f32.mrf.mxu0  ;;  %v8146_v6 = vsel %vm23096_vm5, %v7955_v36, 0  ;;  %vm23097_vm6 = vmmov %vm23095_vm4  ;;  %v7825_v20 = vmul.f32 0.01, %v7697_v25  ;;  %vm7761_vm9 = vcmp.ge.f32.partialorder %v7697_v25, 0.0 }
 0x42a   :  { %v6734_v40 = vpop.f32.mrf.mxu1  ;;  %vm23098_vm7 = vmmov %vm23095_vm4  ;;  %v7247_v41 = vsel %vm7055_vm10, %v20356_v13, %v6681_v51 }
 0x42b   :  { %v6683_v45 = vpop.f32.mrf.mxu0  ;;  %v7889_v13 = vsel %vm7761_vm9, %v7697_v25, %v7825_v20 }
 0x42c   :  { %v7248_v23 = vsel %vm7056_vm11, %v6679_v11, %v6683_v45  ;;  %v6736_v2 = vpop.f32.mrf.mxu1  ;;  %v20397_v11 = vand.u32 3, %v6801_v48  ;;  %v9871_v48 = vshra.s32 %v15979_v29, 2 }
 0x42d   :  { %v7440_v5 = vsel %vm6992_vm14, %v6673_v19, %v7248_v23  ;;  %v7250_v22 = vsel %vm7058_vm15, %v6732_v3, %v6736_v2  ;;  %v20385_v18 = vpop.f32.mrf.mxu0  ;;  %14830 = vmatmul.mubr.msk.bf16.vlgmr.msra.gmra.mxu0 %vm22742_vm0, %v19975_v49  ;;  %v7699_v19 = vadd.f32 %v19361_v38, %v7629_v47  ;;  %vm6927_vm15 = vcmp.eq.s32.totalorder %v20378_v26, 0 }
 0x42e   :  { %v7442_v44 = vsel %vm6994_vm1, %v6726_v14, %v7250_v22  ;;  %v20391_v16 = vpop.f32.mrf.mxu1  ;;  %14833 = vmatmul.mubr.msk.bf16.vlgmr.msra.gmra.mxu1 %vm22742_vm0, %v19975_v49  ;;  %9568 = vmatpush1.bf16.msra.mxu0 %v8140_v30  ;;  %v7632_v62 = vsel %vm6928_vm2, %v20334_v27, %v7440_v5  ;;  %v9872_v27 = vshra.s32 %v22975_v28, 2  ;;  %vm7057_vm13 = vcmp.eq.s32.totalorder %v20397_v11, 2 }
 0x42f   :  { %9621 = vmatpush1.bf16.msra.mxu1 %v8146_v6  ;;  %14841 = vmatprep.subr.msk.bf16.mxu0 %vm23097_vm6, %v7958_v53  ;;  %v20402_v22 = vpop.f32.mrf.mxu0  ;;  %v7634_v14 = vsel %vm6930_vm3, %v20339_v12, %v7442_v44  ;;  %v7702_v42 = vadd.f32 %v19361_v38, %v7632_v62  ;;  %v9874_v12 = vshra.s32 %v22977_v31, 2  ;;  %v7827_v9 = vmul.f32 0.01, %v7699_v19 }
 0x430   :  { %14844 = vmatprep.subr.msk.bf16.mxu1 %vm23098_vm7, %v7960_v52  ;;  %v20407_v49 = vpop.f32.mrf.mxu1  ;;  %9489 = vmatprep.mubr.bf16.mxu0 %v22757_v33  ;;  %v7704_v3 = vadd.f32 %v19361_v38, %v7634_v14  ;;  %vm7763_vm8 = vcmp.ge.f32.partialorder %v7699_v19, 0.0  ;;  %vm6993_vm11 = vcmp.eq.s32.totalorder %v20397_v11, 1  ;;  %v9936_v45 = vand.u32 3, %v9872_v27 }
 0x431   :  { %v20410_v50 = vpop.f32.mrf.mxu0  ;;  %9542 = vmatprep.mubr.bf16.mxu1 %v22757_v33  ;;  %v7249_v47 = vsel %vm7057_vm13, %v20362_v35, %v6734_v40  ;;  %v7830_v23 = vmul.f32 0.01, %v7702_v42  ;;  %v9938_v5 = vand.u32 3, %v9874_v12  ;;  %v7891_v53 = vsel %vm7763_vm8, %v7699_v19, %v7827_v9 }
 0x432   :  { %v20416_v43 = vpop.f32.mrf.mxu1  ;;  %v7832_v51 = vmul.f32 0.01, %v7704_v3  ;;  %vm7766_vm14 = vcmp.ge.f32.partialorder %v7702_v42, 0.0  ;;  %v7439_v35 = vsel %vm6991_vm12, %v20342_v39, %v7247_v41  ;;  %vm6929_vm1 = vcmp.eq.s32.totalorder %v20397_v11, 0 }
 0x433   :  { %v8215_v0 = vpop.f32.mrf.mxu0  ;;  %vm7768_vm2 = vcmp.ge.f32.partialorder %v7704_v3, 0.0  ;;  %v7441_v40 = vsel %vm6993_vm11, %v20348_v46, %v7249_v47  ;;  %v20446_v44 = vand.u32 3, %v9871_v48  ;;  %vm10128_vm3 = vcmp.eq.s32.totalorder %v9936_v45, 2 }
 0x434   :  { %v8268_v36 = vpop.f32.mrf.mxu1  ;;  %v7957_v6 = vpack.c.bf16 %v7889_v13, %v7889_v13  ;;  %vm10064_vm4 = vcmp.eq.s32.totalorder %v9936_v45, 1  ;;  %vm10130_vm5 = vcmp.eq.s32.totalorder %v9938_v5, 2  ;;  %v7959_v19 = vpack.c.bf16 %v7891_v53, %v7891_v53 }
 0x435   :  { %v20424_v54 = vpop.f32.mrf.mxu0  ;;  %14831 = vmatmul.mubr.msk.bf16.gmra.mxu0 %vm22742_vm0, %v20022_v34  ;;  %v7894_v26 = vsel %vm7766_vm14, %v7702_v42, %v7830_v23  ;;  %v7631_v39 = vsel %vm6927_vm15, %v20317_v60, %v7439_v35  ;;  %v9873_v62 = vshra.s32 %v22978_v61, 2  ;;  %vm10066_vm6 = vcmp.eq.s32.totalorder %v9938_v5, 1  ;;  %v20457_v42 = vld [vmem:[#allocation9] sm:$0xff]  }
 0x436   :  { %v20430_v2 = vpop.f32.mrf.mxu1  ;;  %14834 = vmatmul.mubr.msk.bf16.gmra.mxu1 %vm22742_vm0, %v20022_v34  ;;  %9585 = vmatprep.mubr.bf16.mxu0 %v22757_v33  ;;  %v7896_v27 = vsel %vm7768_vm2, %v7704_v3, %v7832_v51  ;;  %v7633_v46 = vsel %vm6929_vm1, %v20323_v32, %v7441_v40  ;;  %vm10000_vm7 = vcmp.eq.s32.totalorder %v9936_v45, 0  ;;  %vm10002_vm10 = vcmp.eq.s32.totalorder %v9938_v5, 0 }
 0x437   :  { %v8221_v30 = vpop.f32.mrf.mxu0  ;;  %9638 = vmatprep.mubr.bf16.mxu1 %v22757_v33  ;;  %vm23099_vm13 = vcmask 1043456   ;;  %v7962_v3 = vpack.c.bf16 %v7894_v26, %v7894_v26  ;;  %v7701_v47 = vadd.f32 %v19361_v38, %v7631_v39  ;;  %v7964_v23 = vpack.c.bf16 %v7896_v27, %v7896_v27  ;;  %v20500_v27 = vld [vmem:[#allocation9 + $0x8] sm:$0xff]  }
 0x438   :  { %v8274_v34 = vpop.f32.mrf.mxu1  ;;  %v8152_v60 = vsel %vm23099_vm13, %v7957_v6, 0  ;;  %vm23100_vm9 = vmmov %vm23099_vm13  ;;  %v7703_v13 = vadd.f32 %v19361_v38, %v7633_v46  ;;  %v20469_v51 = vand.u32 3, %v9873_v62  ;;  %v20482_v38 = vpop.permute.xlu1 %10770  ;;  %vm10127_vm11 = vcmp.eq.s32.totalorder %v20446_v44, 2 }
 0x439   :  { %v8223_v25 = vpop.f32.mrf.mxu0  ;;  %vm23101_vm12 = vmmov %vm23100_vm9  ;;  %v7829_v40 = vmul.f32 0.01, %v7701_v47  ;;  %vm7765_vm15 = vcmp.ge.f32.partialorder %v7701_v47, 0.0  ;;  %vm10063_vm1 = vcmp.eq.s32.totalorder %v20446_v44, 1  ;;  %v9875_v46 = vshra.s32 %v22984_v37, 2 }
 0x43a   :  { %v20448_v52 = vpop.f32.mrf.mxu1  ;;  %vm23102_vm8 = vmmov %vm23100_vm9  ;;  %vm10129_vm14 = vcmp.eq.s32.totalorder %v20469_v51, 2  ;;  %v7831_v26 = vmul.f32 0.01, %v7703_v13  ;;  %vm7767_vm2 = vcmp.ge.f32.partialorder %v7703_v13, 0.0  ;;  %v10319_v62 = vsel %vm10127_vm11, %v20424_v54, %v8223_v25 }
 0x43b   :  { %v8225_v14 = vpop.f32.mrf.mxu0  ;;  %v7893_v25 = vsel %vm7765_vm15, %v7701_v47, %v7829_v40 }
 0x43c   :  { %v10320_v12 = vsel %vm10128_vm3, %v8221_v30, %v8225_v14  ;;  %v8278_v20 = vpop.f32.mrf.mxu1  ;;  %vm10065_vm3 = vcmp.eq.s32.totalorder %v20469_v51, 1 }
 0x43d   :  { %v10512_v9 = vsel %vm10064_vm4, %v8215_v0, %v10320_v12  ;;  %v10322_v41 = vsel %vm10130_vm5, %v8274_v34, %v8278_v20  ;;  %v20455_v48 = vpop.f32.mrf.mxu0  ;;  %14836 = vmatmul.mubr.msk.bf16.vlgmr.msra.gmra.mxu0 %vm22742_vm0, %v20457_v42  ;;  %v8158_v0 = vsel %vm23100_vm9, %v7959_v19, 0  ;;  %v10321_v20 = vsel %vm10129_vm14, %v20430_v2, %v20448_v52 }
 0x43e   :  { %v10514_v11 = vsel %vm10066_vm6, %v8268_v36, %v10322_v41  ;;  %v20463_v32 = vpop.f32.mrf.mxu1  ;;  %14839 = vmatmul.mubr.msk.bf16.vlgmr.msra.gmra.mxu1 %vm22742_vm0, %v20457_v42  ;;  %9674 = vmatpush1.bf16.msra.mxu0 %v8152_v60  ;;  %v10704_v30 = vsel %vm10000_vm7, %v20402_v22, %v10512_v9  ;;  %v9876_v22 = vshra.s32 %v22979_v24, 2  ;;  %vm9999_vm5 = vcmp.eq.s32.totalorder %v20446_v44, 0 }
 0x43f   :  { %9727 = vmatpush1.bf16.msra.mxu1 %v8158_v0  ;;  %14847 = vmatprep.subr.msk.bf16.mxu0 %vm23101_vm12, %v7962_v3  ;;  %v20474_v36 = vpop.f32.mrf.mxu0  ;;  %v10706_v53 = vsel %vm10002_vm10, %v20407_v49, %v10514_v11  ;;  %v10774_v45 = vadd.f32 %v20482_v38, %v10704_v30  ;;  %v9878_v49 = vshra.s32 %v22982_v59, 2  ;;  %v7895_v11 = vsel %vm7767_vm2, %v7703_v13, %v7831_v26 }
 0x440   :  { %14850 = vmatprep.subr.msk.bf16.mxu1 %vm23102_vm8, %v7964_v23  ;;  %v20479_v35 = vpop.f32.mrf.mxu1  ;;  %9595 = vmatprep.mubr.bf16.mxu0 %v22757_v33  ;;  %v10776_v6 = vadd.f32 %v20482_v38, %v10706_v53  ;;  %v9940_v12 = vand.u32 3, %v9876_v22  ;;  %v10511_v2 = vsel %vm10063_vm1, %v20410_v50, %v10319_v62  ;;  %vm10001_vm6 = vcmp.eq.s32.totalorder %v20469_v51, 0 }
 0x441   :  { %v20484_v34 = vpop.f32.mrf.mxu0  ;;  %9648 = vmatprep.mubr.bf16.mxu1 %v22757_v33  ;;  %v10902_v9 = vmul.f32 0.01, %v10774_v45  ;;  %v9942_v54 = vand.u32 3, %v9878_v49  ;;  %vm10838_vm4 = vcmp.ge.f32.partialorder %v10774_v45, 0.0  ;;  %v10513_v47 = vsel %vm10065_vm3, %v20416_v43, %v10321_v20 }
 0x442   :  { %v20490_v5 = vpop.f32.mrf.mxu1  ;;  %v10904_v60 = vmul.f32 0.01, %v10776_v6  ;;  %vm10840_vm7 = vcmp.ge.f32.partialorder %v10776_v6, 0.0  ;;  %v20523_v23 = vand.u32 3, %v9875_v46  ;;  %vm10132_vm10 = vcmp.eq.s32.totalorder %v9940_v12, 2 }
 0x443   :  { %v8321_v19 = vpop.f32.mrf.mxu0  ;;  %v7961_v13 = vpack.c.bf16 %v7893_v25, %v7893_v25  ;;  %vm10068_vm13 = vcmp.eq.s32.totalorder %v9940_v12, 1  ;;  %vm10134_vm9 = vcmp.eq.s32.totalorder %v9942_v54, 2  ;;  %v7963_v53 = vpack.c.bf16 %v7895_v11, %v7895_v11 }
 0x444   :  { %v8374_v39 = vpop.f32.mrf.mxu1  ;;  %v10966_v22 = vsel %vm10838_vm4, %v10774_v45, %v10902_v9  ;;  %v10703_v50 = vsel %vm9999_vm5, %v20385_v18, %v10511_v2  ;;  %v9877_v44 = vshra.s32 %v22985_v10, 2  ;;  %vm10070_vm12 = vcmp.eq.s32.totalorder %v9942_v54, 1 }
 0x445   :  { %v20498_v14 = vpop.f32.mrf.mxu0  ;;  %14837 = vmatmul.mubr.msk.bf16.gmra.mxu0 %vm22742_vm0, %v20500_v27  ;;  %v10968_v40 = vsel %vm10840_vm7, %v10776_v6, %v10904_v60  ;;  %v10705_v43 = vsel %vm10001_vm6, %v20391_v16, %v10513_v47  ;;  %vm10004_vm8 = vcmp.eq.s32.totalorder %v9940_v12, 0  ;;  %vm10006_vm11 = vcmp.eq.s32.totalorder %v9942_v54, 0 }
 0x446   :  { %v20507_v41 = vpop.f32.mrf.mxu1  ;;  %14840 = vmatmul.mubr.msk.bf16.gmra.mxu1 %vm22742_vm0, %v20500_v27  ;;  %9691 = vmatprep.mubr.bf16.mxu0 %v22757_v33  ;;  %vm23103_vm14 = vcmask 1043456   ;;  %v11034_v45 = vpack.c.bf16 %v10966_v22, %v10966_v22  ;;  %v10773_v6 = vadd.f32 %v20482_v38, %v10703_v50  ;;  %v11036_v51 = vpack.c.bf16 %v10968_v40, %v10968_v40 }
 0x447   :  { %v8327_v3 = vpop.f32.mrf.mxu0  ;;  %9744 = vmatprep.mubr.bf16.mxu1 %v22757_v33  ;;  %v8164_v18 = vsel %vm23103_vm14, %v7961_v13, 0  ;;  %vm23104_vm15 = vmmov %vm23103_vm14  ;;  %vm10131_vm3 = vcmp.eq.s32.totalorder %v20523_v23, 2  ;;  %vm10067_vm6 = vcmp.eq.s32.totalorder %v20523_v23, 1 }
 0x448   :  { %v8380_v52 = vpop.f32.mrf.mxu1  ;;  %v8170_v16 = vsel %vm23104_vm15, %v7963_v53, 0  ;;  %vm23105_vm1 = vmmov %vm23103_vm14  ;;  %v10901_v54 = vmul.f32 0.01, %v10773_v6  ;;  %vm10837_vm5 = vcmp.ge.f32.partialorder %v10773_v6, 0.0 }
 0x449   :  { %v8329_v0 = vpop.f32.mrf.mxu0  ;;  %vm23106_vm2 = vmmov %vm23105_vm1 }
 0x44a   :  { %v8382_v30 = vpop.f32.mrf.mxu1 }
 0x44b   :  { %v8331_v49 = vpop.f32.mrf.mxu0 }
 0x44c   :  { %v10324_v26 = vsel %vm10132_vm10, %v8327_v3, %v8331_v49  ;;  %v8384_v62 = vpop.f32.mrf.mxu1  ;;  %v20542_v3 = vand.u32 3, %v9877_v44  ;;  %v10323_v49 = vsel %vm10131_vm3, %v20498_v14, %v8329_v0  ;;  %v10965_v14 = vsel %vm10837_vm5, %v10773_v6, %v10901_v54 }
 0x44d   :  { %v10516_v46 = vsel %vm10068_vm13, %v8321_v19, %v10324_v26  ;;  %v10326_v20 = vsel %vm10134_vm9, %v8380_v52, %v8384_v62  ;;  %v20530_v25 = vpop.f32.mrf.mxu0  ;;  %14842 = vmatmul.mubr.msk.bf16.vlgmr.msra.gmra.mxu0 %vm22742_vm0, %v20457_v42  ;;  %v10775_v19 = vadd.f32 %v20482_v38, %v10705_v43  ;;  %v9879_v43 = vshra.s32 %v22990_v15, 2 }
 0x44e   :  { %v10518_v9 = vsel %vm10070_vm12, %v8374_v39, %v10326_v20  ;;  %v20536_v60 = vpop.f32.mrf.mxu1  ;;  %14845 = vmatmul.mubr.msk.bf16.vlgmr.msra.gmra.mxu1 %vm22742_vm0, %v20457_v42  ;;  %9780 = vmatpush1.bf16.msra.mxu0 %v8164_v18  ;;  %v10708_v11 = vsel %vm10004_vm8, %v20474_v36, %v10516_v46  ;;  %v9880_v36 = vshra.s32 %v22988_v8, 2  ;;  %vm10133_vm4 = vcmp.eq.s32.totalorder %v20542_v3, 2 }
 0x44f   :  { %9833 = vmatpush1.bf16.msra.mxu1 %v8170_v16  ;;  %14855 = vmatprep.subr.msk.bf16.mxu0 %vm23105_vm1, %v11034_v45  ;;  %v20547_v39 = vpop.f32.mrf.mxu0  ;;  %v10710_v2 = vsel %vm10006_vm11, %v20479_v35, %v10518_v9  ;;  %v10778_v12 = vadd.f32 %v20482_v38, %v10708_v11  ;;  %v9882_v35 = vshra.s32 %v22989_v4, 2  ;;  %v10903_v50 = vmul.f32 0.01, %v10775_v19 }
 0x450   :  { %14858 = vmatprep.subr.msk.bf16.mxu1 %vm23106_vm2, %v11036_v51  ;;  %v20552_v52 = vpop.f32.mrf.mxu1  ;;  %9701 = vmatprep.mubr.bf16.mxu0 %v22757_v33  ;;  %v10780_v53 = vadd.f32 %v20482_v38, %v10710_v2  ;;  %vm10839_vm7 = vcmp.ge.f32.partialorder %v10775_v19, 0.0  ;;  %vm10069_vm10 = vcmp.eq.s32.totalorder %v20542_v3, 1  ;;  %v9944_v26 = vand.u32 3, %v9880_v36 }
 0x451   :  { %v20555_v47 = vpop.f32.mrf.mxu0  ;;  %9754 = vmatprep.mubr.bf16.mxu1 %v22757_v33  ;;  %v10325_v62 = vsel %vm10133_vm4, %v20507_v41, %v8382_v30  ;;  %v10906_v46 = vmul.f32 0.01, %v10778_v12  ;;  %v9946_v18 = vand.u32 3, %v9882_v35  ;;  %v10967_v9 = vsel %vm10839_vm7, %v10775_v19, %v10903_v50 }
 0x452   :  { %v20561_v13 = vpop.f32.mrf.mxu1  ;;  %v10908_v0 = vmul.f32 0.01, %v10780_v53  ;;  %vm10842_vm13 = vcmp.ge.f32.partialorder %v10778_v12, 0.0  ;;  %vm10003_vm9 = vcmp.eq.s32.totalorder %v20523_v23, 0  ;;  %v10515_v41 = vsel %vm10067_vm6, %v20484_v34, %v10323_v49 }
 0x453   :  { %v8427_v22 = vpop.f32.mrf.mxu0  ;;  %vm10005_vm12 = vcmp.eq.s32.totalorder %v20542_v3, 0  ;;  %vm10844_vm8 = vcmp.ge.f32.partialorder %v10780_v53, 0.0  ;;  %v10517_v6 = vsel %vm10069_vm10, %v20490_v5, %v10325_v62  ;;  %v20591_v51 = vand.u32 3, %v9879_v43 }
 0x454   :  { %v8480_v44 = vpop.f32.mrf.mxu1  ;;  %vm10136_vm11 = vcmp.eq.s32.totalorder %v9944_v26, 2  ;;  %v11033_v19 = vpack.c.bf16 %v10965_v14, %v10965_v14  ;;  %vm10072_vm14 = vcmp.eq.s32.totalorder %v9944_v26, 1  ;;  %vm10138_vm15 = vcmp.eq.s32.totalorder %v9946_v18, 2 }
 0x455   :  { %v20569_v40 = vpop.f32.mrf.mxu0  ;;  %14843 = vmatmul.mubr.msk.bf16.gmra.mxu0 %vm22742_vm0, %v20500_v27  ;;  %v11035_v2 = vpack.c.bf16 %v10967_v9, %v10967_v9  ;;  %v10970_v36 = vsel %vm10842_vm13, %v10778_v12, %v10906_v46  ;;  %v10707_v34 = vsel %vm10003_vm9, %v20455_v48, %v10515_v41  ;;  %v9881_v23 = vshra.s32 %v22991_v57, 2 }
 0x456   :  { %v20575_v20 = vpop.f32.mrf.mxu1  ;;  %14846 = vmatmul.mubr.msk.bf16.gmra.mxu1 %vm22742_vm0, %v20500_v27  ;;  %9797 = vmatprep.mubr.bf16.mxu0 %v22757_v33  ;;  %vm10074_vm1 = vcmp.eq.s32.totalorder %v9946_v18, 1  ;;  %v10972_v54 = vsel %vm10844_vm8, %v10780_v53, %v10908_v0  ;;  %v10709_v5 = vsel %vm10005_vm12, %v20463_v32, %v10517_v6  ;;  %vm10008_vm2 = vcmp.eq.s32.totalorder %v9944_v26, 0 }
 0x457   :  { %v8433_v45 = vpop.f32.mrf.mxu0  ;;  %9850 = vmatprep.mubr.bf16.mxu1 %v22757_v33  ;;  %vm10010_vm3 = vcmp.eq.s32.totalorder %v9946_v18, 0  ;;  %vm23107_vm4 = vcmask 1043456   ;;  %v11038_v12 = vpack.c.bf16 %v10970_v36, %v10970_v36  ;;  %v10777_v53 = vadd.f32 %v20482_v38, %v10707_v34 }
 0x458   :  { %v8486_v30 = vpop.f32.mrf.mxu1  ;;  %v11114_v48 = vsel %vm23107_vm4, %v11033_v19, 0  ;;  %vm23108_vm5 = vmmov %vm23107_vm4  ;;  %v11040_v3 = vpack.c.bf16 %v10972_v54, %v10972_v54  ;;  %vm10135_vm10 = vcmp.eq.s32.totalorder %v20591_v51, 2  ;;  %vm10071_vm12 = vcmp.eq.s32.totalorder %v20591_v51, 1 }
 0x459   :  { %v8435_v16 = vpop.f32.mrf.mxu0  ;;  %v11120_v32 = vsel %vm23108_vm5, %v11035_v2, 0  ;;  %vm23109_vm6 = vmmov %vm23107_vm4  ;;  %v10905_v18 = vmul.f32 0.01, %v10777_v53  ;;  %vm10841_vm9 = vcmp.ge.f32.partialorder %v10777_v53, 0.0  ;;  %v9883_v54 = vshra.s32 %v22998_v1, 2 }
 0x45a   :  { %v8488_v11 = vpop.f32.mrf.mxu1  ;;  %vm23110_vm7 = vmmov %vm23107_vm4 }
 0x45b   :  { %v8437_v35 = vpop.f32.mrf.mxu0 }
 0x45c   :  { %v10328_v50 = vsel %vm10136_vm11, %v8433_v45, %v8437_v35  ;;  %v8490_v49 = vpop.f32.mrf.mxu1  ;;  %v20610_v45 = vand.u32 3, %v9881_v23  ;;  %v10327_v23 = vsel %vm10135_vm10, %v20569_v40, %v8435_v16  ;;  %v10969_v40 = vsel %vm10841_vm9, %v10777_v53, %v10905_v18 }
 0x45d   :  { %v10520_v43 = vsel %vm10072_vm14, %v8427_v22, %v10328_v50  ;;  %v10330_v62 = vsel %vm10138_vm15, %v8486_v30, %v8490_v49  ;;  %v20598_v14 = vpop.f32.mrf.mxu0  ;;  %14848 = vmatmul.mubr.msk.bf16.vlgmr.msra.gmra.mxu0 %vm22742_vm0, %v20457_v42  ;;  %v10779_v22 = vadd.f32 %v20482_v38, %v10709_v5  ;;  %vm10007_vm15 = vcmp.eq.s32.totalorder %v20591_v51, 0 }
 0x45e   :  { %v10522_v46 = vsel %vm10074_vm1, %v8480_v44, %v10330_v62  ;;  %v20604_v0 = vpop.f32.mrf.mxu1  ;;  %14851 = vmatmul.mubr.msk.bf16.vlgmr.msra.gmra.mxu1 %vm22742_vm0, %v20457_v42  ;;  %11320 = vmatpush1.bf16.msra.mxu0 %v11114_v48  ;;  %v10712_v9 = vsel %vm10008_vm2, %v20547_v39, %v10520_v43  ;;  %v9884_v39 = vshra.s32 %v22996_v58, 2  ;;  %vm10137_vm13 = vcmp.eq.s32.totalorder %v20610_v45, 2 }
 0x45f   :  { %11373 = vmatpush1.bf16.msra.mxu1 %v11120_v32  ;;  %14861 = vmatprep.subr.msk.bf16.mxu0 %vm23109_vm6, %v11038_v12  ;;  %v20615_v44 = vpop.f32.mrf.mxu0  ;;  %v10714_v41 = vsel %vm10010_vm3, %v20552_v52, %v10522_v46  ;;  %v10782_v26 = vadd.f32 %v20482_v38, %v10712_v9  ;;  %v9886_v52 = vshra.s32 %v22997_v7, 2  ;;  %v10907_v36 = vmul.f32 0.01, %v10779_v22  ;;  %v20661_v32 = vld [vmem:[#allocation12] sm:$0xff]  }
 0x460   :  { %14864 = vmatprep.subr.msk.bf16.mxu1 %vm23110_vm7, %v11040_v3  ;;  %v20620_v42 = vpop.f32.mrf.mxu1  ;;  %9807 = vmatprep.mubr.bf16.mxu0 %v22757_v33  ;;  %v10784_v19 = vadd.f32 %v20482_v38, %v10714_v41  ;;  %vm10843_vm8 = vcmp.ge.f32.partialorder %v10779_v22, 0.0  ;;  %vm10073_vm11 = vcmp.eq.s32.totalorder %v20610_v45, 1  ;;  %v9948_v5 = vand.u32 3, %v9884_v39 }
 0x461   :  { %v20623_v30 = vpop.f32.mrf.mxu0  ;;  %9860 = vmatprep.mubr.bf16.mxu1 %v22757_v33  ;;  %v10329_v50 = vsel %vm10137_vm13, %v20575_v20, %v8488_v11  ;;  %v10910_v49 = vmul.f32 0.01, %v10782_v26  ;;  %v9950_v62 = vand.u32 3, %v9886_v52  ;;  %v10971_v12 = vsel %vm10843_vm8, %v10779_v22, %v10907_v36 }
 0x462   :  { %v20629_v6 = vpop.f32.mrf.mxu1  ;;  %v10912_v16 = vmul.f32 0.01, %v10784_v19  ;;  %vm10846_vm14 = vcmp.ge.f32.partialorder %v10782_v26, 0.0  ;;  %v10519_v20 = vsel %vm10071_vm12, %v20555_v47, %v10327_v23  ;;  %vm10009_vm1 = vcmp.eq.s32.totalorder %v20610_v45, 0 }
 0x463   :  { %v8533_v2 = vpop.f32.mrf.mxu0  ;;  %vm10848_vm2 = vcmp.ge.f32.partialorder %v10784_v19, 0.0  ;;  %v10521_v11 = vsel %vm10073_vm11, %v20561_v13, %v10329_v50  ;;  %v20659_v46 = vand.u32 3, %v9883_v54  ;;  %vm10140_vm3 = vcmp.eq.s32.totalorder %v9948_v5, 2 }
 0x464   :  { %v8586_v34 = vpop.f32.mrf.mxu1  ;;  %v11037_v3 = vpack.c.bf16 %v10969_v40, %v10969_v40  ;;  %vm10076_vm4 = vcmp.eq.s32.totalorder %v9948_v5, 1  ;;  %vm10142_vm5 = vcmp.eq.s32.totalorder %v9950_v62, 2  ;;  %v11039_v9 = vpack.c.bf16 %v10971_v12, %v10971_v12 }
 0x465   :  { %v20637_v35 = vpop.f32.mrf.mxu0  ;;  %14849 = vmatmul.mubr.msk.bf16.gmra.mxu0 %vm22742_vm0, %v20500_v27  ;;  %v10974_v47 = vsel %vm10846_vm14, %v10782_v26, %v10910_v49  ;;  %v10711_v41 = vsel %vm10007_vm15, %v20530_v25, %v10519_v20  ;;  %v9885_v39 = vshra.s32 %v22999_v21, 2  ;;  %vm10078_vm6 = vcmp.eq.s32.totalorder %v9950_v62, 1 }
 0x466   :  { %v20643_v43 = vpop.f32.mrf.mxu1  ;;  %14852 = vmatmul.mubr.msk.bf16.gmra.mxu1 %vm22742_vm0, %v20500_v27  ;;  %11337 = vmatprep.mubr.bf16.mxu0 %v22757_v33  ;;  %v10976_v52 = vsel %vm10848_vm2, %v10784_v19, %v10912_v16  ;;  %v10713_v18 = vsel %vm10009_vm1, %v20536_v60, %v10521_v11  ;;  %vm10012_vm7 = vcmp.eq.s32.totalorder %v9948_v5, 0  ;;  %vm10014_vm10 = vcmp.eq.s32.totalorder %v9950_v62, 0  ;;  %v20700_v5 = vld [vmem:[#allocation12 + $0x8] sm:$0xff]  }
 0x467   :  { %v8539_v48 = vpop.f32.mrf.mxu0  ;;  %11390 = vmatprep.mubr.bf16.mxu1 %v22757_v33  ;;  %vm23111_vm13 = vcmask 1043456   ;;  %v11042_v51 = vpack.c.bf16 %v10974_v47, %v10974_v47  ;;  %v10781_v19 = vadd.f32 %v20482_v38, %v10711_v41  ;;  %v11044_v45 = vpack.c.bf16 %v10976_v52, %v10976_v52 }
 0x468   :  { %v8592_v27 = vpop.f32.mrf.mxu1  ;;  %v11126_v25 = vsel %vm23111_vm13, %v11037_v3, 0  ;;  %vm23112_vm9 = vmmov %vm23111_vm13  ;;  %v20684_v16 = vand.u32 3, %v9885_v39  ;;  %vm10139_vm11 = vcmp.eq.s32.totalorder %v20659_v46, 2  ;;  %vm10075_vm1 = vcmp.eq.s32.totalorder %v20659_v46, 1 }
 0x469   :  { %v8541_v53 = vpop.f32.mrf.mxu0  ;;  %v11132_v60 = vsel %vm23112_vm9, %v11039_v9, 0  ;;  %vm23113_vm12 = vmmov %vm23112_vm9  ;;  %v10909_v3 = vmul.f32 0.01, %v10781_v19  ;;  %vm10845_vm15 = vcmp.ge.f32.partialorder %v10781_v19, 0.0 }
 0x46a   :  { %v8594_v22 = vpop.f32.mrf.mxu1  ;;  %vm23114_vm8 = vmmov %vm23112_vm9  ;;  %vm10141_vm14 = vcmp.eq.s32.totalorder %v20684_v16, 2 }
 0x46b   :  { %v8543_v13 = vpop.f32.mrf.mxu0 }
 0x46c   :  { %v10332_v36 = vsel %vm10140_vm3, %v8539_v48, %v8543_v13  ;;  %v8596_v23 = vpop.f32.mrf.mxu1  ;;  %v10331_v13 = vsel %vm10139_vm11, %v20637_v35, %v8541_v53  ;;  %vm10077_vm3 = vcmp.eq.s32.totalorder %v20684_v16, 1  ;;  %v10973_v35 = vsel %vm10845_vm15, %v10781_v19, %v10909_v3 }
 0x46d   :  { %v10524_v54 = vsel %vm10076_vm4, %v8533_v2, %v10332_v36  ;;  %v10334_v26 = vsel %vm10142_vm5, %v8592_v27, %v8596_v23  ;;  %v20672_v50 = vpop.f32.mrf.mxu0  ;;  %14856 = vmatmul.mubr.msk.bf16.vlgmr.msra.gmra.mxu0 %vm22742_vm0, %v20661_v32  ;;  %v10783_v2 = vadd.f32 %v20482_v38, %v10713_v18  ;;  %v23115_v18 = vld [vmem:[#allocation46_spill] sm:$0xff]  ;;  %vm10011_vm5 = vcmp.eq.s32.totalorder %v20659_v46, 0  ;;  %v23116_v46 = vld [vmem:[#allocation47_spill] sm:$0xff] }
 0x46e   :  { %v10526_v49 = vsel %vm10078_vm6, %v8586_v34, %v10334_v26  ;;  %v20678_v40 = vpop.f32.mrf.mxu1  ;;  %14859 = vmatmul.mubr.msk.bf16.vlgmr.msra.gmra.mxu1 %vm22742_vm0, %v20661_v32  ;;  %11426 = vmatpush1.bf16.msra.mxu0 %v11126_v25  ;;  %v10716_v48 = vsel %vm10012_vm7, %v20615_v44, %v10524_v54  ;;  %v9888_v44 = vshra.s32 %v23004_v56, 2  ;;  %v9887_v36 = vshra.s32 %v23115_v18, 2 }
 0x46f   :  { %11479 = vmatpush1.bf16.msra.mxu1 %v11132_v60  ;;  %14867 = vmatprep.subr.msk.bf16.mxu0 %vm23113_vm12, %v11042_v51  ;;  %v20689_v34 = vpop.f32.mrf.mxu0  ;;  %v10718_v12 = vsel %vm10014_vm10, %v20620_v42, %v10526_v49  ;;  %v10786_v11 = vadd.f32 %v20482_v38, %v10716_v48  ;;  %v9890_v42 = vshra.s32 %v23005_v63, 2  ;;  %v10911_v41 = vmul.f32 0.01, %v10783_v2 }
 0x470   :  { %14870 = vmatprep.subr.msk.bf16.mxu1 %vm23114_vm8, %v11044_v45  ;;  %v20694_v20 = vpop.f32.mrf.mxu1  ;;  %11347 = vmatprep.mubr.bf16.mxu0 %v22757_v33  ;;  %v10788_v9 = vadd.f32 %v20482_v38, %v10718_v12  ;;  %vm10847_vm2 = vcmp.ge.f32.partialorder %v10783_v2, 0.0  ;;  %v9952_v23 = vand.u32 3, %v9888_v44  ;;  %v10333_v54 = vsel %vm10141_vm14, %v20643_v43, %v8594_v22 }
 0x471   :  { %v20697_v27 = vpop.f32.mrf.mxu0  ;;  %11400 = vmatprep.mubr.bf16.mxu1 %v22757_v33  ;;  %v10914_v26 = vmul.f32 0.01, %v10786_v11  ;;  %v9954_v51 = vand.u32 3, %v9890_v42  ;;  %v10975_v60 = vsel %vm10847_vm2, %v10783_v2, %v10911_v41  ;;  %vm10850_vm4 = vcmp.ge.f32.partialorder %v10786_v11, 0.0 }
 0x472   :  { %v20705_v62 = vpop.f32.mrf.mxu1  ;;  %v10916_v53 = vmul.f32 0.01, %v10788_v9  ;;  %v10523_v43 = vsel %vm10075_vm1, %v20623_v30, %v10331_v13  ;;  %vm10013_vm6 = vcmp.eq.s32.totalorder %v20684_v16, 0  ;;  %vm10852_vm7 = vcmp.ge.f32.partialorder %v10788_v9, 0.0 }
 0x473   :  { %v8639_v47 = vpop.f32.mrf.mxu0  ;;  %v10525_v19 = vsel %vm10077_vm3, %v20629_v6, %v10333_v54  ;;  %v20735_v48 = vand.u32 3, %v9887_v36  ;;  %vm10144_vm10 = vcmp.eq.s32.totalorder %v9952_v23, 2  ;;  %v11041_v2 = vpack.c.bf16 %v10973_v35, %v10973_v35 }
 0x474   :  { %v8692_v39 = vpop.f32.mrf.mxu1  ;;  %vm10080_vm13 = vcmp.eq.s32.totalorder %v9952_v23, 1  ;;  %vm10146_vm9 = vcmp.eq.s32.totalorder %v9954_v51, 2  ;;  %v11043_v44 = vpack.c.bf16 %v10975_v60, %v10975_v60  ;;  %v10978_v42 = vsel %vm10850_vm4, %v10786_v11, %v10914_v26 }
 0x475   :  { %v20713_v52 = vpop.f32.mrf.mxu0  ;;  %14857 = vmatmul.mubr.msk.bf16.gmra.mxu0 %vm22742_vm0, %v20700_v5  ;;  %v10715_v30 = vsel %vm10011_vm5, %v20598_v14, %v10523_v43  ;;  %v9889_v3 = vshra.s32 %v23116_v46, 2  ;;  %vm10082_vm12 = vcmp.eq.s32.totalorder %v9954_v51, 1  ;;  %v10980_v13 = vsel %vm10852_vm7, %v10788_v9, %v10916_v53 }
 0x476   :  { %v20719_v25 = vpop.f32.mrf.mxu1  ;;  %14860 = vmatmul.mubr.msk.bf16.gmra.mxu1 %vm22742_vm0, %v20700_v5  ;;  %11443 = vmatprep.mubr.bf16.mxu0 %v22757_v33  ;;  %v10717_v6 = vsel %vm10013_vm6, %v20604_v0, %v10525_v19  ;;  %vm10016_vm8 = vcmp.eq.s32.totalorder %v9952_v23, 0  ;;  %vm10018_vm11 = vcmp.eq.s32.totalorder %v9954_v51, 0  ;;  %vm23117_vm14 = vcmask 1043456   ;;  %v23121_v23 = vld [vmem:[#allocation62_spill] sm:$0xff]  ;;  %v23122_v51 = vld [vmem:[#allocation63_spill] sm:$0xff] }
 0x477   :  { %v8645_v49 = vpop.f32.mrf.mxu0  ;;  %11496 = vmatprep.mubr.bf16.mxu1 %v22757_v33  ;;  %v11138_v14 = vsel %vm23117_vm14, %v11041_v2, 0  ;;  %v11046_v11 = vpack.c.bf16 %v10978_v42, %v10978_v42  ;;  %v10785_v9 = vadd.f32 %v20482_v38, %v10715_v30  ;;  %vm23118_vm15 = vmmov %vm23117_vm14  ;;  %v11048_v16 = vpack.c.bf16 %v10980_v13, %v10980_v13 }
 0x478   :  { %v8698_v22 = vpop.f32.mrf.mxu1  ;;  %v11144_v0 = vsel %vm23118_vm15, %v11043_v44, 0  ;;  %vm23119_vm1 = vmmov %vm23117_vm14  ;;  %vm10143_vm3 = vcmp.eq.s32.totalorder %v20735_v48, 2  ;;  %vm10079_vm6 = vcmp.eq.s32.totalorder %v20735_v48, 1 }
 0x479   :  { %v8647_v45 = vpop.f32.mrf.mxu0  ;;  %vm23120_vm2 = vmmov %vm23119_vm1  ;;  %v10913_v44 = vmul.f32 0.01, %v10785_v9  ;;  %vm10849_vm5 = vcmp.ge.f32.partialorder %v10785_v9, 0.0 }
 0x47a   :  { %v8700_v12 = vpop.f32.mrf.mxu1  ;;  %v10335_v13 = vsel %vm10143_vm3, %v20713_v52, %v8647_v45 }
 0x47b   :  { %v8649_v41 = vpop.f32.mrf.mxu0  ;;  %v10977_v52 = vsel %vm10849_vm5, %v10785_v9, %v10913_v44 }
 0x47c   :  { %v10336_v36 = vsel %vm10144_vm10, %v8645_v49, %v8649_v41  ;;  %v8702_v54 = vpop.f32.mrf.mxu1  ;;  %v20754_v49 = vand.u32 3, %v9889_v3 }
 0x47d   :  { %v10528_v35 = vsel %vm10080_vm13, %v8639_v47, %v10336_v36  ;;  %v10338_v63 = vsel %vm10146_vm9, %v8698_v22, %v8702_v54  ;;  %v20742_v56 = vpop.f32.mrf.mxu0  ;;  %14862 = vmatmul.mubr.msk.bf16.vlgmr.msra.gmra.mxu0 %vm22742_vm0, %v20661_v32  ;;  %v10787_v47 = vadd.f32 %v20482_v38, %v10717_v6  ;;  %v23123_v36 = vld [vmem:[#allocation58_spill] sm:$0xff]  ;;  %vm10015_vm9 = vcmp.eq.s32.totalorder %v20735_v48, 0  ;;  %v23124_v48 = vld [vmem:[#allocation59_spill] sm:$0xff] }
 0x47e   :  { %v10530_v26 = vsel %vm10082_vm12, %v8692_v39, %v10338_v63  ;;  %v20748_v53 = vpop.f32.mrf.mxu1  ;;  %14865 = vmatmul.mubr.msk.bf16.vlgmr.msra.gmra.mxu1 %vm22742_vm0, %v20661_v32  ;;  %11532 = vmatpush1.bf16.msra.mxu0 %v11138_v14  ;;  %v10720_v60 = vsel %vm10016_vm8, %v20689_v34, %v10528_v35  ;;  %v9892_v34 = vshra.s32 %v23121_v23, 2  ;;  %vm10145_vm4 = vcmp.eq.s32.totalorder %v20754_v49, 2 }
 0x47f   :  { %11585 = vmatpush1.bf16.msra.mxu1 %v11144_v0  ;;  %14873 = vmatprep.subr.msk.bf16.mxu0 %vm23119_vm1, %v11046_v11  ;;  %v20759_v63 = vpop.f32.mrf.mxu0  ;;  %v10722_v39 = vsel %vm10018_vm11, %v20694_v20, %v10530_v26  ;;  %v10790_v19 = vadd.f32 %v20482_v38, %v10720_v60  ;;  %v9894_v20 = vshra.s32 %v23122_v51, 2  ;;  %v10915_v3 = vmul.f32 0.01, %v10787_v47 }
 0x480   :  { %14876 = vmatprep.subr.msk.bf16.mxu1 %vm23120_vm2, %v11048_v16  ;;  %v20764_v43 = vpop.f32.mrf.mxu1  ;;  %11453 = vmatprep.mubr.bf16.mxu0 %v22757_v33  ;;  %v10792_v42 = vadd.f32 %v20482_v38, %v10722_v39  ;;  %vm10851_vm7 = vcmp.ge.f32.partialorder %v10787_v47, 0.0  ;;  %vm10081_vm10 = vcmp.eq.s32.totalorder %v20754_v49, 1  ;;  %v9891_v54 = vshra.s32 %v23123_v36, 2 }
 0x481   :  { %v20767_v22 = vpop.f32.mrf.mxu0  ;;  %11506 = vmatprep.mubr.bf16.mxu1 %v22757_v33  ;;  %v9956_v35 = vand.u32 3, %v9892_v34  ;;  %v10337_v14 = vsel %vm10145_vm4, %v20719_v25, %v8700_v12  ;;  %v10918_v11 = vmul.f32 0.01, %v10790_v19  ;;  %v9958_v0 = vand.u32 3, %v9894_v20 }
 0x482   :  { %v20773_v2 = vpop.f32.mrf.mxu1  ;;  %v10920_v45 = vmul.f32 0.01, %v10792_v42  ;;  %v10979_v60 = vsel %vm10851_vm7, %v10787_v47, %v10915_v3  ;;  %vm10854_vm13 = vcmp.ge.f32.partialorder %v10790_v19, 0.0  ;;  %v10527_v25 = vsel %vm10079_vm6, %v20697_v27, %v10335_v13 }
 0x483   :  { %v8745_v30 = vpop.f32.mrf.mxu0  ;;  %vm10017_vm12 = vcmp.eq.s32.totalorder %v20754_v49, 0  ;;  %vm10856_vm8 = vcmp.ge.f32.partialorder %v10792_v42, 0.0  ;;  %v10529_v9 = vsel %vm10081_vm10, %v20705_v62, %v10337_v14  ;;  %v20803_v34 = vand.u32 3, %v9891_v54 }
 0x484   :  { %v8798_v41 = vpop.f32.mrf.mxu1  ;;  %vm10148_vm11 = vcmp.eq.s32.totalorder %v9956_v35, 2  ;;  %v11045_v47 = vpack.c.bf16 %v10977_v52, %v10977_v52  ;;  %vm10084_vm14 = vcmp.eq.s32.totalorder %v9956_v35, 1  ;;  %vm10150_vm15 = vcmp.eq.s32.totalorder %v9958_v0, 2 }
 0x485   :  { %v20781_v6 = vpop.f32.mrf.mxu0  ;;  %14863 = vmatmul.mubr.msk.bf16.gmra.mxu0 %vm22742_vm0, %v20700_v5  ;;  %v11047_v44 = vpack.c.bf16 %v10979_v60, %v10979_v60  ;;  %v10982_v3 = vsel %vm10854_vm13, %v10790_v19, %v10918_v11  ;;  %v10719_v27 = vsel %vm10015_vm9, %v20672_v50, %v10527_v25  ;;  %v9893_v13 = vshra.s32 %v23124_v48, 2 }
 0x486   :  { %v20787_v26 = vpop.f32.mrf.mxu1  ;;  %14866 = vmatmul.mubr.msk.bf16.gmra.mxu1 %vm22742_vm0, %v20700_v5  ;;  %11549 = vmatprep.mubr.bf16.mxu0 %v22757_v33  ;;  %vm10086_vm1 = vcmp.eq.s32.totalorder %v9958_v0, 1  ;;  %v10984_v23 = vsel %vm10856_vm8, %v10792_v42, %v10920_v45  ;;  %v10721_v62 = vsel %vm10017_vm12, %v20678_v40, %v10529_v9  ;;  %vm10020_vm2 = vcmp.eq.s32.totalorder %v9956_v35, 0  ;;  %v23129_v35 = vld [vmem:[#allocation72_spill] sm:$0xff] }
 0x487   :  { %v8751_v16 = vpop.f32.mrf.mxu0  ;;  %11602 = vmatprep.mubr.bf16.mxu1 %v22757_v33  ;;  %vm10022_vm3 = vcmp.eq.s32.totalorder %v9958_v0, 0  ;;  %vm23125_vm4 = vcmask 1043456   ;;  %v11050_v19 = vpack.c.bf16 %v10982_v3, %v10982_v3  ;;  %v10789_v42 = vadd.f32 %v20482_v38, %v10719_v27  ;;  %v23130_v0 = vld [vmem:[#allocation73_spill] sm:$0xff] }
 0x488   :  { %v8804_v12 = vpop.f32.mrf.mxu1  ;;  %v11150_v50 = vsel %vm23125_vm4, %v11045_v47, 0  ;;  %vm23126_vm5 = vmmov %vm23125_vm4  ;;  %v11052_v49 = vpack.c.bf16 %v10984_v23, %v10984_v23  ;;  %vm10147_vm10 = vcmp.eq.s32.totalorder %v20803_v34, 2  ;;  %vm10083_vm12 = vcmp.eq.s32.totalorder %v20803_v34, 1 }
 0x489   :  { %v8753_v39 = vpop.f32.mrf.mxu0  ;;  %v11156_v40 = vsel %vm23126_vm5, %v11047_v44, 0  ;;  %vm23127_vm6 = vmmov %vm23125_vm4  ;;  %v10917_v9 = vmul.f32 0.01, %v10789_v42  ;;  %vm10853_vm9 = vcmp.ge.f32.partialorder %v10789_v42, 0.0 }
 0x48a   :  { %v8806_v20 = vpop.f32.mrf.mxu1  ;;  %vm23128_vm7 = vmmov %vm23125_vm4 }
 0x48b   :  { %v8755_v51 = vpop.f32.mrf.mxu0 }
 0x48c   :  { %v10340_v54 = vsel %vm10148_vm11, %v8751_v16, %v8755_v51  ;;  %v8808_v14 = vpop.f32.mrf.mxu1  ;;  %v10791_v51 = vadd.f32 %v20482_v38, %v10721_v62 }
 0x48d   :  { %v10532_v52 = vsel %vm10084_vm14, %v8745_v30, %v10340_v54  ;;  %v10342_v36 = vsel %vm10150_vm15, %v8804_v12, %v8808_v14  ;;  %v20810_v46 = vpop.f32.mrf.mxu0  ;;  %14868 = vmatmul.mubr.msk.bf16.vlgmr.msra.gmra.mxu0 %vm22742_vm0, %v20661_v32  ;;  %v20822_v30 = vand.u32 3, %v9893_v13  ;;  %v10339_v13 = vsel %vm10147_vm10, %v20781_v6, %v8753_v39  ;;  %v23131_v54 = vld [vmem:[#allocation70_spill] sm:$0xff] }
 0x48e   :  { %v10534_v11 = vsel %vm10086_vm1, %v8798_v41, %v10342_v36  ;;  %v20816_v45 = vpop.f32.mrf.mxu1  ;;  %14871 = vmatmul.mubr.msk.bf16.vlgmr.msra.gmra.mxu1 %vm22742_vm0, %v20661_v32  ;;  %11638 = vmatpush1.bf16.msra.mxu0 %v11150_v50  ;;  %v10724_v16 = vsel %vm10020_vm2, %v20759_v63, %v10532_v52  ;;  %v9896_v63 = vshra.s32 %v23129_v35, 2  ;;  %v10919_v3 = vmul.f32 0.01, %v10791_v51 }
 0x48f   :  { %11691 = vmatpush1.bf16.msra.mxu1 %v11156_v40  ;;  %14879 = vmatprep.subr.msk.bf16.mxu0 %vm23127_vm6, %v11050_v19  ;;  %v20827_v41 = vpop.f32.mrf.mxu0  ;;  %v10726_v36 = vsel %vm10022_vm3, %v20764_v43, %v10534_v11  ;;  %v10794_v25 = vadd.f32 %v20482_v38, %v10724_v16  ;;  %v9898_v43 = vshra.s32 %v23130_v0, 2  ;;  %vm10149_vm13 = vcmp.eq.s32.totalorder %v20822_v30, 2 }
 0x490   :  { %14882 = vmatprep.subr.msk.bf16.mxu1 %vm23128_vm7, %v11052_v49  ;;  %v20832_v60 = vpop.f32.mrf.mxu1  ;;  %11559 = vmatprep.mubr.bf16.mxu0 %v22757_v33  ;;  %v10796_v47 = vadd.f32 %v20482_v38, %v10726_v36  ;;  %vm10855_vm8 = vcmp.ge.f32.partialorder %v10791_v51, 0.0  ;;  %vm10085_vm11 = vcmp.eq.s32.totalorder %v20822_v30, 1  ;;  %v9895_v14 = vshra.s32 %v23131_v54, 2 }
 0x491   :  { %v20835_v23 = vpop.f32.mrf.mxu0  ;;  %11612 = vmatprep.mubr.bf16.mxu1 %v22757_v33  ;;  %v9960_v52 = vand.u32 3, %v9896_v63  ;;  %v10341_v50 = vsel %vm10149_vm13, %v20787_v26, %v8806_v20  ;;  %v10922_v19 = vmul.f32 0.01, %v10794_v25  ;;  %v9962_v40 = vand.u32 3, %v9898_v43 }
 0x492   :  { %v20841_v12 = vpop.f32.mrf.mxu1  ;;  %v10981_v6 = vsel %vm10853_vm9, %v10789_v42, %v10917_v9  ;;  %v10924_v39 = vmul.f32 0.01, %v10796_v47  ;;  %v10983_v16 = vsel %vm10855_vm8, %v10791_v51, %v10919_v3  ;;  %vm10858_vm14 = vcmp.ge.f32.partialorder %v10794_v25, 0.0 }
 0x493   :  { %v8851_v44 = vpop.f32.mrf.mxu0  ;;  %vm10019_vm15 = vcmp.eq.s32.totalorder %v20803_v34, 0  ;;  %v10531_v26 = vsel %vm10083_vm12, %v20767_v22, %v10339_v13  ;;  %vm10021_vm1 = vcmp.eq.s32.totalorder %v20822_v30, 0  ;;  %vm10860_vm2 = vcmp.ge.f32.partialorder %v10796_v47, 0.0  ;;  %v23132_v34 = vld [vmem:[#allocation71_spill] sm:$0xff] }
 0x494   :  { %v8904_v27 = vpop.f32.mrf.mxu1  ;;  %v10533_v42 = vsel %vm10085_vm11, %v20773_v2, %v10341_v50  ;;  %v20871_v63 = vand.u32 3, %v9895_v14  ;;  %vm10152_vm3 = vcmp.eq.s32.totalorder %v9960_v52, 2  ;;  %v11049_v51 = vpack.c.bf16 %v10981_v6, %v10981_v6 }
 0x495   :  { %v20849_v62 = vpop.f32.mrf.mxu0  ;;  %14869 = vmatmul.mubr.msk.bf16.gmra.mxu0 %vm22742_vm0, %v20700_v5  ;;  %vm10088_vm4 = vcmp.eq.s32.totalorder %v9960_v52, 1  ;;  %vm10154_vm5 = vcmp.eq.s32.totalorder %v9962_v40, 2  ;;  %v11051_v9 = vpack.c.bf16 %v10983_v16, %v10983_v16  ;;  %v10986_v3 = vsel %vm10858_vm14, %v10794_v25, %v10922_v19 }
 0x496   :  { %v20855_v11 = vpop.f32.mrf.mxu1  ;;  %14872 = vmatmul.mubr.msk.bf16.gmra.mxu1 %vm22742_vm0, %v20700_v5  ;;  %11655 = vmatprep.mubr.bf16.mxu0 %v22757_v33  ;;  %v10723_v22 = vsel %vm10019_vm15, %v20742_v56, %v10531_v26  ;;  %v9897_v13 = vshra.s32 %v23132_v34, 2  ;;  %vm10090_vm6 = vcmp.eq.s32.totalorder %v9962_v40, 1  ;;  %v10988_v35 = vsel %vm10860_vm2, %v10796_v47, %v10924_v39 }
 0x497   :  { %v8857_v49 = vpop.f32.mrf.mxu0  ;;  %11708 = vmatprep.mubr.bf16.mxu1 %v22757_v33  ;;  %v10725_v2 = vsel %vm10021_vm1, %v20748_v53, %v10533_v42  ;;  %vm10024_vm7 = vcmp.eq.s32.totalorder %v9960_v52, 0  ;;  %vm10026_vm10 = vcmp.eq.s32.totalorder %v9962_v40, 0  ;;  %vm23133_vm13 = vcmask 1043456   ;;  %v23137_v52 = vld [vmem:[#allocation84_spill] sm:$0xff]  ;;  %v23138_v40 = vld [vmem:[#allocation85_spill] sm:$0xff] }
 0x498   :  { %v8910_v20 = vpop.f32.mrf.mxu1  ;;  %v11162_v56 = vsel %vm23133_vm13, %v11049_v51, 0  ;;  %v11054_v25 = vpack.c.bf16 %v10986_v3, %v10986_v3  ;;  %v10793_v47 = vadd.f32 %v20482_v38, %v10723_v22  ;;  %vm23134_vm9 = vmmov %vm23133_vm13  ;;  %v11056_v30 = vpack.c.bf16 %v10988_v35, %v10988_v35 }
 0x499   :  { %v8859_v36 = vpop.f32.mrf.mxu0  ;;  %v11168_v53 = vsel %vm23134_vm9, %v11051_v9, 0  ;;  %vm23135_vm12 = vmmov %vm23134_vm9  ;;  %vm10151_vm11 = vcmp.eq.s32.totalorder %v20871_v63, 2  ;;  %vm10087_vm1 = vcmp.eq.s32.totalorder %v20871_v63, 1 }
 0x49a   :  { %v8912_v43 = vpop.f32.mrf.mxu1  ;;  %vm23136_vm8 = vmmov %vm23134_vm9  ;;  %v10921_v42 = vmul.f32 0.01, %v10793_v47  ;;  %vm10857_vm15 = vcmp.ge.f32.partialorder %v10793_v47, 0.0 }
 0x49b   :  { %v8861_v0 = vpop.f32.mrf.mxu0 }
 0x49c   :  { %v10344_v14 = vsel %vm10152_vm3, %v8857_v49, %v8861_v0  ;;  %v8914_v50 = vpop.f32.mrf.mxu1  ;;  %v10795_v0 = vadd.f32 %v20482_v38, %v10725_v2 }
 0x49d   :  { %v10536_v6 = vsel %vm10088_vm4, %v8851_v44, %v10344_v14  ;;  %v10346_v54 = vsel %vm10154_vm5, %v8910_v20, %v8914_v50  ;;  %v20878_v48 = vpop.f32.mrf.mxu0  ;;  %14874 = vmatmul.mubr.msk.bf16.vlgmr.msra.gmra.mxu0 %vm22742_vm0, %v20661_v32  ;;  %v20890_v44 = vand.u32 3, %v9897_v13  ;;  %v10343_v13 = vsel %vm10151_vm11, %v20849_v62, %v8859_v36  ;;  %v23139_v14 = vld [vmem:[#allocation82_spill] sm:$0xff] }
 0x49e   :  { %v10538_v19 = vsel %vm10090_vm6, %v8904_v27, %v10346_v54  ;;  %v20884_v39 = vpop.f32.mrf.mxu1  ;;  %14877 = vmatmul.mubr.msk.bf16.vlgmr.msra.gmra.mxu1 %vm22742_vm0, %v20661_v32  ;;  %11744 = vmatpush1.bf16.msra.mxu0 %v11162_v56  ;;  %v10728_v49 = vsel %vm10024_vm7, %v20827_v41, %v10536_v6  ;;  %v9900_v41 = vshra.s32 %v23137_v52, 2  ;;  %v10923_v3 = vmul.f32 0.01, %v10795_v0 }
 0x49f   :  { %11797 = vmatpush1.bf16.msra.mxu1 %v11168_v53  ;;  %14885 = vmatprep.subr.msk.bf16.mxu0 %vm23135_vm12, %v11054_v25  ;;  %v20895_v27 = vpop.f32.mrf.mxu0  ;;  %v10730_v54 = vsel %vm10026_vm10, %v20832_v60, %v10538_v19  ;;  %v10798_v26 = vadd.f32 %v20482_v38, %v10728_v49  ;;  %v9902_v60 = vshra.s32 %v23138_v40, 2  ;;  %vm10153_vm14 = vcmp.eq.s32.totalorder %v20890_v44, 2 }
 0x4a0   :  { %14888 = vmatprep.subr.msk.bf16.mxu1 %vm23136_vm8, %v11056_v30  ;;  %v20900_v16 = vpop.f32.mrf.mxu1  ;;  %11665 = vmatprep.mubr.bf16.mxu0 %v22757_v33  ;;  %v10800_v51 = vadd.f32 %v20482_v38, %v10730_v54  ;;  %vm10859_vm2 = vcmp.ge.f32.partialorder %v10795_v0, 0.0  ;;  %vm10089_vm3 = vcmp.eq.s32.totalorder %v20890_v44, 1  ;;  %v9899_v50 = vshra.s32 %v23139_v14, 2 }
 0x4a1   :  { %v20903_v35 = vpop.f32.mrf.mxu0  ;;  %11718 = vmatprep.mubr.bf16.mxu1 %v22757_v33  ;;  %v9964_v6 = vand.u32 3, %v9900_v41  ;;  %v10345_v56 = vsel %vm10153_vm14, %v20855_v11, %v8912_v43  ;;  %v10926_v25 = vmul.f32 0.01, %v10798_v26  ;;  %v9966_v53 = vand.u32 3, %v9902_v60 }
 0x4a2   :  { %v20909_v20 = vpop.f32.mrf.mxu1  ;;  %v10985_v62 = vsel %vm10857_vm15, %v10793_v47, %v10921_v42  ;;  %v10928_v36 = vmul.f32 0.01, %v10800_v51  ;;  %v10987_v49 = vsel %vm10859_vm2, %v10795_v0, %v10923_v3  ;;  %vm10862_vm4 = vcmp.ge.f32.partialorder %v10798_v26, 0.0 }
 0x4a3   :  { %v8957_v9 = vpop.f32.mrf.mxu0  ;;  %vm10023_vm5 = vcmp.eq.s32.totalorder %v20871_v63, 0  ;;  %v10535_v11 = vsel %vm10087_vm1, %v20835_v23, %v10343_v13  ;;  %vm10025_vm6 = vcmp.eq.s32.totalorder %v20890_v44, 0  ;;  %vm10864_vm7 = vcmp.ge.f32.partialorder %v10800_v51, 0.0  ;;  %v23140_v63 = vld [vmem:[#allocation83_spill] sm:$0xff] }
 0x4a4   :  { %v9010_v22 = vpop.f32.mrf.mxu1  ;;  %v10537_v47 = vsel %vm10089_vm3, %v20841_v12, %v10345_v56  ;;  %v20939_v41 = vand.u32 3, %v9899_v50  ;;  %vm10156_vm10 = vcmp.eq.s32.totalorder %v9964_v6, 2  ;;  %v11053_v0 = vpack.c.bf16 %v10985_v62, %v10985_v62 }
 0x4a5   :  { %v20917_v2 = vpop.f32.mrf.mxu0  ;;  %14875 = vmatmul.mubr.msk.bf16.gmra.mxu0 %vm22742_vm0, %v20700_v5  ;;  %vm10092_vm13 = vcmp.eq.s32.totalorder %v9964_v6, 1  ;;  %vm10158_vm9 = vcmp.eq.s32.totalorder %v9966_v53, 2  ;;  %v11055_v42 = vpack.c.bf16 %v10987_v49, %v10987_v49  ;;  %v10990_v3 = vsel %vm10862_vm4, %v10798_v26, %v10926_v25 }
 0x4a6   :  { %v20923_v19 = vpop.f32.mrf.mxu1  ;;  %14878 = vmatmul.mubr.msk.bf16.gmra.mxu1 %vm22742_vm0, %v20700_v5  ;;  %11761 = vmatprep.mubr.bf16.mxu0 %v22757_v33  ;;  %v10727_v23 = vsel %vm10023_vm5, %v20810_v46, %v10535_v11  ;;  %v9901_v13 = vshra.s32 %v23140_v63, 2  ;;  %vm10094_vm12 = vcmp.eq.s32.totalorder %v9966_v53, 1  ;;  %v10992_v52 = vsel %vm10864_vm7, %v10800_v51, %v10928_v36 }
 0x4a7   :  { %v8963_v30 = vpop.f32.mrf.mxu0  ;;  %11814 = vmatprep.mubr.bf16.mxu1 %v22757_v33  ;;  %v10729_v12 = vsel %vm10025_vm6, %v20816_v45, %v10537_v47  ;;  %vm10028_vm8 = vcmp.eq.s32.totalorder %v9964_v6, 0  ;;  %vm10030_vm11 = vcmp.eq.s32.totalorder %v9966_v53, 0  ;;  %vm23141_vm14 = vcmask 1043456   ;;  %v23145_v6 = vld [vmem:[#allocation93_spill] sm:$0xff]  ;;  %v23146_v53 = vld [vmem:[#allocation94_spill] sm:$0xff] }
 0x4a8   :  { %v9016_v43 = vpop.f32.mrf.mxu1  ;;  %v11174_v46 = vsel %vm23141_vm14, %v11053_v0, 0  ;;  %v11058_v26 = vpack.c.bf16 %v10990_v3, %v10990_v3  ;;  %v10797_v51 = vadd.f32 %v20482_v38, %v10727_v23  ;;  %vm23142_vm15 = vmmov %vm23141_vm14  ;;  %v11060_v44 = vpack.c.bf16 %v10992_v52, %v10992_v52 }
 0x4a9   :  { %v8965_v54 = vpop.f32.mrf.mxu0  ;;  %v11180_v45 = vsel %vm23142_vm15, %v11055_v42, 0  ;;  %vm23143_vm1 = vmmov %vm23141_vm14  ;;  %vm10155_vm3 = vcmp.eq.s32.totalorder %v20939_v41, 2  ;;  %vm10091_vm6 = vcmp.eq.s32.totalorder %v20939_v41, 1 }
 0x4aa   :  { %v9018_v60 = vpop.f32.mrf.mxu1  ;;  %vm23144_vm2 = vmmov %vm23143_vm1  ;;  %v10925_v47 = vmul.f32 0.01, %v10797_v51  ;;  %vm10861_vm5 = vcmp.ge.f32.partialorder %v10797_v51, 0.0 }
 0x4ab   :  { %v8967_v40 = vpop.f32.mrf.mxu0 }
 0x4ac   :  { %v10348_v50 = vsel %vm10156_vm10, %v8963_v30, %v8967_v40  ;;  %v9020_v56 = vpop.f32.mrf.mxu1  ;;  %v10799_v40 = vadd.f32 %v20482_v38, %v10729_v12 }
 0x4ad   :  { %v10540_v62 = vsel %vm10092_vm13, %v8957_v9, %v10348_v50  ;;  %v10350_v14 = vsel %vm10158_vm9, %v9016_v43, %v9020_v56  ;;  %v20946_v34 = vpop.f32.mrf.mxu0  ;;  %14880 = vmatmul.mubr.msk.bf16.vlgmr.msra.gmra.mxu0 %vm22742_vm0, %v20661_v32  ;;  %v20958_v9 = vand.u32 3, %v9901_v13  ;;  %v10347_v13 = vsel %vm10155_vm3, %v20917_v2, %v8965_v54  ;;  %v23147_v50 = vld [vmem:[#allocation91_spill] sm:$0xff] }
 0x4ae   :  { %v10542_v25 = vsel %vm10094_vm12, %v9010_v22, %v10350_v14  ;;  %v20952_v36 = vpop.f32.mrf.mxu1  ;;  %14883 = vmatmul.mubr.msk.bf16.vlgmr.msra.gmra.mxu1 %vm22742_vm0, %v20661_v32  ;;  %11850 = vmatpush1.bf16.msra.mxu0 %v11174_v46  ;;  %v10732_v30 = vsel %vm10028_vm8, %v20895_v27, %v10540_v62  ;;  %v9904_v27 = vshra.s32 %v23145_v6, 2  ;;  %v10927_v3 = vmul.f32 0.01, %v10799_v40 }
 0x4af   :  { %11903 = vmatpush1.bf16.msra.mxu1 %v11180_v45  ;;  %14891 = vmatprep.subr.msk.bf16.mxu0 %vm23143_vm1, %v11058_v26  ;;  %v20963_v22 = vpop.f32.mrf.mxu0  ;;  %v10734_v14 = vsel %vm10030_vm11, %v20900_v16, %v10542_v25  ;;  %v10802_v11 = vadd.f32 %v20482_v38, %v10732_v30  ;;  %v9906_v16 = vshra.s32 %v23146_v53, 2  ;;  %vm10157_vm4 = vcmp.eq.s32.totalorder %v20958_v9, 2 }
 0x4b0   :  { %14894 = vmatprep.subr.msk.bf16.mxu1 %vm23144_vm2, %v11060_v44  ;;  %v20968_v49 = vpop.f32.mrf.mxu1  ;;  %11771 = vmatprep.mubr.bf16.mxu0 %v22757_v33  ;;  %v10804_v0 = vadd.f32 %v20482_v38, %v10734_v14  ;;  %vm10863_vm7 = vcmp.ge.f32.partialorder %v10799_v40, 0.0  ;;  %vm10093_vm10 = vcmp.eq.s32.totalorder %v20958_v9, 1  ;;  %v9903_v56 = vshra.s32 %v23147_v50, 2 }
 0x4b1   :  { %v20971_v52 = vpop.f32.mrf.mxu0  ;;  %11824 = vmatprep.mubr.bf16.mxu1 %v22757_v33  ;;  %v9968_v62 = vand.u32 3, %v9904_v27  ;;  %v10349_v46 = vsel %vm10157_vm4, %v20923_v19, %v9018_v60  ;;  %v10930_v26 = vmul.f32 0.01, %v10802_v11  ;;  %v9970_v45 = vand.u32 3, %v9906_v16 }
 0x4b2   :  { %v20977_v43 = vpop.f32.mrf.mxu1  ;;  %v10989_v2 = vsel %vm10861_vm5, %v10797_v51, %v10925_v47  ;;  %v10932_v54 = vmul.f32 0.01, %v10804_v0  ;;  %v10991_v30 = vsel %vm10863_vm7, %v10799_v40, %v10927_v3  ;;  %vm10866_vm13 = vcmp.ge.f32.partialorder %v10802_v11, 0.0 }
 0x4b3   :  { %v9063_v42 = vpop.f32.mrf.mxu0  ;;  %vm10027_vm9 = vcmp.eq.s32.totalorder %v20939_v41, 0  ;;  %v10539_v19 = vsel %vm10091_vm6, %v20903_v35, %v10347_v13  ;;  %vm10029_vm12 = vcmp.eq.s32.totalorder %v20958_v9, 0  ;;  %vm10868_vm8 = vcmp.ge.f32.partialorder %v10804_v0, 0.0  ;;  %v23148_v41 = vld [vmem:[#allocation92_spill] sm:$0xff] }
 0x4b4   :  { %v9116_v23 = vpop.f32.mrf.mxu1  ;;  %v10541_v51 = vsel %vm10093_vm10, %v20909_v20, %v10349_v46  ;;  %v21007_v27 = vand.u32 3, %v9903_v56  ;;  %vm10160_vm11 = vcmp.eq.s32.totalorder %v9968_v62, 2  ;;  %v11057_v40 = vpack.c.bf16 %v10989_v2, %v10989_v2 }
 0x4b5   :  { %v20985_v12 = vpop.f32.mrf.mxu0  ;;  %14881 = vmatmul.mubr.msk.bf16.gmra.mxu0 %vm22742_vm0, %v20700_v5  ;;  %vm10096_vm14 = vcmp.eq.s32.totalorder %v9968_v62, 1  ;;  %vm10162_vm15 = vcmp.eq.s32.totalorder %v9970_v45, 2  ;;  %v11059_v47 = vpack.c.bf16 %v10991_v30, %v10991_v30  ;;  %v10994_v3 = vsel %vm10866_vm13, %v10802_v11, %v10930_v26 }
 0x4b6   :  { %v20991_v25 = vpop.f32.mrf.mxu1  ;;  %14884 = vmatmul.mubr.msk.bf16.gmra.mxu1 %vm22742_vm0, %v20700_v5  ;;  %11867 = vmatprep.mubr.bf16.mxu0 %v22757_v33  ;;  %v10731_v35 = vsel %vm10027_vm9, %v20878_v48, %v10539_v19  ;;  %v9905_v13 = vshra.s32 %v23148_v41, 2  ;;  %vm10098_vm1 = vcmp.eq.s32.totalorder %v9970_v45, 1  ;;  %v10996_v6 = vsel %vm10868_vm8, %v10804_v0, %v10932_v54 }
 0x4b7   :  { %v9069_v44 = vpop.f32.mrf.mxu0  ;;  %11920 = vmatprep.mubr.bf16.mxu1 %v22757_v33  ;;  %v10733_v20 = vsel %vm10029_vm12, %v20884_v39, %v10541_v51  ;;  %vm10032_vm2 = vcmp.eq.s32.totalorder %v9968_v62, 0  ;;  %vm10034_vm3 = vcmp.eq.s32.totalorder %v9970_v45, 0  ;;  %vm23149_vm4 = vcmask 1043456   ;;  %v23153_v62 = vld [vmem:[#allocation98_spill] sm:$0xff]  ;;  %v23154_v45 = vld [vmem:[#allocation99_spill] sm:$0xff] }
 0x4b8   :  { %v9122_v60 = vpop.f32.mrf.mxu1  ;;  %v11186_v48 = vsel %vm23149_vm4, %v11057_v40, 0  ;;  %v11062_v11 = vpack.c.bf16 %v10994_v3, %v10994_v3  ;;  %v10801_v0 = vadd.f32 %v20482_v38, %v10731_v35  ;;  %vm23150_vm5 = vmmov %vm23149_vm4  ;;  %v11064_v9 = vpack.c.bf16 %v10996_v6, %v10996_v6 }
 0x4b9   :  { %v9071_v14 = vpop.f32.mrf.mxu0  ;;  %v11192_v39 = vsel %vm23150_vm5, %v11059_v47, 0  ;;  %vm23151_vm6 = vmmov %vm23149_vm4  ;;  %vm10159_vm10 = vcmp.eq.s32.totalorder %v21007_v27, 2  ;;  %vm10095_vm12 = vcmp.eq.s32.totalorder %v21007_v27, 1 }
 0x4ba   :  { %v9124_v16 = vpop.f32.mrf.mxu1  ;;  %vm23152_vm7 = vmmov %vm23149_vm4  ;;  %vm10865_vm9 = vcmp.ge.f32.partialorder %v10801_v0, 0.0  ;;  %v10351_v35 = vsel %vm10159_vm10, %v20985_v12, %v9071_v14 }
 0x4bb   :  { %v9073_v53 = vpop.f32.mrf.mxu0 }
 0x4bc   :  { %v10352_v56 = vsel %vm10160_vm11, %v9069_v44, %v9073_v53  ;;  %v9126_v46 = vpop.f32.mrf.mxu1  ;;  %v10803_v53 = vadd.f32 %v20482_v38, %v10733_v20  ;;  %v23155_v20 = vld [vmem:[#allocation96_spill] sm:$0xff] }
 0x4bd   :  { %v10544_v2 = vsel %vm10096_vm14, %v9063_v42, %v10352_v56  ;;  %v10354_v50 = vsel %vm10162_vm15, %v9122_v60, %v9126_v46  ;;  %v21014_v63 = vpop.f32.mrf.mxu0  ;;  %14886 = vmatmul.mubr.msk.bf16.vlgmr.msra.gmra.mxu0 %vm22742_vm0, %v20661_v32  ;;  %v21026_v42 = vand.u32 3, %v9905_v13  ;;  %v10929_v60 = vmul.f32 0.01, %v10801_v0 }
 0x4be   :  { %v10546_v26 = vsel %vm10098_vm1, %v9116_v23, %v10354_v50  ;;  %v21020_v54 = vpop.f32.mrf.mxu1  ;;  %14889 = vmatmul.mubr.msk.bf16.vlgmr.msra.gmra.mxu1 %vm22742_vm0, %v20661_v32  ;;  %11956 = vmatpush1.bf16.msra.mxu0 %v11186_v48  ;;  %v10736_v44 = vsel %vm10032_vm2, %v20963_v22, %v10544_v2  ;;  %v9908_v22 = vshra.s32 %v23153_v62, 2  ;;  %v10931_v47 = vmul.f32 0.01, %v10803_v53 }
 0x4bf   :  { %12009 = vmatpush1.bf16.msra.mxu1 %v11192_v39  ;;  %14897 = vmatprep.subr.msk.bf16.mxu0 %vm23151_vm6, %v11062_v11  ;;  %v21031_v23 = vpop.f32.mrf.mxu0  ;;  %v10738_v50 = vsel %vm10034_vm3, %v20968_v49, %v10546_v26  ;;  %v10806_v30 = vadd.f32 %v20482_v38, %v10736_v44  ;;  %v9910_v49 = vshra.s32 %v23154_v45, 2  ;;  %vm10161_vm13 = vcmp.eq.s32.totalorder %v21026_v42, 2 }
 0x4c0   :  { %14900 = vmatprep.subr.msk.bf16.mxu1 %vm23152_vm7, %v11064_v9  ;;  %v21036_v32 = vpop.f32.mrf.mxu1  ;;  %11877 = vmatprep.mubr.bf16.mxu0 %v22757_v33  ;;  %v10808_v51 = vadd.f32 %v20482_v38, %v10738_v50  ;;  %vm10867_vm8 = vcmp.ge.f32.partialorder %v10803_v53, 0.0  ;;  %vm10097_vm11 = vcmp.eq.s32.totalorder %v21026_v42, 1  ;;  %v9907_v56 = vshra.s32 %v23155_v20, 2 }
 0x4c1   :  { %v21039_v6 = vpop.f32.mrf.mxu0  ;;  %11930 = vmatprep.mubr.bf16.mxu1 %v22757_v33  ;;  %v9972_v46 = vand.u32 3, %v9908_v22  ;;  %v10353_v2 = vsel %vm10161_vm13, %v20991_v25, %v9124_v16  ;;  %v10934_v48 = vmul.f32 0.01, %v10806_v30  ;;  %v9974_v26 = vand.u32 3, %v9910_v49 }
 0x4c2   :  { %v21045_v19 = vpop.f32.mrf.mxu1  ;;  %v10993_v12 = vsel %vm10865_vm9, %v10801_v0, %v10929_v60  ;;  %v10936_v14 = vmul.f32 0.01, %v10808_v51  ;;  %v10995_v9 = vsel %vm10867_vm8, %v10803_v53, %v10931_v47  ;;  %vm10870_vm14 = vcmp.ge.f32.partialorder %v10806_v30, 0.0 }
 0x4c3   :  { %v9169_v40 = vpop.f32.mrf.mxu0  ;;  %vm10031_vm15 = vcmp.eq.s32.totalorder %v21007_v27, 0  ;;  %v10543_v25 = vsel %vm10095_vm12, %v20971_v52, %v10351_v35  ;;  %vm10033_vm1 = vcmp.eq.s32.totalorder %v21026_v42, 0  ;;  %vm10872_vm2 = vcmp.ge.f32.partialorder %v10808_v51, 0.0  ;;  %v23156_v27 = vld [vmem:[#allocation97_spill] sm:$0xff] }
 0x4c4   :  { %v9222_v3 = vpop.f32.mrf.mxu1  ;;  %v10545_v0 = vsel %vm10097_vm11, %v20977_v43, %v10353_v2  ;;  %v21075_v50 = vand.u32 3, %v9907_v56  ;;  %vm10164_vm3 = vcmp.eq.s32.totalorder %v9972_v46, 2  ;;  %v11061_v53 = vpack.c.bf16 %v10993_v12, %v10993_v12 }
 0x4c5   :  { %v21053_v13 = vpop.f32.mrf.mxu0  ;;  %14887 = vmatmul.mubr.msk.bf16.gmra.mxu0 %vm22742_vm0, %v20700_v5  ;;  %vm10100_vm4 = vcmp.eq.s32.totalorder %v9972_v46, 1  ;;  %vm10166_vm5 = vcmp.eq.s32.totalorder %v9974_v26, 2  ;;  %v11063_v49 = vpack.c.bf16 %v10995_v9, %v10995_v9  ;;  %v10998_v60 = vsel %vm10870_vm14, %v10806_v30, %v10934_v48  ;;  %v21084_v30 = vld [vmem:[#allocation12] sm:$0xff]  }
 0x4c6   :  { %v21059_v11 = vpop.f32.mrf.mxu1  ;;  %14890 = vmatmul.mubr.msk.bf16.gmra.mxu1 %vm22742_vm0, %v20700_v5  ;;  %11973 = vmatprep.mubr.bf16.mxu0 %v22757_v33  ;;  %v10735_v52 = vsel %vm10031_vm15, %v20946_v34, %v10543_v25  ;;  %v9909_v47 = vshra.s32 %v23156_v27, 2  ;;  %vm10102_vm6 = vcmp.eq.s32.totalorder %v9974_v26, 1  ;;  %v11000_v45 = vsel %vm10872_vm2, %v10808_v51, %v10936_v14 }
 0x4c7   :  { %v9175_v39 = vpop.f32.mrf.mxu0  ;;  %12026 = vmatprep.mubr.bf16.mxu1 %v22757_v33  ;;  %v10737_v43 = vsel %vm10033_vm1, %v20952_v36, %v10545_v0  ;;  %vm10036_vm7 = vcmp.eq.s32.totalorder %v9972_v46, 0  ;;  %vm10038_vm10 = vcmp.eq.s32.totalorder %v9974_v26, 0  ;;  %vm23157_vm13 = vcmask 1043456   ;;  %v23161_v46 = vld [vmem:[#allocation36_spill] sm:$0xff] }
 0x4c8   :  { %v9228_v16 = vpop.f32.mrf.mxu1  ;;  %v11198_v34 = vsel %vm23157_vm13, %v11061_v53, 0  ;;  %v11066_v51 = vpack.c.bf16 %v10998_v60, %v10998_v60  ;;  %v10805_v48 = vadd.f32 %v20482_v38, %v10735_v52  ;;  %vm23158_vm9 = vmmov %vm23157_vm13  ;;  %v11068_v14 = vpack.c.bf16 %v11000_v45, %v11000_v45  ;;  %v23162_v26 = vld [vmem:[#allocation40_spill] sm:$0xff] }
 0x4c9   :  { %v9177_v44 = vpop.f32.mrf.mxu0  ;;  %v21096_v9 = vand.u32 3, %v9909_v47  ;;  %vm23159_vm12 = vmmov %vm23158_vm9  ;;  %vm10163_vm11 = vcmp.eq.s32.totalorder %v21075_v50, 2  ;;  %vm10099_vm1 = vcmp.eq.s32.totalorder %v21075_v50, 1 }
 0x4ca   :  { %v9230_v22 = vpop.f32.mrf.mxu1  ;;  %vm23160_vm8 = vmmov %vm23158_vm9  ;;  %vm10869_vm15 = vcmp.ge.f32.partialorder %v10805_v48, 0.0 }
 0x4cb   :  { %v9179_v35 = vpop.f32.mrf.mxu0  ;;  %vm10165_vm14 = vcmp.eq.s32.totalorder %v21096_v9, 2 }
 0x4cc   :  { %v10356_v56 = vsel %vm10164_vm3, %v9175_v39, %v9179_v35  ;;  %v9232_v2 = vpop.f32.mrf.mxu1  ;;  %v10807_v39 = vadd.f32 %v20482_v38, %v10737_v43  ;;  %v10355_v43 = vsel %vm10163_vm11, %v21053_v13, %v9177_v44  ;;  %vm10101_vm3 = vcmp.eq.s32.totalorder %v21096_v9, 1 }
 0x4cd   :  { %v10548_v12 = vsel %vm10100_vm4, %v9169_v40, %v10356_v56  ;;  %v10358_v62 = vsel %vm10166_vm5, %v9228_v16, %v9232_v2  ;;  %v21082_v20 = vpop.f32.mrf.mxu0  ;;  %14892 = vmatmul.mubr.msk.bf16.vlgmr.msra.gmra.mxu0 %vm22742_vm0, %v21084_v30  ;;  %v11204_v40 = vsel %vm23158_vm9, %v11063_v49, 0  ;;  %v10933_v49 = vmul.f32 0.01, %v10805_v48  ;;  %v23163_v2 = vld [vmem:[#allocation30_spill] sm:$0xff] }
 0x4ce   :  { %v10550_v42 = vsel %vm10102_vm6, %v9222_v3, %v10358_v62  ;;  %v21090_v36 = vpop.f32.mrf.mxu1  ;;  %14895 = vmatmul.mubr.msk.bf16.vlgmr.msra.gmra.mxu1 %vm22742_vm0, %v21084_v30  ;;  %12062 = vmatpush1.bf16.msra.mxu0 %v11198_v34  ;;  %v10740_v25 = vsel %vm10036_vm7, %v21031_v23, %v10548_v12  ;;  %v9912_v23 = vshra.s32 %v23161_v46, 2  ;;  %v10935_v47 = vmul.f32 0.01, %v10807_v39 }
 0x4cf   :  { %12115 = vmatpush1.bf16.msra.mxu1 %v11204_v40  ;;  %14903 = vmatprep.subr.msk.bf16.mxu0 %vm23159_vm12, %v11066_v51  ;;  %v21101_v62 = vpop.f32.mrf.mxu0  ;;  %v10742_v3 = vsel %vm10038_vm10, %v21036_v32, %v10550_v42  ;;  %v10810_v0 = vadd.f32 %v20482_v38, %v10740_v25  ;;  %v9914_v32 = vshra.s32 %v23162_v26, 2  ;;  %vm10871_vm2 = vcmp.ge.f32.partialorder %v10807_v39, 0.0 }
 0x4d0   :  { %14906 = vmatprep.subr.msk.bf16.mxu1 %vm23160_vm8, %v11068_v14  ;;  %v21106_v16 = vpop.f32.mrf.mxu1  ;;  %11983 = vmatprep.mubr.bf16.mxu0 %v22757_v33  ;;  %v10812_v60 = vadd.f32 %v20482_v38, %v10742_v3  ;;  %v9911_v12 = vshra.s32 %v23163_v2, 2  ;;  %v9976_v34 = vand.u32 3, %v9912_v23  ;;  %v10357_v51 = vsel %vm10165_vm14, %v21059_v11, %v9230_v22  ;;  %v21131_v14 = vld [vmem:[#allocation12 + $0x8] sm:$0xff]  }
 0x4d1   :  { %v21109_v45 = vpop.f32.mrf.mxu0  ;;  %12036 = vmatprep.mubr.bf16.mxu1 %v22757_v33  ;;  %v10938_v42 = vmul.f32 0.01, %v10810_v0  ;;  %v9978_v13 = vand.u32 3, %v9914_v32  ;;  %v10997_v44 = vsel %vm10869_vm15, %v10805_v48, %v10933_v49  ;;  %v10999_v3 = vsel %vm10871_vm2, %v10807_v39, %v10935_v47 }
 0x4d2   :  { %v21115_v53 = vpop.f32.mrf.mxu1  ;;  %v10940_v25 = vmul.f32 0.01, %v10812_v60  ;;  %vm10874_vm4 = vcmp.ge.f32.partialorder %v10810_v0, 0.0  ;;  %vm10035_vm5 = vcmp.eq.s32.totalorder %v21075_v50, 0  ;;  %v10547_v11 = vsel %vm10099_vm1, %v21039_v6, %v10355_v43  ;;  %v23164_v50 = vld [vmem:[#allocation37_spill] sm:$0xff] }
 0x4d3   :  { %v9275_v52 = vpop.f32.mrf.mxu0  ;;  %vm10037_vm6 = vcmp.eq.s32.totalorder %v21096_v9, 0  ;;  %vm10876_vm7 = vcmp.ge.f32.partialorder %v10812_v60, 0.0  ;;  %v10549_v48 = vsel %vm10101_vm3, %v21045_v19, %v10357_v51  ;;  %v21147_v32 = vand.u32 3, %v9911_v12 }
 0x4d4   :  { %v9328_v35 = vpop.f32.mrf.mxu1  ;;  %vm10168_vm10 = vcmp.eq.s32.totalorder %v9976_v34, 2  ;;  %v11065_v39 = vpack.c.bf16 %v10997_v44, %v10997_v44  ;;  %vm10104_vm13 = vcmp.eq.s32.totalorder %v9976_v34, 1  ;;  %vm10170_vm9 = vcmp.eq.s32.totalorder %v9978_v13, 2 }
 0x4d5   :  { %v21123_v56 = vpop.f32.mrf.mxu0  ;;  %14893 = vmatmul.mubr.msk.bf16.gmra.mxu0 %vm22742_vm0, %v20700_v5  ;;  %v11067_v47 = vpack.c.bf16 %v10999_v3, %v10999_v3  ;;  %v11002_v26 = vsel %vm10874_vm4, %v10810_v0, %v10938_v42  ;;  %v10739_v6 = vsel %vm10035_vm5, %v21014_v63, %v10547_v11  ;;  %v9913_v43 = vshra.s32 %v23164_v50, 2 }
 0x4d6   :  { %v21129_v40 = vpop.f32.mrf.mxu1  ;;  %14896 = vmatmul.mubr.msk.bf16.gmra.mxu1 %vm22742_vm0, %v21131_v14  ;;  %12079 = vmatprep.mubr.bf16.mxu0 %v22757_v33  ;;  %vm10106_vm12 = vcmp.eq.s32.totalorder %v9978_v13, 1  ;;  %v11004_v2 = vsel %vm10876_vm7, %v10812_v60, %v10940_v25  ;;  %v10741_v19 = vsel %vm10037_vm6, %v21020_v54, %v10549_v48  ;;  %vm10040_vm8 = vcmp.eq.s32.totalorder %v9976_v34, 0  ;;  %v23169_v34 = vld [vmem:[#allocation56_spill] sm:$0xff] }
 0x4d7   :  { %v9281_v5 = vpop.f32.mrf.mxu0  ;;  %12132 = vmatprep.mubr.bf16.mxu1 %v22757_v33  ;;  %vm10042_vm11 = vcmp.eq.s32.totalorder %v9978_v13, 0  ;;  %vm23165_vm14 = vcmask 1043456   ;;  %v11070_v0 = vpack.c.bf16 %v11002_v26, %v11002_v26  ;;  %v10809_v60 = vadd.f32 %v20482_v38, %v10739_v6  ;;  %v23170_v13 = vld [vmem:[#allocation57_spill] sm:$0xff] }
 0x4d8   :  { %v9334_v22 = vpop.f32.mrf.mxu1  ;;  %v11210_v63 = vsel %vm23165_vm14, %v11065_v39, 0  ;;  %vm23166_vm15 = vmmov %vm23165_vm14  ;;  %v11072_v9 = vpack.c.bf16 %v11004_v2, %v11004_v2  ;;  %vm10167_vm3 = vcmp.eq.s32.totalorder %v21147_v32, 2  ;;  %vm10103_vm6 = vcmp.eq.s32.totalorder %v21147_v32, 1 }
 0x4d9   :  { %v9283_v23 = vpop.f32.mrf.mxu0  ;;  %v11216_v54 = vsel %vm23166_vm15, %v11067_v47, 0  ;;  %vm23167_vm1 = vmmov %vm23165_vm14  ;;  %vm10873_vm5 = vcmp.ge.f32.partialorder %v10809_v60, 0.0 }
 0x4da   :  { %v9336_v49 = vpop.f32.mrf.mxu1  ;;  %vm23168_vm2 = vmmov %vm23167_vm1 }
 0x4db   :  { %v9285_v46 = vpop.f32.mrf.mxu0 }
 0x4dc   :  { %v10360_v12 = vsel %vm10168_vm10, %v9281_v5, %v9285_v46  ;;  %v9338_v51 = vpop.f32.mrf.mxu1  ;;  %v10811_v46 = vadd.f32 %v20482_v38, %v10741_v19 }
 0x4dd   :  { %v10552_v44 = vsel %vm10104_vm13, %v9275_v52, %v10360_v12  ;;  %v10362_v27 = vsel %vm10170_vm9, %v9334_v22, %v9338_v51  ;;  %v21154_v41 = vpop.f32.mrf.mxu0  ;;  %14898 = vmatmul.mubr.msk.bf16.vlgmr.msra.gmra.mxu0 %vm22742_vm0, %v21084_v30  ;;  %v21166_v52 = vand.u32 3, %v9913_v43  ;;  %v10937_v22 = vmul.f32 0.01, %v10809_v60  ;;  %v23171_v12 = vld [vmem:[#allocation55_spill] sm:$0xff] }
 0x4de   :  { %v10554_v42 = vsel %vm10106_vm12, %v9328_v35, %v10362_v27  ;;  %v21160_v25 = vpop.f32.mrf.mxu1  ;;  %14901 = vmatmul.mubr.msk.bf16.vlgmr.msra.gmra.mxu1 %vm22742_vm0, %v21084_v30  ;;  %12168 = vmatpush1.bf16.msra.mxu0 %v11210_v63  ;;  %v10744_v5 = vsel %vm10040_vm8, %v21101_v62, %v10552_v44  ;;  %v9916_v62 = vshra.s32 %v23169_v34, 2  ;;  %v10939_v47 = vmul.f32 0.01, %v10811_v46 }
 0x4df   :  { %12221 = vmatpush1.bf16.msra.mxu1 %v11216_v54  ;;  %14909 = vmatprep.subr.msk.bf16.mxu0 %vm23167_vm1, %v11070_v0  ;;  %v21171_v27 = vpop.f32.mrf.mxu0  ;;  %v10746_v26 = vsel %vm10042_vm11, %v21106_v16, %v10554_v42  ;;  %v10814_v3 = vadd.f32 %v20482_v38, %v10744_v5  ;;  %v9918_v16 = vshra.s32 %v23170_v13, 2  ;;  %vm10169_vm4 = vcmp.eq.s32.totalorder %v21166_v52, 2 }
 0x4e0   :  { %14912 = vmatprep.subr.msk.bf16.mxu1 %vm23168_vm2, %v11072_v9  ;;  %v21176_v35 = vpop.f32.mrf.mxu1  ;;  %12089 = vmatprep.mubr.bf16.mxu0 %v22757_v33  ;;  %v10816_v48 = vadd.f32 %v20482_v38, %v10746_v26  ;;  %vm10875_vm7 = vcmp.ge.f32.partialorder %v10811_v46, 0.0  ;;  %v10359_v43 = vsel %vm10167_vm3, %v21123_v56, %v9283_v23  ;;  %vm10105_vm10 = vcmp.eq.s32.totalorder %v21166_v52, 1 }
 0x4e1   :  { %v21179_v2 = vpop.f32.mrf.mxu0  ;;  %12142 = vmatprep.mubr.bf16.mxu1 %v22757_v33  ;;  %v9915_v51 = vshra.s32 %v23171_v12, 2  ;;  %v9980_v44 = vand.u32 3, %v9916_v62  ;;  %v10361_v63 = vsel %vm10169_vm4, %v21129_v40, %v9336_v49  ;;  %v10942_v0 = vmul.f32 0.01, %v10814_v3 }
 0x4e2   :  { %v21185_v11 = vpop.f32.mrf.mxu1  ;;  %v9982_v54 = vand.u32 3, %v9918_v16  ;;  %v11001_v56 = vsel %vm10873_vm5, %v10809_v60, %v10937_v22  ;;  %v10944_v23 = vmul.f32 0.01, %v10816_v48  ;;  %v11003_v5 = vsel %vm10875_vm7, %v10811_v46, %v10939_v47 }
 0x4e3   :  { %v9381_v39 = vpop.f32.mrf.mxu0  ;;  %vm10878_vm13 = vcmp.ge.f32.partialorder %v10814_v3, 0.0  ;;  %vm10039_vm9 = vcmp.eq.s32.totalorder %v21147_v32, 0  ;;  %v10551_v40 = vsel %vm10103_vm6, %v21109_v45, %v10359_v43  ;;  %vm10041_vm12 = vcmp.eq.s32.totalorder %v21166_v52, 0  ;;  %v23172_v32 = vld [vmem:[#allocation54_spill] sm:$0xff] }
 0x4e4   :  { %v9434_v6 = vpop.f32.mrf.mxu1  ;;  %vm10880_vm8 = vcmp.ge.f32.partialorder %v10816_v48, 0.0  ;;  %v10553_v60 = vsel %vm10105_vm10, %v21115_v53, %v10361_v63  ;;  %v21215_v62 = vand.u32 3, %v9915_v51  ;;  %vm10172_vm11 = vcmp.eq.s32.totalorder %v9980_v44, 2 }
 0x4e5   :  { %v21193_v19 = vpop.f32.mrf.mxu0  ;;  %14899 = vmatmul.mubr.msk.bf16.gmra.mxu0 %vm22742_vm0, %v21131_v14  ;;  %v11069_v46 = vpack.c.bf16 %v11001_v56, %v11001_v56  ;;  %vm10108_vm14 = vcmp.eq.s32.totalorder %v9980_v44, 1  ;;  %vm10174_vm15 = vcmp.eq.s32.totalorder %v9982_v54, 2  ;;  %v11071_v22 = vpack.c.bf16 %v11003_v5, %v11003_v5 }
 0x4e6   :  { %v21199_v42 = vpop.f32.mrf.mxu1  ;;  %14902 = vmatmul.mubr.msk.bf16.gmra.mxu1 %vm22742_vm0, %v21131_v14  ;;  %12185 = vmatprep.mubr.bf16.mxu0 %v22757_v33  ;;  %v11006_v47 = vsel %vm10878_vm13, %v10814_v3, %v10942_v0  ;;  %v10743_v45 = vsel %vm10039_vm9, %v21082_v20, %v10551_v40  ;;  %v9917_v43 = vshra.s32 %v23172_v32, 2  ;;  %vm10110_vm1 = vcmp.eq.s32.totalorder %v9982_v54, 1 }
 0x4e7   :  { %v9387_v9 = vpop.f32.mrf.mxu0  ;;  %12238 = vmatprep.mubr.bf16.mxu1 %v22757_v33  ;;  %v11008_v34 = vsel %vm10880_vm8, %v10816_v48, %v10944_v23  ;;  %v10745_v53 = vsel %vm10041_vm12, %v21090_v36, %v10553_v60  ;;  %vm10044_vm2 = vcmp.eq.s32.totalorder %v9980_v44, 0  ;;  %vm10046_vm3 = vcmp.eq.s32.totalorder %v9982_v54, 0  ;;  %v23177_v44 = vld [vmem:[#allocation66_spill] sm:$0xff]  ;;  %v23178_v54 = vld [vmem:[#allocation69_spill] sm:$0xff] }
 0x4e8   :  { %v9440_v49 = vpop.f32.mrf.mxu1  ;;  %vm23173_vm4 = vcmask 1043456   ;;  %v11074_v3 = vpack.c.bf16 %v11006_v47, %v11006_v47  ;;  %v10813_v48 = vadd.f32 %v20482_v38, %v10743_v45  ;;  %v11076_v52 = vpack.c.bf16 %v11008_v34, %v11008_v34 }
 0x4e9   :  { %v9389_v26 = vpop.f32.mrf.mxu0  ;;  %v11222_v20 = vsel %vm23173_vm4, %v11069_v46, 0  ;;  %vm23174_vm5 = vmmov %vm23173_vm4  ;;  %vm10171_vm10 = vcmp.eq.s32.totalorder %v21215_v62, 2  ;;  %vm10107_vm12 = vcmp.eq.s32.totalorder %v21215_v62, 1 }
 0x4ea   :  { %v9442_v16 = vpop.f32.mrf.mxu1  ;;  %v11228_v36 = vsel %vm23174_vm5, %v11071_v22, 0  ;;  %vm23175_vm6 = vmmov %vm23173_vm4  ;;  %v10941_v60 = vmul.f32 0.01, %v10813_v48  ;;  %vm10877_vm9 = vcmp.ge.f32.partialorder %v10813_v48, 0.0 }
 0x4eb   :  { %v9391_v13 = vpop.f32.mrf.mxu0  ;;  %vm23176_vm7 = vmmov %vm23173_vm4 }
 0x4ec   :  { %v10364_v51 = vsel %vm10172_vm11, %v9387_v9, %v9391_v13  ;;  %v9444_v63 = vpop.f32.mrf.mxu1  ;;  %v10815_v13 = vadd.f32 %v20482_v38, %v10745_v53 }
 0x4ed   :  { %v10556_v56 = vsel %vm10108_vm14, %v9381_v39, %v10364_v51  ;;  %v10366_v12 = vsel %vm10174_vm15, %v9440_v49, %v9444_v63  ;;  %v21222_v50 = vpop.f32.mrf.mxu0  ;;  %14904 = vmatmul.mubr.msk.bf16.vlgmr.msra.gmra.mxu0 %vm22742_vm0, %v21084_v30  ;;  %v21234_v39 = vand.u32 3, %v9917_v43  ;;  %v10363_v43 = vsel %vm10171_vm10, %v21193_v19, %v9389_v26  ;;  %v23179_v51 = vld [vmem:[#allocation64_spill] sm:$0xff] }
 0x4ee   :  { %v10558_v0 = vsel %vm10110_vm1, %v9434_v6, %v10366_v12  ;;  %v21228_v23 = vpop.f32.mrf.mxu1  ;;  %14907 = vmatmul.mubr.msk.bf16.vlgmr.msra.gmra.mxu1 %vm22742_vm0, %v21084_v30  ;;  %12274 = vmatpush1.bf16.msra.mxu0 %v11222_v20  ;;  %v10748_v9 = vsel %vm10044_vm2, %v21171_v27, %v10556_v56  ;;  %v9920_v27 = vshra.s32 %v23177_v44, 2  ;;  %v10943_v47 = vmul.f32 0.01, %v10815_v13 }
 0x4ef   :  { %12327 = vmatpush1.bf16.msra.mxu1 %v11228_v36  ;;  %14915 = vmatprep.subr.msk.bf16.mxu0 %vm23175_vm6, %v11074_v3  ;;  %v21239_v6 = vpop.f32.mrf.mxu0  ;;  %v10750_v12 = vsel %vm10046_vm3, %v21176_v35, %v10558_v0  ;;  %v10818_v40 = vadd.f32 %v20482_v38, %v10748_v9  ;;  %v9922_v35 = vshra.s32 %v23178_v54, 2  ;;  %vm10173_vm13 = vcmp.eq.s32.totalorder %v21234_v39, 2 }
 0x4f0   :  { %14918 = vmatprep.subr.msk.bf16.mxu1 %vm23176_vm7, %v11076_v52  ;;  %v21244_v5 = vpop.f32.mrf.mxu1  ;;  %12195 = vmatprep.mubr.bf16.mxu0 %v22757_v33  ;;  %v10820_v46 = vadd.f32 %v20482_v38, %v10750_v12  ;;  %vm10879_vm8 = vcmp.ge.f32.partialorder %v10815_v13, 0.0  ;;  %vm10109_vm11 = vcmp.eq.s32.totalorder %v21234_v39, 1  ;;  %v9919_v63 = vshra.s32 %v23179_v51, 2 }
 0x4f1   :  { %v21247_v34 = vpop.f32.mrf.mxu0  ;;  %12248 = vmatprep.mubr.bf16.mxu1 %v22757_v33  ;;  %v9984_v56 = vand.u32 3, %v9920_v27  ;;  %v10365_v20 = vsel %vm10173_vm13, %v21199_v42, %v9442_v16  ;;  %v10946_v3 = vmul.f32 0.01, %v10818_v40  ;;  %v9986_v36 = vand.u32 3, %v9922_v35 }
 0x4f2   :  { %v21253_v49 = vpop.f32.mrf.mxu1  ;;  %v11005_v19 = vsel %vm10877_vm9, %v10813_v48, %v10941_v60  ;;  %v10948_v26 = vmul.f32 0.01, %v10820_v46  ;;  %v11007_v9 = vsel %vm10879_vm8, %v10815_v13, %v10943_v47  ;;  %vm10882_vm14 = vcmp.ge.f32.partialorder %v10818_v40, 0.0 }
 0x4f3   :  { %v9487_v22 = vpop.f32.mrf.mxu0  ;;  %vm10043_vm15 = vcmp.eq.s32.totalorder %v21215_v62, 0  ;;  %v10555_v42 = vsel %vm10107_vm12, %v21179_v2, %v10363_v43  ;;  %vm10045_vm1 = vcmp.eq.s32.totalorder %v21234_v39, 0  ;;  %vm10884_vm2 = vcmp.ge.f32.partialorder %v10820_v46, 0.0  ;;  %v23180_v62 = vld [vmem:[#allocation67_spill] sm:$0xff] }
 0x4f4   :  { %v9540_v45 = vpop.f32.mrf.mxu1  ;;  %v10557_v48 = vsel %vm10109_vm11, %v21185_v11, %v10365_v20  ;;  %v21283_v27 = vand.u32 3, %v9919_v63  ;;  %vm10176_vm3 = vcmp.eq.s32.totalorder %v9984_v56, 2  ;;  %v11073_v13 = vpack.c.bf16 %v11005_v19, %v11005_v19 }
 0x4f5   :  { %v21261_v53 = vpop.f32.mrf.mxu0  ;;  %14905 = vmatmul.mubr.msk.bf16.gmra.mxu0 %vm22742_vm0, %v21131_v14  ;;  %vm10112_vm4 = vcmp.eq.s32.totalorder %v9984_v56, 1  ;;  %vm10178_vm5 = vcmp.eq.s32.totalorder %v9986_v36, 2  ;;  %v11075_v60 = vpack.c.bf16 %v11007_v9, %v11007_v9  ;;  %v11010_v47 = vsel %vm10882_vm14, %v10818_v40, %v10946_v3 }
 0x4f6   :  { %v21267_v0 = vpop.f32.mrf.mxu1  ;;  %14908 = vmatmul.mubr.msk.bf16.gmra.mxu1 %vm22742_vm0, %v21131_v14  ;;  %12291 = vmatprep.mubr.bf16.mxu0 %v22757_v33  ;;  %v10747_v2 = vsel %vm10043_vm15, %v21154_v41, %v10555_v42  ;;  %v9921_v43 = vshra.s32 %v23180_v62, 2  ;;  %vm10114_vm6 = vcmp.eq.s32.totalorder %v9986_v36, 1  ;;  %v11012_v44 = vsel %vm10884_vm2, %v10820_v46, %v10948_v26 }
 0x4f7   :  { %v9493_v52 = vpop.f32.mrf.mxu0  ;;  %12344 = vmatprep.mubr.bf16.mxu1 %v22757_v33  ;;  %v10749_v11 = vsel %vm10045_vm1, %v21160_v25, %v10557_v48  ;;  %vm10048_vm7 = vcmp.eq.s32.totalorder %v9984_v56, 0  ;;  %vm10050_vm10 = vcmp.eq.s32.totalorder %v9986_v36, 0  ;;  %vm23181_vm13 = vcmask 1043456   ;;  %v23185_v56 = vld [vmem:[#allocation74_spill] sm:$0xff]  ;;  %v23186_v36 = vld [vmem:[#allocation77_spill] sm:$0xff] }
 0x4f8   :  { %v9546_v16 = vpop.f32.mrf.mxu1  ;;  %v11234_v41 = vsel %vm23181_vm13, %v11073_v13, 0  ;;  %v11078_v40 = vpack.c.bf16 %v11010_v47, %v11010_v47  ;;  %v10817_v46 = vadd.f32 %v20482_v38, %v10747_v2  ;;  %vm23182_vm9 = vmmov %vm23181_vm13  ;;  %v11080_v39 = vpack.c.bf16 %v11012_v44, %v11012_v44 }
 0x4f9   :  { %v9495_v12 = vpop.f32.mrf.mxu0  ;;  %v11240_v25 = vsel %vm23182_vm9, %v11075_v60, 0  ;;  %vm23183_vm12 = vmmov %vm23182_vm9  ;;  %vm10175_vm11 = vcmp.eq.s32.totalorder %v21283_v27, 2  ;;  %vm10111_vm1 = vcmp.eq.s32.totalorder %v21283_v27, 1 }
 0x4fa   :  { %v9548_v35 = vpop.f32.mrf.mxu1  ;;  %vm23184_vm8 = vmmov %vm23182_vm9  ;;  %v10945_v48 = vmul.f32 0.01, %v10817_v46  ;;  %vm10881_vm15 = vcmp.ge.f32.partialorder %v10817_v46, 0.0 }
 0x4fb   :  { %v9497_v54 = vpop.f32.mrf.mxu0 }
 0x4fc   :  { %v10368_v63 = vsel %vm10176_vm3, %v9493_v52, %v9497_v54  ;;  %v9550_v20 = vpop.f32.mrf.mxu1  ;;  %v10819_v54 = vadd.f32 %v20482_v38, %v10749_v11 }
 0x4fd   :  { %v10560_v19 = vsel %vm10112_vm4, %v9487_v22, %v10368_v63  ;;  %v10370_v51 = vsel %vm10178_vm5, %v9546_v16, %v9550_v20  ;;  %v21290_v32 = vpop.f32.mrf.mxu0  ;;  %14910 = vmatmul.mubr.msk.bf16.vlgmr.msra.gmra.mxu0 %vm22742_vm0, %v21084_v30  ;;  %v21302_v22 = vand.u32 3, %v9921_v43  ;;  %v10367_v43 = vsel %vm10175_vm11, %v21261_v53, %v9495_v12  ;;  %v23187_v63 = vld [vmem:[#allocation68_spill] sm:$0xff] }
 0x4fe   :  { %v10562_v3 = vsel %vm10114_vm6, %v9540_v45, %v10370_v51  ;;  %v21296_v26 = vpop.f32.mrf.mxu1  ;;  %14913 = vmatmul.mubr.msk.bf16.vlgmr.msra.gmra.mxu1 %vm22742_vm0, %v21084_v30  ;;  %12380 = vmatpush1.bf16.msra.mxu0 %v11234_v41  ;;  %v10752_v52 = vsel %vm10048_vm7, %v21239_v6, %v10560_v19  ;;  %v9924_v6 = vshra.s32 %v23185_v56, 2  ;;  %v10947_v47 = vmul.f32 0.01, %v10819_v54 }
 0x4ff   :  { %12433 = vmatpush1.bf16.msra.mxu1 %v11240_v25  ;;  %14921 = vmatprep.subr.msk.bf16.mxu0 %vm23183_vm12, %v11078_v40  ;;  %v21307_v45 = vpop.f32.mrf.mxu0  ;;  %v10754_v51 = vsel %vm10050_vm10, %v21244_v5, %v10562_v3  ;;  %v10822_v42 = vadd.f32 %v20482_v38, %v10752_v52  ;;  %v9926_v5 = vshra.s32 %v23186_v36, 2  ;;  %vm10177_vm14 = vcmp.eq.s32.totalorder %v21302_v22, 2 }
 0x500   :  { %14924 = vmatprep.subr.msk.bf16.mxu1 %vm23184_vm8, %v11080_v39  ;;  %v21312_v9 = vpop.f32.mrf.mxu1  ;;  %12301 = vmatprep.mubr.bf16.mxu0 %v22757_v33  ;;  %v10824_v13 = vadd.f32 %v20482_v38, %v10754_v51  ;;  %vm10883_vm2 = vcmp.ge.f32.partialorder %v10819_v54, 0.0  ;;  %vm10113_vm3 = vcmp.eq.s32.totalorder %v21302_v22, 1  ;;  %v9923_v20 = vshra.s32 %v23187_v63, 2 }
 0x501   :  { %v21315_v44 = vpop.f32.mrf.mxu0  ;;  %12354 = vmatprep.mubr.bf16.mxu1 %v22757_v33  ;;  %v9988_v19 = vand.u32 3, %v9924_v6  ;;  %v10369_v41 = vsel %vm10177_vm14, %v21267_v0, %v9548_v35  ;;  %v10950_v40 = vmul.f32 0.01, %v10822_v42  ;;  %v9990_v25 = vand.u32 3, %v9926_v5 }
 0x502   :  { %v21321_v16 = vpop.f32.mrf.mxu1  ;;  %v11009_v53 = vsel %vm10881_vm15, %v10817_v46, %v10945_v48  ;;  %v10952_v12 = vmul.f32 0.01, %v10824_v13  ;;  %v11011_v52 = vsel %vm10883_vm2, %v10819_v54, %v10947_v47  ;;  %vm10886_vm4 = vcmp.ge.f32.partialorder %v10822_v42, 0.0 }
 0x503   :  { %v9593_v60 = vpop.f32.mrf.mxu0  ;;  %vm10047_vm5 = vcmp.eq.s32.totalorder %v21283_v27, 0  ;;  %v10559_v0 = vsel %vm10111_vm1, %v21247_v34, %v10367_v43  ;;  %vm10049_vm6 = vcmp.eq.s32.totalorder %v21302_v22, 0  ;;  %vm10888_vm7 = vcmp.ge.f32.partialorder %v10824_v13, 0.0  ;;  %v23188_v27 = vld [vmem:[#allocation75_spill] sm:$0xff] }
 0x504   :  { %v9646_v2 = vpop.f32.mrf.mxu1  ;;  %v10561_v46 = vsel %vm10113_vm3, %v21253_v49, %v10369_v41  ;;  %v21351_v6 = vand.u32 3, %v9923_v20  ;;  %vm10180_vm10 = vcmp.eq.s32.totalorder %v9988_v19, 2  ;;  %v11077_v54 = vpack.c.bf16 %v11009_v53, %v11009_v53 }
 0x505   :  { %v21329_v11 = vpop.f32.mrf.mxu0  ;;  %14911 = vmatmul.mubr.msk.bf16.gmra.mxu0 %vm22742_vm0, %v21131_v14  ;;  %vm10116_vm13 = vcmp.eq.s32.totalorder %v9988_v19, 1  ;;  %vm10182_vm9 = vcmp.eq.s32.totalorder %v9990_v25, 2  ;;  %v11079_v48 = vpack.c.bf16 %v11011_v52, %v11011_v52  ;;  %v11014_v47 = vsel %vm10886_vm4, %v10822_v42, %v10950_v40 }
 0x506   :  { %v21335_v3 = vpop.f32.mrf.mxu1  ;;  %14914 = vmatmul.mubr.msk.bf16.gmra.mxu1 %vm22742_vm0, %v21131_v14  ;;  %12397 = vmatprep.mubr.bf16.mxu0 %v22757_v33  ;;  %v10751_v34 = vsel %vm10047_vm5, %v21222_v50, %v10559_v0  ;;  %v9925_v43 = vshra.s32 %v23188_v27, 2  ;;  %vm10118_vm12 = vcmp.eq.s32.totalorder %v9990_v25, 1  ;;  %v11016_v56 = vsel %vm10888_vm7, %v10824_v13, %v10952_v12 }
 0x507   :  { %v9599_v39 = vpop.f32.mrf.mxu0  ;;  %12450 = vmatprep.mubr.bf16.mxu1 %v22757_v33  ;;  %v10753_v49 = vsel %vm10049_vm6, %v21228_v23, %v10561_v46  ;;  %vm10052_vm8 = vcmp.eq.s32.totalorder %v9988_v19, 0  ;;  %vm10054_vm11 = vcmp.eq.s32.totalorder %v9990_v25, 0  ;;  %vm23189_vm14 = vcmask 1043456   ;;  %v23193_v19 = vld [vmem:[#allocation78_spill] sm:$0xff]  ;;  %v23194_v25 = vld [vmem:[#allocation81_spill] sm:$0xff] }
 0x508   :  { %v9652_v35 = vpop.f32.mrf.mxu1  ;;  %v11246_v50 = vsel %vm23189_vm14, %v11077_v54, 0  ;;  %v11082_v42 = vpack.c.bf16 %v11014_v47, %v11014_v47  ;;  %v10821_v13 = vadd.f32 %v20482_v38, %v10751_v34  ;;  %vm23190_vm15 = vmmov %vm23189_vm14  ;;  %v11084_v22 = vpack.c.bf16 %v11016_v56, %v11016_v56 }
 0x509   :  { %v9601_v51 = vpop.f32.mrf.mxu0  ;;  %v11252_v23 = vsel %vm23190_vm15, %v11079_v48, 0  ;;  %vm23191_vm1 = vmmov %vm23189_vm14  ;;  %vm10179_vm3 = vcmp.eq.s32.totalorder %v21351_v6, 2  ;;  %vm10115_vm6 = vcmp.eq.s32.totalorder %v21351_v6, 1 }
 0x50a   :  { %v9654_v5 = vpop.f32.mrf.mxu1  ;;  %vm23192_vm2 = vmmov %vm23191_vm1  ;;  %v10949_v46 = vmul.f32 0.01, %v10821_v13  ;;  %vm10885_vm5 = vcmp.ge.f32.partialorder %v10821_v13, 0.0 }
 0x50b   :  { %v9603_v36 = vpop.f32.mrf.mxu0 }
 0x50c   :  { %v10372_v20 = vsel %vm10180_vm10, %v9599_v39, %v9603_v36  ;;  %v9656_v41 = vpop.f32.mrf.mxu1  ;;  %v10823_v36 = vadd.f32 %v20482_v38, %v10753_v49 }
 0x50d   :  { %v10564_v53 = vsel %vm10116_vm13, %v9593_v60, %v10372_v20  ;;  %v10374_v63 = vsel %vm10182_vm9, %v9652_v35, %v9656_v41  ;;  %v21358_v62 = vpop.f32.mrf.mxu0  ;;  %14916 = vmatmul.mubr.msk.bf16.vlgmr.msra.gmra.mxu0 %vm22742_vm0, %v21084_v30  ;;  %v21370_v60 = vand.u32 3, %v9925_v43  ;;  %v10371_v43 = vsel %vm10179_vm3, %v21329_v11, %v9601_v51  ;;  %v23195_v20 = vld [vmem:[#allocation76_spill] sm:$0xff] }
 0x50e   :  { %v10566_v40 = vsel %vm10118_vm12, %v9646_v2, %v10374_v63  ;;  %v21364_v12 = vpop.f32.mrf.mxu1  ;;  %14919 = vmatmul.mubr.msk.bf16.vlgmr.msra.gmra.mxu1 %vm22742_vm0, %v21084_v30  ;;  %12486 = vmatpush1.bf16.msra.mxu0 %v11246_v50  ;;  %v10756_v39 = vsel %vm10052_vm8, %v21307_v45, %v10564_v53  ;;  %v9928_v45 = vshra.s32 %v23193_v19, 2  ;;  %v10951_v47 = vmul.f32 0.01, %v10823_v36 }
 0x50f   :  { %12539 = vmatpush1.bf16.msra.mxu1 %v11252_v23  ;;  %14927 = vmatprep.subr.msk.bf16.mxu0 %vm23191_vm1, %v11082_v42  ;;  %v21375_v2 = vpop.f32.mrf.mxu0  ;;  %v10758_v63 = vsel %vm10054_vm11, %v21312_v9, %v10566_v40  ;;  %v10826_v0 = vadd.f32 %v20482_v38, %v10756_v39  ;;  %v9930_v9 = vshra.s32 %v23194_v25, 2  ;;  %vm10181_vm4 = vcmp.eq.s32.totalorder %v21370_v60, 2 }
 0x510   :  { %14930 = vmatprep.subr.msk.bf16.mxu1 %vm23192_vm2, %v11084_v22  ;;  %v21380_v52 = vpop.f32.mrf.mxu1  ;;  %12407 = vmatprep.mubr.bf16.mxu0 %v22757_v33  ;;  %v10828_v54 = vadd.f32 %v20482_v38, %v10758_v63  ;;  %vm10887_vm7 = vcmp.ge.f32.partialorder %v10823_v36, 0.0  ;;  %vm10117_vm10 = vcmp.eq.s32.totalorder %v21370_v60, 1  ;;  %v9927_v41 = vshra.s32 %v23195_v20, 2 }
 0x511   :  { %v21383_v56 = vpop.f32.mrf.mxu0  ;;  %12460 = vmatprep.mubr.bf16.mxu1 %v22757_v33  ;;  %v9992_v53 = vand.u32 3, %v9928_v45  ;;  %v10373_v50 = vsel %vm10181_vm4, %v21335_v3, %v9654_v5  ;;  %v10954_v42 = vmul.f32 0.01, %v10826_v0  ;;  %v9994_v23 = vand.u32 3, %v9930_v9 }
 0x512   :  { %v21389_v35 = vpop.f32.mrf.mxu1  ;;  %v11013_v11 = vsel %vm10885_vm5, %v10821_v13, %v10949_v46  ;;  %v10956_v51 = vmul.f32 0.01, %v10828_v54  ;;  %v11015_v39 = vsel %vm10887_vm7, %v10823_v36, %v10951_v47  ;;  %vm10890_vm13 = vcmp.ge.f32.partialorder %v10826_v0, 0.0 }
 0x513   :  { %v9699_v48 = vpop.f32.mrf.mxu0  ;;  %vm10051_vm9 = vcmp.eq.s32.totalorder %v21351_v6, 0  ;;  %v10563_v3 = vsel %vm10115_vm6, %v21315_v44, %v10371_v43  ;;  %vm10053_vm12 = vcmp.eq.s32.totalorder %v21370_v60, 0  ;;  %vm10892_vm8 = vcmp.ge.f32.partialorder %v10828_v54, 0.0 }
 0x514   :  { %v9752_v34 = vpop.f32.mrf.mxu1  ;;  %v10565_v13 = vsel %vm10117_vm10, %v21321_v16, %v10373_v50  ;;  %v21419_v45 = vand.u32 3, %v9927_v41  ;;  %vm10184_vm11 = vcmp.eq.s32.totalorder %v9992_v53, 2  ;;  %v11081_v36 = vpack.c.bf16 %v11013_v11, %v11013_v11 }
 0x515   :  { %v21397_v49 = vpop.f32.mrf.mxu0  ;;  %14917 = vmatmul.mubr.msk.bf16.gmra.mxu0 %vm22742_vm0, %v21131_v14  ;;  %vm10120_vm14 = vcmp.eq.s32.totalorder %v9992_v53, 1  ;;  %vm10186_vm15 = vcmp.eq.s32.totalorder %v9994_v23, 2  ;;  %v11083_v46 = vpack.c.bf16 %v11015_v39, %v11015_v39  ;;  %v11018_v6 = vsel %vm10890_vm13, %v10826_v0, %v10954_v42 }
 0x516   :  { %v21403_v40 = vpop.f32.mrf.mxu1  ;;  %14920 = vmatmul.mubr.msk.bf16.gmra.mxu1 %vm22742_vm0, %v21131_v14  ;;  %12503 = vmatprep.mubr.bf16.mxu0 %v22757_v33  ;;  %v10755_v44 = vsel %vm10051_vm9, %v21290_v32, %v10563_v3  ;;  %v9929_v47 = vshra.s32 %v23087_v55, 2  ;;  %vm10122_vm1 = vcmp.eq.s32.totalorder %v9994_v23, 1  ;;  %v11020_v25 = vsel %vm10892_vm8, %v10828_v54, %v10956_v51 }
 0x517   :  { %v9705_v22 = vpop.f32.mrf.mxu0  ;;  %12556 = vmatprep.mubr.bf16.mxu1 %v22757_v33  ;;  %v10757_v16 = vsel %vm10053_vm12, %v21296_v26, %v10565_v13  ;;  %vm10056_vm2 = vcmp.eq.s32.totalorder %v9992_v53, 0  ;;  %vm10058_vm3 = vcmp.eq.s32.totalorder %v9994_v23, 0  ;;  %vm23196_vm4 = vcmask 1043456  }
 0x518   :  { %v9758_v5 = vpop.f32.mrf.mxu1  ;;  %v11258_v32 = vsel %vm23196_vm4, %v11081_v36, 0  ;;  %v11086_v0 = vpack.c.bf16 %v11018_v6, %v11018_v6  ;;  %v10825_v54 = vadd.f32 %v20482_v38, %v10755_v44  ;;  %vm23197_vm5 = vmmov %vm23196_vm4  ;;  %v11088_v60 = vpack.c.bf16 %v11020_v25, %v11020_v25 }
 0x519   :  { %v9707_v63 = vpop.f32.mrf.mxu0  ;;  %v11264_v26 = vsel %vm23197_vm5, %v11083_v46, 0  ;;  %vm10183_vm6 = vcmp.eq.s32.totalorder %v21419_v45, 2  ;;  %vm23198_vm7 = vmmov %vm23196_vm4  ;;  %vm10119_vm13 = vcmp.eq.s32.totalorder %v21419_v45, 1  ;;  %v23202_v46 = vld [vmem:[#allocation88_spill] sm:$0xff]  ;;  %vm10055_vm8 = vcmp.eq.s32.totalorder %v21419_v45, 0 }
 0x51a   :  { %v21421_v9 = vpop.f32.mrf.mxu1  ;;  %vm23199_vm10 = vmmov %vm23196_vm4  ;;  %v10375_v36 = vsel %vm10183_vm6, %v21397_v49, %v9707_v63  ;;  %v9934_v6 = vshra.s32 %v23202_v46, 2  ;;  %v10953_v44 = vmul.f32 0.01, %v10825_v54  ;;  %vm10889_vm12 = vcmp.ge.f32.partialorder %v10825_v54, 0.0 }
 0x51b   :  { %v9709_v43 = vpop.f32.mrf.mxu0  ;;  %v10567_v49 = vsel %vm10119_vm13, %v21383_v56, %v10375_v36 }
 0x51c   :  { %v10376_v41 = vsel %vm10184_vm11, %v9705_v22, %v9709_v43  ;;  %v9762_v50 = vpop.f32.mrf.mxu1  ;;  %v21441_v22 = vand.u32 3, %v9929_v47  ;;  %v9998_v56 = vand.u32 3, %v9934_v6 }
 0x51d   :  { %v10568_v11 = vsel %vm10120_vm14, %v9699_v48, %v10376_v41  ;;  %v10378_v19 = vsel %vm10186_vm15, %v9758_v5, %v9762_v50  ;;  %v21428_v20 = vpop.f32.mrf.mxu0  ;;  %14922 = vmatmul.mubr.msk.bf16.vlgmr.msra.gmra.mxu0 %vm22742_vm0, %v21084_v30  ;;  %v10827_v48 = vadd.f32 %v20482_v38, %v10757_v16  ;;  %v23201_v5 = vld [vmem:[#allocation86_spill] sm:$0xff] }
 0x51e   :  { %v10570_v42 = vsel %vm10122_vm1, %v9752_v34, %v10378_v19  ;;  %v21434_v51 = vpop.f32.mrf.mxu1  ;;  %14925 = vmatmul.mubr.msk.bf16.vlgmr.msra.gmra.mxu1 %vm22742_vm0, %v21084_v30  ;;  %12592 = vmatpush1.bf16.msra.mxu0 %v11258_v32  ;;  %v10760_v39 = vsel %vm10056_vm2, %v21375_v2, %v10568_v11  ;;  %v23200_v2 = vld [vmem:[#allocation87_spill] sm:$0xff]  ;;  %v9932_v13 = vshra.s32 %v23201_v5, 2  ;;  %vm10185_vm9 = vcmp.eq.s32.totalorder %v21441_v22, 2 }
 0x51f   :  { %12645 = vmatpush1.bf16.msra.mxu1 %v11264_v26  ;;  %14933 = vmatprep.subr.msk.bf16.mxu0 %vm23198_vm7, %v11086_v0  ;;  %v21446_v19 = vpop.f32.mrf.mxu0  ;;  %v10762_v34 = vsel %vm10058_vm3, %v21380_v52, %v10570_v42  ;;  %v9931_v53 = vshra.s32 %v23200_v2, 2  ;;  %v10830_v52 = vadd.f32 %v20482_v38, %v10760_v39  ;;  %v10955_v16 = vmul.f32 0.01, %v10827_v48 }
 0x520   :  { %14936 = vmatprep.subr.msk.bf16.mxu1 %vm23199_vm10, %v11088_v60  ;;  %v21451_v25 = vpop.f32.mrf.mxu1  ;;  %12513 = vmatprep.mubr.bf16.mxu0 %v22757_v33  ;;  %v10832_v47 = vadd.f32 %v20482_v38, %v10762_v34  ;;  %vm10891_vm11 = vcmp.ge.f32.partialorder %v10827_v48, 0.0  ;;  %vm10121_vm14 = vcmp.eq.s32.totalorder %v21441_v22, 1  ;;  %v9996_v11 = vand.u32 3, %v9932_v13 }
 0x521   :  { %v21455_v3 = vpop.f32.mrf.mxu0  ;;  %12566 = vmatprep.mubr.bf16.mxu1 %v22757_v33  ;;  %v21476_v50 = vand.u32 3, %v9931_v53  ;;  %v10377_v32 = vsel %vm10185_vm9, %v21403_v40, %v21421_v9  ;;  %v10958_v0 = vmul.f32 0.01, %v10830_v52  ;;  %v11017_v26 = vsel %vm10889_vm12, %v10825_v54, %v10953_v44 }
 0x522   :  { %v21462_v23 = vpop.f32.mrf.mxu1  ;;  %v10960_v60 = vmul.f32 0.01, %v10832_v47  ;;  %v11019_v34 = vsel %vm10891_vm11, %v10827_v48, %v10955_v16  ;;  %vm10894_vm15 = vcmp.ge.f32.partialorder %v10830_v52, 0.0  ;;  %v10759_v40 = vsel %vm10055_vm8, %v21358_v62, %v10567_v49 }
 0x523   :  { %v9805_v43 = vpop.f32.mrf.mxu0  ;;  %vm10057_vm1 = vcmp.eq.s32.totalorder %v21441_v22, 0  ;;  %v9933_v53 = vshra.s32 %v19177_v17, 2  ;;  %vm10896_vm2 = vcmp.ge.f32.partialorder %v10832_v47, 0.0  ;;  %v10569_v54 = vsel %vm10121_vm14, %v21389_v35, %v10377_v32 }
 0x524   :  { %v9858_v41 = vpop.f32.mrf.mxu1  ;;  %vm10187_vm3 = vcmp.eq.s32.totalorder %v21476_v50, 2  ;;  %vm10188_vm4 = vcmp.eq.s32.totalorder %v9996_v11, 2  ;;  %v11085_v48 = vpack.c.bf16 %v11017_v26, %v11017_v26  ;;  %vm10124_vm5 = vcmp.eq.s32.totalorder %v9996_v11, 1 }
 0x525   :  { %v21472_v63 = vpop.f32.mrf.mxu0  ;;  %14923 = vmatmul.mubr.msk.bf16.gmra.mxu0 %vm22742_vm0, %v21131_v14  ;;  %vm10190_vm6 = vcmp.eq.s32.totalorder %v9998_v56, 2  ;;  %v11087_v62 = vpack.c.bf16 %v11019_v34, %v11019_v34  ;;  %v11022_v45 = vsel %vm10894_vm15, %v10830_v52, %v10958_v0  ;;  %v10829_v6 = vadd.f32 %v20482_v38, %v10759_v40 }
 0x526   :  { %v21480_v42 = vpop.f32.mrf.mxu1  ;;  %14926 = vmatmul.mubr.msk.bf16.gmra.mxu1 %vm22742_vm0, %v21131_v14  ;;  %12609 = vmatprep.mubr.bf16.mxu0 %v22757_v33  ;;  %vm10060_vm7 = vcmp.eq.s32.totalorder %v9996_v11, 0  ;;  %vm10126_vm10 = vcmp.eq.s32.totalorder %v9998_v56, 1  ;;  %v11024_v16 = vsel %vm10896_vm2, %v10832_v47, %v10960_v60  ;;  %v10761_v35 = vsel %vm10057_vm1, %v21364_v12, %v10569_v54 }
 0x527   :  { %v9811_v39 = vpop.f32.mrf.mxu0  ;;  %12662 = vmatprep.mubr.bf16.mxu1 %v22757_v33  ;;  %v21503_v49 = vand.u32 3, %v9933_v53  ;;  %vm10062_vm13 = vcmp.eq.s32.totalorder %v9998_v56, 0  ;;  %vm23203_vm9 = vcmask 1043456   ;;  %v11090_v11 = vpack.c.bf16 %v11022_v45, %v11022_v45 }
 0x528   :  { %v9864_v9 = vpop.f32.mrf.mxu1  ;;  %v11270_v52 = vsel %vm23203_vm9, %v11085_v48, 0  ;;  %vm23204_vm12 = vmmov %vm23203_vm9  ;;  %v10831_v56 = vadd.f32 %v20482_v38, %v10761_v35  ;;  %vm10059_vm11 = vcmp.eq.s32.totalorder %v21476_v50, 0  ;;  %vm10893_vm15 = vcmp.ge.f32.partialorder %v10829_v6, 0.0 }
 0x529   :  { %v9813_v13 = vpop.f32.mrf.mxu0  ;;  %v11276_v12 = vsel %vm23204_vm12, %v11087_v62, 0  ;;  %vm23205_vm8 = vmmov %vm23203_vm9  ;;  %vm10123_vm1 = vcmp.eq.s32.totalorder %v21476_v50, 1  ;;  %vm10061_vm2 = vcmp.eq.s32.totalorder %v21503_v49, 0  ;;  %v13003_v40 = vand.u32 3, %v22978_v61 }
 0x52a   :  { %v21497_v36 = vpop.f32.mrf.mxu1  ;;  %vm23206_vm14 = vmmov %vm23205_vm8  ;;  %v10959_v54 = vmul.f32 0.01, %v10831_v56  ;;  %v21549_v45 = vand.u32 3, %v22977_v31 }
 0x52b   :  { %v9815_v44 = vpop.f32.mrf.mxu0  ;;  %vm13131_vm9 = vcmp.eq.s32.totalorder %v13003_v40, 1  ;;  %vm13195_vm12 = vcmp.eq.s32.totalorder %v13003_v40, 2 }
 0x52c   :  { %v10380_v32 = vsel %vm10188_vm4, %v9811_v39, %v9815_v44  ;;  %v9868_v26 = vpop.f32.mrf.mxu1  ;;  %vm10125_vm4 = vcmp.eq.s32.totalorder %v21503_v49, 1 }
 0x52d   :  { %v10572_v46 = vsel %vm10124_vm5, %v9805_v43, %v10380_v32  ;;  %v10382_v5 = vsel %vm10190_vm6, %v9864_v9, %v9868_v26  ;;  %v21505_v17 = vpop.f32.mrf.mxu0  ;;  %14928 = vmatmul.mubr.msk.bf16.vlgmr.msra.gmra.mxu0 %vm22742_vm0, %v21084_v30  ;;  %v11092_v43 = vpack.c.bf16 %v11024_v16, %v11024_v16  ;;  %vm10189_vm5 = vcmp.eq.s32.totalorder %v21503_v49, 2 }
 0x52e   :  { %v10764_v47 = vsel %vm10060_vm7, %v21446_v19, %v10572_v46  ;;  %v10574_v0 = vsel %vm10126_vm10, %v9858_v41, %v10382_v5  ;;  %v21511_v22 = vpop.f32.mrf.mxu1  ;;  %14931 = vmatmul.mubr.msk.bf16.vlgmr.msra.gmra.mxu1 %vm22742_vm0, %v21084_v30  ;;  %12698 = vmatpush1.bf16.msra.mxu0 %v11270_v52  ;;  %v21522_v19 = vand.u32 3, %v15979_v29  ;;  %v10957_v5 = vmul.f32 0.01, %v10829_v6 }
 0x52f   :  { %v10766_v60 = vsel %vm10062_vm13, %v21451_v25, %v10574_v0  ;;  %12751 = vmatpush1.bf16.msra.mxu1 %v11276_v12  ;;  %14939 = vmatprep.subr.msk.bf16.mxu0 %vm23205_vm8, %v11090_v11  ;;  %v21519_v39 = vpop.f32.mrf.mxu0  ;;  %v10834_v30 = vadd.f32 %v20482_v38, %v10764_v47  ;;  %v10379_v25 = vsel %vm10187_vm3, %v21472_v63, %v9813_v13  ;;  %v21543_v63 = vand.u32 3, %v22975_v28 }
 0x530   :  { %14942 = vmatprep.subr.msk.bf16.mxu1 %vm23206_vm14, %v11092_v43  ;;  %v21527_v46 = vpop.f32.mrf.mxu1  ;;  %12619 = vmatprep.mubr.bf16.mxu0 %v22757_v33  ;;  %v10836_v29 = vadd.f32 %v20482_v38, %v10766_v60  ;;  %vm13065_vm6 = vcmp.eq.s32.totalorder %v21522_v19, 0  ;;  %vm13129_vm7 = vcmp.eq.s32.totalorder %v21522_v19, 1  ;;  %v11021_v53 = vsel %vm10893_vm15, %v10829_v6, %v10957_v5  ;;  %v21587_v60 = vpop.permute.xlu0 %13836 }
 0x531   :  { %v11343_v41 = vpop.f32.mrf.mxu0  ;;  %12672 = vmatprep.mubr.bf16.mxu1 %v22757_v33  ;;  %v10571_v13 = vsel %vm10123_vm1, %v21455_v3, %v10379_v25  ;;  %v10962_v48 = vmul.f32 0.01, %v10834_v30  ;;  %vm10895_vm3 = vcmp.ge.f32.partialorder %v10831_v56, 0.0  ;;  %v10381_v61 = vsel %vm10189_vm5, %v21480_v42, %v21497_v36 }
 0x532   :  { %v11396_v34 = vpop.f32.mrf.mxu1  ;;  %v10964_v44 = vmul.f32 0.01, %v10836_v29  ;;  %vm13193_vm10 = vcmp.eq.s32.totalorder %v21522_v19, 2  ;;  %vm10898_vm13 = vcmp.ge.f32.partialorder %v10834_v30, 0.0  ;;  %v11089_v31 = vpack.c.bf16 %v11021_v53, %v11021_v53 }
 0x533   :  { %v11345_v9 = vpop.f32.mrf.mxu0  ;;  %vm10900_vm8 = vcmp.ge.f32.partialorder %v10836_v29, 0.0  ;;  %v10763_v3 = vsel %vm10059_vm11, %v21428_v20, %v10571_v13  ;;  %vm13194_vm15 = vcmp.eq.s32.totalorder %v21543_v63, 2  ;;  %v11023_v36 = vsel %vm10895_vm3, %v10831_v56, %v10959_v54 }
 0x534   :  { %v11398_v62 = vpop.f32.mrf.mxu1  ;;  %vm13130_vm1 = vcmp.eq.s32.totalorder %v21543_v63, 1  ;;  %vm13196_vm5 = vcmp.eq.s32.totalorder %v21549_v45, 2  ;;  %v11026_v50 = vsel %vm10898_vm13, %v10834_v30, %v10962_v48  ;;  %vm13066_vm11 = vcmp.eq.s32.totalorder %v21543_v63, 0 }
 0x535   :  { %v11349_v16 = vpop.f32.mrf.mxu0  ;;  %14929 = vmatmul.mubr.msk.bf16.gmra.mxu0 %vm22742_vm0, %v21131_v14  ;;  %vm13132_vm14 = vcmp.eq.s32.totalorder %v21549_v45, 1  ;;  %v11028_v35 = vsel %vm10900_vm8, %v10836_v29, %v10964_v44  ;;  %v21576_v32 = vadd.f32 %v20482_v38, %v10763_v3  ;;  %v11091_v11 = vpack.c.bf16 %v11023_v36, %v11023_v36 }
 0x536   :  { %v11402_v28 = vpop.f32.mrf.mxu1  ;;  %14932 = vmatmul.mubr.msk.bf16.gmra.mxu1 %vm22742_vm0, %v21131_v14  ;;  %12715 = vmatprep.mubr.bf16.mxu0 %v22757_v33  ;;  %v10573_v14 = vsel %vm10125_vm4, %v21462_v23, %v10381_v61  ;;  %vm13068_vm0 = vcmp.eq.s32.totalorder %v21549_v45, 0  ;;  %vm23207_vm4 = vcmask 1043456   ;;  %v11094_v56 = vpack.c.bf16 %v11026_v50, %v11026_v50 }
 0x537   :  { %v11351_v42 = vpop.f32.mrf.mxu0  ;;  %12768 = vmatprep.mubr.bf16.mxu1 %v22757_v33  ;;  %v11282_v52 = vsel %vm23207_vm4, %v11089_v31, 0  ;;  %v10765_v47 = vsel %vm10061_vm2, %v21434_v51, %v10573_v14  ;;  %v11096_v51 = vpack.c.bf16 %v11028_v35, %v11028_v35  ;;  %vm23208_vm2 = vcmp.eq.s32.totalorder %v13003_v40, 0  ;;  %vm23211_vm3 = vmmov %vm23207_vm4  ;;  %v21649_v35 = vld [vmem:[#allocation12 + $0x8] sm:$0xff]  }
 0x538   :  { %v11404_v6 = vpop.f32.mrf.mxu1  ;;  %v11288_v13 = vsel %vm23211_vm3, %v11091_v11, 0  ;;  %v10835_v48 = vadd.f32 %v20482_v38, %v10765_v47  ;;  %vm23213_vm13 = vmmov %vm23211_vm3  ;;  %v13005_v36 = vand.u32 3, %v22984_v37  ;;  %v13007_v50 = vand.u32 3, %v22985_v10 }
 0x539   :  { %v11353_v20 = vpop.f32.mrf.mxu0  ;;  %v13008_v37 = vand.u32 3, %v22982_v59 }
 0x53a   :  { %v13385_v23 = vsel %vm13193_vm10, %v11349_v16, %v11353_v20  ;;  %v11406_v26 = vpop.f32.mrf.mxu1  ;;  %vm23212_vm10 = vmmov %vm23211_vm3  ;;  %v10963_v14 = vmul.f32 0.01, %v10835_v48  ;;  %vm13071_vm4 = vcmp.eq.s32.totalorder %v13007_v50, 0 }
 0x53b   :  { %v13577_v0 = vsel %vm13129_vm7, %v11343_v41, %v13385_v23  ;;  %v13387_v12 = vsel %vm13195_vm12, %v11402_v28, %v11406_v26  ;;  %v11355_v43 = vpop.f32.mrf.mxu0  ;;  %v10961_v28 = vmul.f32 0.01, %v21576_v32  ;;  %v13006_v23 = vand.u32 3, %v22979_v24 }
 0x53c   :  { %v13769_v5 = vsel %vm13065_vm6, %v21505_v17, %v13577_v0  ;;  %v13579_v30 = vsel %vm13131_vm9, %v11396_v34, %v13387_v12  ;;  %v13386_v25 = vsel %vm13194_vm15, %v11351_v42, %v11355_v43  ;;  %v11408_v49 = vpop.f32.mrf.mxu1  ;;  %v21606_v34 = vld [vmem:[#allocation12] sm:$0xff]   ;;  %vm23209_vm6 = vcmask 64512  }
 0x53d   :  { %v21596_v29 = vadd.f32 %v21587_v60, %v13769_v5  ;;  %v13771_v41 = vsel %vm23208_vm2, %v21511_v22, %v13579_v30  ;;  %v13578_v53 = vsel %vm13130_vm1, %v11345_v9, %v13386_v25  ;;  %v13388_v19 = vsel %vm13196_vm5, %v11404_v6, %v11408_v49  ;;  %v21604_v17 = vpop.f32.mrf.mxu0  ;;  %14934 = vmatmul.mubr.msk.bf16.vlgmr.msra.gmra.mxu0 %vm23209_vm6, %v21606_v34  ;;  %vm23210_vm7 = vmmov %vm23209_vm6 }
 0x53e   :  { %v21611_v54 = vadd.f32 %v21587_v60, %v13771_v41  ;;  %v13770_v22 = vsel %vm13066_vm11, %v21519_v39, %v13578_v53  ;;  %v13580_v40 = vsel %vm13132_vm14, %v11398_v62, %v13388_v19  ;;  %v21618_v9 = vpop.f32.mrf.mxu1  ;;  %14937 = vmatmul.mubr.msk.bf16.vlgmr.msra.gmra.mxu1 %vm23210_vm7, %v21606_v34  ;;  %12804 = vmatpush1.bf16.msra.mxu0 %v11282_v52  ;;  %vm10899_vm9 = vcmp.ge.f32.partialorder %v10835_v48, 0.0  ;;  %vm23214_vm12 = vmmov %vm23209_vm6 }
 0x53f   :  { %v14951_v61 = vmul.f32 -1.442695, %v21596_v29  ;;  %v21626_v44 = vadd.f32 %v21587_v60, %v13770_v22  ;;  %v13772_v39 = vsel %vm13068_vm0, %v21527_v46, %v13580_v40  ;;  %12857 = vmatpush1.bf16.msra.mxu1 %v11288_v13  ;;  %14945 = vmatprep.subr.msk.bf16.mxu0 %vm23212_vm10, %v11094_v56  ;;  %v21632_v63 = vpop.f32.mrf.mxu0  ;;  %vm10897_vm0 = vcmp.ge.f32.partialorder %v21576_v32, 0.0  ;;  %vm23215_vm8 = vmmov %vm23209_vm6 }
 0x540   :  { %v14953_v62 = vmul.f32 -1.442695, %v21611_v54  ;;  %v21636_v16 = vadd.f32 %v21587_v60, %v13772_v39  ;;  %14948 = vmatprep.subr.msk.bf16.mxu1 %vm23213_vm13, %v11096_v51  ;;  %v21639_v38 = vpop.f32.mrf.mxu1  ;;  %12725 = vmatprep.mubr.bf16.mxu0 %v22757_v33  ;;  %v11025_v26 = vsel %vm10897_vm0, %v21576_v32, %v10961_v28  ;;  %vm13197_vm14 = vcmp.eq.s32.totalorder %v13005_v36, 2 }
 0x541   :  { %15040 = vpow2.f32 %v14951_v61  ;;  %v14952_v45 = vmul.f32 -1.442695, %v21626_v44  ;;  %v11449_v46 = vpop.f32.mrf.mxu0  ;;  %12778 = vmatprep.mubr.bf16.mxu1 %v22757_v33  ;;  %v11027_v11 = vsel %vm10899_vm9, %v10835_v48, %v10963_v14  ;;  %vm13133_vm15 = vcmp.eq.s32.totalorder %v13005_v36, 1  ;;  %vm23217_vm9 = vmmov %vm23215_vm8 }
 0x542   :  { %15042 = vpow2.f32 %v14953_v62  ;;  %v14954_v31 = vmul.f32 -1.442695, %v21636_v16  ;;  %v11502_v3 = vpop.f32.mrf.mxu1  ;;  %vm13135_vm1 = vcmp.eq.s32.totalorder %v13007_v50, 1  ;;  %vm13199_vm5 = vcmp.eq.s32.totalorder %v13007_v50, 2 }
 0x543   :  { %15044 = vpow2.f32 %v14952_v45  ;;  %v11451_v42 = vpop.f32.mrf.mxu0  ;;  %v11093_v24 = vpack.c.bf16 %v11025_v26, %v11025_v26  ;;  %vm13069_vm11 = vcmp.eq.s32.totalorder %v13005_v36, 0  ;;  %vm13134_vm2 = vcmp.eq.s32.totalorder %v13006_v23, 1 }
 0x544   :  { %15046 = vpow2.f32 %v14954_v31  ;;  %v11504_v6 = vpop.f32.mrf.mxu1  ;;  %vm13198_vm6 = vcmp.eq.s32.totalorder %v13006_v23, 2  ;;  %vm13136_vm7 = vcmp.eq.s32.totalorder %v13008_v37, 1  ;;  %vm13200_vm3 = vcmp.eq.s32.totalorder %v13008_v37, 2 }
 0x545   :  { %v11455_v20 = vpop.f32.mrf.mxu0  ;;  %14935 = vmatmul.mubr.msk.bf16.gmra.mxu0 %vm23214_vm12, %v21649_v35  ;;  %v11095_v59 = vpack.c.bf16 %v11027_v11, %v11027_v11  ;;  %vm13070_vm10 = vcmp.eq.s32.totalorder %v13006_v23, 0  ;;  %vm13072_vm13 = vcmp.eq.s32.totalorder %v13008_v37, 0  ;;  %vm23216_vm0 = vcmask 1043456   ;;  %vm23218_vm12 = vmmov %vm23215_vm8 }
 0x546   :  { %v11508_v52 = vpop.f32.mrf.mxu1  ;;  %14938 = vmatmul.mubr.msk.bf16.gmra.mxu1 %vm23215_vm8, %v21649_v35  ;;  %12821 = vmatprep.mubr.bf16.mxu0 %v22757_v33  ;;  %v11294_v41 = vsel %vm23216_vm0, %v11093_v24, 0  ;;  %vm23219_vm8 = vmmov %vm23216_vm0  ;;  %v13009_v11 = vand.u32 3, %v22990_v15  ;;  %v13012_v15 = vand.u32 3, %v22989_v4 }
 0x547   :  { %v11457_v10 = vpop.f32.mrf.mxu0  ;;  %12874 = vmatprep.mubr.bf16.mxu1 %v22757_v33 }
 0x548   :  { %v11510_v47 = vpop.f32.mrf.mxu1 }
 0x549   :  { %v11459_v0 = vpop.f32.mrf.mxu0 }
 0x54a   :  { %v13389_v32 = vsel %vm13197_vm14, %v11455_v20, %v11459_v0  ;;  %v11512_v12 = vpop.f32.mrf.mxu1  ;;  %v13011_v0 = vand.u32 3, %v22991_v57  ;;  %vm23221_vm14 = vmmov %vm23217_vm9 }
 0x54b   :  { %v13581_v43 = vsel %vm13133_vm15, %v11449_v46, %v13389_v32  ;;  %v13391_v56 = vsel %vm13199_vm5, %v11508_v52, %v11512_v12  ;;  %v11461_v5 = vpop.f32.mrf.mxu0  ;;  %v23220_v32 = vlaneseq  ;;  %vm23222_vm15 = vmmov %vm23217_vm9  ;;  %vm13137_vm5 = vcmp.eq.s32.totalorder %v13009_v11, 1 }
 0x54c   :  { %v13773_v30 = vsel %vm13069_vm11, %v21604_v17, %v13581_v43  ;;  %v13583_v25 = vsel %vm13135_vm1, %v11502_v3, %v13391_v56  ;;  %v13390_v49 = vsel %vm13198_vm6, %v11457_v10, %v11461_v5  ;;  %v11514_v51 = vpop.f32.mrf.mxu1  ;;  %v13010_v43 = vand.u32 3, %v22988_v8 }
 0x54d   :  { %v21664_v53 = vadd.f32 %v21587_v60, %v13773_v30  ;;  %v13775_v19 = vsel %vm13071_vm4, %v21618_v9, %v13583_v25  ;;  %v13582_v22 = vsel %vm13134_vm2, %v11451_v42, %v13390_v49  ;;  %v13392_v40 = vsel %vm13200_vm3, %v11510_v47, %v11514_v51  ;;  %v21669_v13 = vpop.f32.mrf.mxu0  ;;  %14940 = vmatmul.mubr.msk.bf16.vlgmr.msra.gmra.mxu0 %vm23217_vm9, %v21606_v34 }
 0x54e   :  { %v15041_v17 = vpop.eup %15040  ;;  %v21674_v48 = vadd.f32 %v21587_v60, %v13775_v19  ;;  %v13774_v61 = vsel %vm13070_vm10, %v21632_v63, %v13582_v22  ;;  %v13584_v39 = vsel %vm13136_vm7, %v11504_v6, %v13392_v40  ;;  %v21678_v62 = vpop.f32.mrf.mxu1  ;;  %14943 = vmatmul.mubr.msk.bf16.vlgmr.msra.gmra.mxu1 %vm23218_vm12, %v21606_v34  ;;  %12910 = vmatpush1.bf16.msra.mxu0 %v11294_v41  ;;  %v11300_v9 = vsel %vm23219_vm8, %v11095_v59, 0  ;;  %vm23223_vm8 = vmmov %vm23221_vm14 }
 0x54f   :  { %v15043_v45 = vpop.eup %15042  ;;  %v14098_v46 = vadd.f32 1.0, %v15041_v17  ;;  %v21684_v28 = vadd.f32 %v21587_v60, %v13774_v61  ;;  %v13776_v31 = vsel %vm13072_vm13, %v21639_v38, %v13584_v39  ;;  %12963 = vmatpush1.bf16.msra.mxu1 %v11300_v9  ;;  %v21688_v63 = vpop.f32.mrf.mxu0  ;;  %12831 = vmatprep.mubr.bf16.mxu0 %v22757_v33  ;;  %v14955_v20 = vmul.f32 -1.442695, %v21664_v53 }
 0x550   :  { %v15045_v3 = vpop.eup %15044  ;;  %v14100_v42 = vadd.f32 1.0, %v15043_v45  ;;  %v21692_v36 = vadd.f32 %v21587_v60, %v13776_v31  ;;  %v21694_v14 = vpop.f32.mrf.mxu1  ;;  %12884 = vmatprep.mubr.bf16.mxu1 %v22757_v33  ;;  %v14957_v26 = vmul.f32 -1.442695, %v21674_v48  ;;  %v21704_v12 = vshrl.u32 %v23220_v32, 7 }
 0x551   :  { %v15047_v6 = vpop.eup %15046  ;;  %15048 = vrcp.f32 %v14098_v46  ;;  %v14099_v50 = vadd.f32 1.0, %v15045_v3  ;;  %v11555_v38 = vpop.f32.mrf.mxu0  ;;  %v14956_v37 = vmul.f32 -1.442695, %v21684_v28  ;;  %vm13201_vm1 = vcmp.eq.s32.totalorder %v13009_v11, 2 }
 0x552   :  { %15050 = vrcp.f32 %v14100_v42  ;;  %v14101_v23 = vadd.f32 1.0, %v15047_v6  ;;  %v11608_v52 = vpop.f32.mrf.mxu1  ;;  %v14958_v47 = vmul.f32 -1.442695, %v21692_v36  ;;  %vm13203_vm11 = vcmp.eq.s32.totalorder %v13011_v0, 2 }
 0x553   :  { %15052 = vrcp.f32 %v14099_v50  ;;  %v11557_v10 = vpop.f32.mrf.mxu0  ;;  %vm13905_vm4 = vcmp.lt.s32.totalorder %v21704_v12, 3  ;;  %vm13073_vm2 = vcmp.eq.s32.totalorder %v13009_v11, 0  ;;  %vm13139_vm6 = vcmp.eq.s32.totalorder %v13011_v0, 1 }
 0x554   :  { %15054 = vrcp.f32 %v14101_v23  ;;  %v11610_v24 = vpop.f32.mrf.mxu1  ;;  %vm13202_vm7 = vcmp.eq.s32.totalorder %v13010_v43, 2  ;;  %vm13075_vm3 = vcmp.eq.s32.totalorder %v13011_v0, 0  ;;  %vm13138_vm10 = vcmp.eq.s32.totalorder %v13010_v43, 1 }
 0x555   :  { %15056 = vpow2.f32 %v14955_v20  ;;  %v11561_v59 = vpop.f32.mrf.mxu0  ;;  %14941 = vmatmul.mubr.msk.bf16.gmra.mxu0 %vm23221_vm14, %v21649_v35  ;;  %vm13204_vm13 = vcmp.eq.s32.totalorder %v13012_v15, 2  ;;  %vm13074_vm0 = vcmp.eq.s32.totalorder %v13010_v43, 0  ;;  %vm13140_vm9 = vcmp.eq.s32.totalorder %v13012_v15, 1  ;;  %vm23224_vm14 = vmmov %vm23223_vm8 }
 0x556   :  { %15058 = vpow2.f32 %v14957_v26  ;;  %v11614_v56 = vpop.f32.mrf.mxu1  ;;  %14944 = vmatmul.mubr.msk.bf16.gmra.mxu1 %vm23222_vm15, %v21649_v35  ;;  %12927 = vmatprep.mubr.bf16.mxu0 %v22757_v33  ;;  %vm13076_vm12 = vcmp.eq.s32.totalorder %v13012_v15, 0  ;;  %vm23225_vm15 = vmmov %vm23223_vm8 }
 0x557   :  { %15060 = vpow2.f32 %v14956_v37  ;;  %v11563_v57 = vpop.f32.mrf.mxu0  ;;  %12980 = vmatprep.mubr.bf16.mxu1 %v22757_v33 }
 0x558   :  { %15062 = vpow2.f32 %v14958_v47  ;;  %v11616_v5 = vpop.f32.mrf.mxu1 }
 0x559   :  { %v11565_v8 = vpop.f32.mrf.mxu0 }
 0x55a   :  { %v13393_v30 = vsel %vm13201_vm1, %v11561_v59, %v11565_v8  ;;  %v11618_v25 = vpop.f32.mrf.mxu1  ;;  %v13013_v59 = vand.u32 3, %v22998_v1  ;;  %vm23226_vm1 = vmmov %vm23223_vm8  ;;  %v13016_v1 = vand.u32 3, %v22997_v7 }
 0x55b   :  { %v13585_v4 = vsel %vm13137_vm5, %v11555_v38, %v13393_v30  ;;  %v13395_v49 = vsel %vm13203_vm11, %v11614_v56, %v11618_v25  ;;  %v11567_v51 = vpop.f32.mrf.mxu0  ;;  %v13014_v30 = vand.u32 3, %v22996_v58 }
 0x55c   :  { %v13777_v41 = vsel %vm13073_vm2, %v21669_v13, %v13585_v4  ;;  %v13587_v19 = vsel %vm13139_vm6, %v11608_v52, %v13395_v49  ;;  %v13394_v22 = vsel %vm13202_vm7, %v11563_v57, %v11567_v51  ;;  %v11620_v40 = vpop.f32.mrf.mxu1  ;;  %vm13205_vm5 = vcmp.eq.s32.totalorder %v13013_v59, 2 }
 0x55d   :  { %v21717_v17 = vadd.f32 %v21587_v60, %v13777_v41  ;;  %v13779_v61 = vsel %vm13075_vm3, %v21678_v62, %v13587_v19  ;;  %v13586_v39 = vsel %vm13138_vm10, %v11557_v10, %v13394_v22  ;;  %v13396_v9 = vsel %vm13204_vm13, %v11616_v5, %v11620_v40  ;;  %v21720_v45 = vpop.f32.mrf.mxu0  ;;  %14946 = vmatmul.mubr.msk.bf16.vlgmr.msra.gmra.mxu0 %vm23223_vm8, %v21606_v34 }
 0x55e   :  { %v15049_v46 = vpop.eup %15048  ;;  %v21725_v31 = vadd.f32 %v21587_v60, %v13779_v61  ;;  %v13778_v13 = vsel %vm13074_vm0, %v21688_v63, %v13586_v39  ;;  %v13588_v3 = vsel %vm13140_vm9, %v11610_v24, %v13396_v9  ;;  %v21728_v42 = vpop.f32.mrf.mxu1  ;;  %14949 = vmatmul.mubr.msk.bf16.vlgmr.msra.gmra.mxu1 %vm23224_vm14, %v21606_v34  ;;  %12937 = vmatprep.mubr.bf16.mxu0 %v22757_v33  ;;  %vm13141_vm11 = vcmp.eq.s32.totalorder %v13013_v59, 1 }
 0x55f   :  { %v15051_v62 = vpop.eup %15050  ;;  %v14292_v6 = vsel %vm13905_vm4, %v15049_v46, %v21596_v29  ;;  %v14959_v50 = vmul.f32 -1.442695, %v21717_v17  ;;  %v21738_v20 = vadd.f32 %v21587_v60, %v13778_v13  ;;  %v13780_v63 = vsel %vm13076_vm12, %v21694_v14, %v13588_v3  ;;  %v21742_v38 = vpop.f32.mrf.mxu0  ;;  %12990 = vmatprep.mubr.bf16.mxu1 %v22757_v33 }
 0x560   :  { %v15053_v34 = vpop.eup %15052  ;;  %14356 = vst [vmem:[%s22555_s9] sm:$0xff] %v14292_v6  ;;  %v14294_v29 = vsel %vm13905_vm4, %v15051_v62, %v21611_v54  ;;  %v14961_v23 = vmul.f32 -1.442695, %v21725_v31  ;;  %v21753_v26 = vadd.f32 %v21587_v60, %v13780_v63  ;;  %v21755_v52 = vpop.f32.mrf.mxu1  ;;  %vm13077_vm6 = vcmp.eq.s32.totalorder %v13013_v59, 0 }
 0x561   :  { %v15055_v14 = vpop.eup %15054  ;;  %14358 = vst [vmem:[%s22555_s9 + $0x10] sm:$0xff] %v14294_v29  ;;  %v14293_v33 = vsel %vm13905_vm4, %v15053_v34, %v21626_v44  ;;  %15064 = vpow2.f32 %v14959_v50  ;;  %v14960_v37 = vmul.f32 -1.442695, %v21738_v20  ;;  %v11661_v54 = vpop.f32.mrf.mxu0  ;;  %vm13206_vm3 = vcmp.eq.s32.totalorder %v13014_v30, 2 }
 0x562   :  { %v15057_v10 = vpop.eup %15056  ;;  %14357 = vst [vmem:[%s22555_s9 + $0x8] sm:$0xff] %v14293_v33  ;;  %v14295_v11 = vsel %vm13905_vm4, %v15055_v14, %v21636_v16  ;;  %15066 = vpow2.f32 %v14961_v23  ;;  %v14962_v47 = vmul.f32 -1.442695, %v21753_v26  ;;  %v11714_v24 = vpop.f32.mrf.mxu1  ;;  %v13015_v16 = vand.u32 3, %v22999_v21 }
 0x563   :  { %v15059_v0 = vpop.eup %15058  ;;  %14359 = vst [vmem:[%s22555_s9 + $0x18] sm:$0xff] %v14295_v11  ;;  %v14102_v44 = vadd.f32 1.0, %v15057_v10  ;;  %15068 = vpow2.f32 %v14960_v37  ;;  %v11663_v32 = vpop.f32.mrf.mxu0  ;;  %vm13142_vm13 = vcmp.eq.s32.totalorder %v13014_v30, 1  ;;  %vm13208_vm0 = vcmp.eq.s32.totalorder %v13016_v1, 2 }
 0x564   :  { %v15061_v43 = vpop.eup %15060  ;;  %v14104_v56 = vadd.f32 1.0, %v15059_v0  ;;  %15070 = vpow2.f32 %v14962_v47  ;;  %v11716_v15 = vpop.f32.mrf.mxu1  ;;  %vm13207_vm2 = vcmp.eq.s32.totalorder %v13015_v16, 2  ;;  %vm13143_vm7 = vcmp.eq.s32.totalorder %v13015_v16, 1 }
 0x565   :  { %v15063_v57 = vpop.eup %15062  ;;  %15072 = vrcp.f32 %v14102_v44  ;;  %v14103_v5 = vadd.f32 1.0, %v15061_v43  ;;  %v11667_v8 = vpop.f32.mrf.mxu0  ;;  %14947 = vmatmul.mubr.msk.bf16.gmra.mxu0 %vm23225_vm15, %v21649_v35  ;;  %vm13079_vm10 = vcmp.eq.s32.totalorder %v13015_v16, 0  ;;  %vm13078_vm9 = vcmp.eq.s32.totalorder %v13014_v30, 0 }
 0x566   :  { %15074 = vrcp.f32 %v14104_v56  ;;  %v14105_v25 = vadd.f32 1.0, %v15063_v57  ;;  %v11720_v4 = vpop.f32.mrf.mxu1  ;;  %14950 = vmatmul.mubr.msk.bf16.gmra.mxu1 %vm23226_vm1, %v21649_v35  ;;  %vm13144_vm12 = vcmp.eq.s32.totalorder %v13016_v1, 1  ;;  %vm13080_vm8 = vcmp.eq.s32.totalorder %v13016_v1, 0 }
 0x567   :  { %15076 = vrcp.f32 %v14103_v5  ;;  %v11669_v49 = vpop.f32.mrf.mxu0  ;;  %v13017_v57 = vand.u32 3, %v23115_v18 }
 0x568   :  { %15078 = vrcp.f32 %v14105_v25  ;;  %v11722_v21 = vpop.f32.mrf.mxu1 }
 0x569   :  { %v11671_v51 = vpop.f32.mrf.mxu0  ;;  %vm13209_vm14 = vcmp.eq.s32.totalorder %v13017_v57, 2  ;;  %vm13145_vm15 = vcmp.eq.s32.totalorder %v13017_v57, 1 }
 0x56a   :  { %v13397_v58 = vsel %vm13205_vm5, %v11667_v8, %v11671_v51  ;;  %v11724_v41 = vpop.f32.mrf.mxu1  ;;  %vm13081_vm5 = vcmp.eq.s32.totalorder %v13017_v57, 0 }
 0x56b   :  { %v13589_v19 = vsel %vm13141_vm11, %v11661_v54, %v13397_v58  ;;  %v13399_v35 = vsel %vm13207_vm2, %v11720_v4, %v11724_v41  ;;  %v11673_v22 = vpop.f32.mrf.mxu0  ;;  %v23229_v41 = vld [vmem:[#allocation53_spill] sm:$0xff] }
 0x56c   :  { %v13781_v7 = vsel %vm13077_vm6, %v21720_v45, %v13589_v19  ;;  %v13591_v40 = vsel %vm13143_vm7, %v11714_v24, %v13399_v35  ;;  %v13398_v61 = vsel %vm13206_vm3, %v11669_v49, %v11673_v22  ;;  %v11726_v39 = vpop.f32.mrf.mxu1  ;;  %v13020_v19 = vand.u32 3, %v23229_v41 }
 0x56d   :  { %v21784_v9 = vadd.f32 %v21587_v60, %v13781_v7  ;;  %v13783_v46 = vsel %vm13079_vm10, %v21728_v42, %v13591_v40  ;;  %v13590_v13 = vsel %vm13142_vm13, %v11663_v32, %v13398_v61  ;;  %v13400_v3 = vsel %vm13208_vm0, %v11722_v21, %v11726_v39  ;;  %v21787_v62 = vpop.f32.mrf.mxu0  ;;  %v23228_v21 = vld [vmem:[#allocation48_spill] sm:$0xff] }
 0x56e   :  { %v15065_v6 = vpop.eup %15064  ;;  %v21790_v50 = vadd.f32 %v21587_v60, %v13783_v46  ;;  %v13782_v63 = vsel %vm13078_vm9, %v21742_v38, %v13590_v13  ;;  %v13592_v45 = vsel %vm13144_vm12, %v11716_v15, %v13400_v3  ;;  %v21793_v34 = vpop.f32.mrf.mxu1  ;;  %v13018_v51 = vand.u32 3, %v23228_v21 }
 0x56f   :  { %v15067_v29 = vpop.eup %15066  ;;  %v14106_v23 = vadd.f32 1.0, %v15065_v6  ;;  %v21796_v14 = vadd.f32 %v21587_v60, %v13782_v63  ;;  %v13784_v42 = vsel %vm13080_vm8, %v21755_v52, %v13592_v45  ;;  %v21799_v33 = vpop.f32.mrf.mxu0  ;;  %v14963_v24 = vmul.f32 -1.442695, %v21784_v9 }
 0x570   :  { %v15069_v37 = vpop.eup %15068  ;;  %v14108_v54 = vadd.f32 1.0, %v15067_v29  ;;  %v21802_v10 = vadd.f32 %v21587_v60, %v13784_v42  ;;  %v21804_v11 = vpop.f32.mrf.mxu1  ;;  %v14965_v52 = vmul.f32 -1.442695, %v21790_v50  ;;  %vm13210_vm2 = vcmp.eq.s32.totalorder %v13018_v51, 2 }
 0x571   :  { %v15071_v38 = vpop.eup %15070  ;;  %15080 = vrcp.f32 %v14106_v23  ;;  %v14107_v47 = vadd.f32 1.0, %v15069_v37  ;;  %v11767_v0 = vpop.f32.mrf.mxu0  ;;  %v14964_v15 = vmul.f32 -1.442695, %v21796_v14  ;;  %vm13146_vm7 = vcmp.eq.s32.totalorder %v13018_v51, 1 }
 0x572   :  { %v15073_v44 = vpop.eup %15072  ;;  %15082 = vrcp.f32 %v14108_v54  ;;  %v14109_v32 = vadd.f32 1.0, %v15071_v38  ;;  %v11820_v59 = vpop.f32.mrf.mxu1  ;;  %v14966_v30 = vmul.f32 -1.442695, %v21802_v10  ;;  %vm13212_vm3 = vcmp.eq.s32.totalorder %v13020_v19, 2 }
 0x573   :  { %v15075_v43 = vpop.eup %15074  ;;  %v14296_v56 = vsel %vm13905_vm4, %v15073_v44, %v21664_v53  ;;  %15084 = vrcp.f32 %v14107_v47  ;;  %v11769_v16 = vpop.f32.mrf.mxu0  ;;  %v23227_v53 = vld [vmem:[#allocation47_spill] sm:$0xff]  ;;  %vm13082_vm10 = vcmp.eq.s32.totalorder %v13018_v51, 0  ;;  %vm13148_vm13 = vcmp.eq.s32.totalorder %v13020_v19, 1 }
 0x574   :  { %v15077_v5 = vpop.eup %15076  ;;  %14360 = vst [vmem:[%s22555_s9 + $0x20] sm:$0xff] %v14296_v56  ;;  %v14298_v8 = vsel %vm13905_vm4, %v15075_v43, %v21674_v48  ;;  %15086 = vrcp.f32 %v14109_v32  ;;  %v11822_v25 = vpop.f32.mrf.mxu1  ;;  %v13019_v4 = vand.u32 3, %v23227_v53  ;;  %vm13084_vm0 = vcmp.eq.s32.totalorder %v13020_v19, 0  ;;  %v23231_v51 = vld [vmem:[#allocation59_spill] sm:$0xff]  ;;  %v23232_v19 = vld [vmem:[#allocation62_spill] sm:$0xff] }
 0x575   :  { %v15079_v1 = vpop.eup %15078  ;;  %14362 = vst [vmem:[%s22555_s9 + $0x30] sm:$0xff] %v14298_v8  ;;  %v14297_v18 = vsel %vm13905_vm4, %v15077_v5, %v21684_v28  ;;  %15088 = vpow2.f32 %v14963_v24  ;;  %v11773_v49 = vpop.f32.mrf.mxu0 }
 0x576   :  { %14361 = vst [vmem:[%s22555_s9 + $0x28] sm:$0xff] %v14297_v18  ;;  %v14299_v48 = vsel %vm13905_vm4, %v15079_v1, %v21692_v36  ;;  %15090 = vpow2.f32 %v14965_v52  ;;  %v11826_v58 = vpop.f32.mrf.mxu1  ;;  %vm13211_vm1 = vcmp.eq.s32.totalorder %v13019_v4, 2  ;;  %vm13147_vm11 = vcmp.eq.s32.totalorder %v13019_v4, 1 }
 0x577   :  { %14363 = vst [vmem:[%s22555_s9 + $0x38] sm:$0xff] %v14299_v48  ;;  %15092 = vpow2.f32 %v14964_v15  ;;  %v11775_v28 = vpop.f32.mrf.mxu0  ;;  %vm13083_vm6 = vcmp.eq.s32.totalorder %v13019_v4, 0  ;;  %v23230_v4 = vld [vmem:[#allocation58_spill] sm:$0xff] }
 0x578   :  { %15094 = vpow2.f32 %v14966_v30  ;;  %v11828_v35 = vpop.f32.mrf.mxu1  ;;  %v13021_v1 = vand.u32 3, %v23230_v4 }
 0x579   :  { %v11777_v22 = vpop.f32.mrf.mxu0 }
 0x57a   :  { %v13401_v36 = vsel %vm13209_vm14, %v11773_v49, %v11777_v22  ;;  %v11830_v7 = vpop.f32.mrf.mxu1  ;;  %vm13213_vm9 = vcmp.eq.s32.totalorder %v13021_v1, 2  ;;  %vm13149_vm12 = vcmp.eq.s32.totalorder %v13021_v1, 1  ;;  %vm13085_vm14 = vcmp.eq.s32.totalorder %v13021_v1, 0 }
 0x57b   :  { %v13593_v40 = vsel %vm13145_vm15, %v11767_v0, %v13401_v36  ;;  %v13403_v61 = vsel %vm13211_vm1, %v11826_v58, %v11830_v7  ;;  %v11779_v39 = vpop.f32.mrf.mxu0  ;;  %v23233_v36 = vld [vmem:[#allocation63_spill] sm:$0xff] }
 0x57c   :  { %v13785_v46 = vsel %vm13081_vm5, %v21787_v62, %v13593_v40  ;;  %v13595_v13 = vsel %vm13147_vm11, %v11820_v59, %v13403_v61  ;;  %v13402_v3 = vsel %vm13210_vm2, %v11775_v28, %v11779_v39  ;;  %v11832_v6 = vpop.f32.mrf.mxu1  ;;  %v13022_v28 = vand.u32 3, %v23232_v19 }
 0x57d   :  { %v21840_v63 = vadd.f32 %v21587_v60, %v13785_v46  ;;  %v13787_v45 = vsel %vm13083_vm6, %v21793_v34, %v13595_v13  ;;  %v13594_v29 = vsel %vm13146_vm7, %v11769_v16, %v13402_v3  ;;  %v13404_v23 = vsel %vm13212_vm3, %v11828_v35, %v11832_v6  ;;  %v21843_v42 = vpop.f32.mrf.mxu0 }
 0x57e   :  { %v15081_v37 = vpop.eup %15080  ;;  %v21846_v54 = vadd.f32 %v21587_v60, %v13787_v45  ;;  %v13786_v38 = vsel %vm13082_vm10, %v21799_v33, %v13594_v29  ;;  %v13596_v62 = vsel %vm13148_vm13, %v11822_v25, %v13404_v23  ;;  %v21849_v47 = vpop.f32.mrf.mxu1  ;;  %v13024_v7 = vand.u32 3, %v23233_v36 }
 0x57f   :  { %v15083_v24 = vpop.eup %15082  ;;  %v14300_v0 = vsel %vm13905_vm4, %v15081_v37, %v21717_v17  ;;  %v14967_v34 = vmul.f32 -1.442695, %v21840_v63  ;;  %v21856_v44 = vadd.f32 %v21587_v60, %v13786_v38  ;;  %v13788_v32 = vsel %vm13084_vm0, %v21804_v11, %v13596_v62  ;;  %v21859_v52 = vpop.f32.mrf.mxu0 }
 0x580   :  { %v15085_v59 = vpop.eup %15084  ;;  %14364 = vst [vmem:[%s22555_s9 + $0x40] sm:$0xff] %v14300_v0  ;;  %v14302_v33 = vsel %vm13905_vm4, %v15083_v24, %v21725_v31  ;;  %v14969_v17 = vmul.f32 -1.442695, %v21846_v54  ;;  %v21869_v43 = vadd.f32 %v21587_v60, %v13788_v32  ;;  %v21871_v56 = vpop.f32.mrf.mxu1  ;;  %vm13214_vm1 = vcmp.eq.s32.totalorder %v13022_v28, 2 }
 0x581   :  { %v15087_v15 = vpop.eup %15086  ;;  %14366 = vst [vmem:[%s22555_s9 + $0x50] sm:$0xff] %v14302_v33  ;;  %v14301_v11 = vsel %vm13905_vm4, %v15085_v59, %v21738_v20  ;;  %15096 = vpow2.f32 %v14967_v34  ;;  %v14968_v16 = vmul.f32 -1.442695, %v21856_v44  ;;  %v11873_v31 = vpop.f32.mrf.mxu0  ;;  %vm13150_vm11 = vcmp.eq.s32.totalorder %v13022_v28, 1 }
 0x582   :  { %v15089_v57 = vpop.eup %15088  ;;  %14365 = vst [vmem:[%s22555_s9 + $0x48] sm:$0xff] %v14301_v11  ;;  %v14303_v5 = vsel %vm13905_vm4, %v15087_v15, %v21753_v26  ;;  %15098 = vpow2.f32 %v14969_v17  ;;  %v14970_v8 = vmul.f32 -1.442695, %v21869_v43  ;;  %v11926_v30 = vpop.f32.mrf.mxu1  ;;  %v13023_v26 = vand.u32 3, %v23231_v51 }
 0x583   :  { %v15091_v25 = vpop.eup %15090  ;;  %14367 = vst [vmem:[%s22555_s9 + $0x58] sm:$0xff] %v14303_v5  ;;  %v14110_v20 = vadd.f32 1.0, %v15089_v57  ;;  %15100 = vpow2.f32 %v14968_v16  ;;  %v11875_v53 = vpop.f32.mrf.mxu0  ;;  %vm13216_vm2 = vcmp.eq.s32.totalorder %v13024_v7, 2  ;;  %vm13086_vm6 = vcmp.eq.s32.totalorder %v13022_v28, 0 }
 0x584   :  { %v15093_v18 = vpop.eup %15092  ;;  %v14112_v49 = vadd.f32 1.0, %v15091_v25  ;;  %15102 = vpow2.f32 %v14970_v8  ;;  %v11928_v21 = vpop.f32.mrf.mxu1  ;;  %vm13215_vm8 = vcmp.eq.s32.totalorder %v13023_v26, 2  ;;  %vm13151_vm15 = vcmp.eq.s32.totalorder %v13023_v26, 1 }
 0x585   :  { %v15095_v48 = vpop.eup %15094  ;;  %15104 = vrcp.f32 %v14110_v20  ;;  %v14111_v58 = vadd.f32 1.0, %v15093_v18  ;;  %v11879_v41 = vpop.f32.mrf.mxu0  ;;  %vm13087_vm5 = vcmp.eq.s32.totalorder %v13023_v26, 0  ;;  %vm13152_vm7 = vcmp.eq.s32.totalorder %v13024_v7, 1 }
 0x586   :  { %15106 = vrcp.f32 %v14112_v49  ;;  %v14113_v35 = vadd.f32 1.0, %v15095_v48  ;;  %v11932_v22 = vpop.f32.mrf.mxu1  ;;  %vm13088_vm3 = vcmp.eq.s32.totalorder %v13024_v7, 0 }
 0x587   :  { %15108 = vrcp.f32 %v14111_v58  ;;  %v11881_v40 = vpop.f32.mrf.mxu0  ;;  %v23234_v58 = vld [vmem:[#allocation70_spill] sm:$0xff] }
 0x588   :  { %15110 = vrcp.f32 %v14113_v35  ;;  %v11934_v61 = vpop.f32.mrf.mxu1 }
 0x589   :  { %v11883_v39 = vpop.f32.mrf.mxu0 }
 0x58a   :  { %v13405_v46 = vsel %vm13213_vm9, %v11879_v41, %v11883_v39  ;;  %v11936_v13 = vpop.f32.mrf.mxu1  ;;  %v13025_v41 = vand.u32 3, %v23234_v58  ;;  %v23236_v39 = vld [vmem:[#allocation72_spill] sm:$0xff] }
 0x58b   :  { %v13597_v3 = vsel %vm13149_vm12, %v11873_v31, %v13405_v46  ;;  %v13407_v6 = vsel %vm13215_vm8, %v11932_v22, %v11936_v13  ;;  %v11885_v45 = vpop.f32.mrf.mxu0  ;;  %v13026_v46 = vand.u32 3, %v23236_v39 }
 0x58c   :  { %v13789_v29 = vsel %vm13085_vm14, %v21843_v42, %v13597_v3  ;;  %v13599_v23 = vsel %vm13151_vm15, %v11926_v30, %v13407_v6  ;;  %v13406_v37 = vsel %vm13214_vm1, %v11881_v40, %v11885_v45  ;;  %v11938_v38 = vpop.f32.mrf.mxu1  ;;  %v23237_v3 = vld [vmem:[#allocation73_spill] sm:$0xff]  ;;  %vm13217_vm10 = vcmp.eq.s32.totalorder %v13025_v41, 2 }
 0x58d   :  { %v21896_v62 = vadd.f32 %v21587_v60, %v13789_v29  ;;  %v13791_v24 = vsel %vm13087_vm5, %v21849_v47, %v13599_v23  ;;  %v13598_v0 = vsel %vm13150_vm11, %v11875_v53, %v13406_v37  ;;  %v13408_v34 = vsel %vm13216_vm2, %v11934_v61, %v11938_v38  ;;  %v21899_v32 = vpop.f32.mrf.mxu0 }
 0x58e   :  { %v15097_v59 = vpop.eup %15096  ;;  %v21902_v33 = vadd.f32 %v21587_v60, %v13791_v24  ;;  %v13790_v17 = vsel %vm13086_vm6, %v21859_v52, %v13598_v0  ;;  %v13600_v42 = vsel %vm13152_vm7, %v11928_v21, %v13408_v34  ;;  %v21905_v15 = vpop.f32.mrf.mxu1  ;;  %v13028_v6 = vand.u32 3, %v23237_v3 }
 0x58f   :  { %v15099_v11 = vpop.eup %15098  ;;  %v14114_v16 = vadd.f32 1.0, %v15097_v59  ;;  %v21908_v31 = vadd.f32 %v21587_v60, %v13790_v17  ;;  %v13792_v47 = vsel %vm13088_vm3, %v21871_v56, %v13600_v42  ;;  %v21911_v57 = vpop.f32.mrf.mxu0  ;;  %v14971_v53 = vmul.f32 -1.442695, %v21896_v62 }
 0x590   :  { %v15101_v5 = vpop.eup %15100  ;;  %v14116_v8 = vadd.f32 1.0, %v15099_v11  ;;  %v21914_v30 = vadd.f32 %v21587_v60, %v13792_v47  ;;  %v21916_v25 = vpop.f32.mrf.mxu1  ;;  %v14973_v56 = vmul.f32 -1.442695, %v21902_v33  ;;  %vm13153_vm13 = vcmp.eq.s32.totalorder %v13025_v41, 1 }
 0x591   :  { %v15103_v52 = vpop.eup %15102  ;;  %15112 = vrcp.f32 %v14114_v16  ;;  %v14115_v20 = vadd.f32 1.0, %v15101_v5  ;;  %v11979_v4 = vpop.f32.mrf.mxu0  ;;  %v14972_v26 = vmul.f32 -1.442695, %v21908_v31  ;;  %vm13089_vm9 = vcmp.eq.s32.totalorder %v13025_v41, 0 }
 0x592   :  { %v15105_v1 = vpop.eup %15104  ;;  %15114 = vrcp.f32 %v14116_v8  ;;  %v14117_v18 = vadd.f32 1.0, %v15103_v52  ;;  %v12032_v49 = vpop.f32.mrf.mxu1  ;;  %v14974_v35 = vmul.f32 -1.442695, %v21914_v30  ;;  %vm13218_vm8 = vcmp.eq.s32.totalorder %v13026_v46, 2 }
 0x593   :  { %v15107_v21 = vpop.eup %15106  ;;  %v14304_v51 = vsel %vm13905_vm4, %v15105_v1, %v21784_v9  ;;  %15116 = vrcp.f32 %v14115_v20  ;;  %v11981_v48 = vpop.f32.mrf.mxu0  ;;  %v23235_v9 = vld [vmem:[#allocation71_spill] sm:$0xff]  ;;  %vm13154_vm15 = vcmp.eq.s32.totalorder %v13026_v46, 1  ;;  %vm13220_vm1 = vcmp.eq.s32.totalorder %v13028_v6, 2 }
 0x594   :  { %v15109_v19 = vpop.eup %15108  ;;  %14368 = vst [vmem:[%s22555_s9 + $0x60] sm:$0xff] %v14304_v51  ;;  %v14306_v28 = vsel %vm13905_vm4, %v15107_v21, %v21790_v50  ;;  %15118 = vrcp.f32 %v14117_v18  ;;  %v12034_v22 = vpop.f32.mrf.mxu1  ;;  %v13027_v36 = vand.u32 3, %v23235_v9  ;;  %vm13090_vm5 = vcmp.eq.s32.totalorder %v13026_v46, 0  ;;  %v23239_v46 = vld [vmem:[#allocation83_spill] sm:$0xff] }
 0x595   :  { %v15111_v7 = vpop.eup %15110  ;;  %14370 = vst [vmem:[%s22555_s9 + $0x70] sm:$0xff] %v14306_v28  ;;  %v14305_v40 = vsel %vm13905_vm4, %v15109_v19, %v21796_v14  ;;  %15120 = vpow2.f32 %v14971_v53  ;;  %v11985_v61 = vpop.f32.mrf.mxu0  ;;  %vm13156_vm11 = vcmp.eq.s32.totalorder %v13028_v6, 1  ;;  %vm13092_vm2 = vcmp.eq.s32.totalorder %v13028_v6, 0  ;;  %v23240_v6 = vld [vmem:[#allocation84_spill] sm:$0xff] }
 0x596   :  { %14369 = vst [vmem:[%s22555_s9 + $0x68] sm:$0xff] %v14305_v40  ;;  %v14307_v50 = vsel %vm13905_vm4, %v15111_v7, %v21802_v10  ;;  %15122 = vpow2.f32 %v14973_v56  ;;  %v12038_v13 = vpop.f32.mrf.mxu1  ;;  %vm13219_vm0 = vcmp.eq.s32.totalorder %v13027_v36, 2  ;;  %vm13155_vm12 = vcmp.eq.s32.totalorder %v13027_v36, 1 }
 0x597   :  { %14371 = vst [vmem:[%s22555_s9 + $0x78] sm:$0xff] %v14307_v50  ;;  %15124 = vpow2.f32 %v14972_v26  ;;  %v11987_v14 = vpop.f32.mrf.mxu0  ;;  %vm13091_vm14 = vcmp.eq.s32.totalorder %v13027_v36, 0  ;;  %v23238_v36 = vld [vmem:[#allocation82_spill] sm:$0xff] }
 0x598   :  { %15126 = vpow2.f32 %v14974_v35  ;;  %v12040_v45 = vpop.f32.mrf.mxu1  ;;  %v13029_v7 = vand.u32 3, %v23238_v36 }
 0x599   :  { %v11989_v29 = vpop.f32.mrf.mxu0 }
 0x59a   :  { %v13409_v10 = vsel %vm13217_vm10, %v11985_v61, %v11989_v29  ;;  %v12042_v23 = vpop.f32.mrf.mxu1  ;;  %vm13221_vm6 = vcmp.eq.s32.totalorder %v13029_v7, 2  ;;  %vm13157_vm7 = vcmp.eq.s32.totalorder %v13029_v7, 1  ;;  %vm13093_vm10 = vcmp.eq.s32.totalorder %v13029_v7, 0 }
 0x59b   :  { %v13601_v37 = vsel %vm13153_vm13, %v11979_v4, %v13409_v10  ;;  %v13411_v38 = vsel %vm13219_vm0, %v12038_v13, %v12042_v23  ;;  %v11991_v24 = vpop.f32.mrf.mxu0  ;;  %v23241_v10 = vld [vmem:[#allocation85_spill] sm:$0xff] }
 0x59c   :  { %v13793_v0 = vsel %vm13089_vm9, %v21899_v32, %v13601_v37  ;;  %v13603_v34 = vsel %vm13155_vm12, %v12032_v49, %v13411_v38  ;;  %v13410_v59 = vsel %vm13218_vm8, %v11987_v14, %v11991_v24  ;;  %v12044_v17 = vpop.f32.mrf.mxu1  ;;  %v13030_v14 = vand.u32 3, %v23240_v6 }
 0x59d   :  { %v21952_v42 = vadd.f32 %v21587_v60, %v13793_v0  ;;  %v13795_v11 = vsel %vm13091_vm14, %v21905_v15, %v13603_v34  ;;  %v13602_v16 = vsel %vm13154_vm15, %v11981_v48, %v13410_v59  ;;  %v13412_v47 = vsel %vm13220_vm1, %v12040_v45, %v12044_v17  ;;  %v21955_v5 = vpop.f32.mrf.mxu0 }
 0x59e   :  { %v15113_v8 = vpop.eup %15112  ;;  %v21958_v52 = vadd.f32 %v21587_v60, %v13795_v11  ;;  %v13794_v20 = vsel %vm13090_vm5, %v21911_v57, %v13602_v16  ;;  %v13604_v32 = vsel %vm13156_vm11, %v12034_v22, %v13412_v47  ;;  %v21961_v53 = vpop.f32.mrf.mxu1  ;;  %v13032_v23 = vand.u32 3, %v23241_v10 }
 0x59f   :  { %v15115_v4 = vpop.eup %15114  ;;  %v14308_v1 = vsel %vm13905_vm4, %v15113_v8, %v21840_v63  ;;  %v14975_v15 = vmul.f32 -1.442695, %v21952_v42  ;;  %v21968_v18 = vadd.f32 %v21587_v60, %v13794_v20  ;;  %v13796_v56 = vsel %vm13092_vm2, %v21916_v25, %v13604_v32  ;;  %v21971_v49 = vpop.f32.mrf.mxu0 }
 0x5a0   :  { %v15117_v21 = vpop.eup %15116  ;;  %14372 = vst [vmem:[%s22555_s9 + $0x80] sm:$0xff] %v14308_v1  ;;  %v14310_v57 = vsel %vm13905_vm4, %v15115_v4, %v21846_v54  ;;  %v14977_v63 = vmul.f32 -1.442695, %v21958_v52  ;;  %v21981_v51 = vadd.f32 %v21587_v60, %v13796_v56  ;;  %v21983_v26 = vpop.f32.mrf.mxu1  ;;  %vm13222_vm0 = vcmp.eq.s32.totalorder %v13030_v14, 2 }
 0x5a1   :  { %v15119_v48 = vpop.eup %15118  ;;  %14374 = vst [vmem:[%s22555_s9 + $0x90] sm:$0xff] %v14310_v57  ;;  %v14309_v25 = vsel %vm13905_vm4, %v15117_v21, %v21856_v44  ;;  %15128 = vpow2.f32 %v14975_v15  ;;  %v14976_v58 = vmul.f32 -1.442695, %v21968_v18  ;;  %v12085_v54 = vpop.f32.mrf.mxu0  ;;  %vm13158_vm12 = vcmp.eq.s32.totalorder %v13030_v14, 1 }
 0x5a2   :  { %v15121_v41 = vpop.eup %15120  ;;  %14373 = vst [vmem:[%s22555_s9 + $0x88] sm:$0xff] %v14309_v25  ;;  %v14311_v19 = vsel %vm13905_vm4, %v15119_v48, %v21869_v43  ;;  %15130 = vpow2.f32 %v14977_v63  ;;  %v14978_v28 = vmul.f32 -1.442695, %v21981_v51  ;;  %v12138_v35 = vpop.f32.mrf.mxu1  ;;  %v13031_v43 = vand.u32 3, %v23239_v46 }
 0x5a3   :  { %v15123_v22 = vpop.eup %15122  ;;  %14375 = vst [vmem:[%s22555_s9 + $0x98] sm:$0xff] %v14311_v19  ;;  %v14118_v44 = vadd.f32 1.0, %v15121_v41  ;;  %15132 = vpow2.f32 %v14976_v58  ;;  %v12087_v9 = vpop.f32.mrf.mxu0  ;;  %vm13224_vm8 = vcmp.eq.s32.totalorder %v13032_v23, 2  ;;  %vm13094_vm14 = vcmp.eq.s32.totalorder %v13030_v14, 0 }
 0x5a4   :  { %v15125_v40 = vpop.eup %15124  ;;  %v14120_v61 = vadd.f32 1.0, %v15123_v22  ;;  %15134 = vpow2.f32 %v14978_v28  ;;  %v12140_v39 = vpop.f32.mrf.mxu1  ;;  %vm13223_vm3 = vcmp.eq.s32.totalorder %v13031_v43, 2  ;;  %vm13159_vm13 = vcmp.eq.s32.totalorder %v13031_v43, 1 }
 0x5a5   :  { %v15127_v50 = vpop.eup %15126  ;;  %15136 = vrcp.f32 %v14118_v44  ;;  %v14119_v13 = vadd.f32 1.0, %v15125_v40  ;;  %v12091_v3 = vpop.f32.mrf.mxu0  ;;  %vm13095_vm9 = vcmp.eq.s32.totalorder %v13031_v43, 0  ;;  %vm13160_vm15 = vcmp.eq.s32.totalorder %v13032_v23, 1 }
 0x5a6   :  { %15138 = vrcp.f32 %v14120_v61  ;;  %v14121_v45 = vadd.f32 1.0, %v15127_v50  ;;  %v12144_v29 = vpop.f32.mrf.mxu1  ;;  %vm13096_vm1 = vcmp.eq.s32.totalorder %v13032_v23, 0 }
 0x5a7   :  { %15140 = vrcp.f32 %v14119_v13  ;;  %v12093_v37 = vpop.f32.mrf.mxu0  ;;  %v23242_v13 = vld [vmem:[#allocation91_spill] sm:$0xff] }
 0x5a8   :  { %15142 = vrcp.f32 %v14121_v45  ;;  %v12146_v38 = vpop.f32.mrf.mxu1 }
 0x5a9   :  { %v12095_v24 = vpop.f32.mrf.mxu0 }
 0x5aa   :  { %v13413_v0 = vsel %vm13221_vm6, %v12091_v3, %v12095_v24  ;;  %v12148_v34 = vpop.f32.mrf.mxu1  ;;  %v13033_v3 = vand.u32 3, %v23242_v13  ;;  %v23244_v24 = vld [vmem:[#allocation93_spill] sm:$0xff] }
 0x5ab   :  { %v13605_v59 = vsel %vm13157_vm7, %v12085_v54, %v13413_v0  ;;  %v13415_v17 = vsel %vm13223_vm3, %v12144_v29, %v12148_v34  ;;  %v12097_v11 = vpop.f32.mrf.mxu0  ;;  %v13034_v0 = vand.u32 3, %v23244_v24 }
 0x5ac   :  { %v13797_v16 = vsel %vm13093_vm10, %v21955_v5, %v13605_v59  ;;  %v13607_v47 = vsel %vm13159_vm13, %v12138_v35, %v13415_v17  ;;  %v13414_v8 = vsel %vm13222_vm0, %v12093_v37, %v12097_v11  ;;  %v12150_v20 = vpop.f32.mrf.mxu1  ;;  %v23245_v59 = vld [vmem:[#allocation94_spill] sm:$0xff]  ;;  %vm13225_vm5 = vcmp.eq.s32.totalorder %v13033_v3, 2 }
 0x5ad   :  { %v22008_v32 = vadd.f32 %v21587_v60, %v13797_v16  ;;  %v13799_v4 = vsel %vm13095_vm9, %v21961_v53, %v13607_v47  ;;  %v13606_v1 = vsel %vm13158_vm12, %v12087_v9, %v13414_v8  ;;  %v13416_v15 = vsel %vm13224_vm8, %v12146_v38, %v12150_v20  ;;  %v22011_v56 = vpop.f32.mrf.mxu0 }
 0x5ae   :  { %v15129_v21 = vpop.eup %15128  ;;  %v22014_v57 = vadd.f32 %v21587_v60, %v13799_v4  ;;  %v13798_v63 = vsel %vm13094_vm14, %v21971_v49, %v13606_v1  ;;  %v13608_v5 = vsel %vm13160_vm15, %v12140_v39, %v13416_v15  ;;  %v22017_v48 = vpop.f32.mrf.mxu1  ;;  %v13036_v17 = vand.u32 3, %v23245_v59 }
 0x5af   :  { %v15131_v25 = vpop.eup %15130  ;;  %v14122_v58 = vadd.f32 1.0, %v15129_v21  ;;  %v22020_v54 = vadd.f32 %v21587_v60, %v13798_v63  ;;  %v13800_v53 = vsel %vm13096_vm1, %v21983_v26, %v13608_v5  ;;  %v22023_v41 = vpop.f32.mrf.mxu0  ;;  %v14979_v9 = vmul.f32 -1.442695, %v22008_v32 }
 0x5b0   :  { %v15133_v19 = vpop.eup %15132  ;;  %v14124_v28 = vadd.f32 1.0, %v15131_v25  ;;  %v22026_v35 = vadd.f32 %v21587_v60, %v13800_v53  ;;  %v22028_v22 = vpop.f32.mrf.mxu1  ;;  %v14981_v26 = vmul.f32 -1.442695, %v22014_v57  ;;  %vm13161_vm11 = vcmp.eq.s32.totalorder %v13033_v3, 1 }
 0x5b1   :  { %v15135_v49 = vpop.eup %15134  ;;  %15144 = vrcp.f32 %v14122_v58  ;;  %v14123_v44 = vadd.f32 1.0, %v15133_v19  ;;  %v12191_v36 = vpop.f32.mrf.mxu0  ;;  %v14980_v43 = vmul.f32 -1.442695, %v22020_v54  ;;  %vm13097_vm6 = vcmp.eq.s32.totalorder %v13033_v3, 0 }
 0x5b2   :  { %v15137_v7 = vpop.eup %15136  ;;  %15146 = vrcp.f32 %v14124_v28  ;;  %v14125_v40 = vadd.f32 1.0, %v15135_v49  ;;  %v12244_v61 = vpop.f32.mrf.mxu1  ;;  %v14982_v45 = vmul.f32 -1.442695, %v22026_v35  ;;  %vm13226_vm3 = vcmp.eq.s32.totalorder %v13034_v0, 2 }
 0x5b3   :  { %v15139_v39 = vpop.eup %15138  ;;  %v14312_v46 = vsel %vm13905_vm4, %v15137_v7, %v21896_v62  ;;  %15148 = vrcp.f32 %v14123_v44  ;;  %v12193_v50 = vpop.f32.mrf.mxu0  ;;  %v23243_v62 = vld [vmem:[#allocation92_spill] sm:$0xff]  ;;  %vm13162_vm13 = vcmp.eq.s32.totalorder %v13034_v0, 1  ;;  %vm13228_vm0 = vcmp.eq.s32.totalorder %v13036_v17, 2 }
 0x5b4   :  { %v15141_v6 = vpop.eup %15140  ;;  %14376 = vst [vmem:[%s22555_s9 + $0xa0] sm:$0xff] %v14312_v46  ;;  %v14314_v14 = vsel %vm13905_vm4, %v15139_v39, %v21902_v33  ;;  %15150 = vrcp.f32 %v14125_v40  ;;  %v12246_v29 = vpop.f32.mrf.mxu1  ;;  %v13035_v10 = vand.u32 3, %v23243_v62  ;;  %vm13098_vm9 = vcmp.eq.s32.totalorder %v13034_v0, 0  ;;  %v23247_v0 = vld [vmem:[#allocation97_spill] sm:$0xff] }
 0x5b5   :  { %v15143_v23 = vpop.eup %15142  ;;  %14378 = vst [vmem:[%s22555_s9 + $0xb0] sm:$0xff] %v14314_v14  ;;  %v14313_v37 = vsel %vm13905_vm4, %v15141_v6, %v21908_v31  ;;  %15152 = vpow2.f32 %v14979_v9  ;;  %v12197_v38 = vpop.f32.mrf.mxu0  ;;  %vm13164_vm12 = vcmp.eq.s32.totalorder %v13036_v17, 1  ;;  %vm13100_vm8 = vcmp.eq.s32.totalorder %v13036_v17, 0  ;;  %v23248_v17 = vld [vmem:[#allocation98_spill] sm:$0xff] }
 0x5b6   :  { %14377 = vst [vmem:[%s22555_s9 + $0xa8] sm:$0xff] %v14313_v37  ;;  %v14315_v33 = vsel %vm13905_vm4, %v15143_v23, %v21914_v30  ;;  %15154 = vpow2.f32 %v14981_v26  ;;  %v12250_v34 = vpop.f32.mrf.mxu1  ;;  %vm13227_vm2 = vcmp.eq.s32.totalorder %v13035_v10, 2  ;;  %vm13163_vm7 = vcmp.eq.s32.totalorder %v13035_v10, 1 }
 0x5b7   :  { %14379 = vst [vmem:[%s22555_s9 + $0xb8] sm:$0xff] %v14315_v33  ;;  %15156 = vpow2.f32 %v14980_v43  ;;  %v12199_v31 = vpop.f32.mrf.mxu0  ;;  %vm13099_vm10 = vcmp.eq.s32.totalorder %v13035_v10, 0  ;;  %v23246_v10 = vld [vmem:[#allocation96_spill] sm:$0xff] }
 0x5b8   :  { %15158 = vpow2.f32 %v14982_v45  ;;  %v12252_v11 = vpop.f32.mrf.mxu1  ;;  %v13037_v23 = vand.u32 3, %v23246_v10 }
 0x5b9   :  { %v12201_v16 = vpop.f32.mrf.mxu0 }
 0x5ba   :  { %v13417_v30 = vsel %vm13225_vm5, %v12197_v38, %v12201_v16  ;;  %v12254_v47 = vpop.f32.mrf.mxu1  ;;  %vm13229_vm14 = vcmp.eq.s32.totalorder %v13037_v23, 2  ;;  %vm13165_vm15 = vcmp.eq.s32.totalorder %v13037_v23, 1  ;;  %vm13101_vm5 = vcmp.eq.s32.totalorder %v13037_v23, 0 }
 0x5bb   :  { %v13609_v8 = vsel %vm13161_vm11, %v12191_v36, %v13417_v30  ;;  %v13419_v20 = vsel %vm13227_vm2, %v12250_v34, %v12254_v47  ;;  %v12203_v4 = vpop.f32.mrf.mxu0  ;;  %v23249_v30 = vld [vmem:[#allocation99_spill] sm:$0xff] }
 0x5bc   :  { %v13801_v1 = vsel %vm13097_vm6, %v22011_v56, %v13609_v8  ;;  %v13611_v15 = vsel %vm13163_vm7, %v12244_v61, %v13419_v20  ;;  %v13418_v21 = vsel %vm13226_vm3, %v12199_v31, %v12203_v4  ;;  %v12256_v63 = vpop.f32.mrf.mxu1  ;;  %v13038_v31 = vand.u32 3, %v23248_v17 }
 0x5bd   :  { %v22064_v5 = vadd.f32 %v21587_v60, %v13801_v1  ;;  %v13803_v25 = vsel %vm13099_vm10, %v22017_v48, %v13611_v15  ;;  %v13610_v58 = vsel %vm13162_vm13, %v12193_v50, %v13418_v21  ;;  %v13420_v53 = vsel %vm13228_vm0, %v12252_v11, %v12256_v63  ;;  %v22067_v19 = vpop.f32.mrf.mxu0 }
 0x5be   :  { %v15145_v28 = vpop.eup %15144  ;;  %v22070_v49 = vadd.f32 %v21587_v60, %v13803_v25  ;;  %v13802_v44 = vsel %vm13098_vm9, %v22023_v41, %v13610_v58  ;;  %v13612_v56 = vsel %vm13164_vm12, %v12246_v29, %v13420_v53  ;;  %v22073_v9 = vpop.f32.mrf.mxu1  ;;  %v13040_v47 = vand.u32 3, %v23249_v30 }
 0x5bf   :  { %v15147_v36 = vpop.eup %15146  ;;  %v14316_v7 = vsel %vm13905_vm4, %v15145_v28, %v21952_v42  ;;  %v14983_v48 = vmul.f32 -1.442695, %v22064_v5  ;;  %v22080_v40 = vadd.f32 %v21587_v60, %v13802_v44  ;;  %v13804_v26 = vsel %vm13100_vm8, %v22028_v22, %v13612_v56  ;;  %v22083_v61 = vpop.f32.mrf.mxu0 }
 0x5c0   :  { %v15149_v39 = vpop.eup %15148  ;;  %14380 = vst [vmem:[%s22555_s9 + $0xc0] sm:$0xff] %v14316_v7  ;;  %v14318_v41 = vsel %vm13905_vm4, %v15147_v36, %v21958_v52  ;;  %v14985_v42 = vmul.f32 -1.442695, %v22070_v49  ;;  %v22093_v46 = vadd.f32 %v21587_v60, %v13804_v26  ;;  %v22095_v43 = vpop.f32.mrf.mxu1  ;;  %vm13230_vm2 = vcmp.eq.s32.totalorder %v13038_v31, 2 }
 0x5c1   :  { %v15151_v50 = vpop.eup %15150  ;;  %14382 = vst [vmem:[%s22555_s9 + $0xd0] sm:$0xff] %v14318_v41  ;;  %v14317_v22 = vsel %vm13905_vm4, %v15149_v39, %v21968_v18  ;;  %15160 = vpow2.f32 %v14983_v48  ;;  %v14984_v13 = vmul.f32 -1.442695, %v22080_v40  ;;  %v12297_v52 = vpop.f32.mrf.mxu0  ;;  %vm13166_vm7 = vcmp.eq.s32.totalorder %v13038_v31, 1 }
 0x5c2   :  { %v15153_v3 = vpop.eup %15152  ;;  %14381 = vst [vmem:[%s22555_s9 + $0xc8] sm:$0xff] %v14317_v22  ;;  %v14319_v6 = vsel %vm13905_vm4, %v15151_v50, %v21981_v51  ;;  %15162 = vpow2.f32 %v14985_v42  ;;  %v14986_v14 = vmul.f32 -1.442695, %v22093_v46  ;;  %v12350_v45 = vpop.f32.mrf.mxu1  ;;  %v13039_v51 = vand.u32 3, %v23247_v0 }
 0x5c3   :  { %v15155_v29 = vpop.eup %15154  ;;  %14383 = vst [vmem:[%s22555_s9 + $0xd8] sm:$0xff] %v14319_v6  ;;  %v14126_v18 = vadd.f32 1.0, %v15153_v3  ;;  %15164 = vpow2.f32 %v14984_v13  ;;  %v12299_v62 = vpop.f32.mrf.mxu0  ;;  %vm13232_vm3 = vcmp.eq.s32.totalorder %v13040_v47, 2  ;;  %vm13102_vm10 = vcmp.eq.s32.totalorder %v13038_v31, 0 }
 0x5c4   :  { %v15157_v37 = vpop.eup %15156  ;;  %v14128_v38 = vadd.f32 1.0, %v15155_v29  ;;  %15166 = vpow2.f32 %v14986_v14  ;;  %v12352_v24 = vpop.f32.mrf.mxu1  ;;  %vm13231_vm1 = vcmp.eq.s32.totalorder %v13039_v51, 2  ;;  %vm13167_vm11 = vcmp.eq.s32.totalorder %v13039_v51, 1 }
 0x5c5   :  { %v15159_v33 = vpop.eup %15158  ;;  %15168 = vrcp.f32 %v14126_v18  ;;  %v14127_v34 = vadd.f32 1.0, %v15157_v37  ;;  %v12303_v59 = vpop.f32.mrf.mxu0  ;;  %vm13103_vm6 = vcmp.eq.s32.totalorder %v13039_v51, 0  ;;  %vm13168_vm13 = vcmp.eq.s32.totalorder %v13040_v47, 1 }
 0x5c6   :  { %15170 = vrcp.f32 %v14128_v38  ;;  %v14129_v11 = vadd.f32 1.0, %v15159_v33  ;;  %v12356_v16 = vpop.f32.mrf.mxu1  ;;  %vm13104_vm0 = vcmp.eq.s32.totalorder %v13040_v47, 0 }
 0x5c7   :  { %15172 = vrcp.f32 %v14127_v34  ;;  %v12305_v8 = vpop.f32.mrf.mxu0  ;;  %v23250_v34 = vld [vmem:[#allocation30_spill] sm:$0xff] }
 0x5c8   :  { %15174 = vrcp.f32 %v14129_v11  ;;  %v12358_v20 = vpop.f32.mrf.mxu1 }
 0x5c9   :  { %v12307_v4 = vpop.f32.mrf.mxu0 }
 0x5ca   :  { %v13421_v1 = vsel %vm13229_vm14, %v12303_v59, %v12307_v4  ;;  %v12360_v15 = vpop.f32.mrf.mxu1  ;;  %v13041_v59 = vand.u32 3, %v23250_v34  ;;  %v23252_v4 = vld [vmem:[#allocation36_spill] sm:$0xff] }
 0x5cb   :  { %v13613_v21 = vsel %vm13165_vm15, %v12297_v52, %v13421_v1  ;;  %v13423_v63 = vsel %vm13231_vm1, %v12356_v16, %v12360_v15  ;;  %v12309_v25 = vpop.f32.mrf.mxu0  ;;  %v13042_v1 = vand.u32 3, %v23252_v4 }
 0x5cc   :  { %v13805_v58 = vsel %vm13101_vm5, %v22067_v19, %v13613_v21  ;;  %v13615_v53 = vsel %vm13167_vm11, %v12350_v45, %v13423_v63  ;;  %v13422_v28 = vsel %vm13230_vm2, %v12305_v8, %v12309_v25  ;;  %v12362_v44 = vpop.f32.mrf.mxu1  ;;  %v23253_v21 = vld [vmem:[#allocation40_spill] sm:$0xff]  ;;  %vm13233_vm9 = vcmp.eq.s32.totalorder %v13041_v59, 2 }
 0x5cd   :  { %v22120_v56 = vadd.f32 %v21587_v60, %v13805_v58  ;;  %v13807_v36 = vsel %vm13103_vm6, %v22073_v9, %v13615_v53  ;;  %v13614_v7 = vsel %vm13166_vm7, %v12299_v62, %v13422_v28  ;;  %v13424_v48 = vsel %vm13232_vm3, %v12358_v20, %v12362_v44  ;;  %v22123_v26 = vpop.f32.mrf.mxu0 }
 0x5ce   :  { %v15161_v39 = vpop.eup %15160  ;;  %v22126_v41 = vadd.f32 %v21587_v60, %v13807_v36  ;;  %v13806_v42 = vsel %vm13102_vm10, %v22083_v61, %v13614_v7  ;;  %v13616_v19 = vsel %vm13168_vm13, %v12352_v24, %v13424_v48  ;;  %v22129_v50 = vpop.f32.mrf.mxu1  ;;  %v13044_v63 = vand.u32 3, %v23253_v21 }
 0x5cf   :  { %v15163_v22 = vpop.eup %15162  ;;  %v14130_v13 = vadd.f32 1.0, %v15161_v39  ;;  %v22132_v52 = vadd.f32 %v21587_v60, %v13806_v42  ;;  %v13808_v9 = vsel %vm13104_vm0, %v22095_v43, %v13616_v19  ;;  %v22135_v3 = vpop.f32.mrf.mxu0  ;;  %v14987_v62 = vmul.f32 -1.442695, %v22120_v56 }
 0x5d0   :  { %v15165_v6 = vpop.eup %15164  ;;  %v14132_v14 = vadd.f32 1.0, %v15163_v22  ;;  %v22138_v45 = vadd.f32 %v21587_v60, %v13808_v9  ;;  %v22140_v29 = vpop.f32.mrf.mxu1  ;;  %v14989_v43 = vmul.f32 -1.442695, %v22126_v41  ;;  %vm13169_vm12 = vcmp.eq.s32.totalorder %v13041_v59, 1 }
 0x5d1   :  { %v15167_v61 = vpop.eup %15166  ;;  %15176 = vrcp.f32 %v14130_v13  ;;  %v14131_v18 = vadd.f32 1.0, %v15165_v6  ;;  %v12403_v10 = vpop.f32.mrf.mxu0  ;;  %v14988_v51 = vmul.f32 -1.442695, %v22132_v52  ;;  %vm13105_vm14 = vcmp.eq.s32.totalorder %v13041_v59, 0 }
 0x5d2   :  { %v15169_v23 = vpop.eup %15168  ;;  %15178 = vrcp.f32 %v14132_v14  ;;  %v14133_v37 = vadd.f32 1.0, %v15167_v61  ;;  %v12456_v38 = vpop.f32.mrf.mxu1  ;;  %v14990_v11 = vmul.f32 -1.442695, %v22138_v45  ;;  %vm13234_vm1 = vcmp.eq.s32.totalorder %v13042_v1, 2 }
 0x5d3   :  { %v15171_v24 = vpop.eup %15170  ;;  %v14320_v0 = vsel %vm13905_vm4, %v15169_v23, %v22008_v32  ;;  %15180 = vrcp.f32 %v14131_v18  ;;  %v12405_v33 = vpop.f32.mrf.mxu0  ;;  %v23251_v32 = vld [vmem:[#allocation37_spill] sm:$0xff]  ;;  %vm13170_vm11 = vcmp.eq.s32.totalorder %v13042_v1, 1  ;;  %vm13236_vm2 = vcmp.eq.s32.totalorder %v13044_v63, 2 }
 0x5d4   :  { %v15173_v17 = vpop.eup %15172  ;;  %14384 = vst [vmem:[%s22555_s9 + $0xe0] sm:$0xff] %v14320_v0  ;;  %v14322_v31 = vsel %vm13905_vm4, %v15171_v24, %v22014_v57  ;;  %15182 = vrcp.f32 %v14133_v37  ;;  %v12458_v16 = vpop.f32.mrf.mxu1  ;;  %v13043_v30 = vand.u32 3, %v23251_v32  ;;  %vm13106_vm6 = vcmp.eq.s32.totalorder %v13042_v1, 0  ;;  %v23255_v1 = vld [vmem:[#allocation54_spill] sm:$0xff] }
 0x5d5   :  { %v15175_v47 = vpop.eup %15174  ;;  %14386 = vst [vmem:[%s22555_s9 + $0xf0] sm:$0xff] %v14322_v31  ;;  %v14321_v8 = vsel %vm13905_vm4, %v15173_v17, %v22020_v54  ;;  %15184 = vpow2.f32 %v14987_v62  ;;  %v12409_v20 = vpop.f32.mrf.mxu0  ;;  %vm13172_vm7 = vcmp.eq.s32.totalorder %v13044_v63, 1  ;;  %vm13108_vm3 = vcmp.eq.s32.totalorder %v13044_v63, 0  ;;  %v23256_v63 = vld [vmem:[#allocation56_spill] sm:$0xff] }
 0x5d6   :  { %14385 = vst [vmem:[%s22555_s9 + $0xe8] sm:$0xff] %v14321_v8  ;;  %v14323_v57 = vsel %vm13905_vm4, %v15175_v47, %v22026_v35  ;;  %15186 = vpow2.f32 %v14989_v43  ;;  %v12462_v15 = vpop.f32.mrf.mxu1  ;;  %vm13235_vm8 = vcmp.eq.s32.totalorder %v13043_v30, 2  ;;  %vm13171_vm15 = vcmp.eq.s32.totalorder %v13043_v30, 1 }
 0x5d7   :  { %14387 = vst [vmem:[%s22555_s9 + $0xf8] sm:$0xff] %v14323_v57  ;;  %15188 = vpow2.f32 %v14988_v51  ;;  %v12411_v54 = vpop.f32.mrf.mxu0  ;;  %vm13107_vm5 = vcmp.eq.s32.totalorder %v13043_v30, 0  ;;  %v23254_v30 = vld [vmem:[#allocation55_spill] sm:$0xff] }
 0x5d8   :  { %15190 = vpow2.f32 %v14990_v11  ;;  %v12464_v25 = vpop.f32.mrf.mxu1  ;;  %v13045_v47 = vand.u32 3, %v23254_v30 }
 0x5d9   :  { %v12413_v58 = vpop.f32.mrf.mxu0 }
 0x5da   :  { %v13425_v35 = vsel %vm13233_vm9, %v12409_v20, %v12413_v58  ;;  %v12466_v53 = vpop.f32.mrf.mxu1  ;;  %vm13237_vm10 = vcmp.eq.s32.totalorder %v13045_v47, 2  ;;  %vm13173_vm13 = vcmp.eq.s32.totalorder %v13045_v47, 1  ;;  %vm13109_vm9 = vcmp.eq.s32.totalorder %v13045_v47, 0 }
 0x5db   :  { %v13617_v28 = vsel %vm13169_vm12, %v12403_v10, %v13425_v35  ;;  %v13427_v44 = vsel %vm13235_vm8, %v12462_v15, %v12466_v53  ;;  %v12415_v36 = vpop.f32.mrf.mxu0  ;;  %v23257_v35 = vld [vmem:[#allocation57_spill] sm:$0xff] }
 0x5dc   :  { %v13809_v7 = vsel %vm13105_vm14, %v22123_v26, %v13617_v28  ;;  %v13619_v48 = vsel %vm13171_vm15, %v12456_v38, %v13427_v44  ;;  %v13426_v39 = vsel %vm13234_vm1, %v12411_v54, %v12415_v36  ;;  %v12468_v42 = vpop.f32.mrf.mxu1  ;;  %v13046_v54 = vand.u32 3, %v23256_v63 }
 0x5dd   :  { %v22176_v19 = vadd.f32 %v21587_v60, %v13809_v7  ;;  %v13811_v22 = vsel %vm13107_vm5, %v22129_v50, %v13619_v48  ;;  %v13618_v13 = vsel %vm13170_vm11, %v12405_v33, %v13426_v39  ;;  %v13428_v9 = vsel %vm13236_vm2, %v12464_v25, %v12468_v42  ;;  %v22179_v6 = vpop.f32.mrf.mxu0 }
 0x5de   :  { %v15177_v14 = vpop.eup %15176  ;;  %v22182_v61 = vadd.f32 %v21587_v60, %v13811_v22  ;;  %v13810_v18 = vsel %vm13106_vm6, %v22135_v3, %v13618_v13  ;;  %v13620_v26 = vsel %vm13172_vm7, %v12458_v16, %v13428_v9  ;;  %v22185_v62 = vpop.f32.mrf.mxu1  ;;  %v13048_v53 = vand.u32 3, %v23257_v35 }
 0x5df   :  { %v15179_v10 = vpop.eup %15178  ;;  %v14324_v23 = vsel %vm13905_vm4, %v15177_v14, %v22064_v5  ;;  %v14991_v50 = vmul.f32 -1.442695, %v22176_v19  ;;  %v22192_v37 = vadd.f32 %v21587_v60, %v13810_v18  ;;  %v13812_v43 = vsel %vm13108_vm3, %v22140_v29, %v13620_v26  ;;  %v22195_v38 = vpop.f32.mrf.mxu0 }
 0x5e0   :  { %v15181_v24 = vpop.eup %15180  ;;  %14388 = vst [vmem:[%s22555_s9 + $0x100] sm:$0xff] %v14324_v23  ;;  %v14326_v3 = vsel %vm13905_vm4, %v15179_v10, %v22070_v49  ;;  %v14993_v5 = vmul.f32 -1.442695, %v22182_v61  ;;  %v22205_v0 = vadd.f32 %v21587_v60, %v13812_v43  ;;  %v22207_v51 = vpop.f32.mrf.mxu1  ;;  %vm13238_vm8 = vcmp.eq.s32.totalorder %v13046_v54, 2 }
 0x5e1   :  { %v15183_v33 = vpop.eup %15182  ;;  %14390 = vst [vmem:[%s22555_s9 + $0x110] sm:$0xff] %v14326_v3  ;;  %v14325_v29 = vsel %vm13905_vm4, %v15181_v24, %v22080_v40  ;;  %15192 = vpow2.f32 %v14991_v50  ;;  %v14992_v34 = vmul.f32 -1.442695, %v22192_v37  ;;  %v12509_v49 = vpop.f32.mrf.mxu0  ;;  %vm13174_vm15 = vcmp.eq.s32.totalorder %v13046_v54, 1 }
 0x5e2   :  { %v15185_v59 = vpop.eup %15184  ;;  %14389 = vst [vmem:[%s22555_s9 + $0x108] sm:$0xff] %v14325_v29  ;;  %v14327_v17 = vsel %vm13905_vm4, %v15183_v33, %v22093_v46  ;;  %15194 = vpow2.f32 %v14993_v5  ;;  %v14994_v31 = vmul.f32 -1.442695, %v22205_v0  ;;  %v12562_v11 = vpop.f32.mrf.mxu1  ;;  %v13047_v46 = vand.u32 3, %v23255_v1 }
 0x5e3   :  { %v15187_v16 = vpop.eup %15186  ;;  %14391 = vst [vmem:[%s22555_s9 + $0x118] sm:$0xff] %v14327_v17  ;;  %v14134_v40 = vadd.f32 1.0, %v15185_v59  ;;  %15196 = vpow2.f32 %v14992_v34  ;;  %v12511_v32 = vpop.f32.mrf.mxu0  ;;  %vm13240_vm1 = vcmp.eq.s32.totalorder %v13048_v53, 2  ;;  %vm13110_vm5 = vcmp.eq.s32.totalorder %v13046_v54, 0 }
 0x5e4   :  { %v15189_v8 = vpop.eup %15188  ;;  %v14136_v20 = vadd.f32 1.0, %v15187_v16  ;;  %15198 = vpow2.f32 %v14994_v31  ;;  %v12564_v4 = vpop.f32.mrf.mxu1  ;;  %vm13239_vm0 = vcmp.eq.s32.totalorder %v13047_v46, 2  ;;  %vm13175_vm12 = vcmp.eq.s32.totalorder %v13047_v46, 1 }
 0x5e5   :  { %v15191_v57 = vpop.eup %15190  ;;  %15200 = vrcp.f32 %v14134_v40  ;;  %v14135_v15 = vadd.f32 1.0, %v15189_v8  ;;  %v12515_v21 = vpop.f32.mrf.mxu0  ;;  %vm13111_vm14 = vcmp.eq.s32.totalorder %v13047_v46, 0  ;;  %vm13176_vm11 = vcmp.eq.s32.totalorder %v13048_v53, 1 }
 0x5e6   :  { %15202 = vrcp.f32 %v14136_v20  ;;  %v14137_v25 = vadd.f32 1.0, %v15191_v57  ;;  %v12568_v58 = vpop.f32.mrf.mxu1  ;;  %vm13112_vm2 = vcmp.eq.s32.totalorder %v13048_v53, 0 }
 0x5e7   :  { %15204 = vrcp.f32 %v14135_v15  ;;  %v12517_v28 = vpop.f32.mrf.mxu0  ;;  %v23258_v15 = vld [vmem:[#allocation64_spill] sm:$0xff] }
 0x5e8   :  { %15206 = vrcp.f32 %v14137_v25  ;;  %v12570_v44 = vpop.f32.mrf.mxu1 }
 0x5e9   :  { %v12519_v36 = vpop.f32.mrf.mxu0 }
 0x5ea   :  { %v13429_v7 = vsel %vm13237_vm10, %v12515_v21, %v12519_v36  ;;  %v12572_v48 = vpop.f32.mrf.mxu1  ;;  %v13049_v21 = vand.u32 3, %v23258_v15  ;;  %v23260_v36 = vld [vmem:[#allocation66_spill] sm:$0xff] }
 0x5eb   :  { %v13621_v39 = vsel %vm13173_vm13, %v12509_v49, %v13429_v7  ;;  %v13431_v42 = vsel %vm13239_vm0, %v12568_v58, %v12572_v48  ;;  %v12521_v22 = vpop.f32.mrf.mxu0  ;;  %v13050_v7 = vand.u32 3, %v23260_v36 }
 0x5ec   :  { %v13813_v13 = vsel %vm13109_vm9, %v22179_v6, %v13621_v39  ;;  %v13623_v9 = vsel %vm13175_vm12, %v12562_v11, %v13431_v42  ;;  %v13430_v14 = vsel %vm13238_vm8, %v12517_v28, %v12521_v22  ;;  %v12574_v18 = vpop.f32.mrf.mxu1  ;;  %v23261_v39 = vld [vmem:[#allocation69_spill] sm:$0xff]  ;;  %vm13241_vm6 = vcmp.eq.s32.totalorder %v13049_v21, 2 }
 0x5ed   :  { %v22232_v26 = vadd.f32 %v21587_v60, %v13813_v13  ;;  %v13815_v10 = vsel %vm13111_vm14, %v22185_v62, %v13623_v9  ;;  %v13622_v23 = vsel %vm13174_vm15, %v12511_v32, %v13430_v14  ;;  %v13432_v50 = vsel %vm13240_vm1, %v12570_v44, %v12574_v18  ;;  %v22235_v43 = vpop.f32.mrf.mxu0 }
 0x5ee   :  { %v15193_v24 = vpop.eup %15192  ;;  %v22238_v3 = vadd.f32 %v21587_v60, %v13815_v10  ;;  %v13814_v5 = vsel %vm13110_vm5, %v22195_v38, %v13622_v23  ;;  %v13624_v6 = vsel %vm13176_vm11, %v12564_v4, %v13432_v50  ;;  %v22241_v33 = vpop.f32.mrf.mxu1  ;;  %v13052_v42 = vand.u32 3, %v23261_v39  ;;  %v23263_v39 = vld [vmem:[#allocation74_spill] sm:$0xff] }
 0x5ef   :  { %v15195_v29 = vpop.eup %15194  ;;  %v14138_v34 = vadd.f32 1.0, %v15193_v24  ;;  %v22244_v49 = vadd.f32 %v21587_v60, %v13814_v5  ;;  %v13816_v62 = vsel %vm13112_vm2, %v22207_v51, %v13624_v6  ;;  %v22247_v59 = vpop.f32.mrf.mxu0  ;;  %v14995_v32 = vmul.f32 -1.442695, %v22232_v26 }
 0x5f0   :  { %v15197_v17 = vpop.eup %15196  ;;  %v14140_v31 = vadd.f32 1.0, %v15195_v29  ;;  %v22250_v11 = vadd.f32 %v21587_v60, %v13816_v62  ;;  %v22252_v16 = vpop.f32.mrf.mxu1  ;;  %v14997_v51 = vmul.f32 -1.442695, %v22238_v3  ;;  %vm13177_vm7 = vcmp.eq.s32.totalorder %v13049_v21, 1 }
 0x5f1   :  { %v15199_v38 = vpop.eup %15198  ;;  %15208 = vrcp.f32 %v14138_v34  ;;  %v14139_v40 = vadd.f32 1.0, %v15197_v17  ;;  %v12615_v30 = vpop.f32.mrf.mxu0  ;;  %v14996_v46 = vmul.f32 -1.442695, %v22244_v49  ;;  %vm13113_vm10 = vcmp.eq.s32.totalorder %v13049_v21, 0 }
 0x5f2   :  { %v15201_v47 = vpop.eup %15200  ;;  %15210 = vrcp.f32 %v14140_v31  ;;  %v14141_v8 = vadd.f32 1.0, %v15199_v38  ;;  %v12668_v20 = vpop.f32.mrf.mxu1  ;;  %v14998_v25 = vmul.f32 -1.442695, %v22250_v11  ;;  %vm13242_vm0 = vcmp.eq.s32.totalorder %v13050_v7, 2 }
 0x5f3   :  { %v15203_v4 = vpop.eup %15202  ;;  %v14328_v1 = vsel %vm13905_vm4, %v15201_v47, %v22120_v56  ;;  %15212 = vrcp.f32 %v14139_v40  ;;  %v12617_v57 = vpop.f32.mrf.mxu0  ;;  %v23259_v56 = vld [vmem:[#allocation67_spill] sm:$0xff]  ;;  %vm13178_vm12 = vcmp.eq.s32.totalorder %v13050_v7, 1  ;;  %vm13244_vm8 = vcmp.eq.s32.totalorder %v13052_v42, 2 }
 0x5f4   :  { %v15205_v63 = vpop.eup %15204  ;;  %14392 = vst [vmem:[%s22555_s9 + $0x120] sm:$0xff] %v14328_v1  ;;  %v14330_v54 = vsel %vm13905_vm4, %v15203_v4, %v22126_v41  ;;  %15214 = vrcp.f32 %v14141_v8  ;;  %v12670_v58 = vpop.f32.mrf.mxu1  ;;  %v13051_v35 = vand.u32 3, %v23259_v56  ;;  %vm13114_vm14 = vcmp.eq.s32.totalorder %v13050_v7, 0 }
 0x5f5   :  { %v15207_v53 = vpop.eup %15206  ;;  %14394 = vst [vmem:[%s22555_s9 + $0x130] sm:$0xff] %v14330_v54  ;;  %v14329_v28 = vsel %vm13905_vm4, %v15205_v63, %v22132_v52  ;;  %15216 = vpow2.f32 %v14995_v32  ;;  %v12621_v44 = vpop.f32.mrf.mxu0  ;;  %vm13180_vm15 = vcmp.eq.s32.totalorder %v13052_v42, 1  ;;  %vm13116_vm1 = vcmp.eq.s32.totalorder %v13052_v42, 0 }
 0x5f6   :  { %14393 = vst [vmem:[%s22555_s9 + $0x128] sm:$0xff] %v14329_v28  ;;  %v14331_v41 = vsel %vm13905_vm4, %v15207_v53, %v22138_v45  ;;  %15218 = vpow2.f32 %v14997_v51  ;;  %v12674_v48 = vpop.f32.mrf.mxu1  ;;  %vm13243_vm3 = vcmp.eq.s32.totalorder %v13051_v35, 2  ;;  %vm13179_vm13 = vcmp.eq.s32.totalorder %v13051_v35, 1 }
 0x5f7   :  { %14395 = vst [vmem:[%s22555_s9 + $0x138] sm:$0xff] %v14331_v41  ;;  %15220 = vpow2.f32 %v14996_v46  ;;  %v12623_v52 = vpop.f32.mrf.mxu0  ;;  %vm13115_vm9 = vcmp.eq.s32.totalorder %v13051_v35, 0  ;;  %v23262_v35 = vld [vmem:[#allocation68_spill] sm:$0xff]  ;;  %v13054_v42 = vand.u32 3, %v23263_v39 }
 0x5f8   :  { %15222 = vpow2.f32 %v14998_v25  ;;  %v12676_v22 = vpop.f32.mrf.mxu1  ;;  %v13053_v53 = vand.u32 3, %v23262_v35 }
 0x5f9   :  { %v12625_v13 = vpop.f32.mrf.mxu0 }
 0x5fa   :  { %v13433_v45 = vsel %vm13241_vm6, %v12621_v44, %v12625_v13  ;;  %v12678_v9 = vpop.f32.mrf.mxu1  ;;  %v23264_v13 = vld [vmem:[#allocation77_spill] sm:$0xff]  ;;  %vm13245_vm5 = vcmp.eq.s32.totalorder %v13053_v53, 2  ;;  %vm13181_vm11 = vcmp.eq.s32.totalorder %v13053_v53, 1  ;;  %vm13117_vm6 = vcmp.eq.s32.totalorder %v13053_v53, 0 }
 0x5fb   :  { %v13625_v14 = vsel %vm13177_vm7, %v12615_v30, %v13433_v45  ;;  %v13435_v18 = vsel %vm13243_vm3, %v12674_v48, %v12678_v9  ;;  %v12627_v10 = vpop.f32.mrf.mxu0  ;;  %v13056_v45 = vand.u32 3, %v23264_v13  ;;  %vm13246_vm3 = vcmp.eq.s32.totalorder %v13054_v42, 2 }
 0x5fc   :  { %v13817_v23 = vsel %vm13113_vm10, %v22235_v43, %v13625_v14  ;;  %v13627_v50 = vsel %vm13179_vm13, %v12668_v20, %v13435_v18  ;;  %v13434_v24 = vsel %vm13242_vm0, %v12623_v52, %v12627_v10  ;;  %v12680_v5 = vpop.f32.mrf.mxu1  ;;  %vm13182_vm13 = vcmp.eq.s32.totalorder %v13054_v42, 1 }
 0x5fd   :  { %v22288_v6 = vadd.f32 %v21587_v60, %v13817_v23  ;;  %v13819_v29 = vsel %vm13115_vm9, %v22241_v33, %v13627_v50  ;;  %v13626_v34 = vsel %vm13178_vm12, %v12617_v57, %v13434_v24  ;;  %v13436_v62 = vsel %vm13244_vm8, %v12676_v22, %v12680_v5  ;;  %v22291_v17 = vpop.f32.mrf.mxu0 }
 0x5fe   :  { %v15209_v31 = vpop.eup %15208  ;;  %v22294_v38 = vadd.f32 %v21587_v60, %v13819_v29  ;;  %v13818_v40 = vsel %vm13114_vm14, %v22247_v59, %v13626_v34  ;;  %v13628_v43 = vsel %vm13180_vm15, %v12670_v58, %v13436_v62  ;;  %v22297_v32 = vpop.f32.mrf.mxu1  ;;  %vm13248_vm0 = vcmp.eq.s32.totalorder %v13056_v45, 2 }
 0x5ff   :  { %v15211_v30 = vpop.eup %15210  ;;  %v14332_v47 = vsel %vm13905_vm4, %v15209_v31, %v22176_v19  ;;  %v14999_v33 = vmul.f32 -1.442695, %v22288_v6  ;;  %v22304_v8 = vadd.f32 %v21587_v60, %v13818_v40  ;;  %v13820_v51 = vsel %vm13116_vm1, %v22252_v16, %v13628_v43  ;;  %v22307_v20 = vpop.f32.mrf.mxu0 }
 0x600   :  { %v15213_v4 = vpop.eup %15212  ;;  %14396 = vst [vmem:[%s22555_s9 + $0x140] sm:$0xff] %v14332_v47  ;;  %v14334_v59 = vsel %vm13905_vm4, %v15211_v30, %v22182_v61  ;;  %v15001_v19 = vmul.f32 -1.442695, %v22294_v38  ;;  %v22317_v1 = vadd.f32 %v21587_v60, %v13820_v51  ;;  %v22319_v46 = vpop.f32.mrf.mxu1  ;;  %vm13118_vm9 = vcmp.eq.s32.totalorder %v13054_v42, 0 }
 0x601   :  { %v15215_v57 = vpop.eup %15214  ;;  %14398 = vst [vmem:[%s22555_s9 + $0x150] sm:$0xff] %v14334_v59  ;;  %v14333_v16 = vsel %vm13905_vm4, %v15213_v4, %v22192_v37  ;;  %15224 = vpow2.f32 %v14999_v33  ;;  %v15000_v15 = vmul.f32 -1.442695, %v22304_v8  ;;  %v12721_v61 = vpop.f32.mrf.mxu0  ;;  %vm13184_vm12 = vcmp.eq.s32.totalorder %v13056_v45, 1 }
 0x602   :  { %v15217_v21 = vpop.eup %15216  ;;  %14397 = vst [vmem:[%s22555_s9 + $0x148] sm:$0xff] %v14333_v16  ;;  %v14335_v63 = vsel %vm13905_vm4, %v15215_v57, %v22205_v0  ;;  %15226 = vpow2.f32 %v15001_v19  ;;  %v15002_v54 = vmul.f32 -1.442695, %v22317_v1  ;;  %v12774_v25 = vpop.f32.mrf.mxu1  ;;  %v13055_v0 = vand.u32 3, %v23188_v27 }
 0x603   :  { %v15219_v58 = vpop.eup %15218  ;;  %14399 = vst [vmem:[%s22555_s9 + $0x158] sm:$0xff] %v14335_v63  ;;  %v14142_v37 = vadd.f32 1.0, %v15217_v21  ;;  %15228 = vpow2.f32 %v15000_v15  ;;  %v12723_v56 = vpop.f32.mrf.mxu0  ;;  %vm13120_vm8 = vcmp.eq.s32.totalorder %v13056_v45, 0 }
 0x604   :  { %v15221_v28 = vpop.eup %15220  ;;  %v14144_v44 = vadd.f32 1.0, %v15219_v58  ;;  %15230 = vpow2.f32 %v15002_v54  ;;  %v12776_v36 = vpop.f32.mrf.mxu1  ;;  %vm13247_vm2 = vcmp.eq.s32.totalorder %v13055_v0, 2  ;;  %vm13183_vm7 = vcmp.eq.s32.totalorder %v13055_v0, 1 }
 0x605   :  { %v15223_v7 = vpop.eup %15222  ;;  %15232 = vrcp.f32 %v14142_v37  ;;  %v14143_v41 = vadd.f32 1.0, %v15221_v28  ;;  %v12727_v48 = vpop.f32.mrf.mxu0  ;;  %vm13119_vm10 = vcmp.eq.s32.totalorder %v13055_v0, 0 }
 0x606   :  { %15234 = vrcp.f32 %v14144_v44  ;;  %v14145_v52 = vadd.f32 1.0, %v15223_v7  ;;  %v12780_v22 = vpop.f32.mrf.mxu1  ;;  %v23265_v7 = vld [vmem:[#allocation76_spill] sm:$0xff] }
 0x607   :  { %15236 = vrcp.f32 %v14143_v41  ;;  %v12729_v9 = vpop.f32.mrf.mxu0  ;;  %v13057_v41 = vand.u32 3, %v23265_v7 }
 0x608   :  { %15238 = vrcp.f32 %v14145_v52  ;;  %v12782_v14 = vpop.f32.mrf.mxu1 }
 0x609   :  { %v12731_v18 = vpop.f32.mrf.mxu0  ;;  %vm13249_vm14 = vcmp.eq.s32.totalorder %v13057_v41, 2  ;;  %vm13185_vm15 = vcmp.eq.s32.totalorder %v13057_v41, 1 }
 0x60a   :  { %v13437_v27 = vsel %vm13245_vm5, %v12727_v48, %v12731_v18  ;;  %v12784_v10 = vpop.f32.mrf.mxu1  ;;  %v23267_v18 = vld [vmem:[#allocation81_spill] sm:$0xff]  ;;  %vm13121_vm5 = vcmp.eq.s32.totalorder %v13057_v41, 0 }
 0x60b   :  { %v13629_v23 = vsel %vm13181_vm11, %v12721_v61, %v13437_v27  ;;  %v13439_v50 = vsel %vm13247_vm2, %v12780_v22, %v12784_v10  ;;  %v12733_v24 = vpop.f32.mrf.mxu0  ;;  %v13060_v27 = vand.u32 3, %v23267_v18 }
 0x60c   :  { %v13821_v5 = vsel %vm13117_vm6, %v22291_v17, %v13629_v23  ;;  %v13631_v29 = vsel %vm13183_vm7, %v12774_v25, %v13439_v50  ;;  %v13438_v34 = vsel %vm13246_vm3, %v12729_v9, %v12733_v24  ;;  %v12786_v62 = vpop.f32.mrf.mxu1  ;;  %v23266_v9 = vld [vmem:[#allocation78_spill] sm:$0xff] }
 0x60d   :  { %v22344_v31 = vadd.f32 %v21587_v60, %v13821_v5  ;;  %v13823_v40 = vsel %vm13119_vm10, %v22297_v32, %v13631_v29  ;;  %v13630_v43 = vsel %vm13182_vm13, %v12723_v56, %v13438_v34  ;;  %v13440_v30 = vsel %vm13248_vm0, %v12782_v14, %v12786_v62  ;;  %v22347_v47 = vpop.f32.mrf.mxu0 }
 0x60e   :  { %v15225_v33 = vpop.eup %15224  ;;  %v22350_v51 = vadd.f32 %v21587_v60, %v13823_v40  ;;  %v13822_v4 = vsel %vm13118_vm9, %v22307_v20, %v13630_v43  ;;  %v13632_v17 = vsel %vm13184_vm12, %v12776_v36, %v13440_v30  ;;  %v22353_v59 = vpop.f32.mrf.mxu1  ;;  %v13058_v14 = vand.u32 3, %v23266_v9 }
 0x60f   :  { %v15227_v19 = vpop.eup %15226  ;;  %v14146_v57 = vadd.f32 1.0, %v15225_v33  ;;  %v22356_v16 = vadd.f32 %v21587_v60, %v13822_v4  ;;  %v13824_v32 = vsel %vm13120_vm8, %v22319_v46, %v13632_v17  ;;  %v22359_v15 = vpop.f32.mrf.mxu0  ;;  %v15003_v58 = vmul.f32 -1.442695, %v22344_v31 }
 0x610   :  { %v15229_v61 = vpop.eup %15228  ;;  %v14148_v21 = vadd.f32 1.0, %v15227_v19  ;;  %v22362_v63 = vadd.f32 %v21587_v60, %v13824_v32  ;;  %v22364_v54 = vpop.f32.mrf.mxu1  ;;  %v15005_v46 = vmul.f32 -1.442695, %v22350_v51  ;;  %vm13250_vm2 = vcmp.eq.s32.totalorder %v13058_v14, 2 }
 0x611   :  { %v15231_v20 = vpop.eup %15230  ;;  %15240 = vrcp.f32 %v14146_v57  ;;  %v14147_v25 = vadd.f32 1.0, %v15229_v61  ;;  %v12827_v37 = vpop.f32.mrf.mxu0  ;;  %v15004_v36 = vmul.f32 -1.442695, %v22356_v16  ;;  %vm13186_vm7 = vcmp.eq.s32.totalorder %v13058_v14, 1 }
 0x612   :  { %v15233_v56 = vpop.eup %15232  ;;  %15242 = vrcp.f32 %v14148_v21  ;;  %v14149_v35 = vadd.f32 1.0, %v15231_v20  ;;  %v12880_v53 = vpop.f32.mrf.mxu1  ;;  %v15006_v42 = vmul.f32 -1.442695, %v22362_v63  ;;  %vm13252_vm3 = vcmp.eq.s32.totalorder %v13060_v27, 2 }
 0x613   :  { %v15235_v28 = vpop.eup %15234  ;;  %v14336_v44 = vsel %vm13905_vm4, %v15233_v56, %v22232_v26  ;;  %15244 = vrcp.f32 %v14147_v25  ;;  %v12829_v0 = vpop.f32.mrf.mxu0  ;;  %v13059_v26 = vand.u32 3, %v23087_v55  ;;  %vm13122_vm10 = vcmp.eq.s32.totalorder %v13058_v14, 0 }
 0x614   :  { %v15237_v48 = vpop.eup %15236  ;;  %14400 = vst [vmem:[%s22555_s9 + $0x160] sm:$0xff] %v14336_v44  ;;  %v14338_v39 = vsel %vm13905_vm4, %v15235_v28, %v22238_v3  ;;  %15246 = vrcp.f32 %v14149_v35  ;;  %v12882_v52 = vpop.f32.mrf.mxu1  ;;  %vm13188_vm13 = vcmp.eq.s32.totalorder %v13060_v27, 1  ;;  %vm13124_vm0 = vcmp.eq.s32.totalorder %v13060_v27, 0 }
 0x615   :  { %v15239_v22 = vpop.eup %15238  ;;  %14402 = vst [vmem:[%s22555_s9 + $0x170] sm:$0xff] %v14338_v39  ;;  %v14337_v13 = vsel %vm13905_vm4, %v15237_v48, %v22244_v49  ;;  %15248 = vpow2.f32 %v15003_v58  ;;  %v12833_v45 = vpop.f32.mrf.mxu0  ;;  %vm13251_vm1 = vcmp.eq.s32.totalorder %v13059_v26, 2  ;;  %vm13187_vm11 = vcmp.eq.s32.totalorder %v13059_v26, 1 }
 0x616   :  { %14401 = vst [vmem:[%s22555_s9 + $0x168] sm:$0xff] %v14337_v13  ;;  %v14339_v55 = vsel %vm13905_vm4, %v15239_v22, %v22250_v11  ;;  %15250 = vpow2.f32 %v15005_v46  ;;  %v12886_v3 = vpop.f32.mrf.mxu1  ;;  %vm13123_vm6 = vcmp.eq.s32.totalorder %v13059_v26, 0  ;;  %v23268_v13 = vld [vmem:[#allocation90_spill] sm:$0xff] }
 0x617   :  { %14403 = vst [vmem:[%s22555_s9 + $0x178] sm:$0xff] %v14339_v55  ;;  %15252 = vpow2.f32 %v15004_v36  ;;  %v12835_v49 = vpop.f32.mrf.mxu0  ;;  %v23269_v55 = vld [vmem:[#allocation86_spill] sm:$0xff] }
 0x618   :  { %15254 = vpow2.f32 %v15006_v42  ;;  %v12888_v10 = vpop.f32.mrf.mxu1  ;;  %v13061_v42 = vand.u32 3, %v23200_v2 }
 0x619   :  { %v12837_v23 = vpop.f32.mrf.mxu0 }
 0x61a   :  { %v13441_v11 = vsel %vm13249_vm14, %v12833_v45, %v12837_v23  ;;  %v12890_v50 = vpop.f32.mrf.mxu1  ;;  %vm13253_vm9 = vcmp.eq.s32.totalorder %v13061_v42, 2  ;;  %vm13189_vm12 = vcmp.eq.s32.totalorder %v13061_v42, 1  ;;  %vm13125_vm14 = vcmp.eq.s32.totalorder %v13061_v42, 0 }
 0x61b   :  { %v13633_v24 = vsel %vm13185_vm15, %v12827_v37, %v13441_v11  ;;  %v13443_v5 = vsel %vm13251_vm1, %v12886_v3, %v12890_v50  ;;  %v12839_v29 = vpop.f32.mrf.mxu0  ;;  %v13062_v3 = vand.u32 3, %v23269_v55 }
 0x61c   :  { %v13825_v34 = vsel %vm13121_vm5, %v22347_v47, %v13633_v24  ;;  %v13635_v62 = vsel %vm13187_vm11, %v12880_v53, %v13443_v5  ;;  %v13442_v40 = vsel %vm13250_vm2, %v12835_v49, %v12839_v29  ;;  %v12892_v43 = vpop.f32.mrf.mxu1  ;;  %v23270_v49 = vld [vmem:[#allocation88_spill] sm:$0xff] }
 0x61d   :  { %v22400_v30 = vadd.f32 %v21587_v60, %v13825_v34  ;;  %v13827_v33 = vsel %vm13123_vm6, %v22353_v59, %v13635_v62  ;;  %v13634_v4 = vsel %vm13186_vm7, %v12829_v0, %v13442_v40  ;;  %v13444_v17 = vsel %vm13252_vm3, %v12888_v10, %v12892_v43  ;;  %v22403_v19 = vpop.f32.mrf.mxu0 }
 0x61e   :  { %v15241_v57 = vpop.eup %15240  ;;  %v22406_v32 = vadd.f32 %v21587_v60, %v13827_v33  ;;  %v13826_v61 = vsel %vm13122_vm10, %v22359_v15, %v13634_v4  ;;  %v13636_v47 = vsel %vm13188_vm13, %v12882_v52, %v13444_v17  ;;  %v22409_v21 = vpop.f32.mrf.mxu1  ;;  %v13064_v10 = vand.u32 3, %v23270_v49 }
 0x61f   :  { %v15243_v20 = vpop.eup %15242  ;;  %v14340_v25 = vsel %vm13905_vm4, %v15241_v57, %v22288_v6  ;;  %v15007_v59 = vmul.f32 -1.442695, %v22400_v30  ;;  %v22416_v58 = vadd.f32 %v21587_v60, %v13826_v61  ;;  %v13828_v37 = vsel %vm13124_vm0, %v22364_v54, %v13636_v47  ;;  %v22419_v56 = vpop.f32.mrf.mxu0 }
 0x620   :  { %v15245_v35 = vpop.eup %15244  ;;  %14404 = vst [vmem:[%s22555_s9 + $0x180] sm:$0xff] %v14340_v25  ;;  %v14342_v15 = vsel %vm13905_vm4, %v15243_v20, %v22294_v38  ;;  %v15009_v6 = vmul.f32 -1.442695, %v22406_v32  ;;  %v22429_v46 = vadd.f32 %v21587_v60, %v13828_v37  ;;  %v22431_v53 = vpop.f32.mrf.mxu1  ;;  %vm13254_vm1 = vcmp.eq.s32.totalorder %v13062_v3, 2 }
 0x621   :  { %v15247_v28 = vpop.eup %15246  ;;  %14406 = vst [vmem:[%s22555_s9 + $0x190] sm:$0xff] %v14342_v15  ;;  %v14341_v54 = vsel %vm13905_vm4, %v15245_v35, %v22304_v8  ;;  %15256 = vpow2.f32 %v15007_v59  ;;  %v15008_v44 = vmul.f32 -1.442695, %v22416_v58  ;;  %v12933_v38 = vpop.f32.mrf.mxu0  ;;  %vm13190_vm11 = vcmp.eq.s32.totalorder %v13062_v3, 1 }
 0x622   :  { %v15249_v36 = vpop.eup %15248  ;;  %14405 = vst [vmem:[%s22555_s9 + $0x188] sm:$0xff] %v14341_v54  ;;  %v14343_v0 = vsel %vm13905_vm4, %v15247_v28, %v22317_v1  ;;  %15258 = vpow2.f32 %v15009_v6  ;;  %v15010_v7 = vmul.f32 -1.442695, %v22429_v46  ;;  %v12986_v41 = vpop.f32.mrf.mxu1  ;;  %v13063_v1 = vand.u32 3, %v23268_v13 }
 0x623   :  { %v15251_v48 = vpop.eup %15250  ;;  %14407 = vst [vmem:[%s22555_s9 + $0x198] sm:$0xff] %v14343_v0  ;;  %v14150_v8 = vadd.f32 1.0, %v15249_v36  ;;  %15260 = vpow2.f32 %v15008_v44  ;;  %v12935_v39 = vpop.f32.mrf.mxu0  ;;  %vm13256_vm2 = vcmp.eq.s32.totalorder %v13064_v10, 2  ;;  %vm13126_vm6 = vcmp.eq.s32.totalorder %v13062_v3, 0 }
 0x624   :  { %v15253_v52 = vpop.eup %15252  ;;  %v14152_v26 = vadd.f32 1.0, %v15251_v48  ;;  %15262 = vpow2.f32 %v15010_v7  ;;  %v12988_v22 = vpop.f32.mrf.mxu1  ;;  %vm13255_vm8 = vcmp.eq.s32.totalorder %v13063_v1, 2  ;;  %vm13191_vm15 = vcmp.eq.s32.totalorder %v13063_v1, 1 }
 0x625   :  { %v15255_v45 = vpop.eup %15254  ;;  %15264 = vrcp.f32 %v14150_v8  ;;  %v14151_v9 = vadd.f32 1.0, %v15253_v52  ;;  %v12939_v14 = vpop.f32.mrf.mxu0  ;;  %vm13127_vm5 = vcmp.eq.s32.totalorder %v13063_v1, 0  ;;  %vm13192_vm7 = vcmp.eq.s32.totalorder %v13064_v10, 1 }
 0x626   :  { %15266 = vrcp.f32 %v14152_v26  ;;  %v14153_v18 = vadd.f32 1.0, %v15255_v45  ;;  %v12992_v27 = vpop.f32.mrf.mxu1  ;;  %vm13128_vm3 = vcmp.eq.s32.totalorder %v13064_v10, 0 }
 0x627   :  { %15268 = vrcp.f32 %v14151_v9  ;;  %v12941_v23 = vpop.f32.mrf.mxu0 }
 0x628   :  { %15270 = vrcp.f32 %v14153_v18  ;;  %v12994_v2 = vpop.f32.mrf.mxu1 }
 0x629   :  { %v12943_v11 = vpop.f32.mrf.mxu0 }
 0x62a   :  { %v13445_v50 = vsel %vm13253_vm9, %v12939_v14, %v12943_v11  ;;  %v12996_v24 = vpop.f32.mrf.mxu1 }
 0x62b   :  { %v13637_v5 = vsel %vm13189_vm12, %v12933_v38, %v13445_v50  ;;  %v13447_v29 = vsel %vm13255_vm8, %v12992_v27, %v12996_v24  ;;  %v12945_v34 = vpop.f32.mrf.mxu0 }
 0x62c   :  { %v13829_v62 = vsel %vm13125_vm14, %v22403_v19, %v13637_v5  ;;  %v13639_v40 = vsel %vm13191_vm15, %v12986_v41, %v13447_v29  ;;  %v13446_v43 = vsel %vm13254_vm1, %v12941_v23, %v12945_v34  ;;  %v12998_v33 = vpop.f32.mrf.mxu1 }
 0x62d   :  { %v22456_v4 = vadd.f32 %v21587_v60, %v13829_v62  ;;  %v13831_v17 = vsel %vm13127_vm5, %v22409_v21, %v13639_v40  ;;  %v13638_v57 = vsel %vm13190_vm11, %v12935_v39, %v13446_v43  ;;  %v13448_v61 = vsel %vm13256_vm2, %v12994_v2, %v12998_v33 }
 0x62e   :  { %v15257_v47 = vpop.eup %15256  ;;  %v22460_v20 = vadd.f32 %v21587_v60, %v13831_v17  ;;  %v13830_v25 = vsel %vm13126_vm6, %v22419_v56, %v13638_v57  ;;  %v13640_v59 = vsel %vm13192_vm7, %v12988_v22, %v13448_v61 }
 0x62f   :  { %v15259_v37 = vpop.eup %15258  ;;  %v14154_v19 = vadd.f32 1.0, %v15257_v47  ;;  %v22464_v35 = vadd.f32 %v21587_v60, %v13830_v25  ;;  %v13832_v15 = vsel %vm13128_vm3, %v22431_v53, %v13640_v59  ;;  %v15011_v38 = vmul.f32 -1.442695, %v22456_v4 }
 0x630   :  { %v15261_v6 = vpop.eup %15260  ;;  %v14156_v28 = vadd.f32 1.0, %v15259_v37  ;;  %v22468_v21 = vadd.f32 %v21587_v60, %v13832_v15  ;;  %v15013_v0 = vmul.f32 -1.442695, %v22460_v20 }
 0x631   :  { %v15263_v54 = vpop.eup %15262  ;;  %15272 = vrcp.f32 %v14154_v19  ;;  %v14155_v44 = vadd.f32 1.0, %v15261_v6  ;;  %v15012_v41 = vmul.f32 -1.442695, %v22464_v35 }
 0x632   :  { %v15265_v36 = vpop.eup %15264  ;;  %15274 = vrcp.f32 %v14156_v28  ;;  %v14157_v56 = vadd.f32 1.0, %v15263_v54  ;;  %v15014_v8 = vmul.f32 -1.442695, %v22468_v21 }
 0x633   :  { %v15267_v7 = vpop.eup %15266  ;;  %v14344_v53 = vsel %vm13905_vm4, %v15265_v36, %v22344_v31  ;;  %15276 = vrcp.f32 %v14155_v44 }
 0x634   :  { %v15269_v60 = vpop.eup %15268  ;;  %14408 = vst [vmem:[%s22555_s9 + $0x1a0] sm:$0xff] %v14344_v53  ;;  %v14346_v48 = vsel %vm13905_vm4, %v15267_v7, %v22350_v51  ;;  %15278 = vrcp.f32 %v14157_v56 }
 0x635   :  { %v15271_v39 = vpop.eup %15270  ;;  %14410 = vst [vmem:[%s22555_s9 + $0x1b0] sm:$0xff] %v14346_v48  ;;  %v14345_v31 = vsel %vm13905_vm4, %v15269_v60, %v22356_v16  ;;  %15280 = vpow2.f32 %v15011_v38 }
 0x636   :  { %14409 = vst [vmem:[%s22555_s9 + $0x1a8] sm:$0xff] %v14345_v31  ;;  %v14347_v51 = vsel %vm13905_vm4, %v15271_v39, %v22362_v63  ;;  %15282 = vpow2.f32 %v15013_v0 }
 0x637   :  { %14411 = vst [vmem:[%s22555_s9 + $0x1b8] sm:$0xff] %v14347_v51  ;;  %15284 = vpow2.f32 %v15012_v41 }
 0x638   :  { %15286 = vpow2.f32 %v15014_v8 }
 0x63e   :  { %v15273_v42 = vpop.eup %15272 }
 0x63f   :  { %v15275_v52 = vpop.eup %15274  ;;  %v14348_v16 = vsel %vm13905_vm4, %v15273_v42, %v22400_v30 }
 0x640   :  { %v15277_v26 = vpop.eup %15276  ;;  %14412 = vst [vmem:[%s22555_s9 + $0x1c0] sm:$0xff] %v14348_v16  ;;  %v14350_v63 = vsel %vm13905_vm4, %v15275_v52, %v22406_v32 }
 0x641   :  { %v15279_v22 = vpop.eup %15278  ;;  %14414 = vst [vmem:[%s22555_s9 + $0x1d0] sm:$0xff] %v14350_v63  ;;  %v14349_v13 = vsel %vm13905_vm4, %v15277_v26, %v22416_v58 }
 0x642   :  { %v15281_v1 = vpop.eup %15280  ;;  %14413 = vst [vmem:[%s22555_s9 + $0x1c8] sm:$0xff] %v14349_v13  ;;  %v14351_v30 = vsel %vm13905_vm4, %v15279_v22, %v22429_v46 }
 0x643   :  { %v15283_v45 = vpop.eup %15282  ;;  %14415 = vst [vmem:[%s22555_s9 + $0x1d8] sm:$0xff] %v14351_v30  ;;  %v14158_v32 = vadd.f32 1.0, %v15281_v1 }
 0x644   :  { %v15285_v9 = vpop.eup %15284  ;;  %v14160_v14 = vadd.f32 1.0, %v15283_v45 }
 0x645   :  { %v15287_v55 = vpop.eup %15286  ;;  %15288 = vrcp.f32 %v14158_v32  ;;  %v14159_v58 = vadd.f32 1.0, %v15285_v9 }
 0x646   :  { %15290 = vrcp.f32 %v14160_v14  ;;  %v14161_v3 = vadd.f32 1.0, %v15287_v55 }
 0x647   :  { %15292 = vrcp.f32 %v14159_v58 }
 0x648   :  { %15294 = vrcp.f32 %v14161_v3 }
 0x652   :  { %v15289_v18 = vpop.eup %15288 }
 0x653   :  { %v15291_v27 = vpop.eup %15290  ;;  %v14352_v46 = vsel %vm13905_vm4, %v15289_v18, %v22456_v4 }
 0x654   :  { %v15293_v49 = vpop.eup %15292  ;;  %14416 = vst [vmem:[%s22555_s9 + $0x1e0] sm:$0xff] %v14352_v46  ;;  %v14354_v10 = vsel %vm13905_vm4, %v15291_v27, %v22460_v20 }
 0x655   :  { %v15295_v23 = vpop.eup %15294  ;;  %14418 = vst [vmem:[%s22555_s9 + $0x1f0] sm:$0xff] %v14354_v10  ;;  %v14353_v2 = vsel %vm13905_vm4, %v15293_v49, %v22464_v35 }
 0x656   :  { %14417 = vst [vmem:[%s22555_s9 + $0x1e8] sm:$0xff] %v14353_v2  ;;  %v14355_v11 = vsel %vm13905_vm4, %v15295_v23, %v22468_v21 }
 0x657   :  { %14419 = vst [vmem:[%s22555_s9 + $0x1f8] sm:$0xff] %v14355_v11 }
 0x658   :  { %14424 = vsyncpa [#allocation3], 1 }
 0x659   :  { %14425 = vsyncpa [#allocation5], 1 }
 0x65a   :  { %14426 = vsyncpa [#allocation8], 1 }
 0x65b   :  { %14427 = vsyncpa [#allocation11], 1 }
 0x65c   :  { %14428 = vsyncpa [#allocation14], 1 }

</bundles_post_ra>
